<compile_context>
chip_gen: v7x
topology: tpu7x:2x2x1
jax: 0.10.0
libtpu: 0.0.40
codegen_flags: <defaults>
</compile_context>

<pallas_src>
import functools
import math

import jax
import jax.numpy as jnp
from jax import lax
from jax.experimental import pallas as pl
from jax.experimental.pallas import tpu as pltpu


# ----------------------------------------------------------------------------
# Fused Pallas kernel: the full stack of residual blocks
#   per layer: x = relu(conv2(relu(conv1(x)))) + x      (causal, dilated)
# ----------------------------------------------------------------------------
def _fused_tcn_kernel(x_ref, w1_ref, b1_ref, w2_ref, b2_ref, o_ref, xpad_ref,
                      *, K, L, Cf, dilations):
    M = x_ref.shape[0]                  # M = batch_block * L (batch folded in)
    CP = xpad_ref.shape[1]              # lane-padded channel width (128)
    cdt = w1_ref.dtype                  # matmul operand dtype (bf16 or f32)
    prec = (lax.Precision.HIGHEST
            if jnp.dtype(cdt) == jnp.dtype(jnp.float32)
            else lax.Precision.DEFAULT)

    # Lane-pad the activation ONCE, inside VMEM (the HBM block is only Cf wide).
    xpad_ref[...] = jnp.zeros_like(xpad_ref)
    xpad_ref[:, :Cf] = x_ref[...].astype(jnp.float32)
    x = xpad_ref[...]                   # (M, CP) f32, resident for all layers

    # Row index within each batch element (batch folded into M).  Masks causal
    # shifts so they never read rows of the previous batch element.
    l_idx = lax.broadcasted_iota(jnp.int32, (M, 1), 0) % L

    for li, dil in enumerate(dilations):            # statically unrolled
        # Static tap schedule: taps whose shift covers the whole sequence only
        # ever multiply causal-pad zeros -> skipped.
        shifts = [(K - 1 - t) * dil for t in range(K)]
        active = [(t, s) for t, s in enumerate(shifts) if s < L]
        # Hoisted causal/batch masks, shared by conv1 and conv2 (same dilation).
        masks = {s: l_idx >= s for _, s in active if s > 0}

        def causal_conv(inp, w_ref, b_ref):
            acc = None
            for t, s in active:
                if s == 0:
                    v = inp
                else:
                    # roll + mask == zero-padded causal shift (rows that wrap
                    # around / cross a batch boundary are zeroed by the mask).
                    v = pltpu.roll(inp, shift=s, axis=0)
                    v = jnp.where(masks[s], v, 0.0)
                d = jnp.dot(v.astype(cdt), w_ref[li, t],
                            preferred_element_type=jnp.float32,
                            precision=prec)
                acc = d if acc is None else acc + d
            bias = b_ref[pl.ds(li, 1), :].astype(jnp.float32)    # (1, out)
            return jnp.maximum(acc + bias, 0.0)

        residual = x
        h = causal_conv(x, w1_ref, b1_ref)          # Cf -> Nf (lane-padded)
        # TODO(synk): nn.Dropout omitted (eval-mode identity).
        y = causal_conv(h, w2_ref, b2_ref)          # Nf -> Cf (lane-padded)
        x = y + residual

    # Only the real Cf lanes go back to HBM.
    o_ref[...] = x[:, :Cf].astype(o_ref.dtype)


def _default_batch_block(B, L, target_rows=4096, min_grid=4):
    """Pick batch_block: several grid steps (megacore + pipelining) while the
    per-block row count stays v7x-VMEM friendly (<= ~4k rows)."""
    bt = max(1, min(B, max(1, target_rows // max(L, 1))))
    while bt > 1 and (B // bt) < min(min_grid, B):
        bt -= 1
    while B % bt:
        bt -= 1
    return bt


def residual_block_forward(x_blc, packed, *, batch_block=None):
    """x_blc: (B, his_len, d_feature).  packed: output of pack_params()."""
    B, L, Cf = x_blc.shape
    nl, K, CP, NP = packed["w1"].shape
    assert Cf <= CP

    Bt = _default_batch_block(B, L) if batch_block is None else batch_block
    assert B % Bt == 0, (B, Bt)
    Mb = Bt * L
    assert Mb % 8 == 0, f"batch_block*his_len must be a multiple of 8, got {Mb}"

    # No lane padding in HBM: kernel consumes/produces the raw (B*L, Cf) slab.
    x2d = x_blc.reshape(B * L, Cf)

    # VMEM budget: ~a dozen live (Mb, 128) f32 temporaries in the unrolled
    # layer loop + lane-padding scratch + double-buffered weights + I/O blocks.
    w_bytes = (packed["w1"].size * packed["w1"].dtype.itemsize
               + packed["w2"].size * packed["w2"].dtype.itemsize)
    b_bytes = (packed["b1"].size + packed["b2"].size) * 4
    est = (14 * Mb * CP * 4 + 4 * Mb * Cf * x_blc.dtype.itemsize
           + 2 * (w_bytes + b_bytes))
    vmem_limit = int(min(max(est, 32 * 1024 * 1024), 64 * 1024 * 1024))

    kernel = functools.partial(_fused_tcn_kernel, K=K, L=L, Cf=Cf,
                               dilations=packed["dilations"])
    out2d = pl.pallas_call(
        kernel,
        out_shape=jax.ShapeDtypeStruct((B * L, Cf), x_blc.dtype),
        grid=(B // Bt,),
        in_specs=[
            pl.BlockSpec((Mb, Cf), lambda i: (i, 0)),
            # Weights/biases are grid-invariant (same block every step).
            pl.BlockSpec((nl, K, CP, NP), lambda i: (0, 0, 0, 0)),
            pl.BlockSpec((nl, NP), lambda i: (0, 0)),
            pl.BlockSpec((nl, K, NP, CP), lambda i: (0, 0, 0, 0)),
            pl.BlockSpec((nl, CP), lambda i: (0, 0)),
        ],
        out_specs=pl.BlockSpec((Mb, Cf), lambda i: (i, 0)),
        scratch_shapes=[pltpu.VMEM((Mb, CP), jnp.float32)],
        compiler_params=pltpu.CompilerParams(
            dimension_semantics=("parallel",),
            vmem_limit_bytes=vmem_limit),
    )(x2d, packed["w1"], packed["b1"], packed["w2"], packed["b2"])

    return out2d.reshape(B, L, Cf)


# ----------------------------------------------------------------------------
# Parameter setup (glue, plain JAX — done once, hoisted out of the forward)
# ----------------------------------------------------------------------------
def weight_norm_effective(v, g):
    """PyTorch weight_norm (dim=0): w = g * v / ||v||, norm over (in, K)."""
    norm = jnp.sqrt(jnp.sum(v * v, axis=(1, 2), keepdims=True))
    return g[:, None, None] * v / norm


def init_params(key, d_feature, num_filters, kernel_size, num_layers):
    params = []
    for i in range(num_layers):
        keys = jax.random.split(jax.random.fold_in(key, i), 6)
        # conv1: (out=Nf, in=Cf, K) ; conv2: (out=Cf, in=Nf, K)
        v1 = jax.random.normal(keys[0], (num_filters, d_feature, kernel_size),
                               jnp.float32) * 0.3
        g1 = jax.random.uniform(keys[1], (num_filters,), jnp.float32, 0.5, 1.5)
        b1 = jax.random.normal(keys[2], (num_filters,), jnp.float32) * 0.1
        v2 = jax.random.normal(keys[3], (d_feature, num_filters, kernel_size),
                               jnp.float32) * 0.3
        g2 = jax.random.uniform(keys[4], (d_feature,), jnp.float32, 0.5, 1.5)
        b2 = jax.random.normal(keys[5], (d_feature,), jnp.float32) * 0.1
        params.append(dict(
            w1_oik=weight_norm_effective(v1, g1),   # (Nf, Cf, K)
            b1=b1,
            w2_oik=weight_norm_effective(v2, g2),   # (Cf, Nf, K)
            b2=b2,
            dilation=kernel_size ** i))
    return params


def pack_params(params, cpad=128, npad=128, compute_dtype=jnp.bfloat16):
    """Done once: transpose to (K, in, out), lane-pad to 128, stack layers.

    Weights are stored in `compute_dtype` (bf16 by default -> native MXU rate,
    half the weight HBM/VMEM traffic); biases stay f32 (added post-matmul).
    """
    w1s, b1s, w2s, b2s, dils = [], [], [], [], []
    Nf = Cf = 0
    for p in params:
        w1 = jnp.transpose(p["w1_oik"], (2, 1, 0))   # (K, Cf, Nf)
        w2 = jnp.transpose(p["w2_oik"], (2, 1, 0))   # (K, Nf, Cf)
        K, Cf, Nf = w1.shape
        w1s.append(jnp.pad(w1, ((0, 0), (0, cpad - Cf), (0, npad - Nf))))
        w2s.append(jnp.pad(w2, ((0, 0), (0, npad - Nf), (0, cpad - Cf))))
        b1s.append(jnp.pad(p["b1"], (0, npad - Nf)))
        b2s.append(jnp.pad(p["b2"], (0, cpad - Cf)))
        dils.append(int(p["dilation"]))
    w1 = jnp.stack(w1s).astype(compute_dtype)        # (nl, K, cpad, npad)
    w2 = jnp.stack(w2s).astype(compute_dtype)        # (nl, K, npad, cpad)
    b1 = jnp.stack(b1s).astype(jnp.float32)          # (nl, npad)
    b2 = jnp.stack(b2s).astype(jnp.float32)          # (nl, cpad)
    # Padded bias lanes must be exactly zero: a nonzero pad would leak through
    # ReLU into the padded channels of the residual stream.
    if npad > Nf:
        assert float(jnp.max(jnp.abs(b1[:, Nf:]))) == 0.0
    if cpad > Cf:
        assert float(jnp.max(jnp.abs(b2[:, Cf:]))) == 0.0
    # Note: taps whose causal shift >= his_len are skipped in the kernel but
    # their (128,128) slabs are still shipped (only ~32 KiB/layer at bf16).
    return dict(w1=w1, b1=b1, w2=w2, b2=b2, dilations=tuple(dils))


# ----------------------------------------------------------------------------
# Pure-JAX reference (lax.conv_general_dilated, full f32) for validation
# ----------------------------------------------------------------------------
def reference_forward(x_blc, params, kernel_size):
    x = jnp.transpose(x_blc, (0, 2, 1))            # (B, C, L)
    for p in params:
        dilation = p["dilation"]
        pad = (kernel_size - 1) * dilation
        residual = x
        h = jnp.pad(x, ((0, 0), (0, 0), (pad, 0)))
        h = lax.conv_general_dilated(
            h, p["w1_oik"], window_strides=(1,), padding="VALID",
            rhs_dilation=(dilation,), dimension_numbers=("NCH", "OIH", "NCH"),
            precision=lax.Precision.HIGHEST)
        h = jnp.maximum(h + p["b1"][None, :, None], 0.0)
        h = jnp.pad(h, ((0, 0), (0, 0), (pad, 0)))
        h = lax.conv_general_dilated(
            h, p["w2_oik"], window_strides=(1,), padding="VALID",
            rhs_dilation=(dilation,), dimension_numbers=("NCH", "OIH", "NCH"),
            precision=lax.Precision.HIGHEST)
        h = jnp.maximum(h + p["b2"][None, :, None], 0.0)
        x = h + residual
    return jnp.transpose(x, (0, 2, 1))             # (B, L, C)


if __name__ == "__main__":
    # small, module-consistent shapes
    B, his_len, d_feature = 2, 16, 4
    num_filters, kernel_size, dropout = 8, 2, 0.1

    num_layers = math.ceil(
        math.log((his_len - 1) / (kernel_size - 1), kernel_size) + 1)  # = 5

    key = jax.random.PRNGKey(0)
    kx, kp = jax.random.split(key)
    x = jax.random.normal(kx, (B, his_len, d_feature), jnp.float32)
    params = init_params(kp, d_feature, num_filters, kernel_size, num_layers)

    ref = reference_forward(x, params, kernel_size)

    # 1) f32 parity path (tight-ish tolerance; proves functional correctness).
    packed_f32 = pack_params(params, compute_dtype=jnp.float32)
    out_f32 = jax.block_until_ready(residual_block_forward(x, packed_f32))
    assert out_f32.shape == (B, his_len, d_feature)
    assert jnp.allclose(out_f32, ref, atol=2e-3, rtol=2e-3), (
        float(jnp.max(jnp.abs(out_f32 - ref))))

    # 2) bf16 perf path (default config; relaxed tolerance for bf16 MXU ops).
    packed_bf16 = pack_params(params, compute_dtype=jnp.bfloat16)
    out_bf16 = jax.block_until_ready(residual_block_forward(x, packed_bf16))
    assert out_bf16.shape == (B, his_len, d_feature)
    assert jnp.allclose(out_bf16, ref, atol=1e-1, rtol=5e-2), (
        float(jnp.max(jnp.abs(out_bf16 - ref))))

    print("KERNEL_OK")
</pallas_src>

<mosaic_0001>
module attributes {stable_mosaic.version = 11 : i64} {
  func.func @_fused_tcn_kernel(%arg0: i32, %arg1: memref<16x4xf32, #tpu.memory_space<vmem>>, %arg2: memref<5x2x128x128xf32, #tpu.memory_space<vmem>>, %arg3: memref<5x128xf32, #tpu.memory_space<vmem>>, %arg4: memref<5x2x128x128xf32, #tpu.memory_space<vmem>>, %arg5: memref<5x128xf32, #tpu.memory_space<vmem>>, %arg6: memref<16x4xf32, #tpu.memory_space<vmem>>, %arg7: memref<16x128xf32, #tpu.memory_space<vmem>>) attributes {dimension_semantics = [#tpu.dimension_semantics<parallel>], iteration_bounds = array<i64: 2>, scalar_prefetch = 0 : i64, scratch_operands = 1 : i64, tpu.core_type = #tpu.core_type<tc>, window_params = [{transform_indices = @transform_0, window_bounds = array<i64: 16, 4>}, {pipeline_mode = #tpu.pipeline_mode<synchronous>, transform_indices = @transform_1, window_bounds = array<i64: 5, 2, 128, 128>}, {pipeline_mode = #tpu.pipeline_mode<synchronous>, transform_indices = @transform_2, window_bounds = array<i64: 5, 128>}, {pipeline_mode = #tpu.pipeline_mode<synchronous>, transform_indices = @transform_3, window_bounds = array<i64: 5, 2, 128, 128>}, {pipeline_mode = #tpu.pipeline_mode<synchronous>, transform_indices = @transform_4, window_bounds = array<i64: 5, 128>}, {transform_indices = @transform_5, window_bounds = array<i64: 16, 4>}]} {
    %cst = arith.constant 0.000000e+00 : f32
    %0 = vector.broadcast %cst : f32 to vector<16x128xf32>
    %c0 = arith.constant 0 : index
    %c0_0 = arith.constant 0 : index
    %1 = vector.load %arg7[%c0, %c0_0] : memref<16x128xf32, #tpu.memory_space<vmem>>, vector<16x128xf32>
    tpu.vector_store %arg7[%c0, %c0_0], %0 {strides = array<i32>} : memref<16x128xf32, #tpu.memory_space<vmem>>, vector<16x128xf32>,
    %c0_1 = arith.constant 0 : index
    %c0_2 = arith.constant 0 : index
    %2 = vector.load %arg1[%c0_1, %c0_2] : memref<16x4xf32, #tpu.memory_space<vmem>>, vector<16x4xf32>
    %c0_3 = arith.constant 0 : index
    %c0_4 = arith.constant 0 : index
    %3 = vector.load %arg7[%c0_3, %c0_4] : memref<16x128xf32, #tpu.memory_space<vmem>>, vector<16x4xf32>
    tpu.vector_store %arg7[%c0_3, %c0_4], %2 {strides = array<i32>} : memref<16x128xf32, #tpu.memory_space<vmem>>, vector<16x4xf32>,
    %c0_5 = arith.constant 0 : index
    %c0_6 = arith.constant 0 : index
    %4 = vector.load %arg7[%c0_5, %c0_6] : memref<16x128xf32, #tpu.memory_space<vmem>>, vector<16x128xf32>
    %5 = tpu.iota {dimensions = array<i32: 0>} : vector<16x1xi32>
    %c16_i32 = arith.constant 16 : i32
    %c0_i32 = arith.constant 0 : i32
    %6 = arith.cmpi eq, %c16_i32, %c0_i32 : i32
    %c1_i32 = arith.constant 1 : i32
    %7 = arith.select %6, %c1_i32, %c16_i32 : i32
    %8 = vector.broadcast %7 : i32 to vector<16x1xi32>
    %9 = arith.remsi %5, %8 : vector<16x1xi32>
    %c0_i32_7 = arith.constant 0 : i32
    %10 = vector.broadcast %c0_i32_7 : i32 to vector<16x1xi32>
    %11 = arith.cmpi ne, %9, %10 : vector<16x1xi32>
    %c0_i32_8 = arith.constant 0 : i32
    %12 = vector.broadcast %c0_i32_8 : i32 to vector<16x1xi32>
    %13 = arith.cmpi slt, %9, %12 : vector<16x1xi32>
    %c0_i32_9 = arith.constant 0 : i32
    %14 = arith.cmpi slt, %7, %c0_i32_9 : i32
    %15 = vector.broadcast %14 : i1 to vector<16x1xi1>
    %16 = vector.broadcast %15 : vector<16x1xi1> to vector<16x1xi1>
    %17 = arith.xori %13, %16 : vector<16x1xi1>
    %18 = arith.andi %17, %11 : vector<16x1xi1>
    %19 = vector.broadcast %7 : i32 to vector<16x1xi32>
    %20 = arith.addi %9, %19 : vector<16x1xi32>
    %21 = arith.select %18, %20, %9 : vector<16x1xi1>, vector<16x1xi32>
    %c1_i32_10 = arith.constant 1 : i32
    %22 = vector.broadcast %c1_i32_10 : i32 to vector<16x1xi32>
    %23 = arith.cmpi sge, %21, %22 : vector<16x1xi32>
    %c1_i32_11 = arith.constant 1 : i32
    %24 = tpu.dynamic_rotate %4 by %c1_i32_11 dim 0 : vector<16x128xf32>, i32 -> vector<16x128xf32>
    %cst_12 = arith.constant 0.000000e+00 : f32
    %25 = vector.shape_cast %23 : vector<16x1xi1> to vector<16x1xi1>
    %26 = vector.broadcast %25 : vector<16x1xi1> to vector<16x128xi1>
    %27 = vector.broadcast %cst_12 : f32 to vector<16x128xf32>
    %28 = arith.select %26, %24, %27 : vector<16x128xi1>, vector<16x128xf32>
    %c0_13 = arith.constant 0 : index
    %c0_14 = arith.constant 0 : index
    %c0_15 = arith.constant 0 : index
    %c0_16 = arith.constant 0 : index
    %29 = vector.load %arg2[%c0_13, %c0_14, %c0_15, %c0_16] : memref<5x2x128x128xf32, #tpu.memory_space<vmem>>, vector<1x1x128x128xf32>
    %30 = vector.shape_cast %29 : vector<1x1x128x128xf32> to vector<128x128xf32>
    %cst_17 = arith.constant dense<0.000000e+00> : vector<16x128xf32>
    %31 = tpu.matmul %28, %30, %cst_17 {dimension_numbers = #tpu.dot_dimension_numbers<[1], [0], [0], [1], [0, 0, 1, 1], [], []>, precision = #tpu.contract_precision<fp32>} : vector<16x128xf32>, vector<128x128xf32>, vector<16x128xf32> -> vector<16x128xf32>
    %c0_18 = arith.constant 0 : index
    %c1 = arith.constant 1 : index
    %c0_19 = arith.constant 0 : index
    %c0_20 = arith.constant 0 : index
    %32 = vector.load %arg2[%c0_18, %c1, %c0_19, %c0_20] : memref<5x2x128x128xf32, #tpu.memory_space<vmem>>, vector<1x1x128x128xf32>
    %33 = vector.shape_cast %32 : vector<1x1x128x128xf32> to vector<128x128xf32>
    %cst_21 = arith.constant dense<0.000000e+00> : vector<16x128xf32>
    %34 = tpu.matmul %4, %33, %cst_21 {dimension_numbers = #tpu.dot_dimension_numbers<[1], [0], [0], [1], [0, 0, 1, 1], [], []>, precision = #tpu.contract_precision<fp32>} : vector<16x128xf32>, vector<128x128xf32>, vector<16x128xf32> -> vector<16x128xf32>
    %35 = arith.addf %31, %34 : vector<16x128xf32>
    %c0_22 = arith.constant 0 : index
    %c0_23 = arith.constant 0 : index
    %36 = vector.load %arg3[%c0_22, %c0_23] : memref<5x128xf32, #tpu.memory_space<vmem>>, vector<1x128xf32>
    %37 = vector.broadcast %36 : vector<1x128xf32> to vector<16x128xf32>
    %38 = arith.addf %35, %37 : vector<16x128xf32>
    %cst_24 = arith.constant 0.000000e+00 : f32
    %39 = vector.broadcast %cst_24 : f32 to vector<16x128xf32>
    %40 = arith.maximumf %38, %39 : vector<16x128xf32>
    %c1_i32_25 = arith.constant 1 : i32
    %41 = tpu.dynamic_rotate %40 by %c1_i32_25 dim 0 : vector<16x128xf32>, i32 -> vector<16x128xf32>
    %cst_26 = arith.constant 0.000000e+00 : f32
    %42 = vector.shape_cast %23 : vector<16x1xi1> to vector<16x1xi1>
    %43 = vector.broadcast %42 : vector<16x1xi1> to vector<16x128xi1>
    %44 = vector.broadcast %cst_26 : f32 to vector<16x128xf32>
    %45 = arith.select %43, %41, %44 : vector<16x128xi1>, vector<16x128xf32>
    %c0_27 = arith.constant 0 : index
    %c0_28 = arith.constant 0 : index
    %c0_29 = arith.constant 0 : index
    %c0_30 = arith.constant 0 : index
    %46 = vector.load %arg4[%c0_27, %c0_28, %c0_29, %c0_30] : memref<5x2x128x128xf32, #tpu.memory_space<vmem>>, vector<1x1x128x128xf32>
    %47 = vector.shape_cast %46 : vector<1x1x128x128xf32> to vector<128x128xf32>
    %cst_31 = arith.constant dense<0.000000e+00> : vector<16x128xf32>
    %48 = tpu.matmul %45, %47, %cst_31 {dimension_numbers = #tpu.dot_dimension_numbers<[1], [0], [0], [1], [0, 0, 1, 1], [], []>, precision = #tpu.contract_precision<fp32>} : vector<16x128xf32>, vector<128x128xf32>, vector<16x128xf32> -> vector<16x128xf32>
    %c0_32 = arith.constant 0 : index
    %c1_33 = arith.constant 1 : index
    %c0_34 = arith.constant 0 : index
    %c0_35 = arith.constant 0 : index
    %49 = vector.load %arg4[%c0_32, %c1_33, %c0_34, %c0_35] : memref<5x2x128x128xf32, #tpu.memory_space<vmem>>, vector<1x1x128x128xf32>
    %50 = vector.shape_cast %49 : vector<1x1x128x128xf32> to vector<128x128xf32>
    %cst_36 = arith.constant dense<0.000000e+00> : vector<16x128xf32>
    %51 = tpu.matmul %40, %50, %cst_36 {dimension_numbers = #tpu.dot_dimension_numbers<[1], [0], [0], [1], [0, 0, 1, 1], [], []>, precision = #tpu.contract_precision<fp32>} : vector<16x128xf32>, vector<128x128xf32>, vector<16x128xf32> -> vector<16x128xf32>
    %52 = arith.addf %48, %51 : vector<16x128xf32>
    %c0_37 = arith.constant 0 : index
    %c0_38 = arith.constant 0 : index
    %53 = vector.load %arg5[%c0_37, %c0_38] : memref<5x128xf32, #tpu.memory_space<vmem>>, vector<1x128xf32>
    %54 = vector.broadcast %53 : vector<1x128xf32> to vector<16x128xf32>
    %55 = arith.addf %52, %54 : vector<16x128xf32>
    %cst_39 = arith.constant 0.000000e+00 : f32
    %56 = vector.broadcast %cst_39 : f32 to vector<16x128xf32>
    %57 = arith.maximumf %55, %56 : vector<16x128xf32>
    %58 = arith.addf %57, %4 : vector<16x128xf32>
    %c2_i32 = arith.constant 2 : i32
    %59 = vector.broadcast %c2_i32 : i32 to vector<16x1xi32>
    %60 = arith.cmpi sge, %21, %59 : vector<16x1xi32>
    %c2_i32_40 = arith.constant 2 : i32
    %61 = tpu.dynamic_rotate %58 by %c2_i32_40 dim 0 : vector<16x128xf32>, i32 -> vector<16x128xf32>
    %cst_41 = arith.constant 0.000000e+00 : f32
    %62 = vector.shape_cast %60 : vector<16x1xi1> to vector<16x1xi1>
    %63 = vector.broadcast %62 : vector<16x1xi1> to vector<16x128xi1>
    %64 = vector.broadcast %cst_41 : f32 to vector<16x128xf32>
    %65 = arith.select %63, %61, %64 : vector<16x128xi1>, vector<16x128xf32>
    %c1_42 = arith.constant 1 : index
    %c0_43 = arith.constant 0 : index
    %c0_44 = arith.constant 0 : index
    %c0_45 = arith.constant 0 : index
    %66 = vector.load %arg2[%c1_42, %c0_43, %c0_44, %c0_45] : memref<5x2x128x128xf32, #tpu.memory_space<vmem>>, vector<1x1x128x128xf32>
    %67 = vector.shape_cast %66 : vector<1x1x128x128xf32> to vector<128x128xf32>
    %cst_46 = arith.constant dense<0.000000e+00> : vector<16x128xf32>
    %68 = tpu.matmul %65, %67, %cst_46 {dimension_numbers = #tpu.dot_dimension_numbers<[1], [0], [0], [1], [0, 0, 1, 1], [], []>, precision = #tpu.contract_precision<fp32>} : vector<16x128xf32>, vector<128x128xf32>, vector<16x128xf32> -> vector<16x128xf32>
    %c1_47 = arith.constant 1 : index
    %c1_48 = arith.constant 1 : index
    %c0_49 = arith.constant 0 : index
    %c0_50 = arith.constant 0 : index
    %69 = vector.load %arg2[%c1_47, %c1_48, %c0_49, %c0_50] : memref<5x2x128x128xf32, #tpu.memory_space<vmem>>, vector<1x1x128x128xf32>
    %70 = vector.shape_cast %69 : vector<1x1x128x128xf32> to vector<128x128xf32>
    %cst_51 = arith.constant dense<0.000000e+00> : vector<16x128xf32>
    %71 = tpu.matmul %58, %70, %cst_51 {dimension_numbers = #tpu.dot_dimension_numbers<[1], [0], [0], [1], [0, 0, 1, 1], [], []>, precision = #tpu.contract_precision<fp32>} : vector<16x128xf32>, vector<128x128xf32>, vector<16x128xf32> -> vector<16x128xf32>
    %72 = arith.addf %68, %71 : vector<16x128xf32>
    %c1_52 = arith.constant 1 : index
    %c0_53 = arith.constant 0 : index
    %73 = vector.load %arg3[%c1_52, %c0_53] : memref<5x128xf32, #tpu.memory_space<vmem>>, vector<1x128xf32>
    %74 = vector.broadcast %73 : vector<1x128xf32> to vector<16x128xf32>
    %75 = arith.addf %72, %74 : vector<16x128xf32>
    %cst_54 = arith.constant 0.000000e+00 : f32
    %76 = vector.broadcast %cst_54 : f32 to vector<16x128xf32>
    %77 = arith.maximumf %75, %76 : vector<16x128xf32>
    %c2_i32_55 = arith.constant 2 : i32
    %78 = tpu.dynamic_rotate %77 by %c2_i32_55 dim 0 : vector<16x128xf32>, i32 -> vector<16x128xf32>
    %cst_56 = arith.constant 0.000000e+00 : f32
    %79 = vector.shape_cast %60 : vector<16x1xi1> to vector<16x1xi1>
    %80 = vector.broadcast %79 : vector<16x1xi1> to vector<16x128xi1>
    %81 = vector.broadcast %cst_56 : f32 to vector<16x128xf32>
    %82 = arith.select %80, %78, %81 : vector<16x128xi1>, vector<16x128xf32>
    %c1_57 = arith.constant 1 : index
    %c0_58 = arith.constant 0 : index
    %c0_59 = arith.constant 0 : index
    %c0_60 = arith.constant 0 : index
    %83 = vector.load %arg4[%c1_57, %c0_58, %c0_59, %c0_60] : memref<5x2x128x128xf32, #tpu.memory_space<vmem>>, vector<1x1x128x128xf32>
    %84 = vector.shape_cast %83 : vector<1x1x128x128xf32> to vector<128x128xf32>
    %cst_61 = arith.constant dense<0.000000e+00> : vector<16x128xf32>
    %85 = tpu.matmul %82, %84, %cst_61 {dimension_numbers = #tpu.dot_dimension_numbers<[1], [0], [0], [1], [0, 0, 1, 1], [], []>, precision = #tpu.contract_precision<fp32>} : vector<16x128xf32>, vector<128x128xf32>, vector<16x128xf32> -> vector<16x128xf32>
    %c1_62 = arith.constant 1 : index
    %c1_63 = arith.constant 1 : index
    %c0_64 = arith.constant 0 : index
    %c0_65 = arith.constant 0 : index
    %86 = vector.load %arg4[%c1_62, %c1_63, %c0_64, %c0_65] : memref<5x2x128x128xf32, #tpu.memory_space<vmem>>, vector<1x1x128x128xf32>
    %87 = vector.shape_cast %86 : vector<1x1x128x128xf32> to vector<128x128xf32>
    %cst_66 = arith.constant dense<0.000000e+00> : vector<16x128xf32>
    %88 = tpu.matmul %77, %87, %cst_66 {dimension_numbers = #tpu.dot_dimension_numbers<[1], [0], [0], [1], [0, 0, 1, 1], [], []>, precision = #tpu.contract_precision<fp32>} : vector<16x128xf32>, vector<128x128xf32>, vector<16x128xf32> -> vector<16x128xf32>
    %89 = arith.addf %85, %88 : vector<16x128xf32>
    %c1_67 = arith.constant 1 : index
    %c0_68 = arith.constant 0 : index
    %90 = vector.load %arg5[%c1_67, %c0_68] : memref<5x128xf32, #tpu.memory_space<vmem>>, vector<1x128xf32>
    %91 = vector.broadcast %90 : vector<1x128xf32> to vector<16x128xf32>
    %92 = arith.addf %89, %91 : vector<16x128xf32>
    %cst_69 = arith.constant 0.000000e+00 : f32
    %93 = vector.broadcast %cst_69 : f32 to vector<16x128xf32>
    %94 = arith.maximumf %92, %93 : vector<16x128xf32>
    %95 = arith.addf %94, %58 : vector<16x128xf32>
    %c4_i32 = arith.constant 4 : i32
    %96 = vector.broadcast %c4_i32 : i32 to vector<16x1xi32>
    %97 = arith.cmpi sge, %21, %96 : vector<16x1xi32>
    %c4_i32_70 = arith.constant 4 : i32
    %98 = tpu.dynamic_rotate %95 by %c4_i32_70 dim 0 : vector<16x128xf32>, i32 -> vector<16x128xf32>
    %cst_71 = arith.constant 0.000000e+00 : f32
    %99 = vector.shape_cast %97 : vector<16x1xi1> to vector<16x1xi1>
    %100 = vector.broadcast %99 : vector<16x1xi1> to vector<16x128xi1>
    %101 = vector.broadcast %cst_71 : f32 to vector<16x128xf32>
    %102 = arith.select %100, %98, %101 : vector<16x128xi1>, vector<16x128xf32>
    %c2 = arith.constant 2 : index
    %c0_72 = arith.constant 0 : index
    %c0_73 = arith.constant 0 : index
    %c0_74 = arith.constant 0 : index
    %103 = vector.load %arg2[%c2, %c0_72, %c0_73, %c0_74] : memref<5x2x128x128xf32, #tpu.memory_space<vmem>>, vector<1x1x128x128xf32>
    %104 = vector.shape_cast %103 : vector<1x1x128x128xf32> to vector<128x128xf32>
    %cst_75 = arith.constant dense<0.000000e+00> : vector<16x128xf32>
    %105 = tpu.matmul %102, %104, %cst_75 {dimension_numbers = #tpu.dot_dimension_numbers<[1], [0], [0], [1], [0, 0, 1, 1], [], []>, precision = #tpu.contract_precision<fp32>} : vector<16x128xf32>, vector<128x128xf32>, vector<16x128xf32> -> vector<16x128xf32>
    %c2_76 = arith.constant 2 : index
    %c1_77 = arith.constant 1 : index
    %c0_78 = arith.constant 0 : index
    %c0_79 = arith.constant 0 : index
    %106 = vector.load %arg2[%c2_76, %c1_77, %c0_78, %c0_79] : memref<5x2x128x128xf32, #tpu.memory_space<vmem>>, vector<1x1x128x128xf32>
    %107 = vector.shape_cast %106 : vector<1x1x128x128xf32> to vector<128x128xf32>
    %cst_80 = arith.constant dense<0.000000e+00> : vector<16x128xf32>
    %108 = tpu.matmul %95, %107, %cst_80 {dimension_numbers = #tpu.dot_dimension_numbers<[1], [0], [0], [1], [0, 0, 1, 1], [], []>, precision = #tpu.contract_precision<fp32>} : vector<16x128xf32>, vector<128x128xf32>, vector<16x128xf32> -> vector<16x128xf32>
    %109 = arith.addf %105, %108 : vector<16x128xf32>
    %c2_81 = arith.constant 2 : index
    %c0_82 = arith.constant 0 : index
    %110 = vector.load %arg3[%c2_81, %c0_82] : memref<5x128xf32, #tpu.memory_space<vmem>>, vector<1x128xf32>
    %111 = vector.broadcast %110 : vector<1x128xf32> to vector<16x128xf32>
    %112 = arith.addf %109, %111 : vector<16x128xf32>
    %cst_83 = arith.constant 0.000000e+00 : f32
    %113 = vector.broadcast %cst_83 : f32 to vector<16x128xf32>
    %114 = arith.maximumf %112, %113 : vector<16x128xf32>
    %c4_i32_84 = arith.constant 4 : i32
    %115 = tpu.dynamic_rotate %114 by %c4_i32_84 dim 0 : vector<16x128xf32>, i32 -> vector<16x128xf32>
    %cst_85 = arith.constant 0.000000e+00 : f32
    %116 = vector.shape_cast %97 : vector<16x1xi1> to vector<16x1xi1>
    %117 = vector.broadcast %116 : vector<16x1xi1> to vector<16x128xi1>
    %118 = vector.broadcast %cst_85 : f32 to vector<16x128xf32>
    %119 = arith.select %117, %115, %118 : vector<16x128xi1>, vector<16x128xf32>
    %c2_86 = arith.constant 2 : index
    %c0_87 = arith.constant 0 : index
    %c0_88 = arith.constant 0 : index
    %c0_89 = arith.constant 0 : index
    %120 = vector.load %arg4[%c2_86, %c0_87, %c0_88, %c0_89] : memref<5x2x128x128xf32, #tpu.memory_space<vmem>>, vector<1x1x128x128xf32>
    %121 = vector.shape_cast %120 : vector<1x1x128x128xf32> to vector<128x128xf32>
    %cst_90 = arith.constant dense<0.000000e+00> : vector<16x128xf32>
    %122 = tpu.matmul %119, %121, %cst_90 {dimension_numbers = #tpu.dot_dimension_numbers<[1], [0], [0], [1], [0, 0, 1, 1], [], []>, precision = #tpu.contract_precision<fp32>} : vector<16x128xf32>, vector<128x128xf32>, vector<16x128xf32> -> vector<16x128xf32>
    %c2_91 = arith.constant 2 : index
    %c1_92 = arith.constant 1 : index
    %c0_93 = arith.constant 0 : index
    %c0_94 = arith.constant 0 : index
    %123 = vector.load %arg4[%c2_91, %c1_92, %c0_93, %c0_94] : memref<5x2x128x128xf32, #tpu.memory_space<vmem>>, vector<1x1x128x128xf32>
    %124 = vector.shape_cast %123 : vector<1x1x128x128xf32> to vector<128x128xf32>
    %cst_95 = arith.constant dense<0.000000e+00> : vector<16x128xf32>
    %125 = tpu.matmul %114, %124, %cst_95 {dimension_numbers = #tpu.dot_dimension_numbers<[1], [0], [0], [1], [0, 0, 1, 1], [], []>, precision = #tpu.contract_precision<fp32>} : vector<16x128xf32>, vector<128x128xf32>, vector<16x128xf32> -> vector<16x128xf32>
    %126 = arith.addf %122, %125 : vector<16x128xf32>
    %c2_96 = arith.constant 2 : index
    %c0_97 = arith.constant 0 : index
    %127 = vector.load %arg5[%c2_96, %c0_97] : memref<5x128xf32, #tpu.memory_space<vmem>>, vector<1x128xf32>
    %128 = vector.broadcast %127 : vector<1x128xf32> to vector<16x128xf32>
    %129 = arith.addf %126, %128 : vector<16x128xf32>
    %cst_98 = arith.constant 0.000000e+00 : f32
    %130 = vector.broadcast %cst_98 : f32 to vector<16x128xf32>
    %131 = arith.maximumf %129, %130 : vector<16x128xf32>
    %132 = arith.addf %131, %95 : vector<16x128xf32>
    %c8_i32 = arith.constant 8 : i32
    %133 = vector.broadcast %c8_i32 : i32 to vector<16x1xi32>
    %134 = arith.cmpi sge, %21, %133 : vector<16x1xi32>
    %c8_i32_99 = arith.constant 8 : i32
    %135 = tpu.dynamic_rotate %132 by %c8_i32_99 dim 0 : vector<16x128xf32>, i32 -> vector<16x128xf32>
    %cst_100 = arith.constant 0.000000e+00 : f32
    %136 = vector.shape_cast %134 : vector<16x1xi1> to vector<16x1xi1>
    %137 = vector.broadcast %136 : vector<16x1xi1> to vector<16x128xi1>
    %138 = vector.broadcast %cst_100 : f32 to vector<16x128xf32>
    %139 = arith.select %137, %135, %138 : vector<16x128xi1>, vector<16x128xf32>
    %c3 = arith.constant 3 : index
    %c0_101 = arith.constant 0 : index
    %c0_102 = arith.constant 0 : index
    %c0_103 = arith.constant 0 : index
    %140 = vector.load %arg2[%c3, %c0_101, %c0_102, %c0_103] : memref<5x2x128x128xf32, #tpu.memory_space<vmem>>, vector<1x1x128x128xf32>
    %141 = vector.shape_cast %140 : vector<1x1x128x128xf32> to vector<128x128xf32>
    %cst_104 = arith.constant dense<0.000000e+00> : vector<16x128xf32>
    %142 = tpu.matmul %139, %141, %cst_104 {dimension_numbers = #tpu.dot_dimension_numbers<[1], [0], [0], [1], [0, 0, 1, 1], [], []>, precision = #tpu.contract_precision<fp32>} : vector<16x128xf32>, vector<128x128xf32>, vector<16x128xf32> -> vector<16x128xf32>
    %c3_105 = arith.constant 3 : index
    %c1_106 = arith.constant 1 : index
    %c0_107 = arith.constant 0 : index
    %c0_108 = arith.constant 0 : index
    %143 = vector.load %arg2[%c3_105, %c1_106, %c0_107, %c0_108] : memref<5x2x128x128xf32, #tpu.memory_space<vmem>>, vector<1x1x128x128xf32>
    %144 = vector.shape_cast %143 : vector<1x1x128x128xf32> to vector<128x128xf32>
    %cst_109 = arith.constant dense<0.000000e+00> : vector<16x128xf32>
    %145 = tpu.matmul %132, %144, %cst_109 {dimension_numbers = #tpu.dot_dimension_numbers<[1], [0], [0], [1], [0, 0, 1, 1], [], []>, precision = #tpu.contract_precision<fp32>} : vector<16x128xf32>, vector<128x128xf32>, vector<16x128xf32> -> vector<16x128xf32>
    %146 = arith.addf %142, %145 : vector<16x128xf32>
    %c3_110 = arith.constant 3 : index
    %c0_111 = arith.constant 0 : index
    %147 = vector.load %arg3[%c3_110, %c0_111] : memref<5x128xf32, #tpu.memory_space<vmem>>, vector<1x128xf32>
    %148 = vector.broadcast %147 : vector<1x128xf32> to vector<16x128xf32>
    %149 = arith.addf %146, %148 : vector<16x128xf32>
    %cst_112 = arith.constant 0.000000e+00 : f32
    %150 = vector.broadcast %cst_112 : f32 to vector<16x128xf32>
    %151 = arith.maximumf %149, %150 : vector<16x128xf32>
    %c8_i32_113 = arith.constant 8 : i32
    %152 = tpu.dynamic_rotate %151 by %c8_i32_113 dim 0 : vector<16x128xf32>, i32 -> vector<16x128xf32>
    %cst_114 = arith.constant 0.000000e+00 : f32
    %153 = vector.shape_cast %134 : vector<16x1xi1> to vector<16x1xi1>
    %154 = vector.broadcast %153 : vector<16x1xi1> to vector<16x128xi1>
    %155 = vector.broadcast %cst_114 : f32 to vector<16x128xf32>
    %156 = arith.select %154, %152, %155 : vector<16x128xi1>, vector<16x128xf32>
    %c3_115 = arith.constant 3 : index
    %c0_116 = arith.constant 0 : index
    %c0_117 = arith.constant 0 : index
    %c0_118 = arith.constant 0 : index
    %157 = vector.load %arg4[%c3_115, %c0_116, %c0_117, %c0_118] : memref<5x2x128x128xf32, #tpu.memory_space<vmem>>, vector<1x1x128x128xf32>
    %158 = vector.shape_cast %157 : vector<1x1x128x128xf32> to vector<128x128xf32>
    %cst_119 = arith.constant dense<0.000000e+00> : vector<16x128xf32>
    %159 = tpu.matmul %156, %158, %cst_119 {dimension_numbers = #tpu.dot_dimension_numbers<[1], [0], [0], [1], [0, 0, 1, 1], [], []>, precision = #tpu.contract_precision<fp32>} : vector<16x128xf32>, vector<128x128xf32>, vector<16x128xf32> -> vector<16x128xf32>
    %c3_120 = arith.constant 3 : index
    %c1_121 = arith.constant 1 : index
    %c0_122 = arith.constant 0 : index
    %c0_123 = arith.constant 0 : index
    %160 = vector.load %arg4[%c3_120, %c1_121, %c0_122, %c0_123] : memref<5x2x128x128xf32, #tpu.memory_space<vmem>>, vector<1x1x128x128xf32>
    %161 = vector.shape_cast %160 : vector<1x1x128x128xf32> to vector<128x128xf32>
    %cst_124 = arith.constant dense<0.000000e+00> : vector<16x128xf32>
    %162 = tpu.matmul %151, %161, %cst_124 {dimension_numbers = #tpu.dot_dimension_numbers<[1], [0], [0], [1], [0, 0, 1, 1], [], []>, precision = #tpu.contract_precision<fp32>} : vector<16x128xf32>, vector<128x128xf32>, vector<16x128xf32> -> vector<16x128xf32>
    %163 = arith.addf %159, %162 : vector<16x128xf32>
    %c3_125 = arith.constant 3 : index
    %c0_126 = arith.constant 0 : index
    %164 = vector.load %arg5[%c3_125, %c0_126] : memref<5x128xf32, #tpu.memory_space<vmem>>, vector<1x128xf32>
    %165 = vector.broadcast %164 : vector<1x128xf32> to vector<16x128xf32>
    %166 = arith.addf %163, %165 : vector<16x128xf32>
    %cst_127 = arith.constant 0.000000e+00 : f32
    %167 = vector.broadcast %cst_127 : f32 to vector<16x128xf32>
    %168 = arith.maximumf %166, %167 : vector<16x128xf32>
    %169 = arith.addf %168, %132 : vector<16x128xf32>
    %c4 = arith.constant 4 : index
    %c1_128 = arith.constant 1 : index
    %c0_129 = arith.constant 0 : index
    %c0_130 = arith.constant 0 : index
    %170 = vector.load %arg2[%c4, %c1_128, %c0_129, %c0_130] : memref<5x2x128x128xf32, #tpu.memory_space<vmem>>, vector<1x1x128x128xf32>
    %171 = vector.shape_cast %170 : vector<1x1x128x128xf32> to vector<128x128xf32>
    %cst_131 = arith.constant dense<0.000000e+00> : vector<16x128xf32>
    %172 = tpu.matmul %169, %171, %cst_131 {dimension_numbers = #tpu.dot_dimension_numbers<[1], [0], [0], [1], [0, 0, 1, 1], [], []>, precision = #tpu.contract_precision<fp32>} : vector<16x128xf32>, vector<128x128xf32>, vector<16x128xf32> -> vector<16x128xf32>
    %c4_132 = arith.constant 4 : index
    %c0_133 = arith.constant 0 : index
    %173 = vector.load %arg3[%c4_132, %c0_133] : memref<5x128xf32, #tpu.memory_space<vmem>>, vector<1x128xf32>
    %174 = vector.broadcast %173 : vector<1x128xf32> to vector<16x128xf32>
    %175 = arith.addf %172, %174 : vector<16x128xf32>
    %cst_134 = arith.constant 0.000000e+00 : f32
    %176 = vector.broadcast %cst_134 : f32 to vector<16x128xf32>
    %177 = arith.maximumf %175, %176 : vector<16x128xf32>
    %c4_135 = arith.constant 4 : index
    %c1_136 = arith.constant 1 : index
    %c0_137 = arith.constant 0 : index
    %c0_138 = arith.constant 0 : index
    %178 = vector.load %arg4[%c4_135, %c1_136, %c0_137, %c0_138] : memref<5x2x128x128xf32, #tpu.memory_space<vmem>>, vector<1x1x128x128xf32>
    %179 = vector.shape_cast %178 : vector<1x1x128x128xf32> to vector<128x128xf32>
    %cst_139 = arith.constant dense<0.000000e+00> : vector<16x128xf32>
    %180 = tpu.matmul %177, %179, %cst_139 {dimension_numbers = #tpu.dot_dimension_numbers<[1], [0], [0], [1], [0, 0, 1, 1], [], []>, precision = #tpu.contract_precision<fp32>} : vector<16x128xf32>, vector<128x128xf32>, vector<16x128xf32> -> vector<16x128xf32>
    %c4_140 = arith.constant 4 : index
    %c0_141 = arith.constant 0 : index
    %181 = vector.load %arg5[%c4_140, %c0_141] : memref<5x128xf32, #tpu.memory_space<vmem>>, vector<1x128xf32>
    %182 = vector.broadcast %181 : vector<1x128xf32> to vector<16x128xf32>
    %183 = arith.addf %180, %182 : vector<16x128xf32>
    %cst_142 = arith.constant 0.000000e+00 : f32
    %184 = vector.broadcast %cst_142 : f32 to vector<16x128xf32>
    %185 = arith.maximumf %183, %184 : vector<16x128xf32>
    %186 = arith.addf %185, %169 : vector<16x128xf32>
    %187 = vector.extract_strided_slice %186 {offsets = [0, 0], sizes = [16, 4], strides = [1, 1]} : vector<16x128xf32> to vector<16x4xf32>
    %c0_143 = arith.constant 0 : index
    %c0_144 = arith.constant 0 : index
    %188 = vector.load %arg6[%c0_143, %c0_144] : memref<16x4xf32, #tpu.memory_space<vmem>>, vector<16x4xf32>
    tpu.vector_store %arg6[%c0_143, %c0_144], %187 {strides = array<i32>} : memref<16x4xf32, #tpu.memory_space<vmem>>, vector<16x4xf32>,
    return
  }
  func.func @transform_0(%arg0: i32) -> (i32, i32) {
    %c0_i32 = arith.constant 0 : i32
    %c0_i32_0 = arith.constant 0 : i32
    return %arg0, %c0_i32 : i32, i32
  }
  func.func @transform_1(%arg0: i32) -> (i32, i32, i32, i32) {
    %c0_i32 = arith.constant 0 : i32
    %c0_i32_0 = arith.constant 0 : i32
    %c0_i32_1 = arith.constant 0 : i32
    %c0_i32_2 = arith.constant 0 : i32
    %c0_i32_3 = arith.constant 0 : i32
    return %c0_i32, %c0_i32_0, %c0_i32_1, %c0_i32_2 : i32, i32, i32, i32
  }
  func.func @transform_2(%arg0: i32) -> (i32, i32) {
    %c0_i32 = arith.constant 0 : i32
    %c0_i32_0 = arith.constant 0 : i32
    %c0_i32_1 = arith.constant 0 : i32
    return %c0_i32, %c0_i32_0 : i32, i32
  }
  func.func @transform_3(%arg0: i32) -> (i32, i32, i32, i32) {
    %c0_i32 = arith.constant 0 : i32
    %c0_i32_0 = arith.constant 0 : i32
    %c0_i32_1 = arith.constant 0 : i32
    %c0_i32_2 = arith.constant 0 : i32
    %c0_i32_3 = arith.constant 0 : i32
    return %c0_i32, %c0_i32_0, %c0_i32_1, %c0_i32_2 : i32, i32, i32, i32
  }
  func.func @transform_4(%arg0: i32) -> (i32, i32) {
    %c0_i32 = arith.constant 0 : i32
    %c0_i32_0 = arith.constant 0 : i32
    %c0_i32_1 = arith.constant 0 : i32
    return %c0_i32, %c0_i32_0 : i32, i32
  }
  func.func @transform_5(%arg0: i32) -> (i32, i32) {
    %c0_i32 = arith.constant 0 : i32
    %c0_i32_0 = arith.constant 0 : i32
    return %arg0, %c0_i32 : i32, i32
  }
}

</mosaic_0001>

<bundles_post_ra>
// kernel: tpu_custom_call.1
= control target key start
LH: loop header
LB: loop body
LE: loop exit
PB: predicated region body
PF: predicated region fallthrough
CT: control target
= control target key end

     0   :  { %10 = vsyncpa [#allocation4], 0  ;;  %s28402_s0 = inlined_call_operand.vmem [shape: f32[32,4], index: 0, kind: input, shape index: {}]   ;;  %s28403_s1 = inlined_call_operand.hbm [shape: f32[5,2,128,128], index: 1, kind: input, shape index: {}]   ;;  %s28404_s2 = inlined_call_operand.vmem [shape: f32[5,128], index: 2, kind: input, shape index: {}]   ;;  %s28405_s3 = inlined_call_operand.hbm [shape: f32[5,2,128,128], index: 3, kind: input, shape index: {}]   ;;  %s28406_s4 = inlined_call_operand.vmem [shape: f32[5,128], index: 4, kind: input, shape index: {}]   ;;  %s28407_s5 = inlined_call_operand.vmem [shape: f32[32,4], index: 5, kind: output, shape index: {}]  }
   0x1   :  { %11 = vsyncpa [#allocation6], 0  ;;  %s22699_s18 = smov 0  }
   0x2 LB: > { %s13153_s19 = sadd.s32 4294967295, %s22662_s18   ;;  %p13155_p0 = scmp.ge.s32.totalorder %s22662_s18, 1  ;;  %s22662_s18 = sphi %s22699_s18, %s17_s18  }
   0x3   : > { %p158_p1 = scmp.lt.s32.totalorder %s22662_s18, 3  ;;  %s22664_s20 = smov [#allocation3]  }
   0x4   : > { %s170_s21 = sshll.u32 %s22664_s20, 4  ;;  %p22713_p3 = scmp.eq.s32.totalorder %s13153_s19, 0  ;;  %s171_s21 = int_to_ptr.vmem [resolvable:$true] %s170_s21 }
   0x5   : > { %p22707_p2 = pnand %p13155_p0, %p158_p1  ;;  %s22665_s24 = smov [#allocation5]  }
   0x6   : > { %s28563_s23 = scalar_select %p22713_p3, 1, 0 }
   0x7   : > { %s28562_s22 = scalar_select %p22707_p2, 1, 0 }
   0x8   : > { %p22566_p4 = pneg %p22707_p2  ;;  %s186_s25 = sshll.u32 %s22665_s24, 4  ;;  %s22725_s25 = int_to_ptr.vmem [resolvable:$true] %s186_s25 }
   0x9   : > { %s22592_s29 = scalar_lea.hbm %s28403_s1, 20480 }
   0xa   : > { %p22721_p5 = pnand %p22713_p3, %p22566_p4  ;;  %p22593_p6 = scmp.ne.s32.totalorder %s28403_s1, %s22592_s29 }
   0xb   : > { %p22599_p10 = scmp.lt.u32.totalorder %s22592_s29, %s28403_s1 }
   0xc   : > { %p22594_p7 = pneg %p22721_p5 }
   0xe   : > { %p22595_p8 = pnand %p22594_p7, %p22593_p6 }
  0x10   : > { %p22596_p9 = pneg %p22595_p8 }
  0x12   : > { %p22601_p11 = pnand %p22599_p10, %p22596_p9 }
  0x14   : > { %22604 = shalt.err (!%p22601_p11)
}
  0x15   : > { %s22605_s9 = scalar_lea.vmem %s171_s21, 20480  ;;  %p22613_p1 = scmp.lt.s32.totalorder %s171_s21, %s171_s21 }
  0x16   : > { %p22606_p12 = scmp.ne.s32.totalorder %s171_s21, %s22605_s9  ;;  %p22614_p4 = scmp.lt.s32.totalorder %s22605_s9, %s22605_s9 }
  0x18   : > { %p22608_p13 = pnand %p22606_p12, %p22594_p7  ;;  %p22615_p3 = por %p22614_p4, %p22613_p1 }
  0x1a   : > { %p22609_p0 = pneg %p22608_p13 }
  0x1c   : > { %p22616_p2 = pnand %p22615_p3, %p22609_p0 }
  0x1e   : > { %22619 = shalt.err (!%p22616_p2)
}
  0x1f   : > { %s22666_s10 = smov 128   ;;  %s22667_s11 = smov 8  }
  0x20   : > { %22569 = dma.hbm_to_vmem [thread:$0]  (!%p22721_p5), %s28403_s1, 20480, %s171_s21, [#allocation4], %s22666_s10, %s22666_s10, %s22667_s11  }
  0x21   : > { %s22620_s16 = scalar_lea.hbm %s28405_s3, 20480 }
  0x22   : > { %p22621_p6 = scmp.ne.s32.totalorder %s28405_s3, %s22620_s16  ;;  %p22627_p8 = scmp.lt.u32.totalorder %s22620_s16, %s28405_s3 }
  0x24   : > { %p22623_p2 = pnand %p22621_p6, %p22594_p7 }
  0x26   : > { %p22624_p3 = pneg %p22623_p2 }
  0x28   : > { %p22629_p9 = pnand %p22627_p8, %p22624_p3 }
  0x2a   : > { %22632 = shalt.err (!%p22629_p9)
}
  0x2b   : > { %s22633_s21 = scalar_lea.vmem %s22725_s25, 20480  ;;  %p22641_p13 = scmp.lt.s32.totalorder %s22725_s25, %s22725_s25 }
  0x2c   : > { %p22634_p10 = scmp.ne.s32.totalorder %s22725_s25, %s22633_s21  ;;  %p22642_p0 = scmp.lt.s32.totalorder %s22633_s21, %s22633_s21 }
  0x2e   : > { %p22636_p11 = pnand %p22634_p10, %p22594_p7  ;;  %p22643_p1 = por %p22642_p0, %p22641_p13 }
  0x30   : > { %p22637_p12 = pneg %p22636_p11 }
  0x32   : > { %p22644_p4 = pnand %p22643_p1, %p22637_p12 }
  0x34   : > { %22647 = shalt.err (!%p22644_p4)
}
  0x35   : > { %22572 = dma.hbm_to_vmem [thread:$0]  (!%p22721_p5), %s28405_s3, 20480, %s22725_s25, [#allocation6], %s22666_s10, %s22666_s10, %s22667_s11  }
  0x36   : > { %p28565_p6 = scmp.ne.s32.totalorder %s28562_s22, 0 }
  0x38   : > { %214 = sbr.rel (%p28565_p6) target bundleno = 5521 (0x1591), region = 40 }
  0x3f   : > { %p28566_p2 = scmp.ne.s32.totalorder %s28563_s23, 0 }
  0x41   : > { %22653 = dma.done.wait (%p28566_p2), [#allocation4], 20480  }
  0x42   : > { %22655 = vsyncadd (%p28566_p2), [#allocation4], 4294946816 }
  0x43   : > { %22657 = dma.done.wait (%p28566_p2), [#allocation6], 20480  }
  0x44   : > { %22659 = vsyncadd (%p28566_p2), [#allocation6], 4294946816  ;;  %s13162_s26 = sshll.u32 %s13153_s19, 1  ;;  %v28411_v0 = vmov 0.0   ;;  %v324_v1 = vld [vmem:[#allocation3 + $0x80] sm:$0xff]  ;;  %v325_v2 = vld [vmem:[#allocation3 + $0x88] sm:$0xff] }
  0x45   : > { %p247_p7 = scmp.lt.s32.totalorder %s13162_s26, 3  ;;  %258 = vst [vmem:[#allocation2] sm:$0xff] %v28411_v0  ;;  %259 = vst [vmem:[#allocation2 + $0x8] sm:$0xff] %v28411_v0  ;;  %v326_v3 = vld [vmem:[#allocation3 + $0x90] sm:$0xff]  ;;  %v341_v4 = vand.u32 4294901760, %v324_v1  ;;  %v344_v5 = vand.u32 4294901760, %v325_v2 }
  0x46   : > { %v327_v6 = vld [vmem:[#allocation3 + $0x98] sm:$0xff]  ;;  %v347_v7 = vand.u32 4294901760, %v326_v3  ;;  %v328_v8 = vld [vmem:[#allocation3 + $0xa0] sm:$0xff]  ;;  %v329_v9 = vld [vmem:[#allocation3 + $0xa8] sm:$0xff]  ;;  %vm262_vm0 = vcmask 31744  }
  0x47   : > { %s28719_s26 = smov (!%p247_p7, %s13162_s26), 3  ;;  %v350_v10 = vand.u32 4294901760, %v327_v6  ;;  %v22796_v11 = vpack.c.bf16 %v344_v5, %v341_v4  ;;  %v353_v12 = vand.u32 4294901760, %v328_v8  ;;  %v356_v13 = vand.u32 4294901760, %v329_v9  ;;  %v330_v15 = vld [vmem:[#allocation3 + $0xb0] sm:$0xff]  ;;  %v331_v16 = vld [vmem:[#allocation3 + $0xb8] sm:$0xff] }
  0x48   : > { %s13163_s22 = sshll.u32 %s28719_s26, 3  ;;  %v359_v20 = vand.u32 4294901760, %v330_v15  ;;  %v362_v21 = vand.u32 4294901760, %v331_v16  ;;  %v332_v22 = vld [vmem:[#allocation3 + $0xc0] sm:$0xff]  ;;  %v333_v23 = vld [vmem:[#allocation3 + $0xc8] sm:$0xff]  ;;  %v334_v27 = vld [vmem:[#allocation3 + $0xd0] sm:$0xff]  ;;  %v22813_v34 = vsub.f32 %v324_v1, %v341_v4  ;;  %v22821_v38 = vsub.f32 %v325_v2, %v344_v5 }
  0x49   : > { %s250_s25 = scalar_lea.vmem %s28402_s0, %s13163_s22  ;;  %v22798_v14 = vpack.c.bf16 %v350_v10, %v347_v7  ;;  %18903 = vmatprep.subr.bf16.mxu0 %v22796_v11  ;;  %v22805_v19 = vpack.c.bf16 %v356_v13, %v353_v12  ;;  %v365_v25 = vand.u32 4294901760, %v332_v22  ;;  %v368_v26 = vand.u32 4294901760, %v333_v23  ;;  %v335_v28 = vld [vmem:[#allocation3 + $0xd8] sm:$0xff]  ;;  %v336_v29 = vld [vmem:[#allocation3 + $0xe0] sm:$0xff]  ;;  %v337_v30 = vld [vmem:[#allocation3 + $0xe8] sm:$0xff]  ;;  %s256_s30 = scalar_lea.vmem %s28407_s5, %s13163_s22 }
  0x4a   : > { %v260_v17 = vld [vmem:[%s250_s25] sm:$0xff]  ;;  %v261_v18 = vld [vmem:[%s250_s25 + $0x8] sm:$0xff]  ;;  %18905 = vmatpush3.bf16.msra.mxu0 %v22796_v11  ;;  %v22809_v24 = vpack.c.bf16 %v362_v21, %v359_v20  ;;  %v371_v36 = vand.u32 4294901760, %v334_v27  ;;  %v22823_v39 = vsub.f32 %v326_v3, %v347_v7  ;;  %v374_v41 = vand.u32 4294901760, %v335_v28 }
  0x4b   : > { %263 = vst.msk [vmem:[#allocation2] sm:$0xff] %vm262_vm0, %v260_v17  ;;  %264 = vst.msk [vmem:[#allocation2 + $0x8] sm:$0xff] %vm262_vm0, %v261_v18  ;;  %18907 = vmatprep.subr.bf16.mxu0 %v22798_v14  ;;  %v338_v31 = vld [vmem:[#allocation3 + $0xf0] sm:$0xff]  ;;  %v339_v32 = vld [vmem:[#allocation3 + $0xf8] sm:$0xff]  ;;  %v22826_v40 = vpack.c.bf16 %v368_v26, %v365_v25  ;;  %v377_v42 = vand.u32 4294901760, %v336_v29  ;;  %v380_v44 = vand.u32 4294901760, %v337_v30  ;;  %v22836_v49 = vsub.f32 %v327_v6, %v350_v10 }
  0x4c   : > { %v383_v45 = vand.u32 4294901760, %v338_v31  ;;  %v386_v46 = vand.u32 4294901760, %v339_v32  ;;  %v444_v48 = vand.u32 4294901760, %v22813_v34  ;;  %v22838_v50 = vsub.f32 %v328_v8, %v353_v12 }
  0x4d   : > { %v451_v52 = vand.u32 4294901760, %v22821_v38  ;;  %v458_v53 = vand.u32 4294901760, %v22823_v39  ;;  %v22844_v54 = vsub.f32 %v329_v9, %v356_v13  ;;  %v22847_v55 = vpack.c.bf16 %v374_v41, %v371_v36 }
  0x4e   : > { %18909 = vmatpush3.bf16.msra.mxu0 %v22798_v14  ;;  %v22853_v57 = vpack.c.bf16 %v380_v44, %v377_v42  ;;  %v22855_v58 = vpack.c.bf16 %v386_v46, %v383_v45  ;;  %v22860_v60 = vsub.f32 %v330_v15, %v359_v20  ;;  %v445_v61 = vsub.f32 %v22813_v34, %v444_v48 }
  0x4f   : > { %18911 = vmatprep.subr.bf16.mxu0 %v22805_v19  ;;  %v465_v62 = vand.u32 4294901760, %v22836_v49  ;;  %v472_v63 = vand.u32 4294901760, %v22838_v50  ;;  %v22865_v1 = vsub.f32 %v331_v16, %v362_v21  ;;  %v452_v3 = vsub.f32 %v22821_v38, %v451_v52 }
  0x50   : > { %v459_v4 = vsub.f32 %v22823_v39, %v458_v53  ;;  %v479_v5 = vand.u32 4294901760, %v22844_v54  ;;  %v22873_v7 = vsub.f32 %v332_v22, %v365_v25  ;;  %v22875_v8 = vsub.f32 %v333_v23, %v368_v26 }
  0x51   : > { %v22877_v9 = vsub.f32 %v334_v27, %v371_v36  ;;  %v22879_v10 = vsub.f32 %v335_v28, %v374_v41  ;;  %v22881_v12 = vsub.f32 %v336_v29, %v377_v42  ;;  %v22883_v13 = vsub.f32 %v337_v30, %v380_v44 }
  0x52   : > { %v22811_v33 = vld [vmem:[#allocation2] sm:$0xff]  ;;  %v22815_v35 = vld [vmem:[#allocation2 + $0x8] sm:$0xff]  ;;  %18913 = vmatpush3.bf16.msra.mxu0 %v22805_v19  ;;  %v22885_v15 = vsub.f32 %v338_v31, %v383_v45  ;;  %v446_v16 = vand.u32 4294901760, %v445_v61  ;;  %v466_v17 = vsub.f32 %v22836_v49, %v465_v62  ;;  %v486_v18 = vand.u32 4294901760, %v22860_v60 }
  0x53   : > { %28567 = vst [vmem:[#allocation9_spill] sm:$0xff] %v22815_v35  ;;  %v22819_v37 = vand.u32 4294901760, %v22811_v33  ;;  %18915 = vmatprep.subr.bf16.mxu0 %v22809_v24  ;;  %v22829_v43 = vand.u32 4294901760, %v22815_v35  ;;  %v22889_v20 = vsub.f32 %v339_v32, %v386_v46  ;;  %v453_v21 = vand.u32 4294901760, %v452_v3 }
  0x54   : > { %v460_v22 = vand.u32 4294901760, %v459_v4  ;;  %v473_v23 = vsub.f32 %v22838_v50, %v472_v63  ;;  %v493_v25 = vand.u32 4294901760, %v22865_v1  ;;  %v500_v27 = vand.u32 4294901760, %v22873_v7 }
  0x55   : > { %v22833_v47 = vsub.f32 %v22811_v33, %v22819_v37  ;;  %v22851_v56 = vsub.f32 %v22815_v35, %v22829_v43  ;;  %v507_v28 = vand.u32 4294901760, %v22875_v8  ;;  %v514_v29 = vand.u32 4294901760, %v22877_v9 }
  0x56   : > { %18917 = vmatpush3.bf16.msra.mxu0 %v22809_v24  ;;  %v521_v30 = vand.u32 4294901760, %v22879_v10  ;;  %v528_v31 = vand.u32 4294901760, %v22881_v12  ;;  %v535_v32 = vand.u32 4294901760, %v22883_v13  ;;  %v542_v36 = vand.u32 4294901760, %v22885_v15 }
  0x57   : > { %v28414_v51 = vand.u32 4294901760, %v22833_v47  ;;  %18919 = vmatprep.subr.bf16.mxu0 %v22826_v40  ;;  %v28413_v6 = vand.u32 4294901760, %v22851_v56  ;;  %v549_v41 = vand.u32 4294901760, %v22889_v20  ;;  %v22906_v42 = vpack.c.bf16 %v451_v52, %v444_v48 }
  0x58   : > { %v22908_v44 = vpack.c.bf16 %v465_v62, %v458_v53  ;;  %v22910_v45 = vpack.c.bf16 %v479_v5, %v472_v63  ;;  %v18934_v46 = vpack.c.bf16 %v453_v21, %v446_v16  ;;  %v480_v61 = vsub.f32 %v22844_v54, %v479_v5 }
  0x59   : > { %v424_v59 = vsub.f32 %v22833_v47, %v28414_v51  ;;  %v434_v26 = vsub.f32 %v22851_v56, %v28413_v6  ;;  %v22917_v3 = vpack.c.bf16 %v507_v28, %v500_v27  ;;  %v22919_v4 = vpack.c.bf16 %v521_v30, %v514_v29 }
  0x5a   : > { %18921 = vmatpush3.bf16.msra.mxu0 %v22826_v40  ;;  %v22921_v48 = vpack.c.bf16 %v535_v32, %v528_v31  ;;  %v22923_v52 = vpack.c.bf16 %v549_v41, %v542_v36  ;;  %v487_v62 = vsub.f32 %v22860_v60, %v486_v18  ;;  %v494_v63 = vsub.f32 %v22865_v1, %v493_v25 }
  0x5b   : > { %v425_v2 = vand.u32 4294901760, %v424_v59  ;;  %18923 = vmatprep.subr.bf16.mxu0 %v22847_v55  ;;  %v467_v59 = vand.u32 4294901760, %v466_v17  ;;  %v435_v53 = vand.u32 4294901760, %v434_v26  ;;  %v474_v16 = vand.u32 4294901760, %v473_v23 }
  0x5c   : > { %v481_v17 = vand.u32 4294901760, %v480_v61  ;;  %v488_v21 = vand.u32 4294901760, %v487_v62  ;;  %v495_v0 = vand.u32 4294901760, %v494_v63  ;;  %v501_v26 = vsub.f32 %v22873_v7, %v500_v27 }
  0x5d   : > { %15154 = vmatprep.mubr.f32.mxu0 %v425_v2  ;;  %v22914_v2 = vpack.c.bf16 %v493_v25, %v486_v18  ;;  %v18938_v5 = vpack.c.bf16 %v467_v59, %v460_v22  ;;  %v508_v51 = vsub.f32 %v22875_v8, %v507_v28  ;;  %v515_v22 = vsub.f32 %v22877_v9, %v514_v29 }
  0x5e   : > { %18925 = vmatpush3.bf16.msra.mxu0 %v22847_v55  ;;  %v18942_v6 = vpack.c.bf16 %v481_v17, %v474_v16  ;;  %v18946_v18 = vpack.c.bf16 %v495_v0, %v488_v21  ;;  %v502_v25 = vand.u32 4294901760, %v501_v26  ;;  %v522_v23 = vsub.f32 %v22879_v10, %v521_v30  ;;  %v315_v21 = vld [vmem:[#allocation3 + $0x40] sm:$0xff]  ;;  %v316_v26 = vld [vmem:[#allocation3 + $0x48] sm:$0xff] }
  0x5f   : > { %18927 = vmatprep.subr.bf16.mxu0 %v22853_v57  ;;  %v509_v35 = vand.u32 4294901760, %v508_v51  ;;  %v516_v61 = vand.u32 4294901760, %v515_v22  ;;  %v536_v27 = vsub.f32 %v22883_v13, %v535_v32  ;;  %v543_v51 = vsub.f32 %v22885_v15, %v542_v36 }
  0x60   : > { %v550_v29 = vsub.f32 %v22889_v20, %v549_v41  ;;  %v18966_v32 = vpack.c.bf16 %v22821_v38, %v22813_v34  ;;  %v18970_v36 = vpack.c.bf16 %v22836_v49, %v22823_v39  ;;  %v18974_v41 = vpack.c.bf16 %v22844_v54, %v22838_v50 }
  0x61   : > { %v18950_v59 = vpack.c.bf16 %v509_v35, %v502_v25  ;;  %v537_v62 = vand.u32 4294901760, %v536_v27  ;;  %v544_v30 = vand.u32 4294901760, %v543_v51  ;;  %v18978_v63 = vpack.c.bf16 %v22865_v1, %v22860_v60 }
  0x62   : > { %18929 = vmatpush3.bf16.msra.mxu0 %v22853_v57  ;;  %v18982_v34 = vpack.c.bf16 %v22875_v8, %v22873_v7  ;;  %v18986_v38 = vpack.c.bf16 %v22879_v10, %v22877_v9  ;;  %v18990_v39 = vpack.c.bf16 %v22883_v13, %v22881_v12  ;;  %v18994_v49 = vpack.c.bf16 %v22889_v20, %v22885_v15  ;;  %v28570_v7 = vld [vmem:[#allocation9_spill] sm:$0xff]  ;;  %v309_v15 = vld [vmem:[#allocation3 + $0x10] sm:$0xff]  ;;  %v310_v20 = vld [vmem:[#allocation3 + $0x18] sm:$0xff] }
  0x63   : > { %18931 = vmatprep.subr.bf16.mxu0 %v22855_v58  ;;  %v28568_v50 = vand.u32 4294901760, %v22833_v47  ;;  %v267_v54 = vlaneseq  ;;  %v296_v60 = vrot.slane %v22811_v33, 7  ;;  %v297_v8 = vrot.slane %v28570_v7, 7  ;;  %v307_v10 = vld [vmem:[#allocation3] sm:$0xff] }
  0x64   : > { %v1049_v25 = vand.u32 4294901760, %v315_v21  ;;  %v1052_v22 = vand.u32 4294901760, %v316_v26 }
  0x66   : > { %18933 = vmatpush3.bf16.msra.mxu0 %v22855_v58 }
  0x67   : > { %18935 = vmatprep.subr.bf16.mxu0 %v18934_v46 }
  0x69   : > { %15155 = vmatmul.mubr.f32.vlgmr.msra.gmra.mrb[0].mxu0 %v435_v53  ;;  %v523_v53 = vand.u32 4294901760, %v522_v23  ;;  %v23051_v23 = vld [vmem:[#allocation3 + $0x58] sm:$0xff] }
  0x6a   : > { %18937 = vmatpush3.bf16.msra.mxu0 %v18934_v46  ;;  %15189 = vmatprep.mubr.f32.mxu0 %v22819_v37  ;;  %v529_v46 = vsub.f32 %v22881_v12, %v528_v31  ;;  %v551_v31 = vand.u32 4294901760, %v550_v29 }
  0x6b   : > { %18939 = vmatprep.subr.bf16.mxu0 %v18938_v5  ;;  %v18954_v0 = vpack.c.bf16 %v523_v53, %v516_v61 }
  0x6c   : > { %v530_v28 = vand.u32 4294901760, %v529_v46  ;;  %v18962_v35 = vpack.c.bf16 %v551_v31, %v544_v30  ;;  %v23054_v46 = vld [vmem:[#allocation3 + $0x60] sm:$0xff] }
  0x6d   : > { %v1061_v51 = vand.u32 4294901760, %v23054_v46 }
  0x6e   : > { %18941 = vmatpush3.bf16.msra.mxu0 %v18938_v5  ;;  %v314_v5 = vld [vmem:[#allocation3 + $0x38] sm:$0xff] }
  0x6f   : > { %18943 = vmatprep.subr.bf16.mxu0 %v18942_v6 }
  0x72   : > { %18945 = vmatpush3.bf16.msra.mxu0 %v18942_v6  ;;  %v18958_v6 = vpack.c.bf16 %v537_v62, %v530_v28  ;;  %v23067_v28 = vpack.c.bf16 %v1052_v22, %v1049_v25  ;;  %v1058_v62 = vand.u32 4294901760, %v23051_v23 }
  0x73   : > { %18947 = vmatprep.subr.bf16.mxu0 %v18946_v18 }
  0x76   : > { %18949 = vmatpush3.bf16.msra.mxu0 %v18946_v18 }
  0x77   : > { %18951 = vmatprep.subr.bf16.mxu0 %v18950_v59 }
  0x7a   : > { %18953 = vmatpush3.bf16.msra.mxu0 %v18950_v59  ;;  %v23056_v59 = vld [vmem:[#allocation3 + $0x68] sm:$0xff] }
  0x7b   : > { %18955 = vmatprep.subr.bf16.mxu0 %v18954_v0  ;;  %v1064_v29 = vand.u32 4294901760, %v23056_v59 }
  0x7e   : > { %18957 = vmatpush3.bf16.msra.mxu0 %v18954_v0 }
  0x7f   : > { %18959 = vmatprep.subr.bf16.mxu0 %v18958_v6 }
  0x82   : > { %18961 = vmatpush3.bf16.msra.mxu0 %v18958_v6 }
  0x83   : > { %18963 = vmatprep.subr.bf16.mxu0 %v18962_v35 }
  0x86   : > { %18965 = vmatpush3.bf16.msra.mxu0 %v18962_v35  ;;  %v23081_v35 = vld [vmem:[#allocation3 + $0x70] sm:$0xff] }
  0x87   : > { %18967 = vmatprep.subr.bf16.mxu0 %v18966_v32 }
  0x89   : > { %15190 = vmatmul.mubr.f32.vlgmr.msra.gmra.mrb[0].mxu0 %v22829_v43 }
  0x8a   : > { %18969 = vmatpush3.bf16.msra.mxu0 %v18966_v32  ;;  %15224 = vmatprep.mubr.f32.mxu0 %v22833_v47  ;;  %v28569_v47 = vand.u32 4294901760, %v22851_v56  ;;  %v23083_v32 = vld [vmem:[#allocation3 + $0x78] sm:$0xff] }
  0x8b   : > { %18971 = vmatprep.subr.bf16.mxu0 %v18970_v36 }
  0x8e   : > { %18973 = vmatpush3.bf16.msra.mxu0 %v18970_v36 }
  0x8f   : > { %18975 = vmatprep.subr.bf16.mxu0 %v18974_v41 }
  0x92   : > { %18977 = vmatpush3.bf16.msra.mxu0 %v18974_v41 }
  0x93   : > { %18979 = vmatprep.subr.bf16.mxu0 %v18978_v63 }
  0x96   : > { %18981 = vmatpush3.bf16.msra.mxu0 %v18978_v63  ;;  %v23093_v63 = vpack.c.bf16 %v1064_v29, %v1061_v51 }
  0x97   : > { %18983 = vmatprep.subr.bf16.mxu0 %v18982_v34 }
  0x9a   : > { %18985 = vmatpush3.bf16.msra.mxu0 %v18982_v34 }
  0x9b   : > { %18987 = vmatprep.subr.bf16.mxu0 %v18986_v38 }
  0x9e   : > { %18989 = vmatpush3.bf16.msra.mxu0 %v18986_v38  ;;  %v1067_v38 = vand.u32 4294901760, %v23081_v35 }
  0x9f   : > { %18991 = vmatprep.subr.bf16.mxu0 %v18990_v39 }
  0xa2   : > { %18993 = vmatpush3.bf16.msra.mxu0 %v18990_v39  ;;  %v1070_v39 = vand.u32 4294901760, %v23083_v32 }
  0xa3   : > { %18995 = vmatprep.subr.bf16.mxu0 %v18994_v49 }
  0xa6   : > { %18997 = vmatpush3.bf16.msra.mxu0 %v18994_v49 }
  0xa7   : > { %18999 = vmatprep.subr.bf16.mxu0 %v22796_v11 }
  0xa9   : > { %15225 = vmatmul.mubr.f32.vlgmr.msra.gmra.mrb[0].mxu0 %v22851_v56  ;;  %v22994_v56 = vshrl.u32 %v267_v54, 7 }
  0xaa   : > { %19001 = vmatpush3.bf16.msra.mxu0 %v22796_v11  ;;  %15259 = vmatprep.mubr.f32.mxu0 %v28568_v50 }
  0xab   : > { %19003 = vmatprep.subr.bf16.mxu0 %v22798_v14  ;;  %v23002_v1 = vand.u32 15, %v22994_v56  ;;  %vm298_vm1 = vcmp.lt.s32.totalorder %v22994_v56, 1  ;;  %vm3139_vm3 = vcmp.lt.s32.totalorder %v22994_v56, 2  ;;  %vm5982_vm5 = vcmp.lt.s32.totalorder %v22994_v56, 4 }
  0xac   : > { %v299_v27 = vsel %vm298_vm1, %v296_v60, %v297_v8 }
  0xad   : > { %vm294_vm2 = vcmp.ge.s32.totalorder %v23002_v1, 1  ;;  %v23073_v6 = vand.u32 4294901760, %v299_v27  ;;  %vm3135_vm4 = vcmp.ge.s32.totalorder %v23002_v1, 2  ;;  %vm5978_vm6 = vcmp.ge.s32.totalorder %v23002_v1, 4 }
  0xae   : > { %19005 = vmatpush3.bf16.msra.mxu0 %v22798_v14 }
  0xaf   : > { %19007 = vmatprep.subr.bf16.mxu0 %v22805_v19  ;;  %v23096_v34 = vsub.f32 %v299_v27, %v23073_v6 }
  0xb2   : > { %19009 = vmatpush3.bf16.msra.mxu0 %v22805_v19 }
  0xb3   : > { %19011 = vmatprep.subr.bf16.mxu0 %v22809_v24 }
  0xb6   : > { %19013 = vmatpush3.bf16.msra.mxu0 %v22809_v24 }
  0xb7   : > { %19015 = vmatprep.subr.bf16.mxu0 %v22826_v40 }
  0xba   : > { %19017 = vmatpush3.bf16.msra.mxu0 %v22826_v40 }
  0xbb   : > { %19019 = vmatprep.subr.bf16.mxu0 %v22847_v55 }
  0xbe   : > { %19021 = vmatpush3.bf16.msra.mxu0 %v22847_v55 }
  0xbf   : > { %19023 = vmatprep.subr.bf16.mxu0 %v22853_v57 }
  0xc2   : > { %19025 = vmatpush3.bf16.msra.mxu0 %v22853_v57 }
  0xc3   : > { %19027 = vmatprep.subr.bf16.mxu0 %v22855_v58 }
  0xc6   : > { %19029 = vmatpush3.bf16.msra.mxu0 %v22855_v58 }
  0xc7   : > { %19031 = vmatprep.subr.bf16.mxu0 %v22906_v42 }
  0xc9   : > { %15260 = vmatmul.mubr.f32.vlgmr.msra.gmra.mrb[0].mxu0 %v28569_v47 }
  0xca   : > { %19033 = vmatpush3.bf16.msra.mxu0 %v22906_v42  ;;  %15294 = vmatprep.mubr.f32.mxu0 %v22819_v37 }
  0xcb   : > { %19035 = vmatprep.subr.bf16.mxu0 %v22908_v44 }
  0xce   : > { %19037 = vmatpush3.bf16.msra.mxu0 %v22908_v44  ;;  %v1031_v44 = vand.u32 4294901760, %v309_v15 }
  0xcf   : > { %19039 = vmatprep.subr.bf16.mxu0 %v22910_v45 }
  0xd0   : > { %v23085_v36 = vsub.f32 %v309_v15, %v1031_v44 }
  0xd2   : > { %19041 = vmatpush3.bf16.msra.mxu0 %v22910_v45  ;;  %v311_v45 = vld [vmem:[#allocation3 + $0x20] sm:$0xff]  ;;  %v1142_v47 = vand.u32 4294901760, %v23085_v36 }
  0xd3   : > { %19043 = vmatprep.subr.bf16.mxu0 %v22914_v2 }
  0xd6   : > { %19045 = vmatpush3.bf16.msra.mxu0 %v22914_v2  ;;  %v312_v2 = vld [vmem:[#allocation3 + $0x28] sm:$0xff] }
  0xd7   : > { %19047 = vmatprep.subr.bf16.mxu0 %v22917_v3 }
  0xda   : > { %19049 = vmatpush3.bf16.msra.mxu0 %v22917_v3 }
  0xdb   : > { %19051 = vmatprep.subr.bf16.mxu0 %v22919_v4 }
  0xde   : > { %19053 = vmatpush3.bf16.msra.mxu0 %v22919_v4 }
  0xdf   : > { %19055 = vmatprep.subr.bf16.mxu0 %v22921_v48 }
  0xe2   : > { %19057 = vmatpush3.bf16.msra.mxu0 %v22921_v48  ;;  %v1040_v48 = vand.u32 4294901760, %v312_v2 }
  0xe3   : > { %19059 = vmatprep.subr.bf16.mxu0 %v22923_v52 }
  0xe4   : > { %v23112_v7 = vsub.f32 %v312_v2, %v1040_v48 }
  0xe6   : > { %19061 = vmatpush3.bf16.msra.mxu0 %v22923_v52  ;;  %v313_v52 = vld [vmem:[#allocation3 + $0x30] sm:$0xff] }
  0xe7   : > { %19063 = vmatprep.subr.bf16.mxu0 %v22796_v11  ;;  %v1043_v17 = vand.u32 4294901760, %v313_v52 }
  0xe9   : > { %15295 = vmatmul.mubr.f32.vlgmr.msra.gmra.mrb[0].mxu0 %v22829_v43 }
  0xea   : > { %19065 = vmatpush3.bf16.msra.mxu0 %v22796_v11  ;;  %15329 = vmatprep.mubr.f32.mxu0 %v22819_v37  ;;  %v300_v11 = vsel %vm298_vm1, %v297_v8, %v296_v60  ;;  %v1117_v8 = vand.u32 4294901760, %v23096_v34 }
  0xeb   : > { %19067 = vmatprep.subr.bf16.mxu0 %v22798_v14  ;;  %v305_v37 = vsel %vm294_vm2, %v300_v11, 0.0  ;;  %v23115_v11 = vsub.f32 %v313_v52, %v1043_v17 }
  0xec   : > { %v23018_v9 = vand.u32 4294901760, %v305_v37 }
  0xee   : > { %19069 = vmatpush3.bf16.msra.mxu0 %v22798_v14  ;;  %v23023_v14 = vsub.f32 %v305_v37, %v23018_v9 }
  0xef   : > { %19071 = vmatprep.subr.bf16.mxu0 %v22805_v19 }
  0xf0   : > { %v1107_v12 = vand.u32 4294901760, %v23023_v14 }
  0xf2   : > { %19073 = vmatpush3.bf16.msra.mxu0 %v22805_v19  ;;  %v308_v19 = vld [vmem:[#allocation3 + $0x8] sm:$0xff] }
  0xf3   : > { %19075 = vmatprep.subr.bf16.mxu0 %v22809_v24  ;;  %v1028_v13 = vand.u32 4294901760, %v308_v19 }
  0xf5   : > { %v23060_v53 = vsub.f32 %v308_v19, %v1028_v13 }
  0xf6   : > { %19077 = vmatpush3.bf16.msra.mxu0 %v22809_v24  ;;  %v1025_v24 = vand.u32 4294901760, %v307_v10 }
  0xf7   : > { %19079 = vmatprep.subr.bf16.mxu0 %v22826_v40  ;;  %v1135_v30 = vand.u32 4294901760, %v23060_v53 }
  0xf8   : > { %v23034_v42 = vpack.c.bf16 %v1028_v13, %v1025_v24  ;;  %v23058_v61 = vsub.f32 %v307_v10, %v1025_v24  ;;  %v23124_v10 = vpack.c.bf16 %v1070_v39, %v1067_v38  ;;  %v1143_v13 = vsub.f32 %v23085_v36, %v1142_v47 }
  0xf9   : > { %v1136_v50 = vsub.f32 %v23060_v53, %v1135_v30 }
  0xfa   : > { %19081 = vmatpush3.bf16.msra.mxu0 %v22826_v40  ;;  %v1108_v40 = vsub.f32 %v23023_v14, %v1107_v12  ;;  %v1128_v33 = vand.u32 4294901760, %v23058_v61 }
  0xfb   : > { %19083 = vmatprep.subr.bf16.mxu0 %v22847_v55  ;;  %v1137_v24 = vand.u32 4294901760, %v1136_v50 }
  0xfc   : > { %v1109_v3 = vand.u32 4294901760, %v1108_v40  ;;  %v1129_v49 = vsub.f32 %v23058_v61, %v1128_v33  ;;  %v1163_v40 = vand.u32 4294901760, %v23112_v7 }
  0xfe   : > { %19085 = vmatpush3.bf16.msra.mxu0 %v22847_v55  ;;  %v1034_v55 = vand.u32 4294901760, %v310_v20  ;;  %v1130_v19 = vand.u32 4294901760, %v1129_v49  ;;  %v23165_v49 = vsub.f32 %v23051_v23, %v1058_v62 }
  0xff   : > { %19087 = vmatprep.subr.bf16.mxu0 %v22853_v57 }
 0x100   : > { %v23038_v4 = vpack.c.bf16 %v1034_v55, %v1031_v44  ;;  %v23087_v41 = vsub.f32 %v310_v20, %v1034_v55  ;;  %v1118_v44 = vsub.f32 %v23096_v34, %v1117_v8  ;;  %v1170_v55 = vand.u32 4294901760, %v23115_v11 }
 0x101   : > { %v19126_v2 = vpack.c.bf16 %v1137_v24, %v1130_v19  ;;  %v1205_v23 = vand.u32 4294901760, %v23165_v49 }
 0x102   : > { %19089 = vmatpush3.bf16.msra.mxu0 %v22853_v57  ;;  %v1037_v57 = vand.u32 4294901760, %v311_v45  ;;  %v1149_v54 = vand.u32 4294901760, %v23087_v41 }
 0x103   : > { %19091 = vmatprep.subr.bf16.mxu0 %v22855_v58 }
 0x104   : > { %v23043_v16 = vpack.c.bf16 %v1040_v48, %v1037_v57  ;;  %v23110_v60 = vsub.f32 %v311_v45, %v1037_v57  ;;  %v1150_v15 = vsub.f32 %v23087_v41, %v1149_v54  ;;  %v23143_v57 = vsub.f32 %v316_v26, %v1052_v22 }
 0x105   : > { %v1144_v48 = vand.u32 4294901760, %v1143_v13 }
 0x106   : > { %19093 = vmatpush3.bf16.msra.mxu0 %v22855_v58  ;;  %v1046_v58 = vand.u32 4294901760, %v314_v5  ;;  %v1156_v20 = vand.u32 4294901760, %v23110_v60  ;;  %v1151_v52 = vand.u32 4294901760, %v1150_v15  ;;  %v1191_v22 = vand.u32 4294901760, %v23143_v57 }
 0x107   : > { %19095 = vmatprep.subr.bf16.mxu0 %v23034_v42 }
 0x108   : > { %v23047_v18 = vpack.c.bf16 %v1046_v58, %v1043_v17  ;;  %v23117_v37 = vsub.f32 %v314_v5, %v1046_v58  ;;  %v1157_v5 = vsub.f32 %v23110_v60, %v1156_v20  ;;  %v1164_v17 = vsub.f32 %v23112_v7, %v1163_v40 }
 0x109   : > { %15330 = vmatmul.mubr.f32.vlgmr.msra.gmra.mrb[0].mxu0 %v22829_v43  ;;  %v23049_v43 = vld [vmem:[#allocation3 + $0x50] sm:$0xff]  ;;  %v1119_v58 = vand.u32 4294901760, %v1118_v44  ;;  %v19130_v50 = vpack.c.bf16 %v1151_v52, %v1144_v48  ;;  %v23184_v48 = vsub.f32 %v23056_v59, %v1064_v29  ;;  %v23197_v59 = vsub.f32 %v23081_v35, %v1067_v38 }
 0x10a   : > { %19097 = vmatpush3.bf16.msra.mxu0 %v23034_v42  ;;  %15364 = vmatprep.mubr.f32.mxu0 %v1109_v3  ;;  %v1055_v0 = vand.u32 4294901760, %v23049_v43  ;;  %v1177_v45 = vand.u32 4294901760, %v23117_v37  ;;  %v23141_v3 = vsub.f32 %v315_v21, %v1049_v25  ;;  %v1171_v21 = vsub.f32 %v23115_v11, %v1170_v55 }
 0x10b   : > { %19099 = vmatprep.subr.bf16.mxu0 %v23038_v4  ;;  %v1158_v19 = vand.u32 4294901760, %v1157_v5  ;;  %v1165_v24 = vand.u32 4294901760, %v1164_v17  ;;  %v23202_v29 = vsub.f32 %v23083_v32, %v1070_v39  ;;  %v28417_v35 = vand.u32 4294901760, %v23197_v59 }
 0x10c   : > { %v23079_v31 = vpack.c.bf16 %v1058_v62, %v1055_v0  ;;  %v1178_v26 = vsub.f32 %v23117_v37, %v1177_v45  ;;  %v1184_v25 = vand.u32 4294901760, %v23141_v3  ;;  %v23162_v27 = vsub.f32 %v23049_v43, %v1055_v0 }
 0x10d   : > { %v1172_v13 = vand.u32 4294901760, %v1171_v21  ;;  %v1192_v43 = vsub.f32 %v23143_v57, %v1191_v22  ;;  %v19134_v62 = vpack.c.bf16 %v1165_v24, %v1158_v19  ;;  %v1206_v21 = vsub.f32 %v23165_v49, %v1205_v23 }
 0x10e   : > { %19101 = vmatpush3.bf16.msra.mxu0 %v23038_v4  ;;  %v1179_v15 = vand.u32 4294901760, %v1178_v26  ;;  %v1185_v44 = vsub.f32 %v23141_v3, %v1184_v25  ;;  %v1198_v0 = vand.u32 4294901760, %v23162_v27  ;;  %v28416_v38 = vand.u32 4294901760, %v23202_v29 }
 0x10f   : > { %19103 = vmatprep.subr.bf16.mxu0 %v23043_v16  ;;  %v1193_v17 = vand.u32 4294901760, %v1192_v43  ;;  %v1207_v19 = vand.u32 4294901760, %v1206_v21  ;;  %v19162_v21 = vpack.c.bf16 %v23087_v41, %v23085_v36  ;;  %v28571_v36 = vand.u32 4294901760, %v23184_v48 }
 0x110   : > { %v19138_v52 = vpack.c.bf16 %v1179_v15, %v1172_v13  ;;  %v1186_v5 = vand.u32 4294901760, %v1185_v44  ;;  %v1227_v44 = vsub.f32 %v23197_v59, %v28417_v35  ;;  %v1234_v43 = vsub.f32 %v23202_v29, %v28416_v38  ;;  %v23256_v38 = vld [vmem:[#allocation5 + $0xb0] sm:$0xff]  ;;  %v23258_v35 = vld [vmem:[#allocation5 + $0xb8] sm:$0xff] }
 0x112   : > { %19105 = vmatpush3.bf16.msra.mxu0 %v23043_v16  ;;  %v19142_v26 = vpack.c.bf16 %v1193_v17, %v1186_v5  ;;  %v1228_v5 = vand.u32 4294901760, %v1227_v44  ;;  %v1235_v17 = vand.u32 4294901760, %v1234_v43  ;;  %v23237_v44 = vld [vmem:[#allocation5 + $0xa8] sm:$0xff]  ;;  %v19166_v43 = vpack.c.bf16 %v23112_v7, %v23110_v60  ;;  %v1751_v60 = vld [vmem:[#allocation5 + $0xd8] sm:$0xff] }
 0x113   : > { %19107 = vmatprep.subr.bf16.mxu0 %v23047_v18  ;;  %v1790_v7 = vand.u32 4294901760, %v1751_v60 }
 0x116   : > { %19109 = vmatpush3.bf16.msra.mxu0 %v23047_v18 }
 0x117   : > { %19111 = vmatprep.subr.bf16.mxu0 %v23067_v28 }
 0x11a   : > { %19113 = vmatpush3.bf16.msra.mxu0 %v23067_v28 }
 0x11b   : > { %19115 = vmatprep.subr.bf16.mxu0 %v23079_v31 }
 0x11e   : > { %19117 = vmatpush3.bf16.msra.mxu0 %v23079_v31 }
 0x11f   : > { %19119 = vmatprep.subr.bf16.mxu0 %v23093_v63 }
 0x122   : > { %19121 = vmatpush3.bf16.msra.mxu0 %v23093_v63 }
 0x123   : > { %19123 = vmatprep.subr.bf16.mxu0 %v23124_v10 }
 0x126   : > { %19125 = vmatpush3.bf16.msra.mxu0 %v23124_v10 }
 0x127   : > { %19127 = vmatprep.subr.bf16.mxu0 %v19126_v2 }
 0x129   : > { %15365 = vmatmul.mubr.f32.vlgmr.msra.gmra.mrb[0].mxu0 %v1119_v58  ;;  %v1199_v58 = vsub.f32 %v23162_v27, %v1198_v0 }
 0x12a   : > { %19129 = vmatpush3.bf16.msra.mxu0 %v19126_v2  ;;  %15399 = vmatprep.mubr.f32.mxu0 %v23018_v9  ;;  %v23179_v2 = vsub.f32 %v23054_v46, %v1061_v51  ;;  %v28422_v51 = vand.u32 4294901760, %v23184_v48 }
 0x12b   : > { %19131 = vmatprep.subr.bf16.mxu0 %v19130_v50 }
 0x12c   : > { %v1212_v46 = vand.u32 4294901760, %v23179_v2  ;;  %v1220_v13 = vsub.f32 %v23184_v48, %v28422_v51 }
 0x12e   : > { %19133 = vmatpush3.bf16.msra.mxu0 %v19130_v50  ;;  %v1200_v50 = vand.u32 4294901760, %v1199_v58  ;;  %v1213_v24 = vsub.f32 %v23179_v2, %v1212_v46  ;;  %v1221_v15 = vand.u32 4294901760, %v1220_v13  ;;  %v19158_v58 = vpack.c.bf16 %v23060_v53, %v23058_v61 }
 0x12f   : > { %19135 = vmatprep.subr.bf16.mxu0 %v19134_v62  ;;  %v19230_v61 = vpack.c.bf16 %v1163_v40, %v1156_v20  ;;  %v19234_v53 = vpack.c.bf16 %v1177_v45, %v1170_v55  ;;  %v19246_v41 = vpack.c.bf16 %v28571_v36, %v1212_v46 }
 0x130   : > { %v19146_v32 = vpack.c.bf16 %v1207_v19, %v1200_v50  ;;  %v1214_v39 = vand.u32 4294901760, %v1213_v24  ;;  %v23225_v50 = vld [vmem:[#allocation5 + $0x88] sm:$0xff]  ;;  %v23227_v19 = vld [vmem:[#allocation5 + $0x90] sm:$0xff] }
 0x131   : > { %v28418_v13 = vand.u32 4294901760, %v23225_v50  ;;  %v28575_v55 = vand.u32 4294901760, %v23225_v50 }
 0x132   : > { %19137 = vmatpush3.bf16.msra.mxu0 %v19134_v62  ;;  %v19150_v62 = vpack.c.bf16 %v1221_v15, %v1214_v39  ;;  %v28420_v39 = vand.u32 4294901760, %v23227_v19  ;;  %v23235_v15 = vld [vmem:[#allocation5 + $0xa0] sm:$0xff] }
 0x133   : > { %19139 = vmatprep.subr.bf16.mxu0 %v19138_v52  ;;  %v23383_v45 = vsub.f32 %v23225_v50, %v28575_v55 }
 0x136   : > { %19141 = vmatpush3.bf16.msra.mxu0 %v19138_v52  ;;  %v19154_v52 = vpack.c.bf16 %v1235_v17, %v1228_v5  ;;  %v1769_v17 = vand.u32 4294901760, %v23235_v15 }
 0x137   : > { %19143 = vmatprep.subr.bf16.mxu0 %v19142_v26 }
 0x13a   : > { %19145 = vmatpush3.bf16.msra.mxu0 %v19142_v26  ;;  %v23223_v26 = vld [vmem:[#allocation5 + $0x80] sm:$0xff] }
 0x13b   : > { %19147 = vmatprep.subr.bf16.mxu0 %v19146_v32  ;;  %v28421_v24 = vand.u32 4294901760, %v23223_v26  ;;  %v28574_v20 = vand.u32 4294901760, %v23223_v26 }
 0x13d   : > { %v23246_v5 = vpack.c.bf16 %v28418_v13, %v28421_v24  ;;  %v19170_v13 = vpack.c.bf16 %v23117_v37, %v23115_v11  ;;  %v19174_v24 = vpack.c.bf16 %v23143_v57, %v23141_v3  ;;  %v1753_v11 = vld [vmem:[#allocation5 + $0xe8] sm:$0xff]  ;;  %v23378_v40 = vsub.f32 %v23223_v26, %v28574_v20  ;;  %v1754_v3 = vld [vmem:[#allocation5 + $0xf0] sm:$0xff]  ;;  %v1755_v57 = vld [vmem:[#allocation5 + $0xf8] sm:$0xff] }
 0x13e   : > { %19149 = vmatpush3.bf16.msra.mxu0 %v19146_v32  ;;  %v23232_v32 = vld [vmem:[#allocation5 + $0x98] sm:$0xff]  ;;  %v1796_v37 = vand.u32 4294901760, %v1753_v11 }
 0x13f   : > { %19151 = vmatprep.subr.bf16.mxu0 %v19150_v62  ;;  %19287 = vmatprep.subr.bf16.mxu1 %v23246_v5 }
 0x140   : > { %19289 = vmatpush3.bf16.msra.mxu1 %v23246_v5 }
 0x142   : > { %19153 = vmatpush3.bf16.msra.mxu0 %v19150_v62  ;;  %v28419_v62 = vand.u32 4294901760, %v23232_v32 }
 0x143   : > { %19155 = vmatprep.subr.bf16.mxu0 %v19154_v52 }
 0x146   : > { %19157 = vmatpush3.bf16.msra.mxu0 %v19154_v52  ;;  %v28423_v52 = vand.u32 4294901760, %v23237_v44 }
 0x147   : > { %19159 = vmatprep.subr.bf16.mxu0 %v19158_v58 }
 0x149   : > { %15400 = vmatmul.mubr.f32.vlgmr.msra.gmra.mrb[0].mxu0 %v23073_v6 }
 0x14a   : > { %19161 = vmatpush3.bf16.msra.mxu0 %v19158_v58  ;;  %15434 = vmatprep.mubr.f32.mxu0 %v23023_v14  ;;  %v23254_v58 = vpack.c.bf16 %v28419_v62, %v28420_v39  ;;  %v23269_v62 = vpack.c.bf16 %v28423_v52, %v1769_v17  ;;  %v1775_v39 = vand.u32 4294901760, %v23256_v38  ;;  %v19178_v52 = vpack.c.bf16 %v23165_v49, %v23162_v27 }
 0x14b   : > { %19163 = vmatprep.subr.bf16.mxu0 %v19162_v21  ;;  %v19222_v14 = vpack.c.bf16 %v1135_v30, %v1128_v33  ;;  %v19238_v33 = vpack.c.bf16 %v1191_v22, %v1184_v25  ;;  %v19242_v30 = vpack.c.bf16 %v1205_v23, %v1198_v0  ;;  %v1799_v25 = vand.u32 4294901760, %v1754_v3 }
 0x14c   : > { %19291 = vmatprep.subr.bf16.mxu1 %v23254_v58  ;;  %v1802_v22 = vand.u32 4294901760, %v1755_v57  ;;  %v1860_v27 = vand.u32 4294901760, %v23378_v40  ;;  %v1867_v49 = vand.u32 4294901760, %v23383_v45 }
 0x14d   : > { %19293 = vmatpush3.bf16.msra.mxu1 %v23254_v58 }
 0x14e   : > { %19165 = vmatpush3.bf16.msra.mxu0 %v19162_v21  ;;  %v1778_v21 = vand.u32 4294901760, %v23258_v35  ;;  %19295 = vmatprep.subr.bf16.mxu1 %v23269_v62  ;;  %v23389_v0 = vpack.c.bf16 %v1802_v22, %v1799_v25  ;;  %v1861_v23 = vsub.f32 %v23378_v40, %v1860_v27 }
 0x14f   : > { %19167 = vmatprep.subr.bf16.mxu0 %v19166_v43 }
 0x150   : > { %v23281_v51 = vpack.c.bf16 %v1778_v21, %v1775_v39 }
 0x151   : > { %19297 = vmatpush3.bf16.msra.mxu1 %v23269_v62 }
 0x152   : > { %19169 = vmatpush3.bf16.msra.mxu0 %v19166_v43  ;;  %19299 = vmatprep.subr.bf16.mxu1 %v23281_v51  ;;  %v19182_v43 = vpack.c.bf16 %v23184_v48, %v23179_v2  ;;  %v1868_v2 = vsub.f32 %v23383_v45, %v1867_v49  ;;  %v1862_v48 = vand.u32 4294901760, %v1861_v23  ;;  %v23460_v23 = vpack.c.bf16 %v23383_v45, %v23378_v40 }
 0x153   : > { %19171 = vmatprep.subr.bf16.mxu0 %v19170_v13 }
 0x154   : > { %v1869_v46 = vand.u32 4294901760, %v1868_v2 }
 0x155   : > { %19301 = vmatpush3.bf16.msra.mxu1 %v23281_v51 }
 0x156   : > { %19173 = vmatpush3.bf16.msra.mxu0 %v19170_v13  ;;  %v19186_v13 = vpack.c.bf16 %v23202_v29, %v23197_v59 }
 0x157   : > { %19175 = vmatprep.subr.bf16.mxu0 %v19174_v24 }
 0x15a   : > { %19177 = vmatpush3.bf16.msra.mxu0 %v19174_v24 }
 0x15b   : > { %19179 = vmatprep.subr.bf16.mxu0 %v19178_v52 }
 0x15e   : > { %19181 = vmatpush3.bf16.msra.mxu0 %v19178_v52 }
 0x15f   : > { %19183 = vmatprep.subr.bf16.mxu0 %v19182_v43 }
 0x162   : > { %19185 = vmatpush3.bf16.msra.mxu0 %v19182_v43 }
 0x163   : > { %19187 = vmatprep.subr.bf16.mxu0 %v19186_v13 }
 0x166   : > { %19189 = vmatpush3.bf16.msra.mxu0 %v19186_v13 }
 0x167   : > { %19191 = vmatprep.subr.bf16.mxu0 %v23034_v42 }
 0x169   : > { %15435 = vmatmul.mubr.f32.vlgmr.msra.gmra.mrb[0].mxu0 %v23096_v34  ;;  %v28572_v34 = vand.u32 4294901760, %v23197_v59  ;;  %v23399_v59 = vpack.c.bf16 %v1869_v46, %v1862_v48 }
 0x16a   : > { %19193 = vmatpush3.bf16.msra.mxu0 %v23034_v42  ;;  %15469 = vmatprep.mubr.f32.mxu0 %v1107_v12  ;;  %v19226_v12 = vpack.c.bf16 %v1149_v54, %v1142_v47  ;;  %v28573_v47 = vand.u32 4294901760, %v23202_v29 }
 0x16b   : > { %19195 = vmatprep.subr.bf16.mxu0 %v23038_v4 }
 0x16c   : > { %v19250_v54 = vpack.c.bf16 %v28573_v47, %v28572_v34  ;;  %v23430_v47 = vsub.f32 %v1753_v11, %v1796_v37 }
 0x16e   : > { %19197 = vmatpush3.bf16.msra.mxu0 %v23038_v4 }
 0x16f   : > { %19199 = vmatprep.subr.bf16.mxu0 %v23043_v16 }
 0x172   : > { %19201 = vmatpush3.bf16.msra.mxu0 %v23043_v16 }
 0x173   : > { %19203 = vmatprep.subr.bf16.mxu0 %v23047_v18 }
 0x176   : > { %19205 = vmatpush3.bf16.msra.mxu0 %v23047_v18 }
 0x177   : > { %19207 = vmatprep.subr.bf16.mxu0 %v23067_v28 }
 0x17a   : > { %19209 = vmatpush3.bf16.msra.mxu0 %v23067_v28 }
 0x17b   : > { %19211 = vmatprep.subr.bf16.mxu0 %v23079_v31 }
 0x17e   : > { %19213 = vmatpush3.bf16.msra.mxu0 %v23079_v31 }
 0x17f   : > { %19215 = vmatprep.subr.bf16.mxu0 %v23093_v63 }
 0x182   : > { %19217 = vmatpush3.bf16.msra.mxu0 %v23093_v63 }
 0x183   : > { %19219 = vmatprep.subr.bf16.mxu0 %v23124_v10 }
 0x186   : > { %19221 = vmatpush3.bf16.msra.mxu0 %v23124_v10 }
 0x187   : > { %19223 = vmatprep.subr.bf16.mxu0 %v19222_v14 }
 0x189   : > { %15470 = vmatmul.mubr.f32.vlgmr.msra.gmra.mrb[0].mxu0 %v1117_v8  ;;  %v1752_v8 = vld [vmem:[#allocation5 + $0xe0] sm:$0xff] }
 0x18a   : > { %19225 = vmatpush3.bf16.msra.mxu0 %v19222_v14  ;;  %15504 = vmatprep.mubr.f32.mxu0 %v23018_v9  ;;  %v23416_v14 = vsub.f32 %v1751_v60, %v1790_v7  ;;  %v23439_v60 = vsub.f32 %v1754_v3, %v1799_v25 }
 0x18b   : > { %19227 = vmatprep.subr.bf16.mxu0 %v19226_v12 }
 0x18c   : > { %v28425_v11 = vand.u32 4294901760, %v23439_v60 }
 0x18e   : > { %19229 = vmatpush3.bf16.msra.mxu0 %v19226_v12  ;;  %v1959_v20 = vsub.f32 %v23439_v60, %v28425_v11 }
 0x18f   : > { %19231 = vmatprep.subr.bf16.mxu0 %v19230_v61 }
 0x192   : > { %19233 = vmatpush3.bf16.msra.mxu0 %v19230_v61 }
 0x193   : > { %19235 = vmatprep.subr.bf16.mxu0 %v19234_v53 }
 0x196   : > { %19237 = vmatpush3.bf16.msra.mxu0 %v19234_v53 }
 0x197   : > { %19239 = vmatprep.subr.bf16.mxu0 %v19238_v33 }
 0x19a   : > { %19241 = vmatpush3.bf16.msra.mxu0 %v19238_v33  ;;  %v28428_v33 = vand.u32 4294901760, %v23416_v14 }
 0x19b   : > { %19243 = vmatprep.subr.bf16.mxu0 %v19242_v30 }
 0x19e   : > { %19245 = vmatpush3.bf16.msra.mxu0 %v19242_v30 }
 0x19f   : > { %19247 = vmatprep.subr.bf16.mxu0 %v19246_v41 }
 0x1a2   : > { %19249 = vmatpush3.bf16.msra.mxu0 %v19246_v41  ;;  %v1938_v41 = vsub.f32 %v23416_v14, %v28428_v33 }
 0x1a3   : > { %19251 = vmatprep.subr.bf16.mxu0 %v19250_v54 }
 0x1a6   : > { %19253 = vmatpush3.bf16.msra.mxu0 %v19250_v54 }
 0x1a7   : > { %19255 = vmatprep.subr.bf16.mxu0 %v23034_v42 }
 0x1a9   : > { %15505 = vmatmul.mubr.f32.vlgmr.msra.gmra.mrb[0].mxu0 %v23073_v6 }
 0x1aa   : > { %19257 = vmatpush3.bf16.msra.mxu0 %v23034_v42  ;;  %15539 = vmatprep.mubr.f32.mxu0 %v23018_v9  ;;  %v1748_v9 = vld [vmem:[#allocation5 + $0xc0] sm:$0xff]  ;;  %v1749_v42 = vld [vmem:[#allocation5 + $0xc8] sm:$0xff] }
 0x1ab   : > { %19259 = vmatprep.subr.bf16.mxu0 %v23038_v4 }
 0x1ae   : > { %19261 = vmatpush3.bf16.msra.mxu0 %v23038_v4  ;;  %v1781_v4 = vand.u32 4294901760, %v1748_v9 }
 0x1af   : > { %19263 = vmatprep.subr.bf16.mxu0 %v23043_v16 }
 0x1b0   : > { %v23402_v29 = vsub.f32 %v1748_v9, %v1781_v4  ;;  %v1939_v9 = vand.u32 4294901760, %v1938_v41 }
 0x1b2   : > { %19265 = vmatpush3.bf16.msra.mxu0 %v23043_v16  ;;  %v1784_v16 = vand.u32 4294901760, %v1749_v42  ;;  %v28431_v50 = vand.u32 4294901760, %v23402_v29 }
 0x1b3   : > { %19267 = vmatprep.subr.bf16.mxu0 %v23047_v18 }
 0x1b4   : > { %v23404_v26 = vsub.f32 %v1749_v42, %v1784_v16  ;;  %v1917_v52 = vsub.f32 %v23402_v29, %v28431_v50 }
 0x1b6   : > { %19269 = vmatpush3.bf16.msra.mxu0 %v23047_v18  ;;  %v23365_v18 = vpack.c.bf16 %v1784_v16, %v1781_v4  ;;  %v28430_v24 = vand.u32 4294901760, %v23404_v26  ;;  %v1918_v12 = vand.u32 4294901760, %v1917_v52  ;;  %v28426_v4 = vand.u32 4294901760, %v23430_v47 }
 0x1b7   : > { %19271 = vmatprep.subr.bf16.mxu0 %v23067_v28  ;;  %v23464_v2 = vpack.c.bf16 %v23404_v26, %v23402_v29 }
 0x1b8   : > { %19303 = vmatprep.subr.bf16.mxu1 %v23365_v18  ;;  %v1924_v43 = vsub.f32 %v23404_v26, %v28430_v24 }
 0x1b9   : > { %19305 = vmatpush3.bf16.msra.mxu1 %v23365_v18 }
 0x1ba   : > { %19273 = vmatpush3.bf16.msra.mxu0 %v23067_v28  ;;  %v1750_v28 = vld [vmem:[#allocation5 + $0xd0] sm:$0xff]  ;;  %v1925_v61 = vand.u32 4294901760, %v1924_v43  ;;  %v28576_v43 = vand.u32 4294901760, %v23227_v19 }
 0x1bb   : > { %19275 = vmatprep.subr.bf16.mxu0 %v23079_v31 }
 0x1bc   : > { %v23420_v30 = vpack.c.bf16 %v1925_v61, %v1918_v12  ;;  %v23481_v12 = vsub.f32 %v23227_v19, %v28576_v43  ;;  %v13166_v61 = vld [vmem:[%s28404_s2] ss:$0 sm:$0xff]  ;;  %v23496_v19 = vsub.f32 %v23235_v15, %v1769_v17 }
 0x1be   : > { %19277 = vmatpush3.bf16.msra.mxu0 %v23079_v31  ;;  %v1787_v31 = vand.u32 4294901760, %v1750_v28  ;;  %v28432_v17 = vand.u32 4294901760, %v23496_v19  ;;  %v28579_v40 = vand.u32 4294901760, %v23496_v19 }
 0x1bf   : > { %19279 = vmatprep.subr.bf16.mxu0 %v23093_v63 }
 0x1c0   : > { %v23414_v13 = vsub.f32 %v1750_v28, %v1787_v31 }
 0x1c2   : > { %19281 = vmatpush3.bf16.msra.mxu0 %v23093_v63  ;;  %v23369_v63 = vpack.c.bf16 %v1790_v7, %v1787_v31  ;;  %v28429_v53 = vand.u32 4294901760, %v23414_v13  ;;  %v23441_v31 = vsub.f32 %v1755_v57, %v1802_v22  ;;  %v1952_v7 = vsub.f32 %v23430_v47, %v28426_v4 }
 0x1c3   : > { %19283 = vmatprep.subr.bf16.mxu0 %v23124_v10  ;;  %v1960_v57 = vand.u32 4294901760, %v1959_v20  ;;  %v23468_v48 = vpack.c.bf16 %v23416_v14, %v23414_v13 }
 0x1c4   : > { %19307 = vmatprep.subr.bf16.mxu1 %v23369_v63  ;;  %v1931_v36 = vsub.f32 %v23414_v13, %v28429_v53  ;;  %v23476_v52 = vpack.c.bf16 %v23441_v31, %v23439_v60 }
 0x1c5   : > { %19309 = vmatpush3.bf16.msra.mxu1 %v23369_v63 }
 0x1c6   : > { %19285 = vmatpush3.bf16.msra.mxu0 %v23124_v10  ;;  %v1932_v54 = vand.u32 4294901760, %v1931_v36  ;;  %v28577_v36 = vand.u32 4294901760, %v23232_v32 }
 0x1c8   : > { %v23434_v16 = vpack.c.bf16 %v1939_v9, %v1932_v54  ;;  %v23489_v41 = vsub.f32 %v23232_v32, %v28577_v36 }
 0x1c9   : > { %15540 = vmatmul.mubr.f32.vlgmr.msra.gmra.mrb[0].mxu0 %v23073_v6  ;;  %v1793_v6 = vand.u32 4294901760, %v1752_v8 }
 0x1cb   : > { %v23373_v10 = vpack.c.bf16 %v1796_v37, %v1793_v6  ;;  %v23428_v34 = vsub.f32 %v1752_v8, %v1793_v6  ;;  %v28424_v6 = vand.u32 4294901760, %v23441_v31  ;;  %v1953_v37 = vand.u32 4294901760, %v1952_v7 }
 0x1cc   : > { %v1874_v7 = vand.u32 4294901760, %v23481_v12 }
 0x1cd   : > { %19311 = vmatprep.subr.bf16.mxu1 %v23373_v10  ;;  %v28427_v42 = vand.u32 4294901760, %v23428_v34  ;;  %v1966_v55 = vsub.f32 %v23441_v31, %v28424_v6  ;;  %v23472_v46 = vpack.c.bf16 %v23430_v47, %v23428_v34 }
 0x1ce   : > { %19313 = vmatpush3.bf16.msra.mxu1 %v23373_v10 }
 0x1cf   : > { %19315 = vmatprep.subr.bf16.mxu1 %v23389_v0  ;;  %v1945_v28 = vsub.f32 %v23428_v34, %v28427_v42  ;;  %v1967_v25 = vand.u32 4294901760, %v1966_v55  ;;  %v28578_v55 = vand.u32 4294901760, %v23237_v44 }
 0x1d1   : > { %v1946_v8 = vand.u32 4294901760, %v1945_v28  ;;  %v23456_v22 = vpack.c.bf16 %v1967_v25, %v1960_v57  ;;  %v23501_v57 = vsub.f32 %v23237_v44, %v28578_v55 }
 0x1d2   : > { %19317 = vmatpush3.bf16.msra.mxu1 %v23389_v0 }
 0x1d3   : > { %19319 = vmatprep.subr.bf16.mxu1 %v23399_v59  ;;  %v23454_v3 = vpack.c.bf16 %v1953_v37, %v1946_v8  ;;  %v1881_v37 = vand.u32 4294901760, %v23489_v41 }
 0x1d5   : > { %v1882_v15 = vsub.f32 %v23489_v41, %v1881_v37 }
 0x1d7   : > { %v1883_v4 = vand.u32 4294901760, %v1882_v15 }
 0x29c   : > { %v15541_v54 = vpop.f32.mrb[0].mxu0 }
 0x29d   : > { %v1714_v9 = vadd.f32 %v15541_v54, %v13166_v61  ;;  %v1698_v28 = vpop.f32.mrb[1].mxu0 }
 0x29e   : > { %v1713_v8 = vadd.f32 %v13166_v61, %v1698_v28  ;;  %v1875_v61 = vsub.f32 %v23481_v12, %v1874_v7  ;;  %v23521_v28 = vsub.f32 %v23256_v38, %v1775_v39 }
 0x29f   : > { %v1716_v20 = vmax.f32 %v1714_v9, 0.0  ;;  %v1895_v9 = vand.u32 4294901760, %v23501_v57 }
 0x2a0   : > { %v1715_v32 = vmax.f32 %v1713_v8, 0.0  ;;  %v23526_v8 = vsub.f32 %v23258_v35, %v1778_v21  ;;  %v1876_v39 = vand.u32 4294901760, %v1875_v61  ;;  %v1889_v35 = vsub.f32 %v23496_v19, %v28432_v17 }
 0x2a1   : > { %v1718_v25 = vrot.slane %v1716_v20, 7  ;;  %v23503_v43 = vand.u32 4294901760, %v1716_v20  ;;  %v19422_v45 = vpack.c.bf16 %v1895_v9, %v28579_v40  ;;  %v23714_v40 = vld [vmem:[#allocation5 + $0x78] sm:$0xff] }
 0x2a2   : > { %v1717_v36 = vrot.slane %v1715_v32, 7  ;;  %v23508_v54 = vand.u32 4294901760, %v1715_v32  ;;  %v19322_v15 = vpack.c.bf16 %v1883_v4, %v1876_v39  ;;  %v1890_v33 = vand.u32 4294901760, %v1889_v35 }
 0x2a3   : > { %v23515_v44 = vsub.f32 %v1716_v20, %v23503_v43 }
 0x2a4   : > { %v23530_v55 = vsel %vm298_vm1, %v1717_v36, %v1718_v25  ;;  %v23534_v20 = vsel %vm298_vm1, %v1718_v25, %v1717_v36  ;;  %v23537_v6 = vsub.f32 %v1715_v32, %v23508_v54  ;;  %v1896_v25 = vsub.f32 %v23501_v57, %v1895_v9  ;;  %v1731_v9 = vld [vmem:[#allocation5 + $0x40] sm:$0xff] }
 0x2a5   : > { %v1849_v11 = vand.u32 4294901760, %v23515_v44  ;;  %v1902_v32 = vand.u32 4294901760, %v23521_v28  ;;  %v1909_v36 = vand.u32 4294901760, %v23526_v8 }
 0x2a6   : > { %v1839_v38 = vand.u32 4294901760, %v23537_v6  ;;  %v1897_v24 = vand.u32 4294901760, %v1896_v25  ;;  %v23688_v25 = vld [vmem:[#allocation5 + $0x60] sm:$0xff] }
 0x2a7   : > { %v1850_v21 = vsub.f32 %v23515_v44, %v1849_v11  ;;  %v1903_v50 = vsub.f32 %v23521_v28, %v1902_v32  ;;  %v1910_v17 = vsub.f32 %v23526_v8, %v1909_v36 }
 0x2a8   : > { %v1840_v42 = vsub.f32 %v23537_v6, %v1839_v38 }
 0x2a9   : > { %v1851_v53 = vand.u32 4294901760, %v1850_v21  ;;  %v1904_v4 = vand.u32 4294901760, %v1903_v50  ;;  %v1911_v39 = vand.u32 4294901760, %v1910_v17  ;;  %v19358_v50 = vpack.c.bf16 %v23501_v57, %v23496_v19  ;;  %v1729_v57 = vld [vmem:[#allocation5 + $0x30] sm:$0xff]  ;;  %v23685_v21 = vld [vmem:[#allocation5 + $0x58] sm:$0xff] }
 0x2aa   : > { %v1841_v61 = vand.u32 4294901760, %v1840_v42  ;;  %v19326_v42 = vpack.c.bf16 %v1897_v24, %v1890_v33  ;;  %v19362_v24 = vpack.c.bf16 %v23526_v8, %v23521_v28  ;;  %v19418_v33 = vpack.c.bf16 %v1881_v37, %v1874_v7  ;;  %v1732_v28 = vld [vmem:[#allocation5 + $0x48] sm:$0xff] }
 0x2ab   : > { %v19330_v35 = vpack.c.bf16 %v1911_v39, %v1904_v4  ;;  %v2474_v4 = vand.u32 4294901760, %v23685_v21  ;;  %v23702_v39 = vand.u32 4294901760, %v23530_v55 }
 0x2ac   : > { %15574 = vmatprep.mubr.f32.mxu1 %v1841_v61 }
 0x2ad   : > { %15575 = vmatmul.mubr.f32.vlgmr.msra.gmra.mrb[0].mxu1 %v1851_v53  ;;  %v19414_v53 = vpack.c.bf16 %v1867_v49, %v1860_v27  ;;  %v19426_v27 = vpack.c.bf16 %v1909_v36, %v1902_v32  ;;  %v28580_v49 = vand.u32 4294901760, %v23402_v29  ;;  %v28586_v29 = vand.u32 4294901760, %v23439_v60  ;;  %v1725_v60 = vld [vmem:[#allocation5 + $0x10] sm:$0xff]  ;;  %v23690_v32 = vld [vmem:[#allocation5 + $0x68] sm:$0xff] }
 0x2ae   : > { %19321 = vmatpush3.bf16.msra.mxu1 %v23399_v59  ;;  %15609 = vmatprep.mubr.f32.mxu1 %v23508_v54  ;;  %v19354_v59 = vpack.c.bf16 %v23489_v41, %v23481_v12  ;;  %v1727_v12 = vld [vmem:[#allocation5 + $0x20] sm:$0xff]  ;;  %v1728_v41 = vld [vmem:[#allocation5 + $0x28] sm:$0xff] }
 0x2af   : > { %19323 = vmatprep.subr.bf16.mxu1 %v19322_v15  ;;  %v2453_v37 = vand.u32 4294901760, %v1727_v12 }
 0x2b2   : > { %19325 = vmatpush3.bf16.msra.mxu1 %v19322_v15 }
 0x2b3   : > { %19327 = vmatprep.subr.bf16.mxu1 %v19326_v42 }
 0x2b6   : > { %19329 = vmatpush3.bf16.msra.mxu1 %v19326_v42 }
 0x2b7   : > { %19331 = vmatprep.subr.bf16.mxu1 %v19330_v35 }
 0x2ba   : > { %19333 = vmatpush3.bf16.msra.mxu1 %v19330_v35  ;;  %v2477_v35 = vand.u32 4294901760, %v23688_v25 }
 0x2bb   : > { %19335 = vmatprep.subr.bf16.mxu1 %v23420_v30 }
 0x2be   : > { %19337 = vmatpush3.bf16.msra.mxu1 %v23420_v30  ;;  %v28581_v30 = vand.u32 4294901760, %v23404_v26  ;;  %v28587_v26 = vand.u32 4294901760, %v23441_v31  ;;  %v1726_v31 = vld [vmem:[#allocation5 + $0x18] sm:$0xff] }
 0x2bf   : > { %19339 = vmatprep.subr.bf16.mxu1 %v23434_v16 }
 0x2c2   : > { %19341 = vmatpush3.bf16.msra.mxu1 %v23434_v16  ;;  %v19430_v16 = vpack.c.bf16 %v28581_v30, %v28580_v49  ;;  %v23722_v49 = vsub.f32 %v23530_v55, %v23702_v39 }
 0x2c3   : > { %19343 = vmatprep.subr.bf16.mxu1 %v23454_v3 }
 0x2c6   : > { %19345 = vmatpush3.bf16.msra.mxu1 %v23454_v3 }
 0x2c7   : > { %19347 = vmatprep.subr.bf16.mxu1 %v23456_v22 }
 0x2ca   : > { %19349 = vmatpush3.bf16.msra.mxu1 %v23456_v22  ;;  %v28584_v22 = vand.u32 4294901760, %v23428_v34 }
 0x2cb   : > { %19351 = vmatprep.subr.bf16.mxu1 %v23460_v23 }
 0x2cd   : > { %15610 = vmatmul.mubr.f32.vlgmr.msra.gmra.mrb[0].mxu1 %v23503_v43 }
 0x2ce   : > { %19353 = vmatpush3.bf16.msra.mxu1 %v23460_v23  ;;  %15644 = vmatprep.mubr.f32.mxu1 %v23537_v6  ;;  %v28583_v6 = vand.u32 4294901760, %v23416_v14  ;;  %v28585_v23 = vand.u32 4294901760, %v23430_v47  ;;  %v1724_v14 = vld [vmem:[#allocation5 + $0x8] sm:$0xff] }
 0x2cf   : > { %19355 = vmatprep.subr.bf16.mxu1 %v19354_v59  ;;  %v2444_v47 = vand.u32 4294901760, %v1724_v14 }
 0x2d1   : > { %v23694_v61 = vsub.f32 %v1724_v14, %v2444_v47 }
 0x2d2   : > { %19357 = vmatpush3.bf16.msra.mxu1 %v19354_v59  ;;  %v2480_v59 = vand.u32 4294901760, %v23690_v32 }
 0x2d3   : > { %19359 = vmatprep.subr.bf16.mxu1 %v19358_v50 }
 0x2d4   : > { %v23728_v30 = vpack.c.bf16 %v2480_v59, %v2477_v35 }
 0x2d6   : > { %19361 = vmatpush3.bf16.msra.mxu1 %v19358_v50 }
 0x2d7   : > { %19363 = vmatprep.subr.bf16.mxu1 %v19362_v24 }
 0x2da   : > { %19365 = vmatpush3.bf16.msra.mxu1 %v19362_v24  ;;  %v2551_v24 = vand.u32 4294901760, %v23694_v61 }
 0x2db   : > { %19367 = vmatprep.subr.bf16.mxu1 %v23464_v2 }
 0x2dc   : > { %v2552_v55 = vsub.f32 %v23694_v61, %v2551_v24 }
 0x2de   : > { %19369 = vmatpush3.bf16.msra.mxu1 %v23464_v2  ;;  %v19438_v2 = vpack.c.bf16 %v28585_v23, %v28584_v22  ;;  %v23742_v23 = vsub.f32 %v1727_v12, %v2453_v37  ;;  %v2553_v14 = vand.u32 4294901760, %v2552_v55 }
 0x2df   : > { %19371 = vmatprep.subr.bf16.mxu1 %v23468_v48 }
 0x2e2   : > { %19373 = vmatpush3.bf16.msra.mxu1 %v23468_v48  ;;  %v19442_v48 = vpack.c.bf16 %v28587_v26, %v28586_v29 }
 0x2e3   : > { %19375 = vmatprep.subr.bf16.mxu1 %v23472_v46 }
 0x2e6   : > { %19377 = vmatpush3.bf16.msra.mxu1 %v23472_v46  ;;  %v2447_v46 = vand.u32 4294901760, %v1725_v60 }
 0x2e7   : > { %19379 = vmatprep.subr.bf16.mxu1 %v23476_v52 }
 0x2ea   : > { %19381 = vmatpush3.bf16.msra.mxu1 %v23476_v52  ;;  %v2450_v52 = vand.u32 4294901760, %v1726_v31 }
 0x2eb   : > { %19383 = vmatprep.subr.bf16.mxu1 %v23246_v5 }
 0x2ec   : > { %v23672_v7 = vpack.c.bf16 %v2450_v52, %v2447_v46 }
 0x2ed   : > { %15645 = vmatmul.mubr.f32.vlgmr.msra.gmra.mrb[0].mxu1 %v23515_v44  ;;  %v2459_v44 = vand.u32 4294901760, %v1729_v57 }
 0x2ee   : > { %19385 = vmatpush3.bf16.msra.mxu1 %v23246_v5  ;;  %15679 = vmatprep.mubr.f32.mxu1 %v1839_v38  ;;  %v2468_v38 = vand.u32 4294901760, %v1732_v28 }
 0x2ef   : > { %19387 = vmatprep.subr.bf16.mxu1 %v23254_v58  ;;  %v23746_v29 = vsub.f32 %v1729_v57, %v2459_v44 }
 0x2f2   : > { %19389 = vmatpush3.bf16.msra.mxu1 %v23254_v58 }
 0x2f3   : > { %19391 = vmatprep.subr.bf16.mxu1 %v23269_v62 }
 0x2f6   : > { %19393 = vmatpush3.bf16.msra.mxu1 %v23269_v62 }
 0x2f7   : > { %19395 = vmatprep.subr.bf16.mxu1 %v23281_v51 }
 0x2fa   : > { %19397 = vmatpush3.bf16.msra.mxu1 %v23281_v51 }
 0x2fb   : > { %19399 = vmatprep.subr.bf16.mxu1 %v23365_v18 }
 0x2fe   : > { %19401 = vmatpush3.bf16.msra.mxu1 %v23365_v18 }
 0x2ff   : > { %19403 = vmatprep.subr.bf16.mxu1 %v23369_v63 }
 0x302   : > { %19405 = vmatpush3.bf16.msra.mxu1 %v23369_v63 }
 0x303   : > { %19407 = vmatprep.subr.bf16.mxu1 %v23373_v10 }
 0x306   : > { %19409 = vmatpush3.bf16.msra.mxu1 %v23373_v10 }
 0x307   : > { %19411 = vmatprep.subr.bf16.mxu1 %v23389_v0 }
 0x30a   : > { %19413 = vmatpush3.bf16.msra.mxu1 %v23389_v0 }
 0x30b   : > { %19415 = vmatprep.subr.bf16.mxu1 %v19414_v53 }
 0x30d   : > { %15680 = vmatmul.mubr.f32.vlgmr.msra.gmra.mrb[0].mxu1 %v1849_v11  ;;  %v28582_v11 = vand.u32 4294901760, %v23414_v13  ;;  %v1721_v13 = vsel %vm294_vm2, %v23534_v20, 0.0  ;;  %v2465_v20 = vand.u32 4294901760, %v1731_v9 }
 0x30e   : > { %19417 = vmatpush3.bf16.msra.mxu1 %v19414_v53  ;;  %15714 = vmatprep.mubr.f32.mxu1 %v23508_v54 }
 0x30f   : > { %19419 = vmatprep.subr.bf16.mxu1 %v19418_v33  ;;  %v19434_v3 = vpack.c.bf16 %v28583_v6, %v28582_v11  ;;  %v23697_v15 = vpack.c.bf16 %v2468_v38, %v2465_v20  ;;  %v2486_v11 = vand.u32 4294901760, %v23714_v40 }
 0x312   : > { %19421 = vmatpush3.bf16.msra.mxu1 %v19418_v33  ;;  %v23712_v33 = vld [vmem:[#allocation5 + $0x70] sm:$0xff] }
 0x313   : > { %19423 = vmatprep.subr.bf16.mxu1 %v19422_v45 }
 0x316   : > { %19425 = vmatpush3.bf16.msra.mxu1 %v19422_v45  ;;  %v23716_v45 = vsub.f32 %v1725_v60, %v2447_v46  ;;  %v2572_v60 = vand.u32 4294901760, %v23742_v23  ;;  %v2586_v46 = vand.u32 4294901760, %v23746_v29 }
 0x317   : > { %19427 = vmatprep.subr.bf16.mxu1 %v19426_v27 }
 0x318   : > { %v2573_v57 = vsub.f32 %v23742_v23, %v2572_v60 }
 0x31a   : > { %19429 = vmatpush3.bf16.msra.mxu1 %v19426_v27  ;;  %v23718_v27 = vsub.f32 %v1726_v31, %v2450_v52 }
 0x31b   : > { %19431 = vmatprep.subr.bf16.mxu1 %v19430_v16 }
 0x31c   : > { %v2565_v22 = vand.u32 4294901760, %v23718_v27 }
 0x31e   : > { %19433 = vmatpush3.bf16.msra.mxu1 %v19430_v16  ;;  %v2483_v16 = vand.u32 4294901760, %v23712_v33 }
 0x31f   : > { %19435 = vmatprep.subr.bf16.mxu1 %v19434_v3 }
 0x322   : > { %19437 = vmatpush3.bf16.msra.mxu1 %v19434_v3  ;;  %v2558_v3 = vand.u32 4294901760, %v23716_v45 }
 0x323   : > { %19439 = vmatprep.subr.bf16.mxu1 %v19438_v2 }
 0x326   : > { %19441 = vmatpush3.bf16.msra.mxu1 %v19438_v2 }
 0x327   : > { %19443 = vmatprep.subr.bf16.mxu1 %v19442_v48 }
 0x32a   : > { %19445 = vmatpush3.bf16.msra.mxu1 %v19442_v48  ;;  %v23755_v48 = vpack.c.bf16 %v2486_v11, %v2483_v16 }
 0x32b   : > { %19447 = vmatprep.subr.bf16.mxu1 %v23246_v5 }
 0x32d   : > { %15715 = vmatmul.mubr.f32.vlgmr.msra.gmra.mrb[0].mxu1 %v23503_v43 }
 0x32e   : > { %19449 = vmatpush3.bf16.msra.mxu1 %v23246_v5  ;;  %15749 = vmatprep.mubr.f32.mxu1 %v23508_v54  ;;  %v23653_v5 = vand.u32 4294901760, %v1721_v13  ;;  %v1730_v54 = vld [vmem:[#allocation5 + $0x38] sm:$0xff] }
 0x32f   : > { %19451 = vmatprep.subr.bf16.mxu1 %v23254_v58 }
 0x332   : > { %19453 = vmatpush3.bf16.msra.mxu1 %v23254_v58  ;;  %v1723_v58 = vld [vmem:[#allocation5] sm:$0xff] }
 0x333   : > { %19455 = vmatprep.subr.bf16.mxu1 %v23269_v62  ;;  %v2441_v34 = vand.u32 4294901760, %v1723_v58 }
 0x335   : > { %v23692_v36 = vsub.f32 %v1723_v58, %v2441_v34 }
 0x336   : > { %19457 = vmatpush3.bf16.msra.mxu1 %v23269_v62  ;;  %v23658_v62 = vsub.f32 %v1721_v13, %v23653_v5  ;;  %v2533_v13 = vand.u32 4294901760, %v23722_v49 }
 0x337   : > { %19459 = vmatprep.subr.bf16.mxu1 %v23281_v51  ;;  %v2544_v50 = vand.u32 4294901760, %v23692_v36 }
 0x339   : > { %v2545_v6 = vsub.f32 %v23692_v36, %v2544_v50 }
 0x33a   : > { %19461 = vmatpush3.bf16.msra.mxu1 %v23281_v51  ;;  %v2523_v51 = vand.u32 4294901760, %v23658_v62 }
 0x33b   : > { %19463 = vmatprep.subr.bf16.mxu1 %v23365_v18  ;;  %v2546_v58 = vand.u32 4294901760, %v2545_v6 }
 0x33d   : > { %v19510_v12 = vpack.c.bf16 %v2553_v14, %v2546_v58  ;;  %v2574_v58 = vand.u32 4294901760, %v2573_v57 }
 0x33e   : > { %19465 = vmatpush3.bf16.msra.mxu1 %v23365_v18  ;;  %v23665_v18 = vpack.c.bf16 %v2444_v47, %v2441_v34  ;;  %v2559_v34 = vsub.f32 %v23716_v45, %v2558_v3  ;;  %v2566_v47 = vsub.f32 %v23718_v27, %v2565_v22 }
 0x33f   : > { %19467 = vmatprep.subr.bf16.mxu1 %v23369_v63 }
 0x342   : > { %19469 = vmatpush3.bf16.msra.mxu1 %v23369_v63  ;;  %v2524_v63 = vsub.f32 %v23658_v62, %v2523_v51 }
 0x343   : > { %19471 = vmatprep.subr.bf16.mxu1 %v23373_v10 }
 0x344   : > { %v2525_v19 = vand.u32 4294901760, %v2524_v63  ;;  %v2534_v63 = vsub.f32 %v23722_v49, %v2533_v13 }
 0x346   : > { %19473 = vmatpush3.bf16.msra.mxu1 %v23373_v10  ;;  %v2456_v10 = vand.u32 4294901760, %v1728_v41  ;;  %v2535_v6 = vand.u32 4294901760, %v2534_v63  ;;  %v23811_v63 = vsub.f32 %v23688_v25, %v2477_v35 }
 0x347   : > { %19475 = vmatprep.subr.bf16.mxu1 %v23389_v0 }
 0x348   : > { %v23677_v17 = vpack.c.bf16 %v2456_v10, %v2453_v37  ;;  %v23744_v2 = vsub.f32 %v1728_v41, %v2456_v10  ;;  %v23773_v41 = vsub.f32 %v1731_v9, %v2465_v20  ;;  %v23775_v37 = vsub.f32 %v1732_v28, %v2468_v38 }
 0x349   : > { %v2560_v10 = vand.u32 4294901760, %v2559_v34  ;;  %v23797_v38 = vsub.f32 %v23685_v21, %v2474_v4  ;;  %v2628_v25 = vand.u32 4294901760, %v23811_v63 }
 0x34a   : > { %19477 = vmatpush3.bf16.msra.mxu1 %v23389_v0  ;;  %v2462_v0 = vand.u32 4294901760, %v1730_v54  ;;  %v2579_v31 = vand.u32 4294901760, %v23744_v2  ;;  %v2600_v9 = vand.u32 4294901760, %v23773_v41  ;;  %v2607_v28 = vand.u32 4294901760, %v23775_v37 }
 0x34b   : > { %19479 = vmatprep.subr.bf16.mxu1 %v23665_v18 }
 0x34c   : > { %v23681_v8 = vpack.c.bf16 %v2462_v0, %v2459_v44  ;;  %v23748_v26 = vsub.f32 %v1730_v54, %v2462_v0  ;;  %v2580_v54 = vsub.f32 %v23744_v2, %v2579_v31  ;;  %v2587_v44 = vsub.f32 %v23746_v29, %v2586_v46 }
 0x34d   : > { %15750 = vmatmul.mubr.f32.vlgmr.msra.gmra.mrb[0].mxu1 %v23503_v43  ;;  %v23683_v43 = vld [vmem:[#allocation5 + $0x50] sm:$0xff] }
 0x34e   : > { %19481 = vmatpush3.bf16.msra.mxu1 %v23665_v18  ;;  %15784 = vmatprep.mubr.f32.mxu1 %v2525_v19  ;;  %v2471_v42 = vand.u32 4294901760, %v23683_v43  ;;  %v28433_v52 = vand.u32 4294901760, %v23748_v26  ;;  %v2567_v19 = vand.u32 4294901760, %v2566_v47  ;;  %v2581_v14 = vand.u32 4294901760, %v2580_v54 }
 0x34f   : > { %19483 = vmatprep.subr.bf16.mxu1 %v23672_v7  ;;  %v2588_v34 = vand.u32 4294901760, %v2587_v44 }
 0x350   : > { %v23710_v53 = vpack.c.bf16 %v2474_v4, %v2471_v42  ;;  %v2594_v0 = vsub.f32 %v23748_v26, %v28433_v52  ;;  %v23794_v20 = vsub.f32 %v23683_v43, %v2471_v42  ;;  %v19514_v55 = vpack.c.bf16 %v2567_v19, %v2560_v10 }
 0x351   : > { %v2601_v52 = vsub.f32 %v23773_v41, %v2600_v9  ;;  %v2608_v43 = vsub.f32 %v23775_v37, %v2607_v28  ;;  %v2621_v42 = vand.u32 4294901760, %v23797_v38  ;;  %v19518_v4 = vpack.c.bf16 %v2581_v14, %v2574_v58 }
 0x352   : > { %19485 = vmatpush3.bf16.msra.mxu1 %v23672_v7  ;;  %v2595_v47 = vand.u32 4294901760, %v2594_v0  ;;  %v2614_v21 = vand.u32 4294901760, %v23794_v20 }
 0x353   : > { %19487 = vmatprep.subr.bf16.mxu1 %v23677_v17  ;;  %v2602_v19 = vand.u32 4294901760, %v2601_v52  ;;  %v2609_v57 = vand.u32 4294901760, %v2608_v43  ;;  %v2622_v44 = vsub.f32 %v23797_v38, %v2621_v42 }
 0x354   : > { %v19522_v10 = vpack.c.bf16 %v2595_v47, %v2588_v34  ;;  %v2615_v54 = vsub.f32 %v23794_v20, %v2614_v21 }
 0x355   : > { %v19526_v52 = vpack.c.bf16 %v2609_v57, %v2602_v19  ;;  %v19542_v57 = vpack.c.bf16 %v23694_v61, %v23692_v36  ;;  %v19614_v36 = vpack.c.bf16 %v2579_v31, %v2572_v60  ;;  %v28588_v61 = vand.u32 4294901760, %v23748_v26 }
 0x356   : > { %19489 = vmatpush3.bf16.msra.mxu1 %v23677_v17  ;;  %v2616_v0 = vand.u32 4294901760, %v2615_v54  ;;  %v19546_v54 = vpack.c.bf16 %v23718_v27, %v23716_v45  ;;  %v19626_v45 = vpack.c.bf16 %v2621_v42, %v2614_v21 }
 0x357   : > { %19491 = vmatprep.subr.bf16.mxu1 %v23681_v8 }
 0x35a   : > { %19493 = vmatpush3.bf16.msra.mxu1 %v23681_v8 }
 0x35b   : > { %19495 = vmatprep.subr.bf16.mxu1 %v23697_v15 }
 0x35e   : > { %19497 = vmatpush3.bf16.msra.mxu1 %v23697_v15 }
 0x35f   : > { %19499 = vmatprep.subr.bf16.mxu1 %v23710_v53 }
 0x362   : > { %19501 = vmatpush3.bf16.msra.mxu1 %v23710_v53 }
 0x363   : > { %19503 = vmatprep.subr.bf16.mxu1 %v23728_v30 }
 0x366   : > { %19505 = vmatpush3.bf16.msra.mxu1 %v23728_v30 }
 0x367   : > { %19507 = vmatprep.subr.bf16.mxu1 %v23755_v48 }
 0x36a   : > { %19509 = vmatpush3.bf16.msra.mxu1 %v23755_v48 }
 0x36b   : > { %19511 = vmatprep.subr.bf16.mxu1 %v19510_v12 }
 0x36d   : > { %15785 = vmatmul.mubr.f32.vlgmr.msra.gmra.mrb[0].mxu1 %v2535_v6  ;;  %v2623_v6 = vand.u32 4294901760, %v2622_v44  ;;  %v23855_v44 = vld [vmem:[#allocation3 + $0x180] sm:$0xff] }
 0x36e   : > { %19513 = vmatpush3.bf16.msra.mxu1 %v19510_v12  ;;  %15819 = vmatprep.mubr.f32.mxu1 %v23653_v5  ;;  %v23816_v12 = vsub.f32 %v23690_v32, %v2480_v59  ;;  %v23829_v32 = vsub.f32 %v23712_v33, %v2483_v16  ;;  %v23834_v59 = vsub.f32 %v23714_v40, %v2486_v11  ;;  %v28591_v60 = vand.u32 4294901760, %v23855_v44 }
 0x36f   : > { %19515 = vmatprep.subr.bf16.mxu1 %v19514_v55  ;;  %v19530_v40 = vpack.c.bf16 %v2623_v6, %v2616_v0  ;;  %v23859_v0 = vld [vmem:[#allocation3 + $0x190] sm:$0xff]  ;;  %v28438_v6 = vand.u32 4294901760, %v23855_v44 }
 0x370   : > { %v2635_v35 = vand.u32 4294901760, %v23816_v12  ;;  %v28439_v33 = vand.u32 4294901760, %v23829_v32  ;;  %v28434_v16 = vand.u32 4294901760, %v23834_v59  ;;  %v24010_v31 = vsub.f32 %v23855_v44, %v28591_v60 }
 0x372   : > { %19517 = vmatpush3.bf16.msra.mxu1 %v19514_v55  ;;  %v2629_v55 = vsub.f32 %v23811_v63, %v2628_v25  ;;  %v2636_v58 = vsub.f32 %v23816_v12, %v2635_v35  ;;  %v2643_v34 = vsub.f32 %v23829_v32, %v28439_v33  ;;  %v2650_v47 = vsub.f32 %v23834_v59, %v28434_v16  ;;  %v23890_v16 = vld [vmem:[#allocation3 + $0x1b8] sm:$0xff] }
 0x373   : > { %19519 = vmatprep.subr.bf16.mxu1 %v19518_v4  ;;  %v19630_v27 = vpack.c.bf16 %v2635_v35, %v2628_v25 }
 0x374   : > { %v2630_v11 = vand.u32 4294901760, %v2629_v55  ;;  %v2637_v14 = vand.u32 4294901760, %v2636_v58  ;;  %v2651_v19 = vand.u32 4294901760, %v2650_v47  ;;  %v23864_v58 = vld [vmem:[#allocation3 + $0x198] sm:$0xff] }
 0x375   : > { %v28436_v47 = vand.u32 4294901760, %v23864_v58 }
 0x376   : > { %19521 = vmatpush3.bf16.msra.mxu1 %v19518_v4  ;;  %v19534_v43 = vpack.c.bf16 %v2637_v14, %v2630_v11  ;;  %v2644_v4 = vand.u32 4294901760, %v2643_v34  ;;  %v23867_v11 = vld [vmem:[#allocation3 + $0x1a0] sm:$0xff]  ;;  %v23869_v14 = vld [vmem:[#allocation3 + $0x1a8] sm:$0xff]  ;;  %v19550_v34 = vpack.c.bf16 %v23744_v2, %v23742_v23  ;;  %v3177_v23 = vld [vmem:[#allocation3 + $0x1d8] sm:$0xff] }
 0x377   : > { %19523 = vmatprep.subr.bf16.mxu1 %v19522_v10  ;;  %v3216_v2 = vand.u32 4294901760, %v3177_v23 }
 0x37a   : > { %19525 = vmatpush3.bf16.msra.mxu1 %v19522_v10  ;;  %v19538_v10 = vpack.c.bf16 %v2651_v19, %v2644_v4  ;;  %v3195_v4 = vand.u32 4294901760, %v23867_v11  ;;  %v28440_v19 = vand.u32 4294901760, %v23869_v14 }
 0x37b   : > { %19527 = vmatprep.subr.bf16.mxu1 %v19526_v52 }
 0x37e   : > { %19529 = vmatpush3.bf16.msra.mxu1 %v19526_v52  ;;  %v23857_v52 = vld [vmem:[#allocation3 + $0x188] sm:$0xff] }
 0x37f   : > { %19531 = vmatprep.subr.bf16.mxu1 %v19530_v40  ;;  %v28435_v55 = vand.u32 4294901760, %v23857_v52 }
 0x382   : > { %19533 = vmatpush3.bf16.msra.mxu1 %v19530_v40  ;;  %v28437_v40 = vand.u32 4294901760, %v23859_v0 }
 0x383   : > { %19535 = vmatprep.subr.bf16.mxu1 %v19534_v43 }
 0x386   : > { %19537 = vmatpush3.bf16.msra.mxu1 %v19534_v43  ;;  %v23878_v43 = vpack.c.bf16 %v28435_v55, %v28438_v6  ;;  %v19554_v55 = vpack.c.bf16 %v23748_v26, %v23746_v29  ;;  %v19558_v6 = vpack.c.bf16 %v23775_v37, %v23773_v41  ;;  %v3178_v29 = vld [vmem:[#allocation3 + $0x1e0] sm:$0xff]  ;;  %v3179_v26 = vld [vmem:[#allocation3 + $0x1e8] sm:$0xff]  ;;  %v3180_v37 = vld [vmem:[#allocation3 + $0x1f0] sm:$0xff] }
 0x387   : > { %19539 = vmatprep.subr.bf16.mxu1 %v19538_v10 }
 0x388   : > { %19671 = vmatprep.subr.bf16.mxu0 %v23878_v43 }
 0x389   : > { %19673 = vmatpush3.bf16.msra.mxu0 %v23878_v43 }
 0x38a   : > { %19541 = vmatpush3.bf16.msra.mxu1 %v19538_v10  ;;  %v23886_v10 = vpack.c.bf16 %v28436_v47, %v28437_v40  ;;  %v23901_v47 = vpack.c.bf16 %v28440_v19, %v3195_v4  ;;  %v19562_v19 = vpack.c.bf16 %v23797_v38, %v23794_v20  ;;  %v3286_v38 = vand.u32 4294901760, %v24010_v31 }
 0x38b   : > { %19543 = vmatprep.subr.bf16.mxu1 %v19542_v57 }
 0x38c   : > { %19675 = vmatprep.subr.bf16.mxu0 %v23886_v10 }
 0x38d   : > { %15820 = vmatmul.mubr.f32.vlgmr.msra.gmra.mrb[0].mxu1 %v23702_v39  ;;  %19677 = vmatpush3.bf16.msra.mxu0 %v23886_v10 }
 0x38e   : > { %19545 = vmatpush3.bf16.msra.mxu1 %v19542_v57  ;;  %15854 = vmatprep.mubr.f32.mxu1 %v23658_v62  ;;  %v23888_v57 = vld [vmem:[#allocation3 + $0x1b0] sm:$0xff]  ;;  %v19606_v62 = vpack.c.bf16 %v2551_v24, %v2544_v50  ;;  %v19618_v50 = vpack.c.bf16 %v28588_v61, %v2586_v46  ;;  %v19622_v24 = vpack.c.bf16 %v2607_v28, %v2600_v9  ;;  %v28592_v46 = vand.u32 4294901760, %v23857_v52  ;;  %v3181_v9 = vld [vmem:[#allocation3 + $0x1f8] sm:$0xff] }
 0x38f   : > { %19547 = vmatprep.subr.bf16.mxu1 %v19546_v54  ;;  %v3201_v40 = vand.u32 4294901760, %v23888_v57  ;;  %19679 = vmatprep.subr.bf16.mxu0 %v23901_v47  ;;  %v3225_v28 = vand.u32 4294901760, %v3180_v37  ;;  %v3228_v20 = vand.u32 4294901760, %v3181_v9 }
 0x390   : > { %v24015_v41 = vsub.f32 %v23857_v52, %v28592_v46 }
 0x391   : > { %19681 = vmatpush3.bf16.msra.mxu0 %v23901_v47  ;;  %v24021_v42 = vpack.c.bf16 %v3228_v20, %v3225_v28 }
 0x392   : > { %19549 = vmatpush3.bf16.msra.mxu1 %v19546_v54  ;;  %v3204_v54 = vand.u32 4294901760, %v23890_v16  ;;  %v3293_v21 = vand.u32 4294901760, %v24015_v41 }
 0x393   : > { %19551 = vmatprep.subr.bf16.mxu1 %v19550_v34 }
 0x394   : > { %v23913_v33 = vpack.c.bf16 %v3204_v54, %v3201_v40 }
 0x396   : > { %19553 = vmatpush3.bf16.msra.mxu1 %v19550_v34  ;;  %19683 = vmatprep.subr.bf16.mxu0 %v23913_v33  ;;  %v19566_v34 = vpack.c.bf16 %v23816_v12, %v23811_v63  ;;  %v3287_v63 = vsub.f32 %v24010_v31, %v3286_v38  ;;  %v3294_v12 = vsub.f32 %v24015_v41, %v3293_v21 }
 0x397   : > { %19555 = vmatprep.subr.bf16.mxu1 %v19554_v55  ;;  %19685 = vmatpush3.bf16.msra.mxu0 %v23913_v33 }
 0x398   : > { %v3288_v25 = vand.u32 4294901760, %v3287_v63  ;;  %v3295_v35 = vand.u32 4294901760, %v3294_v12  ;;  %v24092_v63 = vpack.c.bf16 %v24015_v41, %v24010_v31 }
 0x39a   : > { %19557 = vmatpush3.bf16.msra.mxu1 %v19554_v55  ;;  %v19570_v55 = vpack.c.bf16 %v23834_v59, %v23829_v32 }
 0x39b   : > { %19559 = vmatprep.subr.bf16.mxu1 %v19558_v6 }
 0x39e   : > { %19561 = vmatpush3.bf16.msra.mxu1 %v19558_v6 }
 0x39f   : > { %19563 = vmatprep.subr.bf16.mxu1 %v19562_v19 }
 0x3a2   : > { %19565 = vmatpush3.bf16.msra.mxu1 %v19562_v19 }
 0x3a3   : > { %19567 = vmatprep.subr.bf16.mxu1 %v19566_v34 }
 0x3a6   : > { %19569 = vmatpush3.bf16.msra.mxu1 %v19566_v34 }
 0x3a7   : > { %19571 = vmatprep.subr.bf16.mxu1 %v19570_v55 }
 0x3aa   : > { %19573 = vmatpush3.bf16.msra.mxu1 %v19570_v55 }
 0x3ab   : > { %19575 = vmatprep.subr.bf16.mxu1 %v23665_v18 }
 0x3ad   : > { %15855 = vmatmul.mubr.f32.vlgmr.msra.gmra.mrb[0].mxu1 %v23722_v49  ;;  %v28589_v49 = vand.u32 4294901760, %v23829_v32  ;;  %v24031_v32 = vpack.c.bf16 %v3295_v35, %v3288_v25 }
 0x3ae   : > { %19577 = vmatpush3.bf16.msra.mxu1 %v23665_v18  ;;  %15889 = vmatprep.mubr.f32.mxu1 %v2523_v51  ;;  %v19610_v51 = vpack.c.bf16 %v2565_v22, %v2558_v3  ;;  %v28590_v3 = vand.u32 4294901760, %v23834_v59 }
 0x3af   : > { %19579 = vmatprep.subr.bf16.mxu1 %v23672_v7 }
 0x3b0   : > { %v19634_v22 = vpack.c.bf16 %v28590_v3, %v28589_v49 }
 0x3b2   : > { %19581 = vmatpush3.bf16.msra.mxu1 %v23672_v7 }
 0x3b3   : > { %19583 = vmatprep.subr.bf16.mxu1 %v23677_v17 }
 0x3b6   : > { %19585 = vmatpush3.bf16.msra.mxu1 %v23677_v17 }
 0x3b7   : > { %19587 = vmatprep.subr.bf16.mxu1 %v23681_v8 }
 0x3ba   : > { %19589 = vmatpush3.bf16.msra.mxu1 %v23681_v8 }
 0x3bb   : > { %19591 = vmatprep.subr.bf16.mxu1 %v23697_v15 }
 0x3be   : > { %19593 = vmatpush3.bf16.msra.mxu1 %v23697_v15 }
 0x3bf   : > { %19595 = vmatprep.subr.bf16.mxu1 %v23710_v53 }
 0x3c2   : > { %19597 = vmatpush3.bf16.msra.mxu1 %v23710_v53 }
 0x3c3   : > { %19599 = vmatprep.subr.bf16.mxu1 %v23728_v30 }
 0x3c6   : > { %19601 = vmatpush3.bf16.msra.mxu1 %v23728_v30 }
 0x3c7   : > { %19603 = vmatprep.subr.bf16.mxu1 %v23755_v48 }
 0x3ca   : > { %19605 = vmatpush3.bf16.msra.mxu1 %v23755_v48 }
 0x3cb   : > { %19607 = vmatprep.subr.bf16.mxu1 %v19606_v62 }
 0x3cd   : > { %15890 = vmatmul.mubr.f32.vlgmr.msra.gmra.mrb[0].mxu1 %v2533_v13 }
 0x3ce   : > { %19609 = vmatpush3.bf16.msra.mxu1 %v19606_v62  ;;  %15924 = vmatprep.mubr.f32.mxu1 %v23653_v5  ;;  %v24048_v62 = vsub.f32 %v3177_v23, %v3216_v2  ;;  %v24071_v23 = vsub.f32 %v3180_v37, %v3225_v28 }
 0x3cf   : > { %19611 = vmatprep.subr.bf16.mxu1 %v19610_v51 }
 0x3d2   : > { %19613 = vmatpush3.bf16.msra.mxu1 %v19610_v51 }
 0x3d3   : > { %19615 = vmatprep.subr.bf16.mxu1 %v19614_v36 }
 0x3d6   : > { %19617 = vmatpush3.bf16.msra.mxu1 %v19614_v36 }
 0x3d7   : > { %19619 = vmatprep.subr.bf16.mxu1 %v19618_v50 }
 0x3da   : > { %19621 = vmatpush3.bf16.msra.mxu1 %v19618_v50  ;;  %v28445_v50 = vand.u32 4294901760, %v24048_v62 }
 0x3db   : > { %19623 = vmatprep.subr.bf16.mxu1 %v19622_v24 }
 0x3de   : > { %19625 = vmatpush3.bf16.msra.mxu1 %v19622_v24 }
 0x3df   : > { %19627 = vmatprep.subr.bf16.mxu1 %v19626_v45 }
 0x3e2   : > { %19629 = vmatpush3.bf16.msra.mxu1 %v19626_v45 }
 0x3e3   : > { %19631 = vmatprep.subr.bf16.mxu1 %v19630_v27 }
 0x3e6   : > { %19633 = vmatpush3.bf16.msra.mxu1 %v19630_v27  ;;  %v3364_v27 = vsub.f32 %v24048_v62, %v28445_v50 }
 0x3e7   : > { %19635 = vmatprep.subr.bf16.mxu1 %v19634_v22 }
 0x3ea   : > { %19637 = vmatpush3.bf16.msra.mxu1 %v19634_v22 }
 0x3eb   : > { %19639 = vmatprep.subr.bf16.mxu1 %v23665_v18 }
 0x3ed   : > { %15925 = vmatmul.mubr.f32.vlgmr.msra.gmra.mrb[0].mxu1 %v23702_v39 }
 0x3ee   : > { %19641 = vmatpush3.bf16.msra.mxu1 %v23665_v18  ;;  %15959 = vmatprep.mubr.f32.mxu1 %v23653_v5  ;;  %v3174_v5 = vld [vmem:[#allocation3 + $0x1c0] sm:$0xff]  ;;  %v3175_v18 = vld [vmem:[#allocation3 + $0x1c8] sm:$0xff] }
 0x3ef   : > { %19643 = vmatprep.subr.bf16.mxu1 %v23672_v7 }
 0x3f2   : > { %19645 = vmatpush3.bf16.msra.mxu1 %v23672_v7  ;;  %v3207_v7 = vand.u32 4294901760, %v3174_v5 }
 0x3f3   : > { %19647 = vmatprep.subr.bf16.mxu1 %v23677_v17 }
 0x3f4   : > { %v24034_v59 = vsub.f32 %v3174_v5, %v3207_v7  ;;  %v3365_v5 = vand.u32 4294901760, %v3364_v27  ;;  %v28594_v27 = vand.u32 4294901760, %v23864_v58 }
 0x3f6   : > { %19649 = vmatpush3.bf16.msra.mxu1 %v23677_v17  ;;  %v3210_v17 = vand.u32 4294901760, %v3175_v18  ;;  %v28448_v52 = vand.u32 4294901760, %v24034_v59 }
 0x3f7   : > { %19651 = vmatprep.subr.bf16.mxu1 %v23681_v8 }
 0x3f8   : > { %v24036_v44 = vsub.f32 %v3175_v18, %v3210_v17  ;;  %v3343_v19 = vsub.f32 %v24034_v59, %v28448_v52 }
 0x3fa   : > { %19653 = vmatpush3.bf16.msra.mxu1 %v23681_v8  ;;  %v23997_v8 = vpack.c.bf16 %v3210_v17, %v3207_v7  ;;  %v28447_v6 = vand.u32 4294901760, %v24036_v44  ;;  %v3344_v51 = vand.u32 4294901760, %v3343_v19  ;;  %v24096_v12 = vpack.c.bf16 %v24036_v44, %v24034_v59 }
 0x3fb   : > { %19655 = vmatprep.subr.bf16.mxu1 %v23697_v15 }
 0x3fc   : > { %19687 = vmatprep.subr.bf16.mxu0 %v23997_v8  ;;  %v3350_v34 = vsub.f32 %v24036_v44, %v28447_v6 }
 0x3fd   : > { %19689 = vmatpush3.bf16.msra.mxu0 %v23997_v8 }
 0x3fe   : > { %19657 = vmatpush3.bf16.msra.mxu1 %v23697_v15  ;;  %v3176_v15 = vld [vmem:[#allocation3 + $0x1d0] sm:$0xff]  ;;  %v3351_v36 = vand.u32 4294901760, %v3350_v34 }
 0x3ff   : > { %19659 = vmatprep.subr.bf16.mxu1 %v23710_v53  ;;  %v13167_v34 = vld [vmem:[%s28406_s4] ss:$0 sm:$0xff] }
 0x400   : > { %v24052_v24 = vpack.c.bf16 %v3351_v36, %v3344_v51  ;;  %v28593_v36 = vand.u32 4294901760, %v23859_v0 }
 0x402   : > { %19661 = vmatpush3.bf16.msra.mxu1 %v23710_v53  ;;  %v3213_v53 = vand.u32 4294901760, %v3176_v15 }
 0x403   : > { %19663 = vmatprep.subr.bf16.mxu1 %v23728_v30 }
 0x404   : > { %v24046_v55 = vsub.f32 %v3176_v15, %v3213_v53 }
 0x406   : > { %19665 = vmatpush3.bf16.msra.mxu1 %v23728_v30  ;;  %v24001_v30 = vpack.c.bf16 %v3216_v2, %v3213_v53  ;;  %v28446_v61 = vand.u32 4294901760, %v24046_v55  ;;  %v24073_v53 = vsub.f32 %v3181_v9, %v3228_v20  ;;  %v24100_v25 = vpack.c.bf16 %v24048_v62, %v24046_v55 }
 0x407   : > { %19667 = vmatprep.subr.bf16.mxu1 %v23755_v48 }
 0x408   : > { %19691 = vmatprep.subr.bf16.mxu0 %v24001_v30  ;;  %v3357_v45 = vsub.f32 %v24046_v55, %v28446_v61  ;;  %v24108_v19 = vpack.c.bf16 %v24073_v53, %v24071_v23 }
 0x409   : > { %19693 = vmatpush3.bf16.msra.mxu0 %v24001_v30 }
 0x40a   : > { %19669 = vmatpush3.bf16.msra.mxu1 %v23755_v48  ;;  %v3222_v48 = vand.u32 4294901760, %v3179_v26  ;;  %v3358_v22 = vand.u32 4294901760, %v3357_v45  ;;  %v24116_v45 = vsub.f32 %v23859_v0, %v28593_v36  ;;  %v22590_v0 = vld [vmem:[#allocation2 + $0x8] sm:$0xff] }
 0x40c   : > { %v24062_v3 = vsub.f32 %v3179_v26, %v3222_v48  ;;  %v24066_v17 = vpack.c.bf16 %v3365_v5, %v3358_v22  ;;  %v28442_v26 = vand.u32 4294901760, %v24071_v23  ;;  %v24121_v22 = vsub.f32 %v23864_v58, %v28594_v27 }
 0x40d   : > { %15960 = vmatmul.mubr.f32.vlgmr.msra.gmra.mrb[0].mxu1 %v23702_v39  ;;  %v3219_v39 = vand.u32 4294901760, %v3178_v29  ;;  %v28595_v58 = vand.u32 4294901760, %v23869_v14 }
 0x40e   : > { %v28443_v7 = vand.u32 4294901760, %v24062_v3  ;;  %v3385_v60 = vsub.f32 %v24071_v23, %v28442_v26 }
 0x40f   : > { %v24005_v13 = vpack.c.bf16 %v3222_v48, %v3219_v39  ;;  %v24060_v49 = vsub.f32 %v3178_v29, %v3219_v39  ;;  %v28441_v39 = vand.u32 4294901760, %v24073_v53 }
 0x410   : > { %v3378_v2 = vsub.f32 %v24062_v3, %v28443_v7  ;;  %v3386_v9 = vand.u32 4294901760, %v3385_v60  ;;  %v3300_v60 = vand.u32 4294901760, %v24116_v45 }
 0x411   : > { %19695 = vmatprep.subr.bf16.mxu0 %v24005_v13  ;;  %v28444_v18 = vand.u32 4294901760, %v24060_v49  ;;  %v3392_v46 = vsub.f32 %v24073_v53, %v28441_v39  ;;  %v24104_v35 = vpack.c.bf16 %v24062_v3, %v24060_v49 }
 0x412   : > { %19697 = vmatpush3.bf16.msra.mxu0 %v24005_v13  ;;  %v3379_v48 = vand.u32 4294901760, %v3378_v2 }
 0x413   : > { %19699 = vmatprep.subr.bf16.mxu0 %v24021_v42  ;;  %v3371_v15 = vsub.f32 %v24060_v49, %v28444_v18  ;;  %v3393_v28 = vand.u32 4294901760, %v3392_v46  ;;  %v3307_v46 = vand.u32 4294901760, %v24121_v22 }
 0x415   : > { %v3372_v29 = vand.u32 4294901760, %v3371_v15  ;;  %v24088_v20 = vpack.c.bf16 %v3393_v28, %v3386_v9  ;;  %v24128_v9 = vsub.f32 %v23867_v11, %v3195_v4  ;;  %v3301_v11 = vsub.f32 %v24116_v45, %v3300_v60 }
 0x416   : > { %19701 = vmatpush3.bf16.msra.mxu0 %v24021_v42  ;;  %v3308_v4 = vsub.f32 %v24121_v22, %v3307_v46 }
 0x417   : > { %19703 = vmatprep.subr.bf16.mxu0 %v24031_v32  ;;  %v24086_v37 = vpack.c.bf16 %v3379_v48, %v3372_v29  ;;  %v3302_v39 = vand.u32 4294901760, %v3301_v11  ;;  %v28596_v31 = vand.u32 4294901760, %v24128_v9 }
 0x418   : > { %v3309_v26 = vand.u32 4294901760, %v3308_v4 }
 0x41a   : > { %v19706_v4 = vpack.c.bf16 %v3309_v26, %v3302_v39 }
 0x4e0   : > { %v15961_v51 = vpop.f32.mrb[0].mxu1 }
 0x4e1   : > { %v3130_v5 = vadd.f32 %v15961_v51, %v13167_v34  ;;  %v3114_v15 = vpop.f32.mrb[1].mxu1  ;;  %v24135_v51 = vsub.f32 %v23869_v14, %v28595_v58  ;;  %v28449_v14 = vand.u32 4294901760, %v24128_v9 }
 0x4e2   : > { %v3129_v2 = vadd.f32 %v13167_v34, %v3114_v15  ;;  %v22591_v34 = vld [vmem:[#allocation2] sm:$0xff] }
 0x4e3   : > { %v3132_v29 = vmax.f32 %v3130_v5, 0.0 }
 0x4e4   : > { %v3131_v48 = vmax.f32 %v3129_v2, 0.0  ;;  %v3321_v2 = vand.u32 4294901760, %v24135_v51 }
 0x4e5   : > { %v24130_v28 = vadd.f32 %v22590_v0, %v3132_v29  ;;  %v24160_v29 = vsub.f32 %v23888_v57, %v3201_v40  ;;  %v3315_v40 = vsub.f32 %v24128_v9, %v28449_v14 }
 0x4e6   : > { %v24137_v36 = vadd.f32 %v22591_v34, %v3131_v48  ;;  %v24165_v48 = vsub.f32 %v23890_v16, %v3204_v54  ;;  %v3322_v16 = vsub.f32 %v24135_v51, %v3321_v2  ;;  %v19806_v41 = vpack.c.bf16 %v3321_v2, %v28596_v31  ;;  %v3155_v2 = vld [vmem:[#allocation3 + $0x130] sm:$0xff] }
 0x4e7   : > { %v24140_v27 = vand.u32 4294901760, %v24130_v28  ;;  %v3328_v54 = vand.u32 4294901760, %v24160_v29  ;;  %v3316_v50 = vand.u32 4294901760, %v3315_v40 }
 0x4e8   : > { %v24143_v5 = vand.u32 4294901760, %v24137_v36  ;;  %v3335_v7 = vand.u32 4294901760, %v24165_v48  ;;  %v3323_v6 = vand.u32 4294901760, %v3322_v16 }
 0x4e9   : > { %v24154_v15 = vsub.f32 %v24130_v28, %v24140_v27  ;;  %v3329_v52 = vsub.f32 %v24160_v29, %v3328_v54 }
 0x4ea   : > { %v24169_v0 = vsub.f32 %v24137_v36, %v24143_v5  ;;  %v3336_v14 = vsub.f32 %v24165_v48, %v3335_v7 }
 0x4eb   : > { %v3275_v58 = vand.u32 4294901760, %v24154_v15  ;;  %v3330_v26 = vand.u32 4294901760, %v3329_v52  ;;  %v19742_v52 = vpack.c.bf16 %v24135_v51, %v24128_v9  ;;  %v3153_v9 = vld [vmem:[#allocation3 + $0x120] sm:$0xff]  ;;  %v3154_v51 = vld [vmem:[#allocation3 + $0x128] sm:$0xff] }
 0x4ec   : > { %v3265_v34 = vand.u32 4294901760, %v24169_v0  ;;  %v3337_v39 = vand.u32 4294901760, %v3336_v14  ;;  %v3879_v14 = vand.u32 4294901760, %v3153_v9 }
 0x4ed   : > { %v3276_v57 = vsub.f32 %v24154_v15, %v3275_v58 }
 0x4ee   : > { %v3266_v18 = vsub.f32 %v24169_v0, %v3265_v34  ;;  %v19714_v40 = vpack.c.bf16 %v3337_v39, %v3330_v26 }
 0x4ef   : > { %v3277_v61 = vand.u32 4294901760, %v3276_v57 }
 0x4f0   : > { %v3267_v11 = vand.u32 4294901760, %v3266_v18  ;;  %v19710_v18 = vpack.c.bf16 %v3323_v6, %v3316_v50  ;;  %v19746_v6 = vpack.c.bf16 %v24165_v48, %v24160_v29  ;;  %v19802_v50 = vpack.c.bf16 %v3307_v46, %v3300_v60  ;;  %v3156_v29 = vld [vmem:[#allocation3 + $0x138] sm:$0xff] }
 0x4f2   : > { %15994 = vmatprep.mubr.f32.mxu0 %v3267_v11  ;;  %v24322_v11 = vld [vmem:[#allocation3 + $0x158] sm:$0xff] }
 0x4f3   : > { %15995 = vmatmul.mubr.f32.vlgmr.msra.gmra.mrb[2].mxu0 %v3277_v61  ;;  %v19798_v61 = vpack.c.bf16 %v3293_v21, %v3286_v38  ;;  %v19810_v38 = vpack.c.bf16 %v3335_v7, %v3328_v54  ;;  %v28597_v21 = vand.u32 4294901760, %v24034_v59  ;;  %v28602_v7 = vand.u32 4294901760, %v24062_v3  ;;  %v3150_v3 = vld [vmem:[#allocation3 + $0x108] sm:$0xff] }
 0x4f4   : > { %19705 = vmatpush3.bf16.msra.mxu0 %v24031_v32  ;;  %16029 = vmatprep.mubr.f32.mxu0 %v24143_v5  ;;  %v19738_v32 = vpack.c.bf16 %v24121_v22, %v24116_v45  ;;  %v28603_v59 = vand.u32 4294901760, %v24071_v23  ;;  %v3151_v45 = vld [vmem:[#allocation3 + $0x110] sm:$0xff]  ;;  %v3152_v22 = vld [vmem:[#allocation3 + $0x118] sm:$0xff] }
 0x4f5   : > { %19707 = vmatprep.subr.bf16.mxu0 %v19706_v4  ;;  %v3873_v60 = vand.u32 4294901760, %v3151_v45  ;;  %v3876_v46 = vand.u32 4294901760, %v3152_v22 }
 0x4f8   : > { %19709 = vmatpush3.bf16.msra.mxu0 %v19706_v4  ;;  %v24325_v4 = vld [vmem:[#allocation3 + $0x160] sm:$0xff] }
 0x4f9   : > { %19711 = vmatprep.subr.bf16.mxu0 %v19710_v18 }
 0x4fc   : > { %19713 = vmatpush3.bf16.msra.mxu0 %v19710_v18  ;;  %v24327_v18 = vld [vmem:[#allocation3 + $0x168] sm:$0xff] }
 0x4fd   : > { %19715 = vmatprep.subr.bf16.mxu0 %v19714_v40 }
 0x500   : > { %19717 = vmatpush3.bf16.msra.mxu0 %v19714_v40 }
 0x501   : > { %19719 = vmatprep.subr.bf16.mxu0 %v24052_v24 }
 0x504   : > { %19721 = vmatpush3.bf16.msra.mxu0 %v24052_v24  ;;  %v28598_v24 = vand.u32 4294901760, %v24036_v44  ;;  %v28604_v44 = vand.u32 4294901760, %v24073_v53 }
 0x505   : > { %19723 = vmatprep.subr.bf16.mxu0 %v24066_v17 }
 0x508   : > { %19725 = vmatpush3.bf16.msra.mxu0 %v24066_v17  ;;  %v19814_v17 = vpack.c.bf16 %v28598_v24, %v28597_v21  ;;  %v24350_v24 = vld [vmem:[#allocation3 + $0x170] sm:$0xff] }
 0x509   : > { %19727 = vmatprep.subr.bf16.mxu0 %v24086_v37 }
 0x50c   : > { %19729 = vmatpush3.bf16.msra.mxu0 %v24086_v37  ;;  %v28599_v37 = vand.u32 4294901760, %v24046_v55  ;;  %v3138_v55 = vrot.slane %v24130_v28, 6 }
 0x50d   : > { %19731 = vmatprep.subr.bf16.mxu0 %v24088_v20 }
 0x510   : > { %19733 = vmatpush3.bf16.msra.mxu0 %v24088_v20  ;;  %v28600_v20 = vand.u32 4294901760, %v24048_v62  ;;  %v3137_v62 = vrot.slane %v24137_v36, 6 }
 0x511   : > { %19735 = vmatprep.subr.bf16.mxu0 %v24092_v63 }
 0x512   : > { %v3140_v26 = vsel %vm3139_vm3, %v3137_v62, %v3138_v55 }
 0x513   : > { %16030 = vmatmul.mubr.f32.vlgmr.msra.gmra.mrb[2].mxu0 %v24140_v27  ;;  %v24342_v31 = vand.u32 4294901760, %v3140_v26 }
 0x514   : > { %19737 = vmatpush3.bf16.msra.mxu0 %v24092_v63  ;;  %16064 = vmatprep.mubr.f32.mxu0 %v24169_v0  ;;  %v19818_v63 = vpack.c.bf16 %v28600_v20, %v28599_v37  ;;  %v3885_v0 = vand.u32 4294901760, %v3155_v2  ;;  %v24354_v37 = vsub.f32 %v3151_v45, %v3873_v60  ;;  %v24356_v20 = vsub.f32 %v3152_v22, %v3876_v46 }
 0x515   : > { %19739 = vmatprep.subr.bf16.mxu0 %v19738_v32 }
 0x518   : > { %19741 = vmatpush3.bf16.msra.mxu0 %v19738_v32 }
 0x519   : > { %19743 = vmatprep.subr.bf16.mxu0 %v19742_v52 }
 0x51c   : > { %19745 = vmatpush3.bf16.msra.mxu0 %v19742_v52 }
 0x51d   : > { %19747 = vmatprep.subr.bf16.mxu0 %v19746_v6 }
 0x520   : > { %19749 = vmatpush3.bf16.msra.mxu0 %v19746_v6  ;;  %v3900_v6 = vand.u32 4294901760, %v24322_v11 }
 0x521   : > { %19751 = vmatprep.subr.bf16.mxu0 %v24096_v12 }
 0x524   : > { %19753 = vmatpush3.bf16.msra.mxu0 %v24096_v12  ;;  %v28601_v12 = vand.u32 4294901760, %v24060_v49 }
 0x525   : > { %19755 = vmatprep.subr.bf16.mxu0 %v24100_v25 }
 0x528   : > { %19757 = vmatpush3.bf16.msra.mxu0 %v24100_v25  ;;  %v19822_v25 = vpack.c.bf16 %v28602_v7, %v28601_v12  ;;  %v24365_v12 = vsub.f32 %v3140_v26, %v24342_v31  ;;  %v3909_v7 = vand.u32 4294901760, %v24350_v24 }
 0x529   : > { %19759 = vmatprep.subr.bf16.mxu0 %v24104_v35 }
 0x52c   : > { %19761 = vmatpush3.bf16.msra.mxu0 %v24104_v35  ;;  %v19826_v35 = vpack.c.bf16 %v28604_v44, %v28603_v59 }
 0x52d   : > { %19763 = vmatprep.subr.bf16.mxu0 %v24108_v19 }
 0x530   : > { %19765 = vmatpush3.bf16.msra.mxu0 %v24108_v19  ;;  %v3870_v19 = vand.u32 4294901760, %v3150_v3 }
 0x531   : > { %19767 = vmatprep.subr.bf16.mxu0 %v23878_v43 }
 0x532   : > { %v24333_v40 = vsub.f32 %v3150_v3, %v3870_v19 }
 0x533   : > { %16065 = vmatmul.mubr.f32.vlgmr.msra.gmra.mrb[2].mxu0 %v24154_v15 }
 0x534   : > { %19769 = vmatpush3.bf16.msra.mxu0 %v23878_v43  ;;  %16099 = vmatprep.mubr.f32.mxu0 %v3265_v34  ;;  %v3158_v34 = vld [vmem:[#allocation3 + $0x148] sm:$0xff] }
 0x535   : > { %19771 = vmatprep.subr.bf16.mxu0 %v23886_v10  ;;  %v3894_v54 = vand.u32 4294901760, %v3158_v34 }
 0x538   : > { %19773 = vmatpush3.bf16.msra.mxu0 %v23886_v10 }
 0x539   : > { %19775 = vmatprep.subr.bf16.mxu0 %v23901_v47 }
 0x53c   : > { %19777 = vmatpush3.bf16.msra.mxu0 %v23901_v47 }
 0x53d   : > { %19779 = vmatprep.subr.bf16.mxu0 %v23913_v33 }
 0x540   : > { %19781 = vmatpush3.bf16.msra.mxu0 %v23913_v33 }
 0x541   : > { %19783 = vmatprep.subr.bf16.mxu0 %v23997_v8 }
 0x544   : > { %19785 = vmatpush3.bf16.msra.mxu0 %v23997_v8 }
 0x545   : > { %19787 = vmatprep.subr.bf16.mxu0 %v24001_v30 }
 0x548   : > { %19789 = vmatpush3.bf16.msra.mxu0 %v24001_v30 }
 0x549   : > { %19791 = vmatprep.subr.bf16.mxu0 %v24005_v13 }
 0x54c   : > { %19793 = vmatpush3.bf16.msra.mxu0 %v24005_v13 }
 0x54d   : > { %19795 = vmatprep.subr.bf16.mxu0 %v24021_v42 }
 0x550   : > { %19797 = vmatpush3.bf16.msra.mxu0 %v24021_v42 }
 0x551   : > { %19799 = vmatprep.subr.bf16.mxu0 %v19798_v61 }
 0x553   : > { %16100 = vmatmul.mubr.f32.vlgmr.msra.gmra.mrb[2].mxu0 %v3275_v58  ;;  %v3157_v58 = vld [vmem:[#allocation3 + $0x140] sm:$0xff] }
 0x554   : > { %19801 = vmatpush3.bf16.msra.mxu0 %v19798_v61  ;;  %16134 = vmatprep.mubr.f32.mxu0 %v24143_v5  ;;  %v3891_v16 = vand.u32 4294901760, %v3157_v58  ;;  %v3903_v61 = vand.u32 4294901760, %v24325_v4 }
 0x555   : > { %19803 = vmatprep.subr.bf16.mxu0 %v19802_v50 }
 0x556   : > { %v24336_v32 = vpack.c.bf16 %v3894_v54, %v3891_v16 }
 0x558   : > { %19805 = vmatpush3.bf16.msra.mxu0 %v19802_v50  ;;  %v3906_v50 = vand.u32 4294901760, %v24327_v18 }
 0x559   : > { %19807 = vmatprep.subr.bf16.mxu0 %v19806_v41 }
 0x55c   : > { %19809 = vmatpush3.bf16.msra.mxu0 %v19806_v41 }
 0x55d   : > { %19811 = vmatprep.subr.bf16.mxu0 %v19810_v38 }
 0x560   : > { %19813 = vmatpush3.bf16.msra.mxu0 %v19810_v38  ;;  %v3977_v38 = vand.u32 4294901760, %v24333_v40 }
 0x561   : > { %19815 = vmatprep.subr.bf16.mxu0 %v19814_v17 }
 0x562   : > { %v3978_v44 = vsub.f32 %v24333_v40, %v3977_v38 }
 0x564   : > { %19817 = vmatpush3.bf16.msra.mxu0 %v19814_v17  ;;  %v24352_v17 = vld [vmem:[#allocation3 + $0x178] sm:$0xff]  ;;  %v3979_v45 = vand.u32 4294901760, %v3978_v44  ;;  %v24434_v44 = vsub.f32 %v24322_v11, %v3900_v6 }
 0x565   : > { %19819 = vmatprep.subr.bf16.mxu0 %v19818_v63 }
 0x568   : > { %19821 = vmatpush3.bf16.msra.mxu0 %v19818_v63  ;;  %v24362_v63 = vpack.c.bf16 %v3906_v50, %v3903_v61 }
 0x569   : > { %19823 = vmatprep.subr.bf16.mxu0 %v19822_v25 }
 0x56c   : > { %19825 = vmatpush3.bf16.msra.mxu0 %v19822_v25  ;;  %v3912_v25 = vand.u32 4294901760, %v24352_v17 }
 0x56d   : > { %19827 = vmatprep.subr.bf16.mxu0 %v19826_v35 }
 0x56e   : > { %v24392_v3 = vpack.c.bf16 %v3912_v25, %v3909_v7 }
 0x570   : > { %19829 = vmatpush3.bf16.msra.mxu0 %v19826_v35  ;;  %v3984_v35 = vand.u32 4294901760, %v24354_v37 }
 0x571   : > { %19831 = vmatprep.subr.bf16.mxu0 %v23878_v43 }
 0x572   : > { %v3985_v22 = vsub.f32 %v24354_v37, %v3984_v35 }
 0x573   : > { %16135 = vmatmul.mubr.f32.vlgmr.msra.gmra.mrb[2].mxu0 %v24140_v27 }
 0x574   : > { %19833 = vmatpush3.bf16.msra.mxu0 %v23878_v43  ;;  %16169 = vmatprep.mubr.f32.mxu0 %v24143_v5  ;;  %v3141_v43 = vsel %vm3139_vm3, %v3138_v55, %v3137_v62  ;;  %v24309_v5 = vpack.c.bf16 %v3876_v46, %v3873_v60  ;;  %v3991_v55 = vand.u32 4294901760, %v24356_v20  ;;  %v24379_v62 = vsub.f32 %v3153_v9, %v3879_v14 }
 0x575   : > { %19835 = vmatprep.subr.bf16.mxu0 %v23886_v10  ;;  %v3146_v49 = vsel %vm3135_vm4, %v3141_v43, 0.0 }
 0x576   : > { %v3992_v60 = vsub.f32 %v24356_v20, %v3991_v55  ;;  %v3998_v46 = vand.u32 4294901760, %v24379_v62 }
 0x578   : > { %19837 = vmatpush3.bf16.msra.mxu0 %v23886_v10  ;;  %v24290_v10 = vand.u32 4294901760, %v3146_v49 }
 0x579   : > { %19839 = vmatprep.subr.bf16.mxu0 %v23901_v47 }
 0x57a   : > { %v24295_v23 = vsub.f32 %v3146_v49, %v24290_v10  ;;  %v24383_v49 = vsub.f32 %v3155_v2, %v3885_v0  ;;  %v24412_v2 = vsub.f32 %v3158_v34, %v3894_v54 }
 0x57c   : > { %19841 = vmatpush3.bf16.msra.mxu0 %v23901_v47  ;;  %v3149_v47 = vld [vmem:[#allocation3 + $0x100] sm:$0xff]  ;;  %v28450_v9 = vand.u32 4294901760, %v24383_v49 }
 0x57d   : > { %19843 = vmatprep.subr.bf16.mxu0 %v23913_v33  ;;  %v3867_v53 = vand.u32 4294901760, %v3149_v47 }
 0x57f   : > { %v24331_v39 = vsub.f32 %v3149_v47, %v3867_v53 }
 0x580   : > { %19845 = vmatpush3.bf16.msra.mxu0 %v23913_v33  ;;  %v3949_v33 = vand.u32 4294901760, %v24295_v23 }
 0x581   : > { %19847 = vmatprep.subr.bf16.mxu0 %v23997_v8  ;;  %v3970_v41 = vand.u32 4294901760, %v24331_v39 }
 0x583   : > { %v3971_v59 = vsub.f32 %v24331_v39, %v3970_v41 }
 0x584   : > { %19849 = vmatpush3.bf16.msra.mxu0 %v23997_v8  ;;  %v24302_v8 = vpack.c.bf16 %v3870_v19, %v3867_v53  ;;  %v3959_v53 = vand.u32 4294901760, %v24365_v12 }
 0x585   : > { %19851 = vmatprep.subr.bf16.mxu0 %v24001_v30  ;;  %v3972_v19 = vand.u32 4294901760, %v3971_v59  ;;  %v4013_v59 = vsub.f32 %v24383_v49, %v28450_v9 }
 0x587   : > { %v4014_v9 = vand.u32 4294901760, %v4013_v59 }
 0x588   : > { %19853 = vmatpush3.bf16.msra.mxu0 %v24001_v30  ;;  %v3950_v30 = vsub.f32 %v24295_v23, %v3949_v33 }
 0x589   : > { %19855 = vmatprep.subr.bf16.mxu0 %v24005_v13 }
 0x58a   : > { %v3951_v15 = vand.u32 4294901760, %v3950_v30 }
 0x58c   : > { %19857 = vmatpush3.bf16.msra.mxu0 %v24005_v13  ;;  %v3882_v13 = vand.u32 4294901760, %v3154_v51 }
 0x58d   : > { %19859 = vmatprep.subr.bf16.mxu0 %v24021_v42 }
 0x58e   : > { %v24314_v48 = vpack.c.bf16 %v3882_v13, %v3879_v14  ;;  %v24381_v43 = vsub.f32 %v3154_v51, %v3882_v13  ;;  %v3960_v14 = vsub.f32 %v24365_v12, %v3959_v53  ;;  %v19894_v13 = vpack.c.bf16 %v3979_v45, %v3972_v19 }
 0x590   : > { %19861 = vmatpush3.bf16.msra.mxu0 %v24021_v42  ;;  %v3888_v42 = vand.u32 4294901760, %v3156_v29  ;;  %v28452_v30 = vand.u32 4294901760, %v24381_v43  ;;  %v3961_v19 = vand.u32 4294901760, %v3960_v14  ;;  %v24448_v14 = vsub.f32 %v24325_v4, %v3903_v61 }
 0x591   : > { %19863 = vmatprep.subr.bf16.mxu0 %v24302_v8 }
 0x592   : > { %v24318_v57 = vpack.c.bf16 %v3888_v42, %v3885_v0  ;;  %v24385_v47 = vsub.f32 %v3156_v29, %v3888_v42  ;;  %v3986_v29 = vand.u32 4294901760, %v3985_v22  ;;  %v3993_v0 = vand.u32 4294901760, %v3992_v60 }
 0x593   : > { %16170 = vmatmul.mubr.f32.vlgmr.msra.gmra.mrb[2].mxu0 %v24140_v27  ;;  %v24320_v27 = vld [vmem:[#allocation3 + $0x150] sm:$0xff]  ;;  %v3999_v42 = vsub.f32 %v24379_v62, %v3998_v46  ;;  %v4006_v26 = vsub.f32 %v24381_v43, %v28452_v30  ;;  %v4054_v4 = vand.u32 4294901760, %v24448_v14 }
 0x594   : > { %19865 = vmatpush3.bf16.msra.mxu0 %v24302_v8  ;;  %16204 = vmatprep.mubr.f32.mxu0 %v3951_v15  ;;  %v3897_v52 = vand.u32 4294901760, %v24320_v27  ;;  %v28451_v51 = vand.u32 4294901760, %v24385_v47  ;;  %v24410_v15 = vsub.f32 %v3157_v58, %v3891_v16  ;;  %v4033_v16 = vand.u32 4294901760, %v24412_v2 }
 0x595   : > { %19867 = vmatprep.subr.bf16.mxu0 %v24309_v5  ;;  %v19898_v45 = vpack.c.bf16 %v3993_v0, %v3986_v29  ;;  %v4000_v22 = vand.u32 4294901760, %v3999_v42  ;;  %v4007_v60 = vand.u32 4294901760, %v4006_v26 }
 0x596   : > { %v24348_v21 = vpack.c.bf16 %v3900_v6, %v3897_v52  ;;  %v4020_v58 = vsub.f32 %v24385_v47, %v28451_v51  ;;  %v4026_v34 = vand.u32 4294901760, %v24410_v15  ;;  %v24431_v54 = vsub.f32 %v24320_v27, %v3897_v52 }
 0x597   : > { %v4034_v27 = vsub.f32 %v24412_v2, %v4033_v16  ;;  %v4047_v52 = vand.u32 4294901760, %v24434_v44  ;;  %v19902_v6 = vpack.c.bf16 %v4007_v60, %v4000_v22 }
 0x598   : > { %19869 = vmatpush3.bf16.msra.mxu0 %v24309_v5  ;;  %v4021_v51 = vand.u32 4294901760, %v4020_v58  ;;  %v4027_v30 = vsub.f32 %v24410_v15, %v4026_v34  ;;  %v4040_v11 = vand.u32 4294901760, %v24431_v54  ;;  %v4055_v58 = vsub.f32 %v24448_v14, %v4054_v4 }
 0x599   : > { %19871 = vmatprep.subr.bf16.mxu0 %v24314_v48  ;;  %v4035_v42 = vand.u32 4294901760, %v4034_v27  ;;  %v4048_v59 = vsub.f32 %v24434_v44, %v4047_v52 }
 0x59a   : > { %v19906_v29 = vpack.c.bf16 %v4021_v51, %v4014_v9  ;;  %v4028_v0 = vand.u32 4294901760, %v4027_v30  ;;  %v4041_v26 = vsub.f32 %v24431_v54, %v4040_v11 }
 0x59b   : > { %v4049_v51 = vand.u32 4294901760, %v4048_v59  ;;  %v24492_v59 = vld [vmem:[#allocation5 + $0x180] sm:$0xff] }
 0x59c   : > { %19873 = vmatpush3.bf16.msra.mxu0 %v24314_v48  ;;  %v19910_v30 = vpack.c.bf16 %v4035_v42, %v4028_v0  ;;  %v4042_v9 = vand.u32 4294901760, %v4041_v26  ;;  %v19926_v42 = vpack.c.bf16 %v24333_v40, %v24331_v39  ;;  %v19930_v26 = vpack.c.bf16 %v24356_v20, %v24354_v37 }
 0x59d   : > { %19875 = vmatprep.subr.bf16.mxu0 %v24318_v57  ;;  %v28605_v39 = vand.u32 4294901760, %v24381_v43  ;;  %v20006_v20 = vpack.c.bf16 %v4033_v16, %v4026_v34 }
 0x59f   : > { %v19998_v40 = vpack.c.bf16 %v28605_v39, %v3998_v46 }
 0x5a0   : > { %19877 = vmatpush3.bf16.msra.mxu0 %v24318_v57 }
 0x5a1   : > { %19879 = vmatprep.subr.bf16.mxu0 %v24336_v32 }
 0x5a4   : > { %19881 = vmatpush3.bf16.msra.mxu0 %v24336_v32 }
 0x5a5   : > { %19883 = vmatprep.subr.bf16.mxu0 %v24348_v21 }
 0x5a8   : > { %19885 = vmatpush3.bf16.msra.mxu0 %v24348_v21 }
 0x5a9   : > { %19887 = vmatprep.subr.bf16.mxu0 %v24362_v63 }
 0x5ac   : > { %19889 = vmatpush3.bf16.msra.mxu0 %v24362_v63 }
 0x5ad   : > { %19891 = vmatprep.subr.bf16.mxu0 %v24392_v3 }
 0x5b0   : > { %19893 = vmatpush3.bf16.msra.mxu0 %v24392_v3 }
 0x5b1   : > { %19895 = vmatprep.subr.bf16.mxu0 %v19894_v13 }
 0x5b3   : > { %16205 = vmatmul.mubr.f32.vlgmr.msra.gmra.mrb[2].mxu0 %v3961_v19 }
 0x5b4   : > { %19897 = vmatpush3.bf16.msra.mxu0 %v19894_v13  ;;  %16239 = vmatprep.mubr.f32.mxu0 %v24290_v10  ;;  %v24453_v13 = vsub.f32 %v24327_v18, %v3906_v50  ;;  %v24466_v18 = vsub.f32 %v24350_v24, %v3909_v7  ;;  %v24471_v50 = vsub.f32 %v24352_v17, %v3912_v25  ;;  %v4056_v25 = vand.u32 4294901760, %v4055_v58 }
 0x5b5   : > { %19899 = vmatprep.subr.bf16.mxu0 %v19898_v45  ;;  %v19914_v17 = vpack.c.bf16 %v4049_v51, %v4042_v9  ;;  %v24496_v9 = vld [vmem:[#allocation5 + $0x190] sm:$0xff]  ;;  %v28457_v51 = vand.u32 4294901760, %v24492_v59 }
 0x5b6   : > { %v4061_v61 = vand.u32 4294901760, %v24453_v13  ;;  %v28458_v24 = vand.u32 4294901760, %v24466_v18  ;;  %v28453_v7 = vand.u32 4294901760, %v24471_v50 }
 0x5b8   : > { %19901 = vmatpush3.bf16.msra.mxu0 %v19898_v45  ;;  %v4062_v19 = vsub.f32 %v24453_v13, %v4061_v61  ;;  %v4069_v22 = vsub.f32 %v24466_v18, %v28458_v24  ;;  %v4076_v60 = vsub.f32 %v24471_v50, %v28453_v7  ;;  %v24527_v7 = vld [vmem:[#allocation5 + $0x1b8] sm:$0xff] }
 0x5b9   : > { %19903 = vmatprep.subr.bf16.mxu0 %v19902_v6 }
 0x5ba   : > { %v4063_v45 = vand.u32 4294901760, %v4062_v19  ;;  %v4077_v0 = vand.u32 4294901760, %v4076_v60  ;;  %v24501_v19 = vld [vmem:[#allocation5 + $0x198] sm:$0xff] }
 0x5bb   : > { %v28455_v60 = vand.u32 4294901760, %v24501_v19 }
 0x5bc   : > { %19905 = vmatpush3.bf16.msra.mxu0 %v19902_v6  ;;  %v19918_v27 = vpack.c.bf16 %v4063_v45, %v4056_v25  ;;  %v4070_v6 = vand.u32 4294901760, %v4069_v22  ;;  %v24504_v25 = vld [vmem:[#allocation5 + $0x1a0] sm:$0xff]  ;;  %v24506_v45 = vld [vmem:[#allocation5 + $0x1a8] sm:$0xff]  ;;  %v19934_v22 = vpack.c.bf16 %v24381_v43, %v24379_v62  ;;  %v28609_v62 = vand.u32 4294901760, %v24471_v50 }
 0x5bd   : > { %19907 = vmatprep.subr.bf16.mxu0 %v19906_v29 }
 0x5c0   : > { %19909 = vmatpush3.bf16.msra.mxu0 %v19906_v29  ;;  %v19922_v29 = vpack.c.bf16 %v4077_v0, %v4070_v6  ;;  %v4612_v6 = vand.u32 4294901760, %v24504_v25  ;;  %v28459_v0 = vand.u32 4294901760, %v24506_v45 }
 0x5c1   : > { %19911 = vmatprep.subr.bf16.mxu0 %v19910_v30 }
 0x5c4   : > { %19913 = vmatpush3.bf16.msra.mxu0 %v19910_v30  ;;  %v24494_v30 = vld [vmem:[#allocation5 + $0x188] sm:$0xff] }
 0x5c5   : > { %19915 = vmatprep.subr.bf16.mxu0 %v19914_v17  ;;  %v28454_v58 = vand.u32 4294901760, %v24494_v30  ;;  %v28611_v16 = vand.u32 4294901760, %v24494_v30 }
 0x5c8   : > { %19917 = vmatpush3.bf16.msra.mxu0 %v19914_v17  ;;  %v28456_v17 = vand.u32 4294901760, %v24496_v9 }
 0x5c9   : > { %19919 = vmatprep.subr.bf16.mxu0 %v19918_v27 }
 0x5cc   : > { %19921 = vmatpush3.bf16.msra.mxu0 %v19918_v27  ;;  %v24515_v27 = vpack.c.bf16 %v28454_v58, %v28457_v51  ;;  %v19938_v58 = vpack.c.bf16 %v24385_v47, %v24383_v49  ;;  %v19942_v51 = vpack.c.bf16 %v24412_v2, %v24410_v15  ;;  %v28610_v2 = vand.u32 4294901760, %v24492_v59 }
 0x5cd   : > { %19923 = vmatprep.subr.bf16.mxu0 %v19922_v29 }
 0x5ce   : > { %20055 = vmatprep.subr.bf16.mxu1 %v24515_v27  ;;  %v24647_v34 = vsub.f32 %v24492_v59, %v28610_v2 }
 0x5cf   : > { %20057 = vmatpush3.bf16.msra.mxu1 %v24515_v27 }
 0x5d0   : > { %19925 = vmatpush3.bf16.msra.mxu0 %v19922_v29  ;;  %v24523_v29 = vpack.c.bf16 %v28455_v60, %v28456_v17  ;;  %v24538_v60 = vpack.c.bf16 %v28459_v0, %v4612_v6  ;;  %v19946_v0 = vpack.c.bf16 %v24434_v44, %v24431_v54  ;;  %v24652_v54 = vsub.f32 %v24494_v30, %v28611_v16  ;;  %v4597_v44 = vld [vmem:[#allocation5 + $0x1f0] sm:$0xff] }
 0x5d1   : > { %19927 = vmatprep.subr.bf16.mxu0 %v19926_v42 }
 0x5d2   : > { %20059 = vmatprep.subr.bf16.mxu1 %v24523_v29 }
 0x5d3   : > { %16240 = vmatmul.mubr.f32.vlgmr.msra.gmra.mrb[2].mxu0 %v24342_v31  ;;  %20061 = vmatpush3.bf16.msra.mxu1 %v24523_v29 }
 0x5d4   : > { %19929 = vmatpush3.bf16.msra.mxu0 %v19926_v42  ;;  %16274 = vmatprep.mubr.f32.mxu0 %v24295_v23  ;;  %v24525_v42 = vld [vmem:[#allocation5 + $0x1b0] sm:$0xff]  ;;  %v19990_v23 = vpack.c.bf16 %v3977_v38, %v3970_v41  ;;  %v28606_v41 = vand.u32 4294901760, %v24383_v49  ;;  %v28607_v38 = vand.u32 4294901760, %v24385_v47  ;;  %v4594_v49 = vld [vmem:[#allocation5 + $0x1d8] sm:$0xff] }
 0x5d5   : > { %19931 = vmatprep.subr.bf16.mxu0 %v19930_v26  ;;  %v4618_v17 = vand.u32 4294901760, %v24525_v42  ;;  %20063 = vmatprep.subr.bf16.mxu1 %v24538_v60  ;;  %v4633_v47 = vand.u32 4294901760, %v4594_v49 }
 0x5d6   : > { %v20002_v37 = vpack.c.bf16 %v28607_v38, %v28606_v41 }
 0x5d7   : > { %20065 = vmatpush3.bf16.msra.mxu1 %v24538_v60  ;;  %v24685_v41 = vsub.f32 %v4594_v49, %v4633_v47 }
 0x5d8   : > { %19933 = vmatpush3.bf16.msra.mxu0 %v19930_v26  ;;  %v4621_v26 = vand.u32 4294901760, %v24527_v7 }
 0x5d9   : > { %19935 = vmatprep.subr.bf16.mxu0 %v19934_v22 }
 0x5da   : > { %v24550_v24 = vpack.c.bf16 %v4621_v26, %v4618_v17 }
 0x5dc   : > { %19937 = vmatpush3.bf16.msra.mxu0 %v19934_v22  ;;  %20067 = vmatprep.subr.bf16.mxu1 %v24550_v24  ;;  %v19950_v22 = vpack.c.bf16 %v24453_v13, %v24448_v14  ;;  %v4703_v13 = vand.u32 4294901760, %v24647_v34 }
 0x5dd   : > { %19939 = vmatprep.subr.bf16.mxu0 %v19938_v58  ;;  %20069 = vmatpush3.bf16.msra.mxu1 %v24550_v24 }
 0x5e0   : > { %19941 = vmatpush3.bf16.msra.mxu0 %v19938_v58  ;;  %v19954_v58 = vpack.c.bf16 %v24471_v50, %v24466_v18 }
 0x5e1   : > { %19943 = vmatprep.subr.bf16.mxu0 %v19942_v51 }
 0x5e4   : > { %19945 = vmatpush3.bf16.msra.mxu0 %v19942_v51 }
 0x5e5   : > { %19947 = vmatprep.subr.bf16.mxu0 %v19946_v0 }
 0x5e8   : > { %19949 = vmatpush3.bf16.msra.mxu0 %v19946_v0 }
 0x5e9   : > { %19951 = vmatprep.subr.bf16.mxu0 %v19950_v22 }
 0x5ec   : > { %19953 = vmatpush3.bf16.msra.mxu0 %v19950_v22 }
 0x5ed   : > { %19955 = vmatprep.subr.bf16.mxu0 %v19954_v58 }
 0x5f0   : > { %19957 = vmatpush3.bf16.msra.mxu0 %v19954_v58 }
 0x5f1   : > { %19959 = vmatprep.subr.bf16.mxu0 %v24302_v8 }
 0x5f3   : > { %16275 = vmatmul.mubr.f32.vlgmr.msra.gmra.mrb[2].mxu0 %v24365_v12  ;;  %v20010_v12 = vpack.c.bf16 %v4047_v52, %v4040_v11  ;;  %v4598_v11 = vld [vmem:[#allocation5 + $0x1f8] sm:$0xff]  ;;  %v4642_v52 = vand.u32 4294901760, %v4597_v44 }
 0x5f4   : > { %19961 = vmatpush3.bf16.msra.mxu0 %v24302_v8  ;;  %16309 = vmatprep.mubr.f32.mxu0 %v3949_v33  ;;  %v19994_v33 = vpack.c.bf16 %v3991_v55, %v3984_v35  ;;  %v20014_v35 = vpack.c.bf16 %v4061_v61, %v4054_v4  ;;  %v28608_v55 = vand.u32 4294901760, %v24466_v18  ;;  %v4645_v14 = vand.u32 4294901760, %v4598_v11 }
 0x5f5   : > { %19963 = vmatprep.subr.bf16.mxu0 %v24309_v5  ;;  %v4710_v4 = vand.u32 4294901760, %v24652_v54  ;;  %v4704_v18 = vsub.f32 %v24647_v34, %v4703_v13 }
 0x5f6   : > { %v20018_v43 = vpack.c.bf16 %v28609_v62, %v28608_v55  ;;  %v24658_v61 = vpack.c.bf16 %v4645_v14, %v4642_v52  ;;  %v24710_v2 = vsub.f32 %v4598_v11, %v4645_v14 }
 0x5f7   : > { %v4711_v50 = vsub.f32 %v24652_v54, %v4710_v4  ;;  %v4705_v59 = vand.u32 4294901760, %v4704_v18 }
 0x5f8   : > { %19965 = vmatpush3.bf16.msra.mxu0 %v24309_v5 }
 0x5f9   : > { %19967 = vmatprep.subr.bf16.mxu0 %v24314_v48  ;;  %v4712_v30 = vand.u32 4294901760, %v4711_v50 }
 0x5fb   : > { %v24668_v51 = vpack.c.bf16 %v4712_v30, %v4705_v59  ;;  %v24729_v59 = vpack.c.bf16 %v24652_v54, %v24647_v34 }
 0x5fc   : > { %19969 = vmatpush3.bf16.msra.mxu0 %v24314_v48 }
 0x5fd   : > { %19971 = vmatprep.subr.bf16.mxu0 %v24318_v57 }
 0x600   : > { %19973 = vmatpush3.bf16.msra.mxu0 %v24318_v57 }
 0x601   : > { %19975 = vmatprep.subr.bf16.mxu0 %v24336_v32 }
 0x604   : > { %19977 = vmatpush3.bf16.msra.mxu0 %v24336_v32 }
 0x605   : > { %19979 = vmatprep.subr.bf16.mxu0 %v24348_v21 }
 0x608   : > { %19981 = vmatpush3.bf16.msra.mxu0 %v24348_v21 }
 0x609   : > { %19983 = vmatprep.subr.bf16.mxu0 %v24362_v63 }
 0x60c   : > { %19985 = vmatpush3.bf16.msra.mxu0 %v24362_v63 }
 0x60d   : > { %19987 = vmatprep.subr.bf16.mxu0 %v24392_v3 }
 0x610   : > { %19989 = vmatpush3.bf16.msra.mxu0 %v24392_v3 }
 0x611   : > { %19991 = vmatprep.subr.bf16.mxu0 %v19990_v23 }
 0x613   : > { %16310 = vmatmul.mubr.f32.vlgmr.msra.gmra.mrb[2].mxu0 %v3959_v53  ;;  %v4595_v53 = vld [vmem:[#allocation5 + $0x1e0] sm:$0xff] }
 0x614   : > { %19993 = vmatpush3.bf16.msra.mxu0 %v19990_v23  ;;  %16344 = vmatprep.mubr.f32.mxu0 %v24290_v10 }
 0x615   : > { %19995 = vmatprep.subr.bf16.mxu0 %v19994_v33 }
 0x618   : > { %19997 = vmatpush3.bf16.msra.mxu0 %v19994_v33 }
 0x619   : > { %19999 = vmatprep.subr.bf16.mxu0 %v19998_v40 }
 0x61c   : > { %20001 = vmatpush3.bf16.msra.mxu0 %v19998_v40 }
 0x61d   : > { %20003 = vmatprep.subr.bf16.mxu0 %v20002_v37 }
 0x620   : > { %20005 = vmatpush3.bf16.msra.mxu0 %v20002_v37 }
 0x621   : > { %20007 = vmatprep.subr.bf16.mxu0 %v20006_v20 }
 0x624   : > { %20009 = vmatpush3.bf16.msra.mxu0 %v20006_v20 }
 0x625   : > { %20011 = vmatprep.subr.bf16.mxu0 %v20010_v12 }
 0x628   : > { %20013 = vmatpush3.bf16.msra.mxu0 %v20010_v12  ;;  %v28464_v12 = vand.u32 4294901760, %v24685_v41 }
 0x629   : > { %20015 = vmatprep.subr.bf16.mxu0 %v20014_v35 }
 0x62a   : > { %v4781_v62 = vsub.f32 %v24685_v41, %v28464_v12 }
 0x62c   : > { %20017 = vmatpush3.bf16.msra.mxu0 %v20014_v35 }
 0x62d   : > { %20019 = vmatprep.subr.bf16.mxu0 %v20018_v43 }
 0x630   : > { %20021 = vmatpush3.bf16.msra.mxu0 %v20018_v43 }
 0x631   : > { %20023 = vmatprep.subr.bf16.mxu0 %v24302_v8 }
 0x633   : > { %16345 = vmatmul.mubr.f32.vlgmr.msra.gmra.mrb[2].mxu0 %v24342_v31 }
 0x634   : > { %20025 = vmatpush3.bf16.msra.mxu0 %v24302_v8  ;;  %16379 = vmatprep.mubr.f32.mxu0 %v24290_v10  ;;  %v4591_v10 = vld [vmem:[#allocation5 + $0x1c0] sm:$0xff]  ;;  %v4592_v8 = vld [vmem:[#allocation5 + $0x1c8] sm:$0xff] }
 0x635   : > { %20027 = vmatprep.subr.bf16.mxu0 %v24309_v5 }
 0x638   : > { %20029 = vmatpush3.bf16.msra.mxu0 %v24309_v5  ;;  %v4624_v5 = vand.u32 4294901760, %v4591_v10 }
 0x639   : > { %20031 = vmatprep.subr.bf16.mxu0 %v24314_v48 }
 0x63a   : > { %v24671_v0 = vsub.f32 %v4591_v10, %v4624_v5 }
 0x63c   : > { %20033 = vmatpush3.bf16.msra.mxu0 %v24314_v48  ;;  %v4627_v48 = vand.u32 4294901760, %v4592_v8  ;;  %v28467_v58 = vand.u32 4294901760, %v24671_v0 }
 0x63d   : > { %20035 = vmatprep.subr.bf16.mxu0 %v24318_v57 }
 0x63e   : > { %v24673_v22 = vsub.f32 %v4592_v8, %v4627_v48  ;;  %v4760_v33 = vsub.f32 %v24671_v0, %v28467_v58 }
 0x640   : > { %20037 = vmatpush3.bf16.msra.mxu0 %v24318_v57  ;;  %v24634_v57 = vpack.c.bf16 %v4627_v48, %v4624_v5  ;;  %v28466_v23 = vand.u32 4294901760, %v24673_v22  ;;  %v4761_v38 = vand.u32 4294901760, %v4760_v33  ;;  %v4782_v5 = vand.u32 4294901760, %v4781_v62  ;;  %v13168_v62 = vld [vmem:[%s28404_s2 + $0x1] ss:$0 sm:$0xff] }
 0x641   : > { %20039 = vmatprep.subr.bf16.mxu0 %v24336_v32  ;;  %v24733_v30 = vpack.c.bf16 %v24673_v22, %v24671_v0 }
 0x642   : > { %20071 = vmatprep.subr.bf16.mxu1 %v24634_v57  ;;  %v4767_v39 = vsub.f32 %v24673_v22, %v28466_v23 }
 0x643   : > { %20073 = vmatpush3.bf16.msra.mxu1 %v24634_v57 }
 0x644   : > { %20041 = vmatpush3.bf16.msra.mxu0 %v24336_v32  ;;  %v4593_v32 = vld [vmem:[#allocation5 + $0x1d0] sm:$0xff]  ;;  %v4768_v37 = vand.u32 4294901760, %v4767_v39 }
 0x645   : > { %20043 = vmatprep.subr.bf16.mxu0 %v24348_v21 }
 0x646   : > { %v24689_v35 = vpack.c.bf16 %v4768_v37, %v4761_v38  ;;  %v28612_v37 = vand.u32 4294901760, %v24496_v9 }
 0x648   : > { %20045 = vmatpush3.bf16.msra.mxu0 %v24348_v21  ;;  %v4630_v21 = vand.u32 4294901760, %v4593_v32 }
 0x649   : > { %20047 = vmatprep.subr.bf16.mxu0 %v24362_v63 }
 0x64a   : > { %v24683_v40 = vsub.f32 %v4593_v32, %v4630_v21 }
 0x64c   : > { %20049 = vmatpush3.bf16.msra.mxu0 %v24362_v63  ;;  %v24638_v63 = vpack.c.bf16 %v4633_v47, %v4630_v21  ;;  %v28465_v20 = vand.u32 4294901760, %v24683_v40  ;;  %v24708_v47 = vsub.f32 %v4597_v44, %v4642_v52  ;;  %v24737_v33 = vpack.c.bf16 %v24685_v41, %v24683_v40 }
 0x64d   : > { %20051 = vmatprep.subr.bf16.mxu0 %v24392_v3 }
 0x64e   : > { %20075 = vmatprep.subr.bf16.mxu1 %v24638_v63  ;;  %v4774_v55 = vsub.f32 %v24683_v40, %v28465_v20  ;;  %v24745_v38 = vpack.c.bf16 %v24710_v2, %v24708_v47 }
 0x64f   : > { %20077 = vmatpush3.bf16.msra.mxu1 %v24638_v63 }
 0x650   : > { %20053 = vmatpush3.bf16.msra.mxu0 %v24392_v3  ;;  %v4596_v3 = vld [vmem:[#allocation5 + $0x1e8] sm:$0xff]  ;;  %v4775_v8 = vand.u32 4294901760, %v4774_v55  ;;  %v24750_v55 = vsub.f32 %v24496_v9, %v28612_v37  ;;  %v24765_v9 = vsub.f32 %v24504_v25, %v4612_v6 }
 0x651   : > { %v4639_v46 = vand.u32 4294901760, %v4596_v3 }
 0x652   : > { %v24703_v49 = vpack.c.bf16 %v4782_v5, %v4775_v8  ;;  %v28613_v8 = vand.u32 4294901760, %v24501_v19  ;;  %v28469_v6 = vand.u32 4294901760, %v24765_v9  ;;  %v28617_v34 = vand.u32 4294901760, %v24765_v9 }
 0x653   : > { %16380 = vmatmul.mubr.f32.vlgmr.msra.gmra.mrb[2].mxu0 %v24342_v31  ;;  %v4636_v31 = vand.u32 4294901760, %v4595_v53  ;;  %v24699_v10 = vsub.f32 %v4596_v3, %v4639_v46 }
 0x654   : > { %v24758_v5 = vsub.f32 %v24501_v19, %v28613_v8 }
 0x655   : > { %v24642_v15 = vpack.c.bf16 %v4639_v46, %v4636_v31  ;;  %v24697_v43 = vsub.f32 %v4595_v53, %v4636_v31  ;;  %v28462_v32 = vand.u32 4294901760, %v24699_v10  ;;  %v28461_v31 = vand.u32 4294901760, %v24708_v47 }
 0x656   : > { %v28460_v46 = vand.u32 4294901760, %v24710_v2 }
 0x657   : > { %20079 = vmatprep.subr.bf16.mxu1 %v24642_v15  ;;  %v28463_v48 = vand.u32 4294901760, %v24697_v43  ;;  %v4795_v53 = vsub.f32 %v24699_v10, %v28462_v32  ;;  %v4802_v18 = vsub.f32 %v24708_v47, %v28461_v31  ;;  %v24741_v39 = vpack.c.bf16 %v24699_v10, %v24697_v43 }
 0x658   : > { %20081 = vmatpush3.bf16.msra.mxu1 %v24642_v15  ;;  %v4809_v44 = vsub.f32 %v24710_v2, %v28460_v46 }
 0x659   : > { %20083 = vmatprep.subr.bf16.mxu1 %v24658_v61  ;;  %v4788_v21 = vsub.f32 %v24697_v43, %v28463_v48  ;;  %v4796_v16 = vand.u32 4294901760, %v4795_v53  ;;  %v4803_v52 = vand.u32 4294901760, %v4802_v18 }
 0x65a   : > { %v4810_v14 = vand.u32 4294901760, %v4809_v44  ;;  %v28468_v44 = vand.u32 4294901760, %v24758_v5 }
 0x65b   : > { %v4789_v3 = vand.u32 4294901760, %v4788_v21 }
 0x65c   : > { %20085 = vmatpush3.bf16.msra.mxu1 %v24658_v61  ;;  %v24725_v50 = vpack.c.bf16 %v4810_v14, %v4803_v52  ;;  %v28614_v14 = vand.u32 4294901760, %v24506_v45  ;;  %v4725_v25 = vsub.f32 %v24758_v5, %v28468_v44 }
 0x65d   : > { %20087 = vmatprep.subr.bf16.mxu1 %v24668_v51  ;;  %v24723_v11 = vpack.c.bf16 %v4796_v16, %v4789_v3  ;;  %v4717_v16 = vand.u32 4294901760, %v24750_v55 }
 0x65e   : > { %v24770_v37 = vsub.f32 %v24506_v45, %v28614_v14  ;;  %v24795_v14 = vsub.f32 %v24527_v7, %v4621_v26  ;;  %v4726_v12 = vand.u32 4294901760, %v4725_v25  ;;  %v4732_v7 = vsub.f32 %v24765_v9, %v28469_v6 }
 0x660   : > { %v4733_v23 = vand.u32 4294901760, %v4732_v7 }
 0x726   : > { %v16381_v21 = vpop.f32.mrb[2].mxu0 }
 0x727   : > { %v4556_v53 = vadd.f32 %v16381_v21, %v13168_v62  ;;  %v4540_v3 = vpop.f32.mrb[3].mxu0 }
 0x728   : > { %v4555_v18 = vadd.f32 %v13168_v62, %v4540_v3  ;;  %v4718_v62 = vsub.f32 %v24750_v55, %v4717_v16 }
 0x729   : > { %v4558_v52 = vmax.f32 %v4556_v53, 0.0  ;;  %v4738_v53 = vand.u32 4294901760, %v24770_v37 }
 0x72a   : > { %v4557_v19 = vmax.f32 %v4555_v18, 0.0  ;;  %v24790_v18 = vsub.f32 %v24525_v42, %v4618_v17  ;;  %v4719_v42 = vand.u32 4294901760, %v4718_v62 }
 0x72b   : > { %v4560_v8 = vrot.slane %v4558_v52, 6  ;;  %v24772_v21 = vand.u32 4294901760, %v4558_v52  ;;  %v20190_v54 = vpack.c.bf16 %v4738_v53, %v28617_v34 }
 0x72c   : > { %v4559_v3 = vrot.slane %v4557_v19, 6  ;;  %v24777_v46 = vand.u32 4294901760, %v4557_v19  ;;  %v20090_v25 = vpack.c.bf16 %v4726_v12, %v4719_v42 }
 0x72d   : > { %v24784_v45 = vsub.f32 %v4558_v52, %v24772_v21 }
 0x72e   : > { %v24799_v31 = vsel %vm3139_vm3, %v4559_v3, %v4560_v8  ;;  %v24803_v52 = vsel %vm3139_vm3, %v4560_v8, %v4559_v3  ;;  %v24806_v32 = vsub.f32 %v4557_v19, %v24777_v46  ;;  %v4739_v8 = vsub.f32 %v24770_v37, %v4738_v53  ;;  %v4572_v53 = vld [vmem:[#allocation5 + $0x130] sm:$0xff] }
 0x72f   : > { %v28470_v48 = vand.u32 4294901760, %v24784_v45  ;;  %v4745_v19 = vand.u32 4294901760, %v24790_v18  ;;  %v4752_v3 = vand.u32 4294901760, %v24795_v14 }
 0x730   : > { %v4682_v17 = vand.u32 4294901760, %v24806_v32  ;;  %v4740_v44 = vand.u32 4294901760, %v4739_v8 }
 0x731   : > { %v4693_v26 = vsub.f32 %v24784_v45, %v28470_v48  ;;  %v4746_v6 = vsub.f32 %v24790_v18, %v4745_v19  ;;  %v4753_v48 = vsub.f32 %v24795_v14, %v4752_v3 }
 0x732   : > { %v4683_v20 = vsub.f32 %v24806_v32, %v4682_v17 }
 0x733   : > { %v4694_v58 = vand.u32 4294901760, %v4693_v26  ;;  %v4747_v12 = vand.u32 4294901760, %v4746_v6  ;;  %v4754_v42 = vand.u32 4294901760, %v4753_v48  ;;  %v28615_v48 = vand.u32 4294901760, %v24758_v5  ;;  %v4575_v26 = vld [vmem:[#allocation5 + $0x148] sm:$0xff] }
 0x734   : > { %v4684_v62 = vand.u32 4294901760, %v4683_v20  ;;  %v20094_v20 = vpack.c.bf16 %v4740_v44, %v4733_v23  ;;  %v20130_v23 = vpack.c.bf16 %v24795_v14, %v24790_v18  ;;  %v4570_v44 = vld [vmem:[#allocation5 + $0x120] sm:$0xff]  ;;  %v4573_v18 = vld [vmem:[#allocation5 + $0x138] sm:$0xff] }
 0x735   : > { %v20098_v7 = vpack.c.bf16 %v4754_v42, %v4747_v12  ;;  %v5296_v6 = vand.u32 4294901760, %v4570_v44 }
 0x736   : > { %16414 = vmatprep.mubr.f32.mxu1 %v4684_v62  ;;  %v24954_v62 = vld [vmem:[#allocation5 + $0x158] sm:$0xff] }
 0x737   : > { %16415 = vmatmul.mubr.f32.vlgmr.msra.gmra.mrb[2].mxu1 %v4694_v58  ;;  %v20126_v58 = vpack.c.bf16 %v24770_v37, %v24765_v9  ;;  %v4571_v9 = vld [vmem:[#allocation5 + $0x128] sm:$0xff] }
 0x738   : > { %20089 = vmatpush3.bf16.msra.mxu1 %v24668_v51  ;;  %16449 = vmatprep.mubr.f32.mxu1 %v24777_v46  ;;  %v20122_v51 = vpack.c.bf16 %v24758_v5, %v24750_v55 }
 0x739   : > { %20091 = vmatprep.subr.bf16.mxu1 %v20090_v25 }
 0x73c   : > { %20093 = vmatpush3.bf16.msra.mxu1 %v20090_v25  ;;  %v24957_v25 = vld [vmem:[#allocation5 + $0x160] sm:$0xff] }
 0x73d   : > { %20095 = vmatprep.subr.bf16.mxu1 %v20094_v20 }
 0x740   : > { %20097 = vmatpush3.bf16.msra.mxu1 %v20094_v20  ;;  %v24959_v20 = vld [vmem:[#allocation5 + $0x168] sm:$0xff] }
 0x741   : > { %20099 = vmatprep.subr.bf16.mxu1 %v20098_v7 }
 0x744   : > { %20101 = vmatpush3.bf16.msra.mxu1 %v20098_v7 }
 0x745   : > { %20103 = vmatprep.subr.bf16.mxu1 %v24689_v35 }
 0x748   : > { %20105 = vmatpush3.bf16.msra.mxu1 %v24689_v35  ;;  %v20182_v35 = vpack.c.bf16 %v4710_v4, %v4703_v13  ;;  %v20194_v13 = vpack.c.bf16 %v4752_v3, %v4745_v19  ;;  %v28618_v4 = vand.u32 4294901760, %v24671_v0  ;;  %v28624_v0 = vand.u32 4294901760, %v24708_v47  ;;  %v4568_v47 = vld [vmem:[#allocation5 + $0x110] sm:$0xff] }
 0x749   : > { %20107 = vmatprep.subr.bf16.mxu1 %v24703_v49  ;;  %v5311_v3 = vand.u32 4294901760, %v4575_v26 }
 0x74c   : > { %20109 = vmatpush3.bf16.msra.mxu1 %v24703_v49  ;;  %v28616_v49 = vand.u32 4294901760, %v24784_v45 }
 0x74d   : > { %20111 = vmatprep.subr.bf16.mxu1 %v24723_v11 }
 0x750   : > { %20113 = vmatpush3.bf16.msra.mxu1 %v24723_v11  ;;  %v28619_v11 = vand.u32 4294901760, %v24673_v22  ;;  %v28625_v22 = vand.u32 4294901760, %v24710_v2  ;;  %v4569_v2 = vld [vmem:[#allocation5 + $0x118] sm:$0xff] }
 0x751   : > { %20115 = vmatprep.subr.bf16.mxu1 %v24725_v50 }
 0x752   : > { %v20210_v5 = vpack.c.bf16 %v28625_v22, %v28624_v0  ;;  %v25011_v0 = vsub.f32 %v4570_v44, %v5296_v6 }
 0x754   : > { %20117 = vmatpush3.bf16.msra.mxu1 %v24725_v50  ;;  %v20198_v50 = vpack.c.bf16 %v28619_v11, %v28618_v4 }
 0x755   : > { %20119 = vmatprep.subr.bf16.mxu1 %v24729_v59 }
 0x757   : > { %16450 = vmatmul.mubr.f32.vlgmr.msra.gmra.mrb[2].mxu1 %v24772_v21 }
 0x758   : > { %20121 = vmatpush3.bf16.msra.mxu1 %v24729_v59  ;;  %16484 = vmatprep.mubr.f32.mxu1 %v24806_v32  ;;  %v20186_v32 = vpack.c.bf16 %v28615_v48, %v4717_v16  ;;  %v28620_v59 = vand.u32 4294901760, %v24683_v40  ;;  %v4563_v40 = vsel %vm3135_vm4, %v24803_v52, 0.0  ;;  %v5293_v16 = vand.u32 4294901760, %v4569_v2 }
 0x759   : > { %20123 = vmatprep.subr.bf16.mxu1 %v20122_v51  ;;  %v5302_v52 = vand.u32 4294901760, %v4572_v53  ;;  %v5323_v48 = vand.u32 4294901760, %v24959_v20 }
 0x75a   : > { %v24987_v11 = vsub.f32 %v4569_v2, %v5293_v16 }
 0x75c   : > { %20125 = vmatpush3.bf16.msra.mxu1 %v20122_v51 }
 0x75d   : > { %20127 = vmatprep.subr.bf16.mxu1 %v20126_v58 }
 0x760   : > { %20129 = vmatpush3.bf16.msra.mxu1 %v20126_v58  ;;  %v5317_v58 = vand.u32 4294901760, %v24954_v62 }
 0x761   : > { %20131 = vmatprep.subr.bf16.mxu1 %v20130_v23 }
 0x764   : > { %20133 = vmatpush3.bf16.msra.mxu1 %v20130_v23  ;;  %v24971_v23 = vand.u32 4294901760, %v24799_v31 }
 0x765   : > { %20135 = vmatprep.subr.bf16.mxu1 %v24733_v30 }
 0x768   : > { %20137 = vmatpush3.bf16.msra.mxu1 %v24733_v30  ;;  %v28621_v30 = vand.u32 4294901760, %v24685_v41  ;;  %v4567_v41 = vld [vmem:[#allocation5 + $0x108] sm:$0xff] }
 0x769   : > { %20139 = vmatprep.subr.bf16.mxu1 %v24737_v33 }
 0x76c   : > { %20141 = vmatpush3.bf16.msra.mxu1 %v24737_v33  ;;  %v20202_v33 = vpack.c.bf16 %v28621_v30, %v28620_v59 }
 0x76d   : > { %20143 = vmatprep.subr.bf16.mxu1 %v24741_v39 }
 0x770   : > { %20145 = vmatpush3.bf16.msra.mxu1 %v24741_v39  ;;  %v28622_v39 = vand.u32 4294901760, %v24697_v43 }
 0x771   : > { %20147 = vmatprep.subr.bf16.mxu1 %v24745_v38 }
 0x774   : > { %20149 = vmatpush3.bf16.msra.mxu1 %v24745_v38  ;;  %v28623_v38 = vand.u32 4294901760, %v24699_v10  ;;  %v5287_v10 = vand.u32 4294901760, %v4567_v41 }
 0x775   : > { %20151 = vmatprep.subr.bf16.mxu1 %v24515_v27 }
 0x776   : > { %v20206_v55 = vpack.c.bf16 %v28623_v38, %v28622_v39  ;;  %v24963_v42 = vsub.f32 %v4567_v41, %v5287_v10 }
 0x777   : > { %16485 = vmatmul.mubr.f32.vlgmr.msra.gmra.mrb[2].mxu1 %v24784_v45 }
 0x778   : > { %20153 = vmatpush3.bf16.msra.mxu1 %v24515_v27  ;;  %16519 = vmatprep.mubr.f32.mxu1 %v4682_v17  ;;  %v4574_v17 = vld [vmem:[#allocation5 + $0x140] sm:$0xff] }
 0x779   : > { %20155 = vmatprep.subr.bf16.mxu1 %v24523_v29  ;;  %v5308_v19 = vand.u32 4294901760, %v4574_v17 }
 0x77b   : > { %v24966_v7 = vpack.c.bf16 %v5311_v3, %v5308_v19 }
 0x77c   : > { %20157 = vmatpush3.bf16.msra.mxu1 %v24523_v29 }
 0x77d   : > { %20159 = vmatprep.subr.bf16.mxu1 %v24538_v60 }
 0x780   : > { %20161 = vmatpush3.bf16.msra.mxu1 %v24538_v60 }
 0x781   : > { %20163 = vmatprep.subr.bf16.mxu1 %v24550_v24 }
 0x784   : > { %20165 = vmatpush3.bf16.msra.mxu1 %v24550_v24 }
 0x785   : > { %20167 = vmatprep.subr.bf16.mxu1 %v24634_v57 }
 0x788   : > { %20169 = vmatpush3.bf16.msra.mxu1 %v24634_v57 }
 0x789   : > { %20171 = vmatprep.subr.bf16.mxu1 %v24638_v63 }
 0x78c   : > { %20173 = vmatpush3.bf16.msra.mxu1 %v24638_v63 }
 0x78d   : > { %20175 = vmatprep.subr.bf16.mxu1 %v24642_v15 }
 0x790   : > { %20177 = vmatpush3.bf16.msra.mxu1 %v24642_v15 }
 0x791   : > { %20179 = vmatprep.subr.bf16.mxu1 %v24658_v61 }
 0x794   : > { %20181 = vmatpush3.bf16.msra.mxu1 %v24658_v61 }
 0x795   : > { %20183 = vmatprep.subr.bf16.mxu1 %v20182_v35 }
 0x797   : > { %16520 = vmatmul.mubr.f32.vlgmr.msra.gmra.mrb[2].mxu1 %v28616_v49  ;;  %v5394_v49 = vand.u32 4294901760, %v24963_v42 }
 0x798   : > { %20185 = vmatpush3.bf16.msra.mxu1 %v20182_v35  ;;  %16554 = vmatprep.mubr.f32.mxu1 %v24777_v46  ;;  %v5320_v35 = vand.u32 4294901760, %v24957_v25 }
 0x799   : > { %20187 = vmatprep.subr.bf16.mxu1 %v20186_v32 }
 0x79a   : > { %v24997_v59 = vpack.c.bf16 %v5323_v48, %v5320_v35 }
 0x79c   : > { %20189 = vmatpush3.bf16.msra.mxu1 %v20186_v32 }
 0x79d   : > { %20191 = vmatprep.subr.bf16.mxu1 %v20190_v54 }
 0x7a0   : > { %20193 = vmatpush3.bf16.msra.mxu1 %v20190_v54  ;;  %v24981_v54 = vld [vmem:[#allocation5 + $0x170] sm:$0xff] }
 0x7a1   : > { %20195 = vmatprep.subr.bf16.mxu1 %v20194_v13  ;;  %v5326_v30 = vand.u32 4294901760, %v24981_v54 }
 0x7a4   : > { %20197 = vmatpush3.bf16.msra.mxu1 %v20194_v13  ;;  %v24983_v13 = vld [vmem:[#allocation5 + $0x178] sm:$0xff] }
 0x7a5   : > { %20199 = vmatprep.subr.bf16.mxu1 %v20198_v50 }
 0x7a8   : > { %20201 = vmatpush3.bf16.msra.mxu1 %v20198_v50  ;;  %v24991_v50 = vsub.f32 %v24799_v31, %v24971_v23  ;;  %v5395_v31 = vsub.f32 %v24963_v42, %v5394_v49 }
 0x7a9   : > { %20203 = vmatprep.subr.bf16.mxu1 %v20202_v33 }
 0x7aa   : > { %v5376_v41 = vand.u32 4294901760, %v24991_v50 }
 0x7ac   : > { %20205 = vmatpush3.bf16.msra.mxu1 %v20202_v33  ;;  %v5329_v33 = vand.u32 4294901760, %v24983_v13 }
 0x7ad   : > { %20207 = vmatprep.subr.bf16.mxu1 %v20206_v55 }
 0x7b0   : > { %20209 = vmatpush3.bf16.msra.mxu1 %v20206_v55  ;;  %v5408_v55 = vand.u32 4294901760, %v24987_v11 }
 0x7b1   : > { %20211 = vmatprep.subr.bf16.mxu1 %v20210_v5 }
 0x7b2   : > { %v5409_v2 = vsub.f32 %v24987_v11, %v5408_v55 }
 0x7b4   : > { %20213 = vmatpush3.bf16.msra.mxu1 %v20210_v5  ;;  %v25015_v5 = vsub.f32 %v4572_v53, %v5302_v52 }
 0x7b5   : > { %20215 = vmatprep.subr.bf16.mxu1 %v24515_v27 }
 0x7b7   : > { %16555 = vmatmul.mubr.f32.vlgmr.msra.gmra.mrb[2].mxu1 %v24772_v21 }
 0x7b8   : > { %20217 = vmatpush3.bf16.msra.mxu1 %v24515_v27  ;;  %16589 = vmatprep.mubr.f32.mxu1 %v24777_v46  ;;  %v24922_v27 = vand.u32 4294901760, %v4563_v40  ;;  %v5290_v46 = vand.u32 4294901760, %v4568_v47 }
 0x7b9   : > { %20219 = vmatprep.subr.bf16.mxu1 %v24523_v29 }
 0x7ba   : > { %v24941_v37 = vpack.c.bf16 %v5293_v16, %v5290_v46  ;;  %v24985_v4 = vsub.f32 %v4568_v47, %v5290_v46  ;;  %v5415_v46 = vand.u32 4294901760, %v25011_v0 }
 0x7bc   : > { %20221 = vmatpush3.bf16.msra.mxu1 %v24523_v29  ;;  %v4566_v29 = vld [vmem:[#allocation5 + $0x100] sm:$0xff]  ;;  %v5401_v38 = vand.u32 4294901760, %v24985_v4 }
 0x7bd   : > { %20223 = vmatprep.subr.bf16.mxu1 %v24538_v60  ;;  %v5284_v43 = vand.u32 4294901760, %v4566_v29 }
 0x7be   : > { %v5402_v47 = vsub.f32 %v24985_v4, %v5401_v38 }
 0x7bf   : > { %v24961_v12 = vsub.f32 %v4566_v29, %v5284_v43  ;;  %v25024_v29 = vpack.c.bf16 %v5329_v33, %v5326_v30 }
 0x7c0   : > { %20225 = vmatpush3.bf16.msra.mxu1 %v24538_v60  ;;  %v24927_v60 = vsub.f32 %v4563_v40, %v24922_v27  ;;  %v5403_v53 = vand.u32 4294901760, %v5402_v47 }
 0x7c1   : > { %20227 = vmatprep.subr.bf16.mxu1 %v24550_v24  ;;  %v5387_v32 = vand.u32 4294901760, %v24961_v12 }
 0x7c3   : > { %v5388_v39 = vsub.f32 %v24961_v12, %v5387_v32 }
 0x7c4   : > { %20229 = vmatpush3.bf16.msra.mxu1 %v24550_v24  ;;  %v5366_v24 = vand.u32 4294901760, %v24927_v60 }
 0x7c5   : > { %20231 = vmatprep.subr.bf16.mxu1 %v24634_v57 }
 0x7c8   : > { %20233 = vmatpush3.bf16.msra.mxu1 %v24634_v57  ;;  %v24934_v57 = vpack.c.bf16 %v5287_v10, %v5284_v43  ;;  %v5389_v43 = vand.u32 4294901760, %v5388_v39  ;;  %v5396_v10 = vand.u32 4294901760, %v5395_v31  ;;  %v25066_v31 = vsub.f32 %v24954_v62, %v5317_v58 }
 0x7c9   : > { %20235 = vmatprep.subr.bf16.mxu1 %v24638_v63 }
 0x7cc   : > { %20237 = vmatpush3.bf16.msra.mxu1 %v24638_v63  ;;  %v5367_v63 = vsub.f32 %v24927_v60, %v5366_v24 }
 0x7cd   : > { %20239 = vmatprep.subr.bf16.mxu1 %v24642_v15 }
 0x7ce   : > { %v5368_v45 = vand.u32 4294901760, %v5367_v63  ;;  %v28471_v63 = vand.u32 4294901760, %v25015_v5 }
 0x7d0   : > { %20241 = vmatpush3.bf16.msra.mxu1 %v24642_v15  ;;  %v5299_v15 = vand.u32 4294901760, %v4571_v9  ;;  %v5430_v39 = vsub.f32 %v25015_v5, %v28471_v63 }
 0x7d1   : > { %20243 = vmatprep.subr.bf16.mxu1 %v24658_v61 }
 0x7d2   : > { %v24946_v14 = vpack.c.bf16 %v5299_v15, %v5296_v6  ;;  %v25013_v22 = vsub.f32 %v4571_v9, %v5299_v15  ;;  %v5377_v9 = vsub.f32 %v24991_v50, %v5376_v41  ;;  %v20278_v6 = vpack.c.bf16 %v5396_v10, %v5389_v43 }
 0x7d3   : > { %v25042_v15 = vsub.f32 %v4574_v17, %v5308_v19  ;;  %v5431_v63 = vand.u32 4294901760, %v5430_v39 }
 0x7d4   : > { %20245 = vmatpush3.bf16.msra.mxu1 %v24658_v61  ;;  %v5305_v61 = vand.u32 4294901760, %v4573_v18  ;;  %v28473_v16 = vand.u32 4294901760, %v25013_v22  ;;  %v5378_v43 = vand.u32 4294901760, %v5377_v9  ;;  %v25080_v9 = vsub.f32 %v24957_v25, %v5320_v35 }
 0x7d5   : > { %20247 = vmatprep.subr.bf16.mxu1 %v24934_v57 }
 0x7d6   : > { %v24950_v8 = vpack.c.bf16 %v5305_v61, %v5302_v52  ;;  %v25017_v40 = vsub.f32 %v4573_v18, %v5305_v61  ;;  %v5410_v18 = vand.u32 4294901760, %v5409_v2  ;;  %v5416_v52 = vsub.f32 %v25011_v0, %v5415_v46 }
 0x7d7   : > { %16590 = vmatmul.mubr.f32.vlgmr.msra.gmra.mrb[2].mxu1 %v24772_v21  ;;  %v24952_v21 = vld [vmem:[#allocation5 + $0x150] sm:$0xff]  ;;  %v5423_v61 = vsub.f32 %v25013_v22, %v28473_v16  ;;  %v5471_v25 = vand.u32 4294901760, %v25080_v9 }
 0x7d8   : > { %20249 = vmatpush3.bf16.msra.mxu1 %v24934_v57  ;;  %16624 = vmatprep.mubr.f32.mxu1 %v5368_v45  ;;  %v5314_v51 = vand.u32 4294901760, %v24952_v21  ;;  %v28472_v44 = vand.u32 4294901760, %v25017_v40  ;;  %v25044_v45 = vsub.f32 %v4575_v26, %v5311_v3  ;;  %v5443_v26 = vand.u32 4294901760, %v25042_v15 }
 0x7d9   : > { %20251 = vmatprep.subr.bf16.mxu1 %v24941_v37  ;;  %v20282_v10 = vpack.c.bf16 %v5410_v18, %v5403_v53  ;;  %v5417_v47 = vand.u32 4294901760, %v5416_v52  ;;  %v5424_v2 = vand.u32 4294901760, %v5423_v61 }
 0x7da   : > { %v24979_v34 = vpack.c.bf16 %v5317_v58, %v5314_v51  ;;  %v5437_v17 = vsub.f32 %v25017_v40, %v28472_v44  ;;  %v5450_v19 = vand.u32 4294901760, %v25044_v45  ;;  %v25063_v3 = vsub.f32 %v24952_v21, %v5314_v51 }
 0x7db   : > { %v5444_v16 = vsub.f32 %v25042_v15, %v5443_v26  ;;  %v5464_v51 = vand.u32 4294901760, %v25066_v31  ;;  %v20286_v58 = vpack.c.bf16 %v5424_v2, %v5417_v47 }
 0x7dc   : > { %20253 = vmatpush3.bf16.msra.mxu1 %v24941_v37  ;;  %v5438_v44 = vand.u32 4294901760, %v5437_v17  ;;  %v5451_v21 = vsub.f32 %v25044_v45, %v5450_v19  ;;  %v5457_v62 = vand.u32 4294901760, %v25063_v3  ;;  %v5472_v17 = vsub.f32 %v25080_v9, %v5471_v25 }
 0x7dd   : > { %20255 = vmatprep.subr.bf16.mxu1 %v24946_v14  ;;  %v5445_v18 = vand.u32 4294901760, %v5444_v16  ;;  %v5465_v39 = vsub.f32 %v25066_v31, %v5464_v51 }
 0x7de   : > { %v20290_v53 = vpack.c.bf16 %v5438_v44, %v5431_v63  ;;  %v5452_v52 = vand.u32 4294901760, %v5451_v21  ;;  %v5458_v61 = vsub.f32 %v25063_v3, %v5457_v62 }
 0x7df   : > { %v5466_v44 = vand.u32 4294901760, %v5465_v39  ;;  %v25124_v39 = vld [vmem:[#allocation3 + $0x280] sm:$0xff] }
 0x7e0   : > { %20257 = vmatpush3.bf16.msra.mxu1 %v24946_v14  ;;  %v20294_v16 = vpack.c.bf16 %v5452_v52, %v5445_v18  ;;  %v5459_v63 = vand.u32 4294901760, %v5458_v61  ;;  %v20310_v52 = vpack.c.bf16 %v24963_v42, %v24961_v12  ;;  %v20314_v61 = vpack.c.bf16 %v24987_v11, %v24985_v4 }
 0x7e1   : > { %20259 = vmatprep.subr.bf16.mxu1 %v24950_v8  ;;  %v28626_v12 = vand.u32 4294901760, %v25013_v22  ;;  %v20390_v11 = vpack.c.bf16 %v5450_v19, %v5443_v26 }
 0x7e3   : > { %v20382_v42 = vpack.c.bf16 %v28626_v12, %v5415_v46 }
 0x7e4   : > { %20261 = vmatpush3.bf16.msra.mxu1 %v24950_v8 }
 0x7e5   : > { %20263 = vmatprep.subr.bf16.mxu1 %v24966_v7 }
 0x7e8   : > { %20265 = vmatpush3.bf16.msra.mxu1 %v24966_v7 }
 0x7e9   : > { %20267 = vmatprep.subr.bf16.mxu1 %v24979_v34 }
 0x7ec   : > { %20269 = vmatpush3.bf16.msra.mxu1 %v24979_v34 }
 0x7ed   : > { %20271 = vmatprep.subr.bf16.mxu1 %v24997_v59 }
 0x7f0   : > { %20273 = vmatpush3.bf16.msra.mxu1 %v24997_v59 }
 0x7f1   : > { %20275 = vmatprep.subr.bf16.mxu1 %v25024_v29 }
 0x7f4   : > { %20277 = vmatpush3.bf16.msra.mxu1 %v25024_v29 }
 0x7f5   : > { %20279 = vmatprep.subr.bf16.mxu1 %v20278_v6 }
 0x7f7   : > { %16625 = vmatmul.mubr.f32.vlgmr.msra.gmra.mrb[2].mxu1 %v5378_v43 }
 0x7f8   : > { %20281 = vmatpush3.bf16.msra.mxu1 %v20278_v6  ;;  %16659 = vmatprep.mubr.f32.mxu1 %v24922_v27  ;;  %v25085_v6 = vsub.f32 %v24959_v20, %v5323_v48  ;;  %v25098_v20 = vsub.f32 %v24981_v54, %v5326_v30  ;;  %v25103_v48 = vsub.f32 %v24983_v13, %v5329_v33  ;;  %v5473_v33 = vand.u32 4294901760, %v5472_v17 }
 0x7f9   : > { %20283 = vmatprep.subr.bf16.mxu1 %v20282_v10  ;;  %v20298_v13 = vpack.c.bf16 %v5466_v44, %v5459_v63  ;;  %v25128_v63 = vld [vmem:[#allocation3 + $0x290] sm:$0xff]  ;;  %v28478_v44 = vand.u32 4294901760, %v25124_v39 }
 0x7fa   : > { %v5478_v35 = vand.u32 4294901760, %v25085_v6  ;;  %v28479_v54 = vand.u32 4294901760, %v25098_v20  ;;  %v28474_v30 = vand.u32 4294901760, %v25103_v48 }
 0x7fc   : > { %20285 = vmatpush3.bf16.msra.mxu1 %v20282_v10  ;;  %v5479_v43 = vsub.f32 %v25085_v6, %v5478_v35  ;;  %v5486_v47 = vsub.f32 %v25098_v20, %v28479_v54  ;;  %v5493_v2 = vsub.f32 %v25103_v48, %v28474_v30  ;;  %v25159_v30 = vld [vmem:[#allocation3 + $0x2b8] sm:$0xff] }
 0x7fd   : > { %20287 = vmatprep.subr.bf16.mxu1 %v20286_v58 }
 0x7fe   : > { %v5480_v10 = vand.u32 4294901760, %v5479_v43  ;;  %v5494_v18 = vand.u32 4294901760, %v5493_v2  ;;  %v25133_v43 = vld [vmem:[#allocation3 + $0x298] sm:$0xff] }
 0x7ff   : > { %v28476_v2 = vand.u32 4294901760, %v25133_v43 }
 0x800   : > { %20289 = vmatpush3.bf16.msra.mxu1 %v20286_v58  ;;  %v20302_v21 = vpack.c.bf16 %v5480_v10, %v5473_v33  ;;  %v5487_v58 = vand.u32 4294901760, %v5486_v47  ;;  %v25136_v33 = vld [vmem:[#allocation3 + $0x2a0] sm:$0xff]  ;;  %v25138_v10 = vld [vmem:[#allocation3 + $0x2a8] sm:$0xff]  ;;  %v20318_v47 = vpack.c.bf16 %v25013_v22, %v25011_v0  ;;  %v28630_v0 = vand.u32 4294901760, %v25103_v48 }
 0x801   : > { %20291 = vmatprep.subr.bf16.mxu1 %v20290_v53 }
 0x804   : > { %20293 = vmatpush3.bf16.msra.mxu1 %v20290_v53  ;;  %v20306_v53 = vpack.c.bf16 %v5494_v18, %v5487_v58  ;;  %v6038_v58 = vand.u32 4294901760, %v25136_v33  ;;  %v28480_v18 = vand.u32 4294901760, %v25138_v10 }
 0x805   : > { %20295 = vmatprep.subr.bf16.mxu1 %v20294_v16 }
 0x808   : > { %20297 = vmatpush3.bf16.msra.mxu1 %v20294_v16  ;;  %v25126_v16 = vld [vmem:[#allocation3 + $0x288] sm:$0xff] }
 0x809   : > { %20299 = vmatprep.subr.bf16.mxu1 %v20298_v13  ;;  %v28475_v17 = vand.u32 4294901760, %v25126_v16  ;;  %v28632_v19 = vand.u32 4294901760, %v25126_v16 }
 0x80c   : > { %20301 = vmatpush3.bf16.msra.mxu1 %v20298_v13  ;;  %v28477_v13 = vand.u32 4294901760, %v25128_v63 }
 0x80d   : > { %20303 = vmatprep.subr.bf16.mxu1 %v20302_v21 }
 0x810   : > { %20305 = vmatpush3.bf16.msra.mxu1 %v20302_v21  ;;  %v25147_v21 = vpack.c.bf16 %v28475_v17, %v28478_v44  ;;  %v20322_v17 = vpack.c.bf16 %v25017_v40, %v25015_v5  ;;  %v20326_v44 = vpack.c.bf16 %v25044_v45, %v25042_v15  ;;  %v28631_v45 = vand.u32 4294901760, %v25124_v39 }
 0x811   : > { %20307 = vmatprep.subr.bf16.mxu1 %v20306_v53 }
 0x812   : > { %20439 = vmatprep.subr.bf16.mxu0 %v25147_v21  ;;  %v25279_v26 = vsub.f32 %v25124_v39, %v28631_v45 }
 0x813   : > { %20441 = vmatpush3.bf16.msra.mxu0 %v25147_v21 }
 0x814   : > { %20309 = vmatpush3.bf16.msra.mxu1 %v20306_v53  ;;  %v25155_v53 = vpack.c.bf16 %v28476_v2, %v28477_v13  ;;  %v25170_v2 = vpack.c.bf16 %v28480_v18, %v6038_v58  ;;  %v20330_v18 = vpack.c.bf16 %v25066_v31, %v25063_v3  ;;  %v25284_v3 = vsub.f32 %v25126_v16, %v28632_v19  ;;  %v6023_v31 = vld [vmem:[#allocation3 + $0x2f0] sm:$0xff] }
 0x815   : > { %20311 = vmatprep.subr.bf16.mxu1 %v20310_v52 }
 0x816   : > { %20443 = vmatprep.subr.bf16.mxu0 %v25155_v53 }
 0x817   : > { %16660 = vmatmul.mubr.f32.vlgmr.msra.gmra.mrb[2].mxu1 %v24971_v23  ;;  %20445 = vmatpush3.bf16.msra.mxu0 %v25155_v53 }
 0x818   : > { %20313 = vmatpush3.bf16.msra.mxu1 %v20310_v52  ;;  %16694 = vmatprep.mubr.f32.mxu1 %v24927_v60  ;;  %v25157_v52 = vld [vmem:[#allocation3 + $0x2b0] sm:$0xff]  ;;  %v20374_v60 = vpack.c.bf16 %v5394_v49, %v5387_v32  ;;  %v28627_v32 = vand.u32 4294901760, %v25015_v5  ;;  %v28628_v49 = vand.u32 4294901760, %v25017_v40  ;;  %v6020_v5 = vld [vmem:[#allocation3 + $0x2d8] sm:$0xff] }
 0x819   : > { %20315 = vmatprep.subr.bf16.mxu1 %v20314_v61  ;;  %v6044_v13 = vand.u32 4294901760, %v25157_v52  ;;  %20447 = vmatprep.subr.bf16.mxu0 %v25170_v2  ;;  %v6059_v40 = vand.u32 4294901760, %v6020_v5 }
 0x81a   : > { %v20386_v4 = vpack.c.bf16 %v28628_v49, %v28627_v32 }
 0x81b   : > { %20449 = vmatpush3.bf16.msra.mxu0 %v25170_v2  ;;  %v25317_v32 = vsub.f32 %v6020_v5, %v6059_v40 }
 0x81c   : > { %20317 = vmatpush3.bf16.msra.mxu1 %v20314_v61  ;;  %v6047_v61 = vand.u32 4294901760, %v25159_v30 }
 0x81d   : > { %20319 = vmatprep.subr.bf16.mxu1 %v20318_v47 }
 0x81e   : > { %v25182_v54 = vpack.c.bf16 %v6047_v61, %v6044_v13 }
 0x820   : > { %20321 = vmatpush3.bf16.msra.mxu1 %v20318_v47  ;;  %20451 = vmatprep.subr.bf16.mxu0 %v25182_v54  ;;  %v20334_v47 = vpack.c.bf16 %v25085_v6, %v25080_v9  ;;  %v6129_v6 = vand.u32 4294901760, %v25279_v26 }
 0x821   : > { %20323 = vmatprep.subr.bf16.mxu1 %v20322_v17  ;;  %20453 = vmatpush3.bf16.msra.mxu0 %v25182_v54 }
 0x824   : > { %20325 = vmatpush3.bf16.msra.mxu1 %v20322_v17  ;;  %v20338_v17 = vpack.c.bf16 %v25103_v48, %v25098_v20 }
 0x825   : > { %20327 = vmatprep.subr.bf16.mxu1 %v20326_v44 }
 0x828   : > { %20329 = vmatpush3.bf16.msra.mxu1 %v20326_v44 }
 0x829   : > { %20331 = vmatprep.subr.bf16.mxu1 %v20330_v18 }
 0x82c   : > { %20333 = vmatpush3.bf16.msra.mxu1 %v20330_v18 }
 0x82d   : > { %20335 = vmatprep.subr.bf16.mxu1 %v20334_v47 }
 0x830   : > { %20337 = vmatpush3.bf16.msra.mxu1 %v20334_v47 }
 0x831   : > { %20339 = vmatprep.subr.bf16.mxu1 %v20338_v17 }
 0x834   : > { %20341 = vmatpush3.bf16.msra.mxu1 %v20338_v17 }
 0x835   : > { %20343 = vmatprep.subr.bf16.mxu1 %v24934_v57 }
 0x837   : > { %16695 = vmatmul.mubr.f32.vlgmr.msra.gmra.mrb[2].mxu1 %v24991_v50  ;;  %v20394_v50 = vpack.c.bf16 %v5464_v51, %v5457_v62  ;;  %v6024_v62 = vld [vmem:[#allocation3 + $0x2f8] sm:$0xff]  ;;  %v6068_v51 = vand.u32 4294901760, %v6023_v31 }
 0x838   : > { %20345 = vmatpush3.bf16.msra.mxu1 %v24934_v57  ;;  %16729 = vmatprep.mubr.f32.mxu1 %v5366_v24  ;;  %v20378_v24 = vpack.c.bf16 %v5408_v55, %v5401_v38  ;;  %v20398_v38 = vpack.c.bf16 %v5478_v35, %v5471_v25  ;;  %v28629_v55 = vand.u32 4294901760, %v25098_v20  ;;  %v6071_v9 = vand.u32 4294901760, %v6024_v62 }
 0x839   : > { %20347 = vmatprep.subr.bf16.mxu1 %v24941_v37  ;;  %v6136_v25 = vand.u32 4294901760, %v25284_v3  ;;  %v6130_v20 = vsub.f32 %v25279_v26, %v6129_v6 }
 0x83a   : > { %v20402_v22 = vpack.c.bf16 %v28630_v0, %v28629_v55  ;;  %v25290_v35 = vpack.c.bf16 %v6071_v9, %v6068_v51  ;;  %v25342_v45 = vsub.f32 %v6024_v62, %v6071_v9 }
 0x83b   : > { %v6137_v48 = vsub.f32 %v25284_v3, %v6136_v25  ;;  %v6131_v39 = vand.u32 4294901760, %v6130_v20 }
 0x83c   : > { %20349 = vmatpush3.bf16.msra.mxu1 %v24941_v37 }
 0x83d   : > { %20351 = vmatprep.subr.bf16.mxu1 %v24946_v14  ;;  %v6138_v16 = vand.u32 4294901760, %v6137_v48 }
 0x83f   : > { %v25300_v44 = vpack.c.bf16 %v6138_v16, %v6131_v39  ;;  %v25361_v39 = vpack.c.bf16 %v25284_v3, %v25279_v26 }
 0x840   : > { %20353 = vmatpush3.bf16.msra.mxu1 %v24946_v14 }
 0x841   : > { %20355 = vmatprep.subr.bf16.mxu1 %v24950_v8 }
 0x844   : > { %20357 = vmatpush3.bf16.msra.mxu1 %v24950_v8 }
 0x845   : > { %20359 = vmatprep.subr.bf16.mxu1 %v24966_v7 }
 0x848   : > { %20361 = vmatpush3.bf16.msra.mxu1 %v24966_v7 }
 0x849   : > { %20363 = vmatprep.subr.bf16.mxu1 %v24979_v34 }
 0x84c   : > { %20365 = vmatpush3.bf16.msra.mxu1 %v24979_v34 }
 0x84d   : > { %20367 = vmatprep.subr.bf16.mxu1 %v24997_v59 }
 0x850   : > { %20369 = vmatpush3.bf16.msra.mxu1 %v24997_v59 }
 0x851   : > { %20371 = vmatprep.subr.bf16.mxu1 %v25024_v29 }
 0x854   : > { %20373 = vmatpush3.bf16.msra.mxu1 %v25024_v29 }
 0x855   : > { %20375 = vmatprep.subr.bf16.mxu1 %v20374_v60 }
 0x857   : > { %16730 = vmatmul.mubr.f32.vlgmr.msra.gmra.mrb[2].mxu1 %v5376_v41  ;;  %v6021_v41 = vld [vmem:[#allocation3 + $0x2e0] sm:$0xff] }
 0x858   : > { %20377 = vmatpush3.bf16.msra.mxu1 %v20374_v60  ;;  %16764 = vmatprep.mubr.f32.mxu1 %v24922_v27 }
 0x859   : > { %20379 = vmatprep.subr.bf16.mxu1 %v20378_v24 }
 0x85c   : > { %20381 = vmatpush3.bf16.msra.mxu1 %v20378_v24 }
 0x85d   : > { %20383 = vmatprep.subr.bf16.mxu1 %v20382_v42 }
 0x860   : > { %20385 = vmatpush3.bf16.msra.mxu1 %v20382_v42 }
 0x861   : > { %20387 = vmatprep.subr.bf16.mxu1 %v20386_v4 }
 0x864   : > { %20389 = vmatpush3.bf16.msra.mxu1 %v20386_v4 }
 0x865   : > { %20391 = vmatprep.subr.bf16.mxu1 %v20390_v11 }
 0x868   : > { %20393 = vmatpush3.bf16.msra.mxu1 %v20390_v11 }
 0x869   : > { %20395 = vmatprep.subr.bf16.mxu1 %v20394_v50 }
 0x86c   : > { %20397 = vmatpush3.bf16.msra.mxu1 %v20394_v50  ;;  %v28485_v50 = vand.u32 4294901760, %v25317_v32 }
 0x86d   : > { %20399 = vmatprep.subr.bf16.mxu1 %v20398_v38 }
 0x86e   : > { %v6207_v0 = vsub.f32 %v25317_v32, %v28485_v50 }
 0x870   : > { %20401 = vmatpush3.bf16.msra.mxu1 %v20398_v38 }
 0x871   : > { %20403 = vmatprep.subr.bf16.mxu1 %v20402_v22 }
 0x874   : > { %20405 = vmatpush3.bf16.msra.mxu1 %v20402_v22 }
 0x875   : > { %20407 = vmatprep.subr.bf16.mxu1 %v24934_v57 }
 0x877   : > { %16765 = vmatmul.mubr.f32.vlgmr.msra.gmra.mrb[2].mxu1 %v24971_v23 }
 0x878   : > { %20409 = vmatpush3.bf16.msra.mxu1 %v24934_v57  ;;  %16799 = vmatprep.mubr.f32.mxu1 %v24922_v27  ;;  %v6017_v27 = vld [vmem:[#allocation3 + $0x2c0] sm:$0xff]  ;;  %v6018_v57 = vld [vmem:[#allocation3 + $0x2c8] sm:$0xff] }
 0x879   : > { %20411 = vmatprep.subr.bf16.mxu1 %v24941_v37 }
 0x87c   : > { %20413 = vmatpush3.bf16.msra.mxu1 %v24941_v37  ;;  %v6050_v37 = vand.u32 4294901760, %v6017_v27 }
 0x87d   : > { %20415 = vmatprep.subr.bf16.mxu1 %v24946_v14 }
 0x87e   : > { %v25303_v18 = vsub.f32 %v6017_v27, %v6050_v37 }
 0x880   : > { %20417 = vmatpush3.bf16.msra.mxu1 %v24946_v14  ;;  %v6053_v14 = vand.u32 4294901760, %v6018_v57  ;;  %v28488_v17 = vand.u32 4294901760, %v25303_v18 }
 0x881   : > { %20419 = vmatprep.subr.bf16.mxu1 %v24950_v8 }
 0x882   : > { %v25305_v47 = vsub.f32 %v6018_v57, %v6053_v14  ;;  %v6186_v24 = vsub.f32 %v25303_v18, %v28488_v17 }
 0x884   : > { %20421 = vmatpush3.bf16.msra.mxu1 %v24950_v8  ;;  %v25266_v8 = vpack.c.bf16 %v6053_v14, %v6050_v37  ;;  %v28487_v60 = vand.u32 4294901760, %v25305_v47  ;;  %v6187_v49 = vand.u32 4294901760, %v6186_v24  ;;  %v6208_v37 = vand.u32 4294901760, %v6207_v0 }
 0x885   : > { %20423 = vmatprep.subr.bf16.mxu1 %v24966_v7  ;;  %v25365_v16 = vpack.c.bf16 %v25305_v47, %v25303_v18  ;;  %v28633_v0 = vand.u32 4294901760, %v25128_v63 }
 0x886   : > { %20455 = vmatprep.subr.bf16.mxu0 %v25266_v8  ;;  %v6193_v12 = vsub.f32 %v25305_v47, %v28487_v60 }
 0x887   : > { %20457 = vmatpush3.bf16.msra.mxu0 %v25266_v8 }
 0x888   : > { %20425 = vmatpush3.bf16.msra.mxu1 %v24966_v7  ;;  %v6019_v7 = vld [vmem:[#allocation3 + $0x2d0] sm:$0xff]  ;;  %v6194_v4 = vand.u32 4294901760, %v6193_v12 }
 0x889   : > { %20427 = vmatprep.subr.bf16.mxu1 %v24979_v34 }
 0x88a   : > { %v25321_v38 = vpack.c.bf16 %v6194_v4, %v6187_v49  ;;  %v13169_v4 = vld [vmem:[%s28406_s4 + $0x1] ss:$0 sm:$0xff] }
 0x88c   : > { %20429 = vmatpush3.bf16.msra.mxu1 %v24979_v34  ;;  %v6056_v34 = vand.u32 4294901760, %v6019_v7 }
 0x88d   : > { %20431 = vmatprep.subr.bf16.mxu1 %v24997_v59 }
 0x88e   : > { %v25315_v42 = vsub.f32 %v6019_v7, %v6056_v34 }
 0x890   : > { %20433 = vmatpush3.bf16.msra.mxu1 %v24997_v59  ;;  %v25270_v59 = vpack.c.bf16 %v6059_v40, %v6056_v34  ;;  %v28486_v11 = vand.u32 4294901760, %v25315_v42  ;;  %v25340_v40 = vsub.f32 %v6023_v31, %v6068_v51  ;;  %v25369_v24 = vpack.c.bf16 %v25317_v32, %v25315_v42 }
 0x891   : > { %20435 = vmatprep.subr.bf16.mxu1 %v25024_v29 }
 0x892   : > { %20459 = vmatprep.subr.bf16.mxu0 %v25270_v59  ;;  %v6200_v55 = vsub.f32 %v25315_v42, %v28486_v11  ;;  %v25377_v49 = vpack.c.bf16 %v25342_v45, %v25340_v40 }
 0x893   : > { %20461 = vmatpush3.bf16.msra.mxu0 %v25270_v59 }
 0x894   : > { %20437 = vmatpush3.bf16.msra.mxu1 %v25024_v29  ;;  %v6022_v29 = vld [vmem:[#allocation3 + $0x2e8] sm:$0xff]  ;;  %v6201_v57 = vand.u32 4294901760, %v6200_v55 }
 0x895   : > { %v6065_v46 = vand.u32 4294901760, %v6022_v29 }
 0x896   : > { %v25335_v5 = vpack.c.bf16 %v6208_v37, %v6201_v57  ;;  %v25385_v57 = vsub.f32 %v25128_v63, %v28633_v0  ;;  %v28634_v37 = vand.u32 4294901760, %v25133_v43 }
 0x897   : > { %16800 = vmatmul.mubr.f32.vlgmr.msra.gmra.mrb[2].mxu1 %v24971_v23  ;;  %v6062_v23 = vand.u32 4294901760, %v6021_v41  ;;  %v25331_v27 = vsub.f32 %v6022_v29, %v6065_v46 }
 0x899   : > { %v25274_v15 = vpack.c.bf16 %v6065_v46, %v6062_v23  ;;  %v25329_v22 = vsub.f32 %v6021_v41, %v6062_v23  ;;  %v28483_v7 = vand.u32 4294901760, %v25331_v27  ;;  %v28482_v23 = vand.u32 4294901760, %v25340_v40 }
 0x89a   : > { %v28481_v46 = vand.u32 4294901760, %v25342_v45 }
 0x89b   : > { %20463 = vmatprep.subr.bf16.mxu0 %v25274_v15  ;;  %v28484_v14 = vand.u32 4294901760, %v25329_v22  ;;  %v6221_v41 = vsub.f32 %v25331_v27, %v28483_v7  ;;  %v6228_v20 = vsub.f32 %v25340_v40, %v28482_v23  ;;  %v25373_v12 = vpack.c.bf16 %v25331_v27, %v25329_v22 }
 0x89c   : > { %20465 = vmatpush3.bf16.msra.mxu0 %v25274_v15  ;;  %v6235_v31 = vsub.f32 %v25342_v45, %v28481_v46  ;;  %v25397_v46 = vsub.f32 %v25136_v33, %v6038_v58 }
 0x89d   : > { %20467 = vmatprep.subr.bf16.mxu0 %v25290_v35  ;;  %v6214_v34 = vsub.f32 %v25329_v22, %v28484_v14  ;;  %v6222_v19 = vand.u32 4294901760, %v6221_v41  ;;  %v6229_v51 = vand.u32 4294901760, %v6228_v20 }
 0x89e   : > { %v6236_v9 = vand.u32 4294901760, %v6235_v31  ;;  %v28636_v26 = vand.u32 4294901760, %v25397_v46 }
 0x89f   : > { %v6215_v29 = vand.u32 4294901760, %v6214_v34  ;;  %v25390_v34 = vsub.f32 %v25133_v43, %v28634_v37  ;;  %v28635_v43 = vand.u32 4294901760, %v25138_v10 }
 0x8a0   : > { %20469 = vmatpush3.bf16.msra.mxu0 %v25290_v35  ;;  %v25357_v48 = vpack.c.bf16 %v6236_v9, %v6229_v51  ;;  %v6143_v51 = vand.u32 4294901760, %v25385_v57 }
 0x8a1   : > { %20471 = vmatprep.subr.bf16.mxu0 %v25300_v44  ;;  %v25355_v62 = vpack.c.bf16 %v6222_v19, %v6215_v29  ;;  %v6150_v9 = vand.u32 4294901760, %v25390_v34 }
 0x8a2   : > { %v6144_v33 = vsub.f32 %v25385_v57, %v6143_v51 }
 0x96a   : > { %v16801_v55 = vpop.f32.mrb[2].mxu1 }
 0x96b   : > { %v5973_v41 = vadd.f32 %v16801_v55, %v13169_v4  ;;  %v5957_v29 = vpop.f32.mrb[3].mxu1  ;;  %v25405_v55 = vsub.f32 %v25138_v10, %v28635_v43  ;;  %v28489_v10 = vand.u32 4294901760, %v25397_v46  ;;  %v6145_v43 = vand.u32 4294901760, %v6144_v33 }
 0x96c   : > { %v5972_v19 = vadd.f32 %v13169_v4, %v5957_v29  ;;  %v25436_v29 = vsub.f32 %v25159_v30, %v6047_v61 }
 0x96d   : > { %v5975_v20 = vmax.f32 %v5973_v41, 0.0  ;;  %v6164_v58 = vand.u32 4294901760, %v25405_v55  ;;  %v25431_v41 = vsub.f32 %v25157_v52, %v6044_v13  ;;  %v6158_v13 = vsub.f32 %v25397_v46, %v28489_v10 }
 0x96e   : > { %v5974_v31 = vmax.f32 %v5972_v19, 0.0  ;;  %v6178_v7 = vand.u32 4294901760, %v25436_v29 }
 0x96f   : > { %v25400_v63 = vadd.f32 %v5975_v20, %v24130_v28  ;;  %v6151_v28 = vsub.f32 %v25390_v34, %v6150_v9  ;;  %v6165_v30 = vsub.f32 %v25405_v55, %v6164_v58  ;;  %v6171_v61 = vand.u32 4294901760, %v25431_v41 }
 0x970   : > { %v25408_v4 = vadd.f32 %v5974_v31, %v24137_v36  ;;  %v6159_v50 = vand.u32 4294901760, %v6158_v13  ;;  %v6179_v10 = vsub.f32 %v25436_v29, %v6178_v7  ;;  %v20574_v3 = vpack.c.bf16 %v6164_v58, %v28636_v26  ;;  %v5998_v58 = vld [vmem:[#allocation3 + $0x230] sm:$0xff] }
 0x971   : > { %v25411_v0 = vand.u32 4294901760, %v25400_v63  ;;  %v6152_v23 = vand.u32 4294901760, %v6151_v28  ;;  %v6166_v60 = vand.u32 4294901760, %v6165_v30  ;;  %v6172_v17 = vsub.f32 %v25431_v41, %v6171_v61 }
 0x972   : > { %v25414_v37 = vand.u32 4294901760, %v25408_v4 }
 0x973   : > { %v25425_v36 = vsub.f32 %v25400_v63, %v25411_v0  ;;  %v20474_v28 = vpack.c.bf16 %v6152_v23, %v6145_v43  ;;  %v6173_v23 = vand.u32 4294901760, %v6172_v17  ;;  %v6180_v43 = vand.u32 4294901760, %v6179_v10 }
 0x974   : > { %v25440_v19 = vsub.f32 %v25408_v4, %v25414_v37  ;;  %v20510_v17 = vpack.c.bf16 %v25405_v55, %v25397_v46  ;;  %v28639_v46 = vand.u32 4294901760, %v25315_v42  ;;  %v5981_v42 = vrot.slane %v25400_v63, 4  ;;  %v5997_v55 = vld [vmem:[#allocation3 + $0x228] sm:$0xff] }
 0x975   : > { %v6118_v20 = vand.u32 4294901760, %v25425_v36  ;;  %v20482_v13 = vpack.c.bf16 %v6180_v43, %v6173_v23 }
 0x976   : > { %v6108_v31 = vand.u32 4294901760, %v25440_v19 }
 0x977   : > { %v6119_v52 = vsub.f32 %v25425_v36, %v6118_v20 }
 0x978   : > { %v6109_v14 = vsub.f32 %v25440_v19, %v6108_v31 }
 0x979   : > { %v6120_v11 = vand.u32 4294901760, %v6119_v52 }
 0x97a   : > { %v6110_v33 = vand.u32 4294901760, %v6109_v14  ;;  %v20478_v14 = vpack.c.bf16 %v6166_v60, %v6159_v50  ;;  %v20514_v60 = vpack.c.bf16 %v25436_v29, %v25431_v41  ;;  %v20570_v50 = vpack.c.bf16 %v6150_v9, %v6143_v51  ;;  %v5996_v9 = vld [vmem:[#allocation3 + $0x220] sm:$0xff]  ;;  %v5999_v41 = vld [vmem:[#allocation3 + $0x238] sm:$0xff] }
 0x97b   : > { %v6722_v10 = vand.u32 4294901760, %v5996_v9 }
 0x97c   : > { %16834 = vmatprep.mubr.f32.mxu0 %v6110_v33  ;;  %v25593_v33 = vld [vmem:[#allocation3 + $0x258] sm:$0xff] }
 0x97d   : > { %16835 = vmatmul.mubr.f32.vlgmr.msra.gmra.mrb[4].mxu0 %v6120_v11  ;;  %v20566_v11 = vpack.c.bf16 %v6136_v25, %v6129_v6  ;;  %v20578_v6 = vpack.c.bf16 %v6178_v7, %v6171_v61  ;;  %v28637_v25 = vand.u32 4294901760, %v25303_v18  ;;  %v28642_v7 = vand.u32 4294901760, %v25331_v27  ;;  %v5993_v27 = vld [vmem:[#allocation3 + $0x208] sm:$0xff] }
 0x97e   : > { %20473 = vmatpush3.bf16.msra.mxu0 %v25300_v44  ;;  %16869 = vmatprep.mubr.f32.mxu0 %v25414_v37  ;;  %v20506_v44 = vpack.c.bf16 %v25390_v34, %v25385_v57  ;;  %v28643_v18 = vand.u32 4294901760, %v25340_v40  ;;  %v5995_v57 = vld [vmem:[#allocation3 + $0x218] sm:$0xff] }
 0x97f   : > { %20475 = vmatprep.subr.bf16.mxu0 %v20474_v28  ;;  %v6719_v51 = vand.u32 4294901760, %v5995_v57 }
 0x982   : > { %20477 = vmatpush3.bf16.msra.mxu0 %v20474_v28  ;;  %v25596_v28 = vld [vmem:[#allocation3 + $0x260] sm:$0xff] }
 0x983   : > { %20479 = vmatprep.subr.bf16.mxu0 %v20478_v14 }
 0x986   : > { %20481 = vmatpush3.bf16.msra.mxu0 %v20478_v14  ;;  %v25598_v14 = vld [vmem:[#allocation3 + $0x268] sm:$0xff] }
 0x987   : > { %20483 = vmatprep.subr.bf16.mxu0 %v20482_v13 }
 0x98a   : > { %20485 = vmatpush3.bf16.msra.mxu0 %v20482_v13 }
 0x98b   : > { %20487 = vmatprep.subr.bf16.mxu0 %v25321_v38 }
 0x98e   : > { %20489 = vmatpush3.bf16.msra.mxu0 %v25321_v38  ;;  %v28638_v38 = vand.u32 4294901760, %v25305_v47  ;;  %v28644_v47 = vand.u32 4294901760, %v25342_v45 }
 0x98f   : > { %20491 = vmatprep.subr.bf16.mxu0 %v25335_v5 }
 0x992   : > { %20493 = vmatpush3.bf16.msra.mxu0 %v25335_v5  ;;  %v20582_v5 = vpack.c.bf16 %v28638_v38, %v28637_v25  ;;  %v25621_v38 = vld [vmem:[#allocation3 + $0x270] sm:$0xff] }
 0x993   : > { %20495 = vmatprep.subr.bf16.mxu0 %v25355_v62 }
 0x996   : > { %20497 = vmatpush3.bf16.msra.mxu0 %v25355_v62  ;;  %v28640_v62 = vand.u32 4294901760, %v25317_v32  ;;  %v5980_v32 = vrot.slane %v25408_v4, 4 }
 0x997   : > { %20499 = vmatprep.subr.bf16.mxu0 %v25357_v48 }
 0x998   : > { %v5983_v23 = vsel %vm5982_vm5, %v5980_v32, %v5981_v42 }
 0x999   : > { %v25613_v26 = vand.u32 4294901760, %v5983_v23 }
 0x99a   : > { %20501 = vmatpush3.bf16.msra.mxu0 %v25357_v48  ;;  %v20586_v48 = vpack.c.bf16 %v28640_v62, %v28639_v46  ;;  %v25627_v62 = vsub.f32 %v5995_v57, %v6719_v51 }
 0x99b   : > { %20503 = vmatprep.subr.bf16.mxu0 %v25361_v39 }
 0x99d   : > { %16870 = vmatmul.mubr.f32.vlgmr.msra.gmra.mrb[4].mxu0 %v25411_v0 }
 0x99e   : > { %20505 = vmatpush3.bf16.msra.mxu0 %v25361_v39  ;;  %16904 = vmatprep.mubr.f32.mxu0 %v25440_v19  ;;  %v28641_v39 = vand.u32 4294901760, %v25329_v22  ;;  %v6728_v19 = vand.u32 4294901760, %v5998_v58 }
 0x99f   : > { %20507 = vmatprep.subr.bf16.mxu0 %v20506_v44 }
 0x9a2   : > { %20509 = vmatpush3.bf16.msra.mxu0 %v20506_v44 }
 0x9a3   : > { %20511 = vmatprep.subr.bf16.mxu0 %v20510_v17 }
 0x9a6   : > { %20513 = vmatpush3.bf16.msra.mxu0 %v20510_v17 }
 0x9a7   : > { %20515 = vmatprep.subr.bf16.mxu0 %v20514_v60 }
 0x9aa   : > { %20517 = vmatpush3.bf16.msra.mxu0 %v20514_v60  ;;  %v6743_v60 = vand.u32 4294901760, %v25593_v33 }
 0x9ab   : > { %20519 = vmatprep.subr.bf16.mxu0 %v25365_v16 }
 0x9ae   : > { %20521 = vmatpush3.bf16.msra.mxu0 %v25365_v16  ;;  %v20590_v16 = vpack.c.bf16 %v28642_v7, %v28641_v39  ;;  %v25636_v39 = vsub.f32 %v5983_v23, %v25613_v26  ;;  %v6752_v7 = vand.u32 4294901760, %v25621_v38 }
 0x9af   : > { %20523 = vmatprep.subr.bf16.mxu0 %v25369_v24 }
 0x9b2   : > { %20525 = vmatpush3.bf16.msra.mxu0 %v25369_v24  ;;  %v20594_v24 = vpack.c.bf16 %v28644_v47, %v28643_v18 }
 0x9b3   : > { %20527 = vmatprep.subr.bf16.mxu0 %v25373_v12 }
 0x9b6   : > { %20529 = vmatpush3.bf16.msra.mxu0 %v25373_v12  ;;  %v6713_v12 = vand.u32 4294901760, %v5993_v27 }
 0x9b7   : > { %20531 = vmatprep.subr.bf16.mxu0 %v25377_v49 }
 0x9b8   : > { %v25604_v13 = vsub.f32 %v5993_v27, %v6713_v12 }
 0x9ba   : > { %20533 = vmatpush3.bf16.msra.mxu0 %v25377_v49  ;;  %v5994_v49 = vld [vmem:[#allocation3 + $0x210] sm:$0xff] }
 0x9bb   : > { %20535 = vmatprep.subr.bf16.mxu0 %v25147_v21  ;;  %v6716_v34 = vand.u32 4294901760, %v5994_v49 }
 0x9bd   : > { %16905 = vmatmul.mubr.f32.vlgmr.msra.gmra.mrb[4].mxu0 %v25425_v36  ;;  %v25625_v46 = vsub.f32 %v5994_v49, %v6716_v34 }
 0x9be   : > { %20537 = vmatpush3.bf16.msra.mxu0 %v25147_v21  ;;  %16939 = vmatprep.mubr.f32.mxu0 %v6108_v31  ;;  %v6001_v31 = vld [vmem:[#allocation3 + $0x248] sm:$0xff] }
 0x9bf   : > { %20539 = vmatprep.subr.bf16.mxu0 %v25155_v53  ;;  %v6737_v61 = vand.u32 4294901760, %v6001_v31 }
 0x9c2   : > { %20541 = vmatpush3.bf16.msra.mxu0 %v25155_v53 }
 0x9c3   : > { %20543 = vmatprep.subr.bf16.mxu0 %v25170_v2 }
 0x9c6   : > { %20545 = vmatpush3.bf16.msra.mxu0 %v25170_v2 }
 0x9c7   : > { %20547 = vmatprep.subr.bf16.mxu0 %v25182_v54 }
 0x9ca   : > { %20549 = vmatpush3.bf16.msra.mxu0 %v25182_v54 }
 0x9cb   : > { %20551 = vmatprep.subr.bf16.mxu0 %v25266_v8 }
 0x9ce   : > { %20553 = vmatpush3.bf16.msra.mxu0 %v25266_v8 }
 0x9cf   : > { %20555 = vmatprep.subr.bf16.mxu0 %v25270_v59 }
 0x9d2   : > { %20557 = vmatpush3.bf16.msra.mxu0 %v25270_v59 }
 0x9d3   : > { %20559 = vmatprep.subr.bf16.mxu0 %v25274_v15 }
 0x9d6   : > { %20561 = vmatpush3.bf16.msra.mxu0 %v25274_v15 }
 0x9d7   : > { %20563 = vmatprep.subr.bf16.mxu0 %v25290_v35 }
 0x9da   : > { %20565 = vmatpush3.bf16.msra.mxu0 %v25290_v35 }
 0x9db   : > { %20567 = vmatprep.subr.bf16.mxu0 %v20566_v11 }
 0x9dd   : > { %16940 = vmatmul.mubr.f32.vlgmr.msra.gmra.mrb[4].mxu0 %v6118_v20  ;;  %v6000_v20 = vld [vmem:[#allocation3 + $0x240] sm:$0xff] }
 0x9de   : > { %20569 = vmatpush3.bf16.msra.mxu0 %v20566_v11  ;;  %16974 = vmatprep.mubr.f32.mxu0 %v25414_v37  ;;  %v6734_v30 = vand.u32 4294901760, %v6000_v20  ;;  %v6746_v11 = vand.u32 4294901760, %v25596_v28 }
 0x9df   : > { %20571 = vmatprep.subr.bf16.mxu0 %v20570_v50 }
 0x9e0   : > { %v25607_v44 = vpack.c.bf16 %v6737_v61, %v6734_v30 }
 0x9e2   : > { %20573 = vmatpush3.bf16.msra.mxu0 %v20570_v50  ;;  %v6749_v50 = vand.u32 4294901760, %v25598_v14 }
 0x9e3   : > { %20575 = vmatprep.subr.bf16.mxu0 %v20574_v3 }
 0x9e6   : > { %20577 = vmatpush3.bf16.msra.mxu0 %v20574_v3 }
 0x9e7   : > { %20579 = vmatprep.subr.bf16.mxu0 %v20578_v6 }
 0x9ea   : > { %20581 = vmatpush3.bf16.msra.mxu0 %v20578_v6  ;;  %v6820_v6 = vand.u32 4294901760, %v25604_v13 }
 0x9eb   : > { %20583 = vmatprep.subr.bf16.mxu0 %v20582_v5 }
 0x9ec   : > { %v6821_v47 = vsub.f32 %v25604_v13, %v6820_v6 }
 0x9ee   : > { %20585 = vmatpush3.bf16.msra.mxu0 %v20582_v5  ;;  %v25623_v5 = vld [vmem:[#allocation3 + $0x278] sm:$0xff]  ;;  %v6822_v49 = vand.u32 4294901760, %v6821_v47  ;;  %v25705_v47 = vsub.f32 %v25593_v33, %v6743_v60 }
 0x9ef   : > { %20587 = vmatprep.subr.bf16.mxu0 %v20586_v48 }
 0x9f2   : > { %20589 = vmatpush3.bf16.msra.mxu0 %v20586_v48  ;;  %v25633_v48 = vpack.c.bf16 %v6749_v50, %v6746_v11 }
 0x9f3   : > { %20591 = vmatprep.subr.bf16.mxu0 %v20590_v16 }
 0x9f6   : > { %20593 = vmatpush3.bf16.msra.mxu0 %v20590_v16  ;;  %v6755_v16 = vand.u32 4294901760, %v25623_v5 }
 0x9f7   : > { %20595 = vmatprep.subr.bf16.mxu0 %v20594_v24 }
 0x9f8   : > { %v25663_v27 = vpack.c.bf16 %v6755_v16, %v6752_v7 }
 0x9fa   : > { %20597 = vmatpush3.bf16.msra.mxu0 %v20594_v24  ;;  %v6827_v24 = vand.u32 4294901760, %v25625_v46 }
 0x9fb   : > { %20599 = vmatprep.subr.bf16.mxu0 %v25147_v21 }
 0x9fc   : > { %v6828_v57 = vsub.f32 %v25625_v46, %v6827_v24 }
 0x9fd   : > { %16975 = vmatmul.mubr.f32.vlgmr.msra.gmra.mrb[4].mxu0 %v25411_v0 }
 0x9fe   : > { %20601 = vmatpush3.bf16.msra.mxu0 %v25147_v21  ;;  %17009 = vmatprep.mubr.f32.mxu0 %v25414_v37  ;;  %v5984_v21 = vsel %vm5982_vm5, %v5981_v42, %v5980_v32  ;;  %v25580_v37 = vpack.c.bf16 %v6719_v51, %v6716_v34  ;;  %v6834_v42 = vand.u32 4294901760, %v25627_v62  ;;  %v25650_v32 = vsub.f32 %v5996_v9, %v6722_v10 }
 0x9ff   : > { %20603 = vmatprep.subr.bf16.mxu0 %v25155_v53  ;;  %v5989_v22 = vsel %vm5978_vm6, %v5984_v21, 0.0 }
 0xa00   : > { %v6835_v34 = vsub.f32 %v25627_v62, %v6834_v42  ;;  %v6841_v51 = vand.u32 4294901760, %v25650_v32 }
 0xa02   : > { %20605 = vmatpush3.bf16.msra.mxu0 %v25155_v53  ;;  %v25561_v53 = vand.u32 4294901760, %v5989_v22 }
 0xa03   : > { %20607 = vmatprep.subr.bf16.mxu0 %v25170_v2 }
 0xa04   : > { %v25566_v40 = vsub.f32 %v5989_v22, %v25561_v53  ;;  %v25654_v22 = vsub.f32 %v5998_v58, %v6728_v19  ;;  %v25683_v58 = vsub.f32 %v6001_v31, %v6737_v61 }
 0xa06   : > { %20609 = vmatpush3.bf16.msra.mxu0 %v25170_v2  ;;  %v5992_v2 = vld [vmem:[#allocation3 + $0x200] sm:$0xff]  ;;  %v28490_v9 = vand.u32 4294901760, %v25654_v22 }
 0xa07   : > { %20611 = vmatprep.subr.bf16.mxu0 %v25182_v54  ;;  %v6710_v45 = vand.u32 4294901760, %v5992_v2 }
 0xa09   : > { %v25602_v43 = vsub.f32 %v5992_v2, %v6710_v45 }
 0xa0a   : > { %20613 = vmatpush3.bf16.msra.mxu0 %v25182_v54  ;;  %v6792_v54 = vand.u32 4294901760, %v25566_v40 }
 0xa0b   : > { %20615 = vmatprep.subr.bf16.mxu0 %v25266_v8  ;;  %v6813_v3 = vand.u32 4294901760, %v25602_v43 }
 0xa0d   : > { %v6814_v18 = vsub.f32 %v25602_v43, %v6813_v3 }
 0xa0e   : > { %20617 = vmatpush3.bf16.msra.mxu0 %v25266_v8  ;;  %v25573_v8 = vpack.c.bf16 %v6713_v12, %v6710_v45  ;;  %v6802_v45 = vand.u32 4294901760, %v25636_v39 }
 0xa0f   : > { %20619 = vmatprep.subr.bf16.mxu0 %v25270_v59  ;;  %v6815_v12 = vand.u32 4294901760, %v6814_v18  ;;  %v6856_v18 = vsub.f32 %v25654_v22, %v28490_v9 }
 0xa11   : > { %v6857_v9 = vand.u32 4294901760, %v6856_v18 }
 0xa12   : > { %20621 = vmatpush3.bf16.msra.mxu0 %v25270_v59  ;;  %v6793_v59 = vsub.f32 %v25566_v40, %v6792_v54 }
 0xa13   : > { %20623 = vmatprep.subr.bf16.mxu0 %v25274_v15 }
 0xa14   : > { %v6794_v36 = vand.u32 4294901760, %v6793_v59 }
 0xa16   : > { %20625 = vmatpush3.bf16.msra.mxu0 %v25274_v15  ;;  %v6725_v15 = vand.u32 4294901760, %v5997_v55 }
 0xa17   : > { %20627 = vmatprep.subr.bf16.mxu0 %v25290_v35 }
 0xa18   : > { %v25585_v29 = vpack.c.bf16 %v6725_v15, %v6722_v10  ;;  %v25652_v21 = vsub.f32 %v5997_v55, %v6725_v15  ;;  %v6803_v10 = vsub.f32 %v25636_v39, %v6802_v45  ;;  %v20662_v15 = vpack.c.bf16 %v6822_v49, %v6815_v12 }
 0xa1a   : > { %20629 = vmatpush3.bf16.msra.mxu0 %v25290_v35  ;;  %v6731_v35 = vand.u32 4294901760, %v5999_v41  ;;  %v28492_v59 = vand.u32 4294901760, %v25652_v21  ;;  %v6804_v12 = vand.u32 4294901760, %v6803_v10  ;;  %v25719_v10 = vsub.f32 %v25596_v28, %v6746_v11 }
 0xa1b   : > { %20631 = vmatprep.subr.bf16.mxu0 %v25573_v8 }
 0xa1c   : > { %v25589_v52 = vpack.c.bf16 %v6731_v35, %v6728_v19  ;;  %v25656_v2 = vsub.f32 %v5999_v41, %v6731_v35  ;;  %v6829_v41 = vand.u32 4294901760, %v6828_v57  ;;  %v6836_v19 = vand.u32 4294901760, %v6835_v34 }
 0xa1d   : > { %17010 = vmatmul.mubr.f32.vlgmr.msra.gmra.mrb[4].mxu0 %v25411_v0  ;;  %v25591_v0 = vld [vmem:[#allocation3 + $0x250] sm:$0xff]  ;;  %v6842_v35 = vsub.f32 %v25650_v32, %v6841_v51  ;;  %v6849_v23 = vsub.f32 %v25652_v21, %v28492_v59  ;;  %v6897_v28 = vand.u32 4294901760, %v25719_v10 }
 0xa1e   : > { %20633 = vmatpush3.bf16.msra.mxu0 %v25573_v8  ;;  %17044 = vmatprep.mubr.f32.mxu0 %v6794_v36  ;;  %v6740_v17 = vand.u32 4294901760, %v25591_v0  ;;  %v28491_v55 = vand.u32 4294901760, %v25656_v2  ;;  %v25681_v36 = vsub.f32 %v6000_v20, %v6734_v30  ;;  %v6876_v30 = vand.u32 4294901760, %v25683_v58 }
 0xa1f   : > { %20635 = vmatprep.subr.bf16.mxu0 %v25580_v37  ;;  %v20666_v49 = vpack.c.bf16 %v6836_v19, %v6829_v41  ;;  %v6843_v57 = vand.u32 4294901760, %v6842_v35  ;;  %v6850_v34 = vand.u32 4294901760, %v6849_v23 }
 0xa20   : > { %v25619_v25 = vpack.c.bf16 %v6743_v60, %v6740_v17  ;;  %v6863_v20 = vsub.f32 %v25656_v2, %v28491_v55  ;;  %v6869_v31 = vand.u32 4294901760, %v25681_v36  ;;  %v25702_v61 = vsub.f32 %v25591_v0, %v6740_v17 }
 0xa21   : > { %v6877_v0 = vsub.f32 %v25683_v58, %v6876_v30  ;;  %v6890_v17 = vand.u32 4294901760, %v25705_v47  ;;  %v20670_v60 = vpack.c.bf16 %v6850_v34, %v6843_v57 }
 0xa22   : > { %20637 = vmatpush3.bf16.msra.mxu0 %v25580_v37  ;;  %v6864_v55 = vand.u32 4294901760, %v6863_v20  ;;  %v6870_v59 = vsub.f32 %v25681_v36, %v6869_v31  ;;  %v6883_v33 = vand.u32 4294901760, %v25702_v61  ;;  %v6898_v20 = vsub.f32 %v25719_v10, %v6897_v28 }
 0xa23   : > { %20639 = vmatprep.subr.bf16.mxu0 %v25585_v29  ;;  %v6878_v35 = vand.u32 4294901760, %v6877_v0  ;;  %v6891_v18 = vsub.f32 %v25705_v47, %v6890_v17 }
 0xa24   : > { %v20674_v41 = vpack.c.bf16 %v6864_v55, %v6857_v9  ;;  %v6871_v19 = vand.u32 4294901760, %v6870_v59  ;;  %v6884_v23 = vsub.f32 %v25702_v61, %v6883_v33 }
 0xa25   : > { %v6892_v55 = vand.u32 4294901760, %v6891_v18  ;;  %v25763_v18 = vld [vmem:[#allocation5 + $0x280] sm:$0xff] }
 0xa26   : > { %20641 = vmatpush3.bf16.msra.mxu0 %v25585_v29  ;;  %v20678_v59 = vpack.c.bf16 %v6878_v35, %v6871_v19  ;;  %v6885_v9 = vand.u32 4294901760, %v6884_v23  ;;  %v20694_v35 = vpack.c.bf16 %v25604_v13, %v25602_v43  ;;  %v20698_v23 = vpack.c.bf16 %v25627_v62, %v25625_v46 }
 0xa27   : > { %20643 = vmatprep.subr.bf16.mxu0 %v25589_v52  ;;  %v28645_v43 = vand.u32 4294901760, %v25652_v21  ;;  %v20774_v62 = vpack.c.bf16 %v6876_v30, %v6869_v31 }
 0xa29   : > { %v20766_v13 = vpack.c.bf16 %v28645_v43, %v6841_v51 }
 0xa2a   : > { %20645 = vmatpush3.bf16.msra.mxu0 %v25589_v52 }
 0xa2b   : > { %20647 = vmatprep.subr.bf16.mxu0 %v25607_v44 }
 0xa2e   : > { %20649 = vmatpush3.bf16.msra.mxu0 %v25607_v44 }
 0xa2f   : > { %20651 = vmatprep.subr.bf16.mxu0 %v25619_v25 }
 0xa32   : > { %20653 = vmatpush3.bf16.msra.mxu0 %v25619_v25 }
 0xa33   : > { %20655 = vmatprep.subr.bf16.mxu0 %v25633_v48 }
 0xa36   : > { %20657 = vmatpush3.bf16.msra.mxu0 %v25633_v48 }
 0xa37   : > { %20659 = vmatprep.subr.bf16.mxu0 %v25663_v27 }
 0xa3a   : > { %20661 = vmatpush3.bf16.msra.mxu0 %v25663_v27 }
 0xa3b   : > { %20663 = vmatprep.subr.bf16.mxu0 %v20662_v15 }
 0xa3d   : > { %17045 = vmatmul.mubr.f32.vlgmr.msra.gmra.mrb[4].mxu0 %v6804_v12 }
 0xa3e   : > { %20665 = vmatpush3.bf16.msra.mxu0 %v20662_v15  ;;  %17079 = vmatprep.mubr.f32.mxu0 %v25561_v53  ;;  %v25724_v15 = vsub.f32 %v25598_v14, %v6749_v50  ;;  %v25737_v14 = vsub.f32 %v25621_v38, %v6752_v7  ;;  %v25742_v50 = vsub.f32 %v25623_v5, %v6755_v16  ;;  %v6899_v16 = vand.u32 4294901760, %v6898_v20 }
 0xa3f   : > { %20667 = vmatprep.subr.bf16.mxu0 %v20666_v49  ;;  %v20682_v5 = vpack.c.bf16 %v6892_v55, %v6885_v9  ;;  %v25767_v9 = vld [vmem:[#allocation5 + $0x290] sm:$0xff]  ;;  %v28497_v55 = vand.u32 4294901760, %v25763_v18 }
 0xa40   : > { %v6904_v11 = vand.u32 4294901760, %v25724_v15  ;;  %v28498_v38 = vand.u32 4294901760, %v25737_v14  ;;  %v28493_v7 = vand.u32 4294901760, %v25742_v50 }
 0xa42   : > { %20669 = vmatpush3.bf16.msra.mxu0 %v20666_v49  ;;  %v6905_v12 = vsub.f32 %v25724_v15, %v6904_v11  ;;  %v6912_v57 = vsub.f32 %v25737_v14, %v28498_v38  ;;  %v6919_v34 = vsub.f32 %v25742_v50, %v28493_v7  ;;  %v25798_v7 = vld [vmem:[#allocation5 + $0x2b8] sm:$0xff] }
 0xa43   : > { %20671 = vmatprep.subr.bf16.mxu0 %v20670_v60 }
 0xa44   : > { %v6906_v49 = vand.u32 4294901760, %v6905_v12  ;;  %v6920_v19 = vand.u32 4294901760, %v6919_v34  ;;  %v25772_v12 = vld [vmem:[#allocation5 + $0x298] sm:$0xff] }
 0xa45   : > { %v28495_v34 = vand.u32 4294901760, %v25772_v12 }
 0xa46   : > { %20673 = vmatpush3.bf16.msra.mxu0 %v20670_v60  ;;  %v20686_v0 = vpack.c.bf16 %v6906_v49, %v6899_v16  ;;  %v6913_v60 = vand.u32 4294901760, %v6912_v57  ;;  %v25775_v16 = vld [vmem:[#allocation5 + $0x2a0] sm:$0xff]  ;;  %v25777_v49 = vld [vmem:[#allocation5 + $0x2a8] sm:$0xff]  ;;  %v20702_v57 = vpack.c.bf16 %v25652_v21, %v25650_v32  ;;  %v28649_v32 = vand.u32 4294901760, %v25742_v50 }
 0xa47   : > { %20675 = vmatprep.subr.bf16.mxu0 %v20674_v41 }
 0xa4a   : > { %20677 = vmatpush3.bf16.msra.mxu0 %v20674_v41  ;;  %v20690_v41 = vpack.c.bf16 %v6920_v19, %v6913_v60  ;;  %v7455_v60 = vand.u32 4294901760, %v25775_v16  ;;  %v28499_v19 = vand.u32 4294901760, %v25777_v49 }
 0xa4b   : > { %20679 = vmatprep.subr.bf16.mxu0 %v20678_v59 }
 0xa4e   : > { %20681 = vmatpush3.bf16.msra.mxu0 %v20678_v59  ;;  %v25765_v59 = vld [vmem:[#allocation5 + $0x288] sm:$0xff] }
 0xa4f   : > { %20683 = vmatprep.subr.bf16.mxu0 %v20682_v5  ;;  %v28494_v20 = vand.u32 4294901760, %v25765_v59  ;;  %v28651_v30 = vand.u32 4294901760, %v25765_v59 }
 0xa52   : > { %20685 = vmatpush3.bf16.msra.mxu0 %v20682_v5  ;;  %v28496_v5 = vand.u32 4294901760, %v25767_v9 }
 0xa53   : > { %20687 = vmatprep.subr.bf16.mxu0 %v20686_v0 }
 0xa56   : > { %20689 = vmatpush3.bf16.msra.mxu0 %v20686_v0  ;;  %v25786_v0 = vpack.c.bf16 %v28494_v20, %v28497_v55  ;;  %v20706_v20 = vpack.c.bf16 %v25656_v2, %v25654_v22  ;;  %v20710_v55 = vpack.c.bf16 %v25683_v58, %v25681_v36  ;;  %v28650_v58 = vand.u32 4294901760, %v25763_v18 }
 0xa57   : > { %20691 = vmatprep.subr.bf16.mxu0 %v20690_v41 }
 0xa58   : > { %20823 = vmatprep.subr.bf16.mxu1 %v25786_v0  ;;  %v25918_v31 = vsub.f32 %v25763_v18, %v28650_v58 }
 0xa59   : > { %20825 = vmatpush3.bf16.msra.mxu1 %v25786_v0 }
 0xa5a   : > { %20693 = vmatpush3.bf16.msra.mxu0 %v20690_v41  ;;  %v25794_v41 = vpack.c.bf16 %v28495_v34, %v28496_v5  ;;  %v25809_v34 = vpack.c.bf16 %v28499_v19, %v7455_v60  ;;  %v20714_v19 = vpack.c.bf16 %v25705_v47, %v25702_v61  ;;  %v25923_v61 = vsub.f32 %v25765_v59, %v28651_v30  ;;  %v7440_v47 = vld [vmem:[#allocation5 + $0x2f0] sm:$0xff] }
 0xa5b   : > { %20695 = vmatprep.subr.bf16.mxu0 %v20694_v35 }
 0xa5c   : > { %20827 = vmatprep.subr.bf16.mxu1 %v25794_v41 }
 0xa5d   : > { %17080 = vmatmul.mubr.f32.vlgmr.msra.gmra.mrb[4].mxu0 %v25613_v26  ;;  %20829 = vmatpush3.bf16.msra.mxu1 %v25794_v41 }
 0xa5e   : > { %20697 = vmatpush3.bf16.msra.mxu0 %v20694_v35  ;;  %17114 = vmatprep.mubr.f32.mxu0 %v25566_v40  ;;  %v25796_v35 = vld [vmem:[#allocation5 + $0x2b0] sm:$0xff]  ;;  %v20758_v40 = vpack.c.bf16 %v6820_v6, %v6813_v3  ;;  %v28646_v3 = vand.u32 4294901760, %v25654_v22  ;;  %v28647_v6 = vand.u32 4294901760, %v25656_v2  ;;  %v7437_v22 = vld [vmem:[#allocation5 + $0x2d8] sm:$0xff] }
 0xa5f   : > { %20699 = vmatprep.subr.bf16.mxu0 %v20698_v23  ;;  %v7461_v5 = vand.u32 4294901760, %v25796_v35  ;;  %20831 = vmatprep.subr.bf16.mxu1 %v25809_v34  ;;  %v7476_v2 = vand.u32 4294901760, %v7437_v22 }
 0xa60   : > { %v20770_v46 = vpack.c.bf16 %v28647_v6, %v28646_v3 }
 0xa61   : > { %20833 = vmatpush3.bf16.msra.mxu1 %v25809_v34  ;;  %v25956_v3 = vsub.f32 %v7437_v22, %v7476_v2 }
 0xa62   : > { %20701 = vmatpush3.bf16.msra.mxu0 %v20698_v23  ;;  %v7464_v23 = vand.u32 4294901760, %v25798_v7 }
 0xa63   : > { %20703 = vmatprep.subr.bf16.mxu0 %v20702_v57 }
 0xa64   : > { %v25821_v38 = vpack.c.bf16 %v7464_v23, %v7461_v5 }
 0xa66   : > { %20705 = vmatpush3.bf16.msra.mxu0 %v20702_v57  ;;  %20835 = vmatprep.subr.bf16.mxu1 %v25821_v38  ;;  %v20718_v57 = vpack.c.bf16 %v25724_v15, %v25719_v10  ;;  %v7546_v15 = vand.u32 4294901760, %v25918_v31 }
 0xa67   : > { %20707 = vmatprep.subr.bf16.mxu0 %v20706_v20  ;;  %20837 = vmatpush3.bf16.msra.mxu1 %v25821_v38 }
 0xa6a   : > { %20709 = vmatpush3.bf16.msra.mxu0 %v20706_v20  ;;  %v20722_v20 = vpack.c.bf16 %v25742_v50, %v25737_v14 }
 0xa6b   : > { %20711 = vmatprep.subr.bf16.mxu0 %v20710_v55 }
 0xa6e   : > { %20713 = vmatpush3.bf16.msra.mxu0 %v20710_v55 }
 0xa6f   : > { %20715 = vmatprep.subr.bf16.mxu0 %v20714_v19 }
 0xa72   : > { %20717 = vmatpush3.bf16.msra.mxu0 %v20714_v19 }
 0xa73   : > { %20719 = vmatprep.subr.bf16.mxu0 %v20718_v57 }
 0xa76   : > { %20721 = vmatpush3.bf16.msra.mxu0 %v20718_v57 }
 0xa77   : > { %20723 = vmatprep.subr.bf16.mxu0 %v20722_v20 }
 0xa7a   : > { %20725 = vmatpush3.bf16.msra.mxu0 %v20722_v20 }
 0xa7b   : > { %20727 = vmatprep.subr.bf16.mxu0 %v25573_v8 }
 0xa7d   : > { %17115 = vmatmul.mubr.f32.vlgmr.msra.gmra.mrb[4].mxu0 %v25636_v39  ;;  %v20778_v39 = vpack.c.bf16 %v6890_v17, %v6883_v33  ;;  %v7441_v33 = vld [vmem:[#allocation5 + $0x2f8] sm:$0xff]  ;;  %v7485_v17 = vand.u32 4294901760, %v7440_v47 }
 0xa7e   : > { %20729 = vmatpush3.bf16.msra.mxu0 %v25573_v8  ;;  %17149 = vmatprep.mubr.f32.mxu0 %v6792_v54  ;;  %v20762_v54 = vpack.c.bf16 %v6834_v42, %v6827_v24  ;;  %v20782_v24 = vpack.c.bf16 %v6904_v11, %v6897_v28  ;;  %v28648_v42 = vand.u32 4294901760, %v25737_v14  ;;  %v7488_v10 = vand.u32 4294901760, %v7441_v33 }
 0xa7f   : > { %20731 = vmatprep.subr.bf16.mxu0 %v25580_v37  ;;  %v7553_v28 = vand.u32 4294901760, %v25923_v61  ;;  %v7547_v14 = vsub.f32 %v25918_v31, %v7546_v15 }
 0xa80   : > { %v20786_v21 = vpack.c.bf16 %v28649_v32, %v28648_v42  ;;  %v25929_v11 = vpack.c.bf16 %v7488_v10, %v7485_v17  ;;  %v25981_v58 = vsub.f32 %v7441_v33, %v7488_v10 }
 0xa81   : > { %v7554_v50 = vsub.f32 %v25923_v61, %v7553_v28  ;;  %v7548_v18 = vand.u32 4294901760, %v7547_v14 }
 0xa82   : > { %20733 = vmatpush3.bf16.msra.mxu0 %v25580_v37 }
 0xa83   : > { %20735 = vmatprep.subr.bf16.mxu0 %v25585_v29  ;;  %v7555_v59 = vand.u32 4294901760, %v7554_v50 }
 0xa85   : > { %v25939_v55 = vpack.c.bf16 %v7555_v59, %v7548_v18  ;;  %v26000_v18 = vpack.c.bf16 %v25923_v61, %v25918_v31 }
 0xa86   : > { %20737 = vmatpush3.bf16.msra.mxu0 %v25585_v29 }
 0xa87   : > { %20739 = vmatprep.subr.bf16.mxu0 %v25589_v52 }
 0xa8a   : > { %20741 = vmatpush3.bf16.msra.mxu0 %v25589_v52 }
 0xa8b   : > { %20743 = vmatprep.subr.bf16.mxu0 %v25607_v44 }
 0xa8e   : > { %20745 = vmatpush3.bf16.msra.mxu0 %v25607_v44 }
 0xa8f   : > { %20747 = vmatprep.subr.bf16.mxu0 %v25619_v25 }
 0xa92   : > { %20749 = vmatpush3.bf16.msra.mxu0 %v25619_v25 }
 0xa93   : > { %20751 = vmatprep.subr.bf16.mxu0 %v25633_v48 }
 0xa96   : > { %20753 = vmatpush3.bf16.msra.mxu0 %v25633_v48 }
 0xa97   : > { %20755 = vmatprep.subr.bf16.mxu0 %v25663_v27 }
 0xa9a   : > { %20757 = vmatpush3.bf16.msra.mxu0 %v25663_v27 }
 0xa9b   : > { %20759 = vmatprep.subr.bf16.mxu0 %v20758_v40 }
 0xa9d   : > { %17150 = vmatmul.mubr.f32.vlgmr.msra.gmra.mrb[4].mxu0 %v6802_v45  ;;  %v7438_v45 = vld [vmem:[#allocation5 + $0x2e0] sm:$0xff] }
 0xa9e   : > { %20761 = vmatpush3.bf16.msra.mxu0 %v20758_v40  ;;  %17184 = vmatprep.mubr.f32.mxu0 %v25561_v53 }
 0xa9f   : > { %20763 = vmatprep.subr.bf16.mxu0 %v20762_v54 }
 0xaa2   : > { %20765 = vmatpush3.bf16.msra.mxu0 %v20762_v54 }
 0xaa3   : > { %20767 = vmatprep.subr.bf16.mxu0 %v20766_v13 }
 0xaa6   : > { %20769 = vmatpush3.bf16.msra.mxu0 %v20766_v13 }
 0xaa7   : > { %20771 = vmatprep.subr.bf16.mxu0 %v20770_v46 }
 0xaaa   : > { %20773 = vmatpush3.bf16.msra.mxu0 %v20770_v46 }
 0xaab   : > { %20775 = vmatprep.subr.bf16.mxu0 %v20774_v62 }
 0xaae   : > { %20777 = vmatpush3.bf16.msra.mxu0 %v20774_v62 }
 0xaaf   : > { %20779 = vmatprep.subr.bf16.mxu0 %v20778_v39 }
 0xab2   : > { %20781 = vmatpush3.bf16.msra.mxu0 %v20778_v39  ;;  %v28504_v39 = vand.u32 4294901760, %v25956_v3 }
 0xab3   : > { %20783 = vmatprep.subr.bf16.mxu0 %v20782_v24 }
 0xab4   : > { %v7624_v32 = vsub.f32 %v25956_v3, %v28504_v39 }
 0xab6   : > { %20785 = vmatpush3.bf16.msra.mxu0 %v20782_v24 }
 0xab7   : > { %20787 = vmatprep.subr.bf16.mxu0 %v20786_v21 }
 0xaba   : > { %20789 = vmatpush3.bf16.msra.mxu0 %v20786_v21 }
 0xabb   : > { %20791 = vmatprep.subr.bf16.mxu0 %v25573_v8 }
 0xabd   : > { %17185 = vmatmul.mubr.f32.vlgmr.msra.gmra.mrb[4].mxu0 %v25613_v26 }
 0xabe   : > { %20793 = vmatpush3.bf16.msra.mxu0 %v25573_v8  ;;  %17219 = vmatprep.mubr.f32.mxu0 %v25561_v53  ;;  %v7434_v53 = vld [vmem:[#allocation5 + $0x2c0] sm:$0xff]  ;;  %v7435_v8 = vld [vmem:[#allocation5 + $0x2c8] sm:$0xff] }
 0xabf   : > { %20795 = vmatprep.subr.bf16.mxu0 %v25580_v37 }
 0xac2   : > { %20797 = vmatpush3.bf16.msra.mxu0 %v25580_v37  ;;  %v7467_v37 = vand.u32 4294901760, %v7434_v53 }
 0xac3   : > { %20799 = vmatprep.subr.bf16.mxu0 %v25585_v29 }
 0xac4   : > { %v25942_v19 = vsub.f32 %v7434_v53, %v7467_v37 }
 0xac6   : > { %20801 = vmatpush3.bf16.msra.mxu0 %v25585_v29  ;;  %v7470_v29 = vand.u32 4294901760, %v7435_v8  ;;  %v28507_v20 = vand.u32 4294901760, %v25942_v19 }
 0xac7   : > { %20803 = vmatprep.subr.bf16.mxu0 %v25589_v52 }
 0xac8   : > { %v25944_v57 = vsub.f32 %v7435_v8, %v7470_v29  ;;  %v7603_v54 = vsub.f32 %v25942_v19, %v28507_v20 }
 0xaca   : > { %20805 = vmatpush3.bf16.msra.mxu0 %v25589_v52  ;;  %v25905_v52 = vpack.c.bf16 %v7470_v29, %v7467_v37  ;;  %v28506_v40 = vand.u32 4294901760, %v25944_v57  ;;  %v7604_v6 = vand.u32 4294901760, %v7603_v54  ;;  %v7625_v37 = vand.u32 4294901760, %v7624_v32  ;;  %v13170_v32 = vld [vmem:[%s28404_s2 + $0x2] ss:$0 sm:$0xff] }
 0xacb   : > { %20807 = vmatprep.subr.bf16.mxu0 %v25607_v44  ;;  %v26004_v59 = vpack.c.bf16 %v25944_v57, %v25942_v19 }
 0xacc   : > { %20839 = vmatprep.subr.bf16.mxu1 %v25905_v52  ;;  %v7610_v43 = vsub.f32 %v25944_v57, %v28506_v40 }
 0xacd   : > { %20841 = vmatpush3.bf16.msra.mxu1 %v25905_v52 }
 0xace   : > { %20809 = vmatpush3.bf16.msra.mxu0 %v25607_v44  ;;  %v7436_v44 = vld [vmem:[#allocation5 + $0x2d0] sm:$0xff]  ;;  %v7611_v46 = vand.u32 4294901760, %v7610_v43 }
 0xacf   : > { %20811 = vmatprep.subr.bf16.mxu0 %v25619_v25 }
 0xad0   : > { %v25960_v24 = vpack.c.bf16 %v7611_v46, %v7604_v6  ;;  %v28652_v46 = vand.u32 4294901760, %v25767_v9 }
 0xad2   : > { %20813 = vmatpush3.bf16.msra.mxu0 %v25619_v25  ;;  %v7473_v25 = vand.u32 4294901760, %v7436_v44 }
 0xad3   : > { %20815 = vmatprep.subr.bf16.mxu0 %v25633_v48 }
 0xad4   : > { %v25954_v13 = vsub.f32 %v7436_v44, %v7473_v25 }
 0xad6   : > { %20817 = vmatpush3.bf16.msra.mxu0 %v25633_v48  ;;  %v25909_v48 = vpack.c.bf16 %v7476_v2, %v7473_v25  ;;  %v28505_v62 = vand.u32 4294901760, %v25954_v13  ;;  %v25979_v2 = vsub.f32 %v7440_v47, %v7485_v17  ;;  %v26008_v54 = vpack.c.bf16 %v25956_v3, %v25954_v13 }
 0xad7   : > { %20819 = vmatprep.subr.bf16.mxu0 %v25663_v27 }
 0xad8   : > { %20843 = vmatprep.subr.bf16.mxu1 %v25909_v48  ;;  %v7617_v42 = vsub.f32 %v25954_v13, %v28505_v62  ;;  %v26016_v6 = vpack.c.bf16 %v25981_v58, %v25979_v2 }
 0xad9   : > { %20845 = vmatpush3.bf16.msra.mxu1 %v25909_v48 }
 0xada   : > { %20821 = vmatpush3.bf16.msra.mxu0 %v25663_v27  ;;  %v7439_v27 = vld [vmem:[#allocation5 + $0x2e8] sm:$0xff]  ;;  %v7618_v8 = vand.u32 4294901760, %v7617_v42  ;;  %v26021_v42 = vsub.f32 %v25767_v9, %v28652_v46  ;;  %v26036_v9 = vsub.f32 %v25775_v16, %v7455_v60 }
 0xadb   : > { %v7482_v51 = vand.u32 4294901760, %v7439_v27 }
 0xadc   : > { %v25974_v22 = vpack.c.bf16 %v7625_v37, %v7618_v8  ;;  %v28653_v8 = vand.u32 4294901760, %v25772_v12  ;;  %v28508_v60 = vand.u32 4294901760, %v26036_v9  ;;  %v28656_v31 = vand.u32 4294901760, %v26036_v9 }
 0xadd   : > { %17220 = vmatmul.mubr.f32.vlgmr.msra.gmra.mrb[4].mxu0 %v25613_v26  ;;  %v7479_v26 = vand.u32 4294901760, %v7438_v45  ;;  %v25970_v53 = vsub.f32 %v7439_v27, %v7482_v51 }
 0xade   : > { %v26029_v37 = vsub.f32 %v25772_v12, %v28653_v8 }
 0xadf   : > { %v25913_v36 = vpack.c.bf16 %v7482_v51, %v7479_v26  ;;  %v25968_v21 = vsub.f32 %v7438_v45, %v7479_v26  ;;  %v28502_v44 = vand.u32 4294901760, %v25970_v53  ;;  %v28501_v26 = vand.u32 4294901760, %v25979_v2 }
 0xae0   : > { %v28500_v51 = vand.u32 4294901760, %v25981_v58 }
 0xae1   : > { %20847 = vmatprep.subr.bf16.mxu1 %v25913_v36  ;;  %v28503_v29 = vand.u32 4294901760, %v25968_v21  ;;  %v7638_v45 = vsub.f32 %v25970_v53, %v28502_v44  ;;  %v7645_v14 = vsub.f32 %v25979_v2, %v28501_v26  ;;  %v26012_v43 = vpack.c.bf16 %v25970_v53, %v25968_v21 }
 0xae2   : > { %20849 = vmatpush3.bf16.msra.mxu1 %v25913_v36  ;;  %v7652_v47 = vsub.f32 %v25981_v58, %v28500_v51 }
 0xae3   : > { %20851 = vmatprep.subr.bf16.mxu1 %v25929_v11  ;;  %v7631_v25 = vsub.f32 %v25968_v21, %v28503_v29  ;;  %v7639_v30 = vand.u32 4294901760, %v7638_v45  ;;  %v7646_v17 = vand.u32 4294901760, %v7645_v14 }
 0xae4   : > { %v7653_v10 = vand.u32 4294901760, %v7652_v47  ;;  %v7567_v47 = vand.u32 4294901760, %v26029_v37 }
 0xae5   : > { %v7632_v27 = vand.u32 4294901760, %v7631_v25 }
 0xae6   : > { %20853 = vmatpush3.bf16.msra.mxu1 %v25929_v11  ;;  %v25996_v50 = vpack.c.bf16 %v7653_v10, %v7646_v17  ;;  %v28654_v10 = vand.u32 4294901760, %v25777_v49  ;;  %v7568_v16 = vsub.f32 %v26029_v37, %v7567_v47 }
 0xae7   : > { %20855 = vmatprep.subr.bf16.mxu1 %v25939_v55  ;;  %v25994_v33 = vpack.c.bf16 %v7639_v30, %v7632_v27  ;;  %v7560_v30 = vand.u32 4294901760, %v26021_v42 }
 0xae8   : > { %v26041_v46 = vsub.f32 %v25777_v49, %v28654_v10  ;;  %v26066_v10 = vsub.f32 %v25798_v7, %v7464_v23  ;;  %v7569_v39 = vand.u32 4294901760, %v7568_v16  ;;  %v7575_v7 = vsub.f32 %v26036_v9, %v28508_v60 }
 0xaea   : > { %v7576_v62 = vand.u32 4294901760, %v7575_v7 }
 0xbb0   : > { %v17221_v25 = vpop.f32.mrb[4].mxu0 }
 0xbb1   : > { %v7399_v45 = vadd.f32 %v17221_v25, %v13170_v32  ;;  %v7383_v27 = vpop.f32.mrb[5].mxu0 }
 0xbb2   : > { %v7398_v14 = vadd.f32 %v13170_v32, %v7383_v27  ;;  %v7561_v32 = vsub.f32 %v26021_v42, %v7560_v30 }
 0xbb3   : > { %v7401_v17 = vmax.f32 %v7399_v45, 0.0  ;;  %v7581_v45 = vand.u32 4294901760, %v26041_v46 }
 0xbb4   : > { %v7400_v12 = vmax.f32 %v7398_v14, 0.0  ;;  %v26061_v14 = vsub.f32 %v25796_v35, %v7461_v5  ;;  %v7562_v35 = vand.u32 4294901760, %v7561_v32 }
 0xbb5   : > { %v7403_v8 = vrot.slane %v7401_v17, 4  ;;  %v26043_v25 = vand.u32 4294901760, %v7401_v17  ;;  %v7582_v56 = vsub.f32 %v26041_v46, %v7581_v45  ;;  %v20958_v61 = vpack.c.bf16 %v7581_v45, %v28656_v31  ;;  %v26254_v31 = vld [vmem:[#allocation5 + $0x278] sm:$0xff] }
 0xbb6   : > { %v7402_v27 = vrot.slane %v7400_v12, 4  ;;  %v26048_v51 = vand.u32 4294901760, %v7400_v12  ;;  %v20858_v16 = vpack.c.bf16 %v7569_v39, %v7562_v35 }
 0xbb7   : > { %v26055_v49 = vsub.f32 %v7401_v17, %v26043_v25  ;;  %v7583_v20 = vand.u32 4294901760, %v7582_v56  ;;  %v26225_v56 = vld [vmem:[#allocation5 + $0x258] sm:$0xff] }
 0xbb8   : > { %v26070_v26 = vsel %vm5982_vm5, %v7402_v27, %v7403_v8  ;;  %v26074_v17 = vsel %vm5982_vm5, %v7403_v8, %v7402_v27  ;;  %v26077_v44 = vsub.f32 %v7400_v12, %v26048_v51  ;;  %v7588_v12 = vand.u32 4294901760, %v26061_v14 }
 0xbb9   : > { %v28509_v29 = vand.u32 4294901760, %v26055_v49  ;;  %v7595_v8 = vand.u32 4294901760, %v26066_v10 }
 0xbba   : > { %v7525_v5 = vand.u32 4294901760, %v26077_v44  ;;  %v7589_v60 = vsub.f32 %v26061_v14, %v7588_v12 }
 0xbbb   : > { %v7536_v23 = vsub.f32 %v26055_v49, %v28509_v29  ;;  %v7596_v29 = vsub.f32 %v26066_v10, %v7595_v8 }
 0xbbc   : > { %v7526_v27 = vsub.f32 %v26077_v44, %v7525_v5  ;;  %v7590_v39 = vand.u32 4294901760, %v7589_v60  ;;  %v7416_v60 = vld [vmem:[#allocation5 + $0x238] sm:$0xff] }
 0xbbd   : > { %v7537_v40 = vand.u32 4294901760, %v7536_v23  ;;  %v7597_v35 = vand.u32 4294901760, %v7596_v29  ;;  %v28655_v29 = vand.u32 4294901760, %v26055_v49 }
 0xbbe   : > { %v7527_v32 = vand.u32 4294901760, %v7526_v27  ;;  %v20862_v27 = vpack.c.bf16 %v7583_v20, %v7576_v62  ;;  %v20894_v20 = vpack.c.bf16 %v26041_v46, %v26036_v9  ;;  %v20950_v62 = vpack.c.bf16 %v7553_v28, %v7546_v15  ;;  %v7415_v46 = vld [vmem:[#allocation5 + $0x230] sm:$0xff] }
 0xbbf   : > { %v20866_v7 = vpack.c.bf16 %v7597_v35, %v7590_v39  ;;  %v20962_v15 = vpack.c.bf16 %v7595_v8, %v7588_v12  ;;  %v28657_v28 = vand.u32 4294901760, %v25942_v19  ;;  %v28663_v19 = vand.u32 4294901760, %v25979_v2  ;;  %v7412_v2 = vld [vmem:[#allocation5 + $0x218] sm:$0xff]  ;;  %v26228_v12 = vld [vmem:[#allocation5 + $0x260] sm:$0xff]  ;;  %v26230_v8 = vld [vmem:[#allocation5 + $0x268] sm:$0xff] }
 0xbc0   : > { %17254 = vmatprep.mubr.f32.mxu1 %v7527_v32  ;;  %v8145_v45 = vand.u32 4294901760, %v7415_v46  ;;  %v8160_v35 = vand.u32 4294901760, %v26225_v56 }
 0xbc1   : > { %17255 = vmatmul.mubr.f32.vlgmr.msra.gmra.mrb[4].mxu1 %v7537_v40  ;;  %v20898_v40 = vpack.c.bf16 %v26066_v10, %v26061_v14  ;;  %v7417_v14 = vld [vmem:[#allocation5 + $0x240] sm:$0xff]  ;;  %v7418_v10 = vld [vmem:[#allocation5 + $0x248] sm:$0xff] }
 0xbc2   : > { %20857 = vmatpush3.bf16.msra.mxu1 %v25939_v55  ;;  %17289 = vmatprep.mubr.f32.mxu1 %v26048_v51  ;;  %v20890_v55 = vpack.c.bf16 %v26029_v37, %v26021_v42  ;;  %v7413_v42 = vld [vmem:[#allocation5 + $0x220] sm:$0xff]  ;;  %v7414_v37 = vld [vmem:[#allocation5 + $0x228] sm:$0xff]  ;;  %v8154_v23 = vand.u32 4294901760, %v7418_v10 }
 0xbc3   : > { %20859 = vmatprep.subr.bf16.mxu1 %v20858_v16 }
 0xbc6   : > { %20861 = vmatpush3.bf16.msra.mxu1 %v20858_v16 }
 0xbc7   : > { %20863 = vmatprep.subr.bf16.mxu1 %v20862_v27 }
 0xbca   : > { %20865 = vmatpush3.bf16.msra.mxu1 %v20862_v27 }
 0xbcb   : > { %20867 = vmatprep.subr.bf16.mxu1 %v20866_v7 }
 0xbce   : > { %20869 = vmatpush3.bf16.msra.mxu1 %v20866_v7  ;;  %v26242_v7 = vand.u32 4294901760, %v26070_v26 }
 0xbcf   : > { %20871 = vmatprep.subr.bf16.mxu1 %v25960_v24 }
 0xbd2   : > { %20873 = vmatpush3.bf16.msra.mxu1 %v25960_v24  ;;  %v20954_v24 = vpack.c.bf16 %v7567_v47, %v7560_v30  ;;  %v8139_v47 = vand.u32 4294901760, %v7413_v42 }
 0xbd3   : > { %20875 = vmatprep.subr.bf16.mxu1 %v25974_v22 }
 0xbd6   : > { %20877 = vmatpush3.bf16.msra.mxu1 %v25974_v22 }
 0xbd7   : > { %20879 = vmatprep.subr.bf16.mxu1 %v25994_v33 }
 0xbda   : > { %20881 = vmatpush3.bf16.msra.mxu1 %v25994_v33  ;;  %v28659_v33 = vand.u32 4294901760, %v25954_v13  ;;  %v7406_v13 = vsel %vm5978_vm6, %v26074_v17, 0.0 }
 0xbdb   : > { %20883 = vmatprep.subr.bf16.mxu1 %v25996_v50 }
 0xbde   : > { %20885 = vmatpush3.bf16.msra.mxu1 %v25996_v50  ;;  %v28660_v50 = vand.u32 4294901760, %v25956_v3  ;;  %v7410_v3 = vld [vmem:[#allocation5 + $0x208] sm:$0xff] }
 0xbdf   : > { %20887 = vmatprep.subr.bf16.mxu1 %v26000_v18 }
 0xbe1   : > { %17290 = vmatmul.mubr.f32.vlgmr.msra.gmra.mrb[4].mxu1 %v26043_v25 }
 0xbe2   : > { %20889 = vmatpush3.bf16.msra.mxu1 %v26000_v18  ;;  %17324 = vmatprep.mubr.f32.mxu1 %v26077_v44  ;;  %v28658_v44 = vand.u32 4294901760, %v25944_v57  ;;  %v20970_v18 = vpack.c.bf16 %v28660_v50, %v28659_v33  ;;  %v28664_v57 = vand.u32 4294901760, %v25981_v58  ;;  %v8172_v33 = vand.u32 4294901760, %v26254_v31 }
 0xbe3   : > { %20891 = vmatprep.subr.bf16.mxu1 %v20890_v55 }
 0xbe4   : > { %v20966_v22 = vpack.c.bf16 %v28658_v44, %v28657_v28  ;;  %v26262_v28 = vsub.f32 %v26070_v26, %v26242_v7 }
 0xbe6   : > { %20893 = vmatpush3.bf16.msra.mxu1 %v20890_v55  ;;  %v8163_v55 = vand.u32 4294901760, %v26228_v12 }
 0xbe7   : > { %20895 = vmatprep.subr.bf16.mxu1 %v20894_v20 }
 0xbea   : > { %20897 = vmatpush3.bf16.msra.mxu1 %v20894_v20  ;;  %v8166_v20 = vand.u32 4294901760, %v26230_v8 }
 0xbeb   : > { %20899 = vmatprep.subr.bf16.mxu1 %v20898_v40 }
 0xbec   : > { %v26268_v44 = vpack.c.bf16 %v8166_v20, %v8163_v55 }
 0xbee   : > { %20901 = vmatpush3.bf16.msra.mxu1 %v20898_v40 }
 0xbef   : > { %20903 = vmatprep.subr.bf16.mxu1 %v26004_v59 }
 0xbf2   : > { %20905 = vmatpush3.bf16.msra.mxu1 %v26004_v59  ;;  %v28661_v59 = vand.u32 4294901760, %v25968_v21  ;;  %v8130_v21 = vand.u32 4294901760, %v7410_v3 }
 0xbf3   : > { %20907 = vmatprep.subr.bf16.mxu1 %v26008_v54 }
 0xbf4   : > { %v26234_v16 = vsub.f32 %v7410_v3, %v8130_v21 }
 0xbf6   : > { %20909 = vmatpush3.bf16.msra.mxu1 %v26008_v54  ;;  %v28662_v54 = vand.u32 4294901760, %v25970_v53  ;;  %v7411_v53 = vld [vmem:[#allocation5 + $0x210] sm:$0xff] }
 0xbf7   : > { %20911 = vmatprep.subr.bf16.mxu1 %v26012_v43  ;;  %v8133_v58 = vand.u32 4294901760, %v7411_v53 }
 0xbfa   : > { %20913 = vmatpush3.bf16.msra.mxu1 %v26012_v43  ;;  %v20974_v43 = vpack.c.bf16 %v28662_v54, %v28661_v59  ;;  %v26282_v54 = vsub.f32 %v7413_v42, %v8139_v47 }
 0xbfb   : > { %20915 = vmatprep.subr.bf16.mxu1 %v26016_v6 }
 0xbfe   : > { %20917 = vmatpush3.bf16.msra.mxu1 %v26016_v6  ;;  %v20978_v6 = vpack.c.bf16 %v28664_v57, %v28663_v19  ;;  %v26286_v19 = vsub.f32 %v7415_v46, %v8145_v45 }
 0xbff   : > { %20919 = vmatprep.subr.bf16.mxu1 %v25786_v0 }
 0xc01   : > { %17325 = vmatmul.mubr.f32.vlgmr.msra.gmra.mrb[4].mxu1 %v26055_v49 }
 0xc02   : > { %20921 = vmatpush3.bf16.msra.mxu1 %v25786_v0  ;;  %17359 = vmatprep.mubr.f32.mxu1 %v7525_v5  ;;  %v8151_v5 = vand.u32 4294901760, %v7417_v14 }
 0xc03   : > { %20923 = vmatprep.subr.bf16.mxu1 %v25794_v41 }
 0xc04   : > { %v26237_v27 = vpack.c.bf16 %v8154_v23, %v8151_v5 }
 0xc06   : > { %20925 = vmatpush3.bf16.msra.mxu1 %v25794_v41 }
 0xc07   : > { %20927 = vmatprep.subr.bf16.mxu1 %v25809_v34 }
 0xc0a   : > { %20929 = vmatpush3.bf16.msra.mxu1 %v25809_v34 }
 0xc0b   : > { %20931 = vmatprep.subr.bf16.mxu1 %v25821_v38 }
 0xc0e   : > { %20933 = vmatpush3.bf16.msra.mxu1 %v25821_v38 }
 0xc0f   : > { %20935 = vmatprep.subr.bf16.mxu1 %v25905_v52 }
 0xc12   : > { %20937 = vmatpush3.bf16.msra.mxu1 %v25905_v52 }
 0xc13   : > { %20939 = vmatprep.subr.bf16.mxu1 %v25909_v48 }
 0xc16   : > { %20941 = vmatpush3.bf16.msra.mxu1 %v25909_v48 }
 0xc17   : > { %20943 = vmatprep.subr.bf16.mxu1 %v25913_v36 }
 0xc1a   : > { %20945 = vmatpush3.bf16.msra.mxu1 %v25913_v36 }
 0xc1b   : > { %20947 = vmatprep.subr.bf16.mxu1 %v25929_v11 }
 0xc1e   : > { %20949 = vmatpush3.bf16.msra.mxu1 %v25929_v11 }
 0xc1f   : > { %20951 = vmatprep.subr.bf16.mxu1 %v20950_v62 }
 0xc21   : > { %17360 = vmatmul.mubr.f32.vlgmr.msra.gmra.mrb[4].mxu1 %v28655_v29  ;;  %v26252_v29 = vld [vmem:[#allocation5 + $0x270] sm:$0xff] }
 0xc22   : > { %20953 = vmatpush3.bf16.msra.mxu1 %v20950_v62  ;;  %17394 = vmatprep.mubr.f32.mxu1 %v26048_v51  ;;  %v8237_v62 = vand.u32 4294901760, %v26234_v16 }
 0xc23   : > { %20955 = vmatprep.subr.bf16.mxu1 %v20954_v24 }
 0xc24   : > { %v8238_v26 = vsub.f32 %v26234_v16, %v8237_v62 }
 0xc26   : > { %20957 = vmatpush3.bf16.msra.mxu1 %v20954_v24  ;;  %v8239_v3 = vand.u32 4294901760, %v8238_v26 }
 0xc27   : > { %20959 = vmatprep.subr.bf16.mxu1 %v20958_v61 }
 0xc2a   : > { %20961 = vmatpush3.bf16.msra.mxu1 %v20958_v61  ;;  %v26256_v61 = vsub.f32 %v7411_v53, %v8133_v58  ;;  %v8258_v53 = vand.u32 4294901760, %v26282_v54 }
 0xc2b   : > { %20963 = vmatprep.subr.bf16.mxu1 %v20962_v15 }
 0xc2c   : > { %v8259_v46 = vsub.f32 %v26282_v54, %v8258_v53 }
 0xc2e   : > { %20965 = vmatpush3.bf16.msra.mxu1 %v20962_v15 }
 0xc2f   : > { %20967 = vmatprep.subr.bf16.mxu1 %v20966_v22 }
 0xc32   : > { %20969 = vmatpush3.bf16.msra.mxu1 %v20966_v22  ;;  %v8169_v22 = vand.u32 4294901760, %v26252_v29 }
 0xc33   : > { %20971 = vmatprep.subr.bf16.mxu1 %v20970_v18 }
 0xc36   : > { %20973 = vmatpush3.bf16.msra.mxu1 %v20970_v18  ;;  %v8244_v18 = vand.u32 4294901760, %v26256_v61 }
 0xc37   : > { %20975 = vmatprep.subr.bf16.mxu1 %v20974_v43 }
 0xc3a   : > { %20977 = vmatpush3.bf16.msra.mxu1 %v20974_v43 }
 0xc3b   : > { %20979 = vmatprep.subr.bf16.mxu1 %v20978_v6 }
 0xc3e   : > { %20981 = vmatpush3.bf16.msra.mxu1 %v20978_v6  ;;  %v26295_v6 = vpack.c.bf16 %v8172_v33, %v8169_v22 }
 0xc3f   : > { %20983 = vmatprep.subr.bf16.mxu1 %v25786_v0 }
 0xc41   : > { %17395 = vmatmul.mubr.f32.vlgmr.msra.gmra.mrb[4].mxu1 %v26043_v25 }
 0xc42   : > { %20985 = vmatpush3.bf16.msra.mxu1 %v25786_v0  ;;  %17429 = vmatprep.mubr.f32.mxu1 %v26048_v51  ;;  %v26193_v0 = vand.u32 4294901760, %v7406_v13  ;;  %v8136_v51 = vand.u32 4294901760, %v7412_v2 }
 0xc43   : > { %20987 = vmatprep.subr.bf16.mxu1 %v25794_v41 }
 0xc44   : > { %v26212_v30 = vpack.c.bf16 %v8136_v51, %v8133_v58  ;;  %v26258_v15 = vsub.f32 %v7412_v2, %v8136_v51  ;;  %v8272_v58 = vand.u32 4294901760, %v26286_v19 }
 0xc46   : > { %20989 = vmatpush3.bf16.msra.mxu1 %v25794_v41  ;;  %v7409_v41 = vld [vmem:[#allocation5 + $0x200] sm:$0xff]  ;;  %v8251_v59 = vand.u32 4294901760, %v26258_v15 }
 0xc47   : > { %20991 = vmatprep.subr.bf16.mxu1 %v25809_v34  ;;  %v8127_v1 = vand.u32 4294901760, %v7409_v41 }
 0xc49   : > { %v26232_v32 = vsub.f32 %v7409_v41, %v8127_v1 }
 0xc4a   : > { %20993 = vmatpush3.bf16.msra.mxu1 %v25809_v34  ;;  %v26198_v34 = vsub.f32 %v7406_v13, %v26193_v0  ;;  %v8219_v13 = vand.u32 4294901760, %v26262_v28 }
 0xc4b   : > { %20995 = vmatprep.subr.bf16.mxu1 %v25821_v38  ;;  %v8230_v40 = vand.u32 4294901760, %v26232_v32 }
 0xc4d   : > { %v8231_v50 = vsub.f32 %v26232_v32, %v8230_v40 }
 0xc4e   : > { %20997 = vmatpush3.bf16.msra.mxu1 %v25821_v38  ;;  %v8209_v38 = vand.u32 4294901760, %v26198_v34 }
 0xc4f   : > { %20999 = vmatprep.subr.bf16.mxu1 %v25905_v52  ;;  %v8232_v41 = vand.u32 4294901760, %v8231_v50 }
 0xc51   : > { %v21046_v42 = vpack.c.bf16 %v8239_v3, %v8232_v41  ;;  %v8260_v41 = vand.u32 4294901760, %v8259_v46 }
 0xc52   : > { %21001 = vmatpush3.bf16.msra.mxu1 %v25905_v52  ;;  %v26205_v52 = vpack.c.bf16 %v8130_v21, %v8127_v1  ;;  %v8245_v1 = vsub.f32 %v26256_v61, %v8244_v18  ;;  %v8252_v21 = vsub.f32 %v26258_v15, %v8251_v59 }
 0xc53   : > { %21003 = vmatprep.subr.bf16.mxu1 %v25909_v48 }
 0xc56   : > { %21005 = vmatpush3.bf16.msra.mxu1 %v25909_v48  ;;  %v8210_v48 = vsub.f32 %v26198_v34, %v8209_v38 }
 0xc57   : > { %21007 = vmatprep.subr.bf16.mxu1 %v25913_v36 }
 0xc58   : > { %v8211_v9 = vand.u32 4294901760, %v8210_v48  ;;  %v8220_v48 = vsub.f32 %v26262_v28, %v8219_v13 }
 0xc5a   : > { %21009 = vmatpush3.bf16.msra.mxu1 %v25913_v36  ;;  %v8142_v36 = vand.u32 4294901760, %v7414_v37  ;;  %v8221_v50 = vand.u32 4294901760, %v8220_v48  ;;  %v26351_v48 = vsub.f32 %v26228_v12, %v8163_v55 }
 0xc5b   : > { %21011 = vmatprep.subr.bf16.mxu1 %v25929_v11 }
 0xc5c   : > { %v26217_v49 = vpack.c.bf16 %v8142_v36, %v8139_v47  ;;  %v26284_v43 = vsub.f32 %v7414_v37, %v8142_v36  ;;  %v26313_v37 = vsub.f32 %v7417_v14, %v8151_v5  ;;  %v26315_v47 = vsub.f32 %v7418_v10, %v8154_v23 }
 0xc5d   : > { %v8246_v36 = vand.u32 4294901760, %v8245_v1  ;;  %v26337_v23 = vsub.f32 %v26225_v56, %v8160_v35  ;;  %v8314_v12 = vand.u32 4294901760, %v26351_v48 }
 0xc5e   : > { %21013 = vmatpush3.bf16.msra.mxu1 %v25929_v11  ;;  %v8148_v11 = vand.u32 4294901760, %v7416_v60  ;;  %v8265_v2 = vand.u32 4294901760, %v26284_v43  ;;  %v8286_v14 = vand.u32 4294901760, %v26313_v37  ;;  %v8293_v10 = vand.u32 4294901760, %v26315_v47 }
 0xc5f   : > { %21015 = vmatprep.subr.bf16.mxu1 %v26205_v52 }
 0xc60   : > { %v26221_v17 = vpack.c.bf16 %v8148_v11, %v8145_v45  ;;  %v26288_v57 = vsub.f32 %v7416_v60, %v8148_v11  ;;  %v8266_v60 = vsub.f32 %v26284_v43, %v8265_v2  ;;  %v8273_v45 = vsub.f32 %v26286_v19, %v8272_v58 }
 0xc61   : > { %17430 = vmatmul.mubr.f32.vlgmr.msra.gmra.mrb[4].mxu1 %v26043_v25  ;;  %v26223_v25 = vld [vmem:[#allocation5 + $0x250] sm:$0xff] }
 0xc62   : > { %21017 = vmatpush3.bf16.msra.mxu1 %v26205_v52  ;;  %17464 = vmatprep.mubr.f32.mxu1 %v8211_v9  ;;  %v8157_v39 = vand.u32 4294901760, %v26223_v25  ;;  %v28510_v51 = vand.u32 4294901760, %v26288_v57  ;;  %v8253_v9 = vand.u32 4294901760, %v8252_v21  ;;  %v8267_v3 = vand.u32 4294901760, %v8266_v60 }
 0xc63   : > { %21019 = vmatprep.subr.bf16.mxu1 %v26212_v30  ;;  %v8274_v1 = vand.u32 4294901760, %v8273_v45 }
 0xc64   : > { %v26250_v24 = vpack.c.bf16 %v8160_v35, %v8157_v39  ;;  %v8280_v11 = vsub.f32 %v26288_v57, %v28510_v51  ;;  %v26334_v5 = vsub.f32 %v26223_v25, %v8157_v39  ;;  %v21050_v26 = vpack.c.bf16 %v8253_v9, %v8246_v36 }
 0xc65   : > { %v8287_v51 = vsub.f32 %v26313_v37, %v8286_v14  ;;  %v8294_v25 = vsub.f32 %v26315_v47, %v8293_v10  ;;  %v8307_v39 = vand.u32 4294901760, %v26337_v23  ;;  %v21054_v35 = vpack.c.bf16 %v8267_v3, %v8260_v41 }
 0xc66   : > { %21021 = vmatpush3.bf16.msra.mxu1 %v26212_v30  ;;  %v8281_v21 = vand.u32 4294901760, %v8280_v11  ;;  %v8300_v56 = vand.u32 4294901760, %v26334_v5 }
 0xc67   : > { %21023 = vmatprep.subr.bf16.mxu1 %v26217_v49  ;;  %v8288_v9 = vand.u32 4294901760, %v8287_v51  ;;  %v8295_v46 = vand.u32 4294901760, %v8294_v25  ;;  %v8308_v45 = vsub.f32 %v26337_v23, %v8307_v39 }
 0xc68   : > { %v21058_v36 = vpack.c.bf16 %v8281_v21, %v8274_v1  ;;  %v8301_v60 = vsub.f32 %v26334_v5, %v8300_v56 }
 0xc69   : > { %v21062_v51 = vpack.c.bf16 %v8295_v46, %v8288_v9  ;;  %v21078_v46 = vpack.c.bf16 %v26234_v16, %v26232_v32  ;;  %v21150_v32 = vpack.c.bf16 %v8265_v2, %v8258_v53  ;;  %v28665_v16 = vand.u32 4294901760, %v26288_v57 }
 0xc6a   : > { %21025 = vmatpush3.bf16.msra.mxu1 %v26217_v49  ;;  %v8302_v11 = vand.u32 4294901760, %v8301_v60  ;;  %v21082_v60 = vpack.c.bf16 %v26258_v15, %v26256_v61  ;;  %v21162_v61 = vpack.c.bf16 %v8307_v39, %v8300_v56 }
 0xc6b   : > { %21027 = vmatprep.subr.bf16.mxu1 %v26221_v17 }
 0xc6e   : > { %21029 = vmatpush3.bf16.msra.mxu1 %v26221_v17 }
 0xc6f   : > { %21031 = vmatprep.subr.bf16.mxu1 %v26237_v27 }
 0xc72   : > { %21033 = vmatpush3.bf16.msra.mxu1 %v26237_v27 }
 0xc73   : > { %21035 = vmatprep.subr.bf16.mxu1 %v26250_v24 }
 0xc76   : > { %21037 = vmatpush3.bf16.msra.mxu1 %v26250_v24 }
 0xc77   : > { %21039 = vmatprep.subr.bf16.mxu1 %v26268_v44 }
 0xc7a   : > { %21041 = vmatpush3.bf16.msra.mxu1 %v26268_v44 }
 0xc7b   : > { %21043 = vmatprep.subr.bf16.mxu1 %v26295_v6 }
 0xc7e   : > { %21045 = vmatpush3.bf16.msra.mxu1 %v26295_v6 }
 0xc7f   : > { %21047 = vmatprep.subr.bf16.mxu1 %v21046_v42 }
 0xc81   : > { %17465 = vmatmul.mubr.f32.vlgmr.msra.gmra.mrb[4].mxu1 %v8221_v50  ;;  %v8309_v50 = vand.u32 4294901760, %v8308_v45  ;;  %v26395_v45 = vld [vmem:[#allocation3 + $0x380] sm:$0xff] }
 0xc82   : > { %21049 = vmatpush3.bf16.msra.mxu1 %v21046_v42  ;;  %17499 = vmatprep.mubr.f32.mxu1 %v26193_v0  ;;  %v26356_v42 = vsub.f32 %v26230_v8, %v8166_v20  ;;  %v26369_v8 = vsub.f32 %v26252_v29, %v8169_v22  ;;  %v26374_v20 = vsub.f32 %v26254_v31, %v8172_v33  ;;  %v28668_v53 = vand.u32 4294901760, %v26395_v45 }
 0xc83   : > { %21051 = vmatprep.subr.bf16.mxu1 %v21050_v26  ;;  %v21066_v31 = vpack.c.bf16 %v8309_v50, %v8302_v11  ;;  %v26399_v11 = vld [vmem:[#allocation3 + $0x390] sm:$0xff]  ;;  %v28515_v50 = vand.u32 4294901760, %v26395_v45 }
 0xc84   : > { %v8321_v55 = vand.u32 4294901760, %v26356_v42  ;;  %v28516_v29 = vand.u32 4294901760, %v26369_v8  ;;  %v28511_v22 = vand.u32 4294901760, %v26374_v20  ;;  %v26550_v2 = vsub.f32 %v26395_v45, %v28668_v53 }
 0xc86   : > { %21053 = vmatpush3.bf16.msra.mxu1 %v21050_v26  ;;  %v8315_v26 = vsub.f32 %v26351_v48, %v8314_v12  ;;  %v8322_v41 = vsub.f32 %v26356_v42, %v8321_v55  ;;  %v8329_v1 = vsub.f32 %v26369_v8, %v28516_v29  ;;  %v8336_v21 = vsub.f32 %v26374_v20, %v28511_v22  ;;  %v26430_v22 = vld [vmem:[#allocation3 + $0x3b8] sm:$0xff] }
 0xc87   : > { %21055 = vmatprep.subr.bf16.mxu1 %v21054_v35  ;;  %v21166_v15 = vpack.c.bf16 %v8321_v55, %v8314_v12 }
 0xc88   : > { %v8316_v33 = vand.u32 4294901760, %v8315_v26  ;;  %v8323_v3 = vand.u32 4294901760, %v8322_v41  ;;  %v8337_v9 = vand.u32 4294901760, %v8336_v21  ;;  %v26404_v41 = vld [vmem:[#allocation3 + $0x398] sm:$0xff] }
 0xc89   : > { %v28513_v21 = vand.u32 4294901760, %v26404_v41 }
 0xc8a   : > { %21057 = vmatpush3.bf16.msra.mxu1 %v21054_v35  ;;  %v21070_v25 = vpack.c.bf16 %v8323_v3, %v8316_v33  ;;  %v8330_v35 = vand.u32 4294901760, %v8329_v1  ;;  %v26407_v33 = vld [vmem:[#allocation3 + $0x3a0] sm:$0xff]  ;;  %v26409_v3 = vld [vmem:[#allocation3 + $0x3a8] sm:$0xff]  ;;  %v21086_v1 = vpack.c.bf16 %v26284_v43, %v26282_v54  ;;  %v8858_v54 = vld [vmem:[#allocation3 + $0x3d8] sm:$0xff] }
 0xc8b   : > { %21059 = vmatprep.subr.bf16.mxu1 %v21058_v36  ;;  %v8897_v43 = vand.u32 4294901760, %v8858_v54 }
 0xc8e   : > { %21061 = vmatpush3.bf16.msra.mxu1 %v21058_v36  ;;  %v21074_v36 = vpack.c.bf16 %v8337_v9, %v8330_v35  ;;  %v8876_v35 = vand.u32 4294901760, %v26407_v33  ;;  %v28517_v9 = vand.u32 4294901760, %v26409_v3 }
 0xc8f   : > { %21063 = vmatprep.subr.bf16.mxu1 %v21062_v51 }
 0xc92   : > { %21065 = vmatpush3.bf16.msra.mxu1 %v21062_v51  ;;  %v26397_v51 = vld [vmem:[#allocation3 + $0x388] sm:$0xff] }
 0xc93   : > { %21067 = vmatprep.subr.bf16.mxu1 %v21066_v31  ;;  %v28512_v26 = vand.u32 4294901760, %v26397_v51 }
 0xc96   : > { %21069 = vmatpush3.bf16.msra.mxu1 %v21066_v31  ;;  %v28514_v31 = vand.u32 4294901760, %v26399_v11 }
 0xc97   : > { %21071 = vmatprep.subr.bf16.mxu1 %v21070_v25 }
 0xc9a   : > { %21073 = vmatpush3.bf16.msra.mxu1 %v21070_v25  ;;  %v26418_v25 = vpack.c.bf16 %v28512_v26, %v28515_v50  ;;  %v21090_v26 = vpack.c.bf16 %v26288_v57, %v26286_v19  ;;  %v21094_v50 = vpack.c.bf16 %v26315_v47, %v26313_v37  ;;  %v8859_v19 = vld [vmem:[#allocation3 + $0x3e0] sm:$0xff]  ;;  %v8860_v57 = vld [vmem:[#allocation3 + $0x3e8] sm:$0xff]  ;;  %v8861_v47 = vld [vmem:[#allocation3 + $0x3f0] sm:$0xff] }
 0xc9b   : > { %21075 = vmatprep.subr.bf16.mxu1 %v21074_v36 }
 0xc9c   : > { %21207 = vmatprep.subr.bf16.mxu0 %v26418_v25 }
 0xc9d   : > { %21209 = vmatpush3.bf16.msra.mxu0 %v26418_v25 }
 0xc9e   : > { %21077 = vmatpush3.bf16.msra.mxu1 %v21074_v36  ;;  %v26426_v36 = vpack.c.bf16 %v28513_v21, %v28514_v31  ;;  %v26441_v21 = vpack.c.bf16 %v28517_v9, %v8876_v35  ;;  %v21098_v9 = vpack.c.bf16 %v26337_v23, %v26334_v5  ;;  %v8967_v23 = vand.u32 4294901760, %v26550_v2 }
 0xc9f   : > { %21079 = vmatprep.subr.bf16.mxu1 %v21078_v46 }
 0xca0   : > { %21211 = vmatprep.subr.bf16.mxu0 %v26426_v36 }
 0xca1   : > { %17500 = vmatmul.mubr.f32.vlgmr.msra.gmra.mrb[4].mxu1 %v26242_v7  ;;  %21213 = vmatpush3.bf16.msra.mxu0 %v26426_v36 }
 0xca2   : > { %21081 = vmatpush3.bf16.msra.mxu1 %v21078_v46  ;;  %17534 = vmatprep.mubr.f32.mxu1 %v26198_v34  ;;  %v26428_v46 = vld [vmem:[#allocation3 + $0x3b0] sm:$0xff]  ;;  %v21142_v34 = vpack.c.bf16 %v8237_v62, %v8230_v40  ;;  %v21154_v40 = vpack.c.bf16 %v28665_v16, %v8272_v58  ;;  %v21158_v62 = vpack.c.bf16 %v8293_v10, %v8286_v14  ;;  %v28669_v58 = vand.u32 4294901760, %v26397_v51  ;;  %v8862_v14 = vld [vmem:[#allocation3 + $0x3f8] sm:$0xff] }
 0xca3   : > { %21083 = vmatprep.subr.bf16.mxu1 %v21082_v60  ;;  %v8882_v31 = vand.u32 4294901760, %v26428_v46  ;;  %21215 = vmatprep.subr.bf16.mxu0 %v26441_v21  ;;  %v8906_v10 = vand.u32 4294901760, %v8861_v47  ;;  %v8909_v5 = vand.u32 4294901760, %v8862_v14 }
 0xca4   : > { %v26555_v37 = vsub.f32 %v26397_v51, %v28669_v58 }
 0xca5   : > { %21217 = vmatpush3.bf16.msra.mxu0 %v26441_v21  ;;  %v26561_v39 = vpack.c.bf16 %v8909_v5, %v8906_v10 }
 0xca6   : > { %21085 = vmatpush3.bf16.msra.mxu1 %v21082_v60  ;;  %v8885_v60 = vand.u32 4294901760, %v26430_v22  ;;  %v8974_v56 = vand.u32 4294901760, %v26555_v37 }
 0xca7   : > { %21087 = vmatprep.subr.bf16.mxu1 %v21086_v1 }
 0xca8   : > { %v26453_v29 = vpack.c.bf16 %v8885_v60, %v8882_v31 }
 0xcaa   : > { %21089 = vmatpush3.bf16.msra.mxu1 %v21086_v1  ;;  %21219 = vmatprep.subr.bf16.mxu0 %v26453_v29  ;;  %v21102_v1 = vpack.c.bf16 %v26356_v42, %v26351_v48  ;;  %v8968_v48 = vsub.f32 %v26550_v2, %v8967_v23  ;;  %v8975_v42 = vsub.f32 %v26555_v37, %v8974_v56 }
 0xcab   : > { %21091 = vmatprep.subr.bf16.mxu1 %v21090_v26  ;;  %21221 = vmatpush3.bf16.msra.mxu0 %v26453_v29 }
 0xcac   : > { %v8969_v12 = vand.u32 4294901760, %v8968_v48  ;;  %v8976_v55 = vand.u32 4294901760, %v8975_v42  ;;  %v26632_v48 = vpack.c.bf16 %v26555_v37, %v26550_v2 }
 0xcae   : > { %21093 = vmatpush3.bf16.msra.mxu1 %v21090_v26  ;;  %v21106_v26 = vpack.c.bf16 %v26374_v20, %v26369_v8 }
 0xcaf   : > { %21095 = vmatprep.subr.bf16.mxu1 %v21094_v50 }
 0xcb2   : > { %21097 = vmatpush3.bf16.msra.mxu1 %v21094_v50 }
 0xcb3   : > { %21099 = vmatprep.subr.bf16.mxu1 %v21098_v9 }
 0xcb6   : > { %21101 = vmatpush3.bf16.msra.mxu1 %v21098_v9 }
 0xcb7   : > { %21103 = vmatprep.subr.bf16.mxu1 %v21102_v1 }
 0xcba   : > { %21105 = vmatpush3.bf16.msra.mxu1 %v21102_v1 }
 0xcbb   : > { %21107 = vmatprep.subr.bf16.mxu1 %v21106_v26 }
 0xcbe   : > { %21109 = vmatpush3.bf16.msra.mxu1 %v21106_v26 }
 0xcbf   : > { %21111 = vmatprep.subr.bf16.mxu1 %v26205_v52 }
 0xcc1   : > { %17535 = vmatmul.mubr.f32.vlgmr.msra.gmra.mrb[4].mxu1 %v26262_v28  ;;  %v28666_v28 = vand.u32 4294901760, %v26369_v8  ;;  %v26571_v8 = vpack.c.bf16 %v8976_v55, %v8969_v12 }
 0xcc2   : > { %21113 = vmatpush3.bf16.msra.mxu1 %v26205_v52  ;;  %17569 = vmatprep.mubr.f32.mxu1 %v8209_v38  ;;  %v21146_v38 = vpack.c.bf16 %v8251_v59, %v8244_v18  ;;  %v28667_v18 = vand.u32 4294901760, %v26374_v20 }
 0xcc3   : > { %21115 = vmatprep.subr.bf16.mxu1 %v26212_v30 }
 0xcc4   : > { %v21170_v59 = vpack.c.bf16 %v28667_v18, %v28666_v28 }
 0xcc6   : > { %21117 = vmatpush3.bf16.msra.mxu1 %v26212_v30 }
 0xcc7   : > { %21119 = vmatprep.subr.bf16.mxu1 %v26217_v49 }
 0xcca   : > { %21121 = vmatpush3.bf16.msra.mxu1 %v26217_v49 }
 0xccb   : > { %21123 = vmatprep.subr.bf16.mxu1 %v26221_v17 }
 0xcce   : > { %21125 = vmatpush3.bf16.msra.mxu1 %v26221_v17 }
 0xccf   : > { %21127 = vmatprep.subr.bf16.mxu1 %v26237_v27 }
 0xcd2   : > { %21129 = vmatpush3.bf16.msra.mxu1 %v26237_v27 }
 0xcd3   : > { %21131 = vmatprep.subr.bf16.mxu1 %v26250_v24 }
 0xcd6   : > { %21133 = vmatpush3.bf16.msra.mxu1 %v26250_v24 }
 0xcd7   : > { %21135 = vmatprep.subr.bf16.mxu1 %v26268_v44 }
 0xcda   : > { %21137 = vmatpush3.bf16.msra.mxu1 %v26268_v44 }
 0xcdb   : > { %21139 = vmatprep.subr.bf16.mxu1 %v26295_v6 }
 0xcde   : > { %21141 = vmatpush3.bf16.msra.mxu1 %v26295_v6 }
 0xcdf   : > { %21143 = vmatprep.subr.bf16.mxu1 %v21142_v34 }
 0xce1   : > { %17570 = vmatmul.mubr.f32.vlgmr.msra.gmra.mrb[4].mxu1 %v8219_v13 }
 0xce2   : > { %21145 = vmatpush3.bf16.msra.mxu1 %v21142_v34  ;;  %17604 = vmatprep.mubr.f32.mxu1 %v26193_v0  ;;  %v26588_v34 = vsub.f32 %v8858_v54, %v8897_v43  ;;  %v26611_v54 = vsub.f32 %v8861_v47, %v8906_v10 }
 0xce3   : > { %21147 = vmatprep.subr.bf16.mxu1 %v21146_v38 }
 0xce6   : > { %21149 = vmatpush3.bf16.msra.mxu1 %v21146_v38 }
 0xce7   : > { %21151 = vmatprep.subr.bf16.mxu1 %v21150_v32 }
 0xcea   : > { %21153 = vmatpush3.bf16.msra.mxu1 %v21150_v32 }
 0xceb   : > { %21155 = vmatprep.subr.bf16.mxu1 %v21154_v40 }
 0xcee   : > { %21157 = vmatpush3.bf16.msra.mxu1 %v21154_v40  ;;  %v28522_v40 = vand.u32 4294901760, %v26588_v34 }
 0xcef   : > { %21159 = vmatprep.subr.bf16.mxu1 %v21158_v62 }
 0xcf2   : > { %21161 = vmatpush3.bf16.msra.mxu1 %v21158_v62 }
 0xcf3   : > { %21163 = vmatprep.subr.bf16.mxu1 %v21162_v61 }
 0xcf6   : > { %21165 = vmatpush3.bf16.msra.mxu1 %v21162_v61 }
 0xcf7   : > { %21167 = vmatprep.subr.bf16.mxu1 %v21166_v15 }
 0xcfa   : > { %21169 = vmatpush3.bf16.msra.mxu1 %v21166_v15  ;;  %v9045_v15 = vsub.f32 %v26588_v34, %v28522_v40 }
 0xcfb   : > { %21171 = vmatprep.subr.bf16.mxu1 %v21170_v59 }
 0xcfe   : > { %21173 = vmatpush3.bf16.msra.mxu1 %v21170_v59 }
 0xcff   : > { %21175 = vmatprep.subr.bf16.mxu1 %v26205_v52 }
 0xd01   : > { %17605 = vmatmul.mubr.f32.vlgmr.msra.gmra.mrb[4].mxu1 %v26242_v7 }
 0xd02   : > { %21177 = vmatpush3.bf16.msra.mxu1 %v26205_v52  ;;  %17639 = vmatprep.mubr.f32.mxu1 %v26193_v0  ;;  %v8855_v0 = vld [vmem:[#allocation3 + $0x3c0] sm:$0xff]  ;;  %v8856_v52 = vld [vmem:[#allocation3 + $0x3c8] sm:$0xff] }
 0xd03   : > { %21179 = vmatprep.subr.bf16.mxu1 %v26212_v30 }
 0xd06   : > { %21181 = vmatpush3.bf16.msra.mxu1 %v26212_v30  ;;  %v8888_v30 = vand.u32 4294901760, %v8855_v0 }
 0xd07   : > { %21183 = vmatprep.subr.bf16.mxu1 %v26217_v49 }
 0xd08   : > { %v26574_v20 = vsub.f32 %v8855_v0, %v8888_v30  ;;  %v9046_v0 = vand.u32 4294901760, %v9045_v15  ;;  %v28671_v15 = vand.u32 4294901760, %v26404_v41 }
 0xd0a   : > { %21185 = vmatpush3.bf16.msra.mxu1 %v26217_v49  ;;  %v8891_v49 = vand.u32 4294901760, %v8856_v52  ;;  %v9023_v51 = vand.u32 4294901760, %v26574_v20 }
 0xd0b   : > { %21187 = vmatprep.subr.bf16.mxu1 %v26221_v17 }
 0xd0c   : > { %v26576_v45 = vsub.f32 %v8856_v52, %v8891_v49  ;;  %v9024_v9 = vsub.f32 %v26574_v20, %v9023_v51 }
 0xd0e   : > { %21189 = vmatpush3.bf16.msra.mxu1 %v26221_v17  ;;  %v26537_v17 = vpack.c.bf16 %v8891_v49, %v8888_v30  ;;  %v28524_v50 = vand.u32 4294901760, %v26576_v45  ;;  %v9025_v38 = vand.u32 4294901760, %v9024_v9  ;;  %v26636_v42 = vpack.c.bf16 %v26576_v45, %v26574_v20 }
 0xd0f   : > { %21191 = vmatprep.subr.bf16.mxu1 %v26237_v27  ;;  %v28678_v20 = vand.u32 4294901760, %v26611_v54 }
 0xd10   : > { %21223 = vmatprep.subr.bf16.mxu0 %v26537_v17  ;;  %v9031_v1 = vsub.f32 %v26576_v45, %v28524_v50 }
 0xd11   : > { %21225 = vmatpush3.bf16.msra.mxu0 %v26537_v17 }
 0xd12   : > { %21193 = vmatpush3.bf16.msra.mxu1 %v26237_v27  ;;  %v8857_v27 = vld [vmem:[#allocation3 + $0x3d0] sm:$0xff]  ;;  %v9032_v32 = vand.u32 4294901760, %v9031_v1 }
 0xd13   : > { %21195 = vmatprep.subr.bf16.mxu1 %v26250_v24  ;;  %v13171_v1 = vld [vmem:[%s28406_s4 + $0x2] ss:$0 sm:$0xff] }
 0xd14   : > { %v26592_v62 = vpack.c.bf16 %v9032_v32, %v9025_v38  ;;  %v28670_v32 = vand.u32 4294901760, %v26399_v11 }
 0xd16   : > { %21197 = vmatpush3.bf16.msra.mxu1 %v26250_v24  ;;  %v8894_v24 = vand.u32 4294901760, %v8857_v27 }
 0xd17   : > { %21199 = vmatprep.subr.bf16.mxu1 %v26268_v44 }
 0xd18   : > { %v26586_v26 = vsub.f32 %v8857_v27, %v8894_v24 }
 0xd1a   : > { %21201 = vmatpush3.bf16.msra.mxu1 %v26268_v44  ;;  %v26541_v44 = vpack.c.bf16 %v8897_v43, %v8894_v24  ;;  %v28523_v16 = vand.u32 4294901760, %v26586_v26  ;;  %v26613_v24 = vsub.f32 %v8862_v14, %v8909_v5  ;;  %v26640_v12 = vpack.c.bf16 %v26588_v34, %v26586_v26 }
 0xd1b   : > { %21203 = vmatprep.subr.bf16.mxu1 %v26295_v6 }
 0xd1c   : > { %21227 = vmatprep.subr.bf16.mxu0 %v26541_v44  ;;  %v9038_v61 = vsub.f32 %v26586_v26, %v28523_v16  ;;  %v26648_v9 = vpack.c.bf16 %v26613_v24, %v26611_v54 }
 0xd1d   : > { %21229 = vmatpush3.bf16.msra.mxu0 %v26541_v44 }
 0xd1e   : > { %21205 = vmatpush3.bf16.msra.mxu1 %v26295_v6  ;;  %v8903_v6 = vand.u32 4294901760, %v8860_v57  ;;  %v9039_v59 = vand.u32 4294901760, %v9038_v61  ;;  %v26656_v61 = vsub.f32 %v26399_v11, %v28670_v32 }
 0xd20   : > { %v26602_v18 = vsub.f32 %v8860_v57, %v8903_v6  ;;  %v26606_v49 = vpack.c.bf16 %v9046_v0, %v9039_v59  ;;  %v28519_v57 = vand.u32 4294901760, %v26611_v54  ;;  %v26661_v59 = vsub.f32 %v26404_v41, %v28671_v15 }
 0xd21   : > { %17640 = vmatmul.mubr.f32.vlgmr.msra.gmra.mrb[4].mxu1 %v26242_v7  ;;  %v8900_v7 = vand.u32 4294901760, %v8859_v19  ;;  %v28672_v41 = vand.u32 4294901760, %v26409_v3  ;;  %v26702_v15 = vsub.f32 %v26428_v46, %v8882_v31 }
 0xd22   : > { %v28520_v30 = vand.u32 4294901760, %v26602_v18  ;;  %v9066_v53 = vsub.f32 %v26611_v54, %v28519_v57  ;;  %v8834_v54 = vld [vmem:[#allocation3 + $0x320] sm:$0xff] }
 0xd23   : > { %v26545_v13 = vpack.c.bf16 %v8903_v6, %v8900_v7  ;;  %v26600_v28 = vsub.f32 %v8859_v19, %v8900_v7  ;;  %v28518_v7 = vand.u32 4294901760, %v26613_v24 }
 0xd24   : > { %v9059_v43 = vsub.f32 %v26602_v18, %v28520_v30  ;;  %v9067_v14 = vand.u32 4294901760, %v9066_v53  ;;  %v8981_v53 = vand.u32 4294901760, %v26656_v61 }
 0xd25   : > { %21231 = vmatprep.subr.bf16.mxu0 %v26545_v13  ;;  %v28521_v52 = vand.u32 4294901760, %v26600_v28  ;;  %v9073_v58 = vsub.f32 %v26613_v24, %v28518_v7  ;;  %v26644_v55 = vpack.c.bf16 %v26602_v18, %v26600_v28 }
 0xd26   : > { %21233 = vmatpush3.bf16.msra.mxu0 %v26545_v13  ;;  %v9060_v6 = vand.u32 4294901760, %v9059_v43 }
 0xd27   : > { %21235 = vmatprep.subr.bf16.mxu0 %v26561_v39  ;;  %v9052_v27 = vsub.f32 %v26600_v28, %v28521_v52  ;;  %v9074_v10 = vand.u32 4294901760, %v9073_v58  ;;  %v8988_v58 = vand.u32 4294901760, %v26661_v59 }
 0xd29   : > { %v9053_v19 = vand.u32 4294901760, %v9052_v27  ;;  %v26628_v5 = vpack.c.bf16 %v9074_v10, %v9067_v14  ;;  %v26668_v14 = vsub.f32 %v26407_v33, %v8876_v35  ;;  %v26676_v10 = vsub.f32 %v26409_v3, %v28672_v41 }
 0xd2a   : > { %21237 = vmatpush3.bf16.msra.mxu0 %v26561_v39  ;;  %v8982_v33 = vsub.f32 %v26656_v61, %v8981_v53 }
 0xd2b   : > { %21239 = vmatprep.subr.bf16.mxu0 %v26571_v8  ;;  %v26626_v47 = vpack.c.bf16 %v9060_v6, %v9053_v19  ;;  %v8995_v3 = vand.u32 4294901760, %v26668_v14  ;;  %v9002_v35 = vand.u32 4294901760, %v26676_v10 }
 0xd2d   : > { %v8996_v31 = vsub.f32 %v26668_v14, %v8995_v3  ;;  %v9003_v46 = vsub.f32 %v26676_v10, %v9002_v35  ;;  %v21342_v2 = vpack.c.bf16 %v9002_v35, %v8995_v3  ;;  %v26854_v3 = vld [vmem:[#allocation3 + $0x360] sm:$0xff] }
 0xd2f   : > { %v8997_v30 = vand.u32 4294901760, %v8996_v31  ;;  %v9004_v40 = vand.u32 4294901760, %v9003_v46 }
 0xdf4   : > { %v17641_v38 = vpop.f32.mrb[4].mxu1 }
 0xdf5   : > { %v8816_v0 = vadd.f32 %v17641_v38, %v13171_v1  ;;  %v8800_v27 = vpop.f32.mrb[5].mxu1 }
 0xdf6   : > { %v8815_v43 = vadd.f32 %v13171_v1, %v8800_v27 }
 0xdf7   : > { %v8818_v19 = vmax.f32 %v8816_v0, 0.0  ;;  %v26707_v0 = vsub.f32 %v26430_v22, %v8885_v60  ;;  %v9009_v60 = vand.u32 4294901760, %v26702_v15 }
 0xdf8   : > { %v8817_v6 = vmax.f32 %v8815_v43, 0.0 }
 0xdf9   : > { %v26671_v11 = vadd.f32 %v8818_v19, %v25400_v63  ;;  %v8989_v63 = vsub.f32 %v26661_v59, %v8988_v58  ;;  %v9016_v7 = vand.u32 4294901760, %v26707_v0  ;;  %v9010_v16 = vsub.f32 %v26702_v15, %v9009_v60 }
 0xdfa   : > { %v26679_v1 = vadd.f32 %v8817_v6, %v25408_v4  ;;  %v8983_v6 = vand.u32 4294901760, %v8982_v33 }
 0xdfb   : > { %v26682_v38 = vand.u32 4294901760, %v26671_v11  ;;  %v8990_v41 = vand.u32 4294901760, %v8989_v63  ;;  %v9017_v50 = vsub.f32 %v26707_v0, %v9016_v7  ;;  %v21346_v37 = vpack.c.bf16 %v9016_v7, %v9009_v60 }
 0xdfc   : > { %v26685_v32 = vand.u32 4294901760, %v26679_v1  ;;  %v28677_v7 = vand.u32 4294901760, %v26602_v18  ;;  %v9584_v60 = vand.u32 4294901760, %v26854_v3 }
 0xdfd   : > { %v26696_v4 = vsub.f32 %v26671_v11, %v26682_v38  ;;  %v21242_v57 = vpack.c.bf16 %v8990_v41, %v8983_v6  ;;  %v21246_v6 = vpack.c.bf16 %v9004_v40, %v8997_v30  ;;  %v9011_v41 = vand.u32 4294901760, %v9010_v16 }
 0xdfe   : > { %v26711_v27 = vsub.f32 %v26679_v1, %v26685_v32  ;;  %v9018_v31 = vand.u32 4294901760, %v9017_v50  ;;  %v21278_v50 = vpack.c.bf16 %v26676_v10, %v26668_v14  ;;  %v21282_v16 = vpack.c.bf16 %v26707_v0, %v26702_v15  ;;  %v8840_v10 = vld [vmem:[#allocation3 + $0x350] sm:$0xff] }
 0xdff   : > { %v8956_v43 = vand.u32 4294901760, %v26696_v4  ;;  %v21334_v40 = vpack.c.bf16 %v8974_v56, %v8967_v23  ;;  %v28673_v23 = vand.u32 4294901760, %v26576_v45  ;;  %v28675_v30 = vand.u32 4294901760, %v26588_v34 }
 0xe00   : > { %v26715_v19 = vand.u32 4294901760, %v26711_v27  ;;  %v28679_v45 = vand.u32 4294901760, %v26613_v24  ;;  %v8835_v24 = vld [vmem:[#allocation3 + $0x328] sm:$0xff] }
 0xe01   : > { %v8957_v22 = vsub.f32 %v26696_v4, %v8956_v43  ;;  %v21350_v56 = vpack.c.bf16 %v28673_v23, %v9023_v51 }
 0xe02   : > { %v8947_v33 = vsub.f32 %v26711_v27, %v26715_v19  ;;  %v21362_v51 = vpack.c.bf16 %v28679_v45, %v28678_v20 }
 0xe03   : > { %v8958_v52 = vand.u32 4294901760, %v8957_v22  ;;  %v21250_v22 = vpack.c.bf16 %v9018_v31, %v9011_v41 }
 0xe04   : > { %v26730_v63 = vand.u32 4294901760, %v8947_v33 }
 0xe06   : > { %17674 = vmatprep.mubr.f32.mxu0 %v26730_v63 }
 0xe07   : > { %17675 = vmatmul.mubr.f32.vlgmr.msra.gmra.mrb[6].mxu0 %v8958_v52  ;;  %v28674_v52 = vand.u32 4294901760, %v26586_v26  ;;  %v8831_v26 = vld [vmem:[#allocation3 + $0x308] sm:$0xff] }
 0xe08   : > { %21241 = vmatpush3.bf16.msra.mxu0 %v26571_v8  ;;  %17709 = vmatprep.mubr.f32.mxu0 %v26685_v32  ;;  %v21274_v8 = vpack.c.bf16 %v26661_v59, %v26656_v61  ;;  %v9551_v34 = vand.u32 4294901760, %v8831_v26  ;;  %v8838_v61 = vld [vmem:[#allocation3 + $0x340] sm:$0xff]  ;;  %v8839_v59 = vld [vmem:[#allocation3 + $0x348] sm:$0xff] }
 0xe09   : > { %21243 = vmatprep.subr.bf16.mxu0 %v21242_v57  ;;  %v9575_v14 = vand.u32 4294901760, %v8839_v59 }
 0xe0a   : > { %v26860_v15 = vsub.f32 %v8831_v26, %v9551_v34 }
 0xe0c   : > { %21245 = vmatpush3.bf16.msra.mxu0 %v21242_v57  ;;  %v28676_v57 = vand.u32 4294901760, %v26600_v28  ;;  %v8832_v28 = vld [vmem:[#allocation3 + $0x310] sm:$0xff]  ;;  %v9658_v41 = vand.u32 4294901760, %v26860_v15 }
 0xe0d   : > { %21247 = vmatprep.subr.bf16.mxu0 %v21246_v6  ;;  %v9554_v18 = vand.u32 4294901760, %v8832_v28 }
 0xe0e   : > { %v9659_v23 = vsub.f32 %v26860_v15, %v9658_v41 }
 0xe10   : > { %21249 = vmatpush3.bf16.msra.mxu0 %v21246_v6  ;;  %v9660_v45 = vand.u32 4294901760, %v9659_v23 }
 0xe11   : > { %21251 = vmatprep.subr.bf16.mxu0 %v21250_v22 }
 0xe14   : > { %21253 = vmatpush3.bf16.msra.mxu0 %v21250_v22  ;;  %v26873_v22 = vld [vmem:[#allocation3 + $0x370] sm:$0xff] }
 0xe15   : > { %21255 = vmatprep.subr.bf16.mxu0 %v26592_v62 }
 0xe18   : > { %21257 = vmatpush3.bf16.msra.mxu0 %v26592_v62  ;;  %v21338_v62 = vpack.c.bf16 %v8988_v58, %v8981_v53  ;;  %v9572_v58 = vand.u32 4294901760, %v8838_v61 }
 0xe19   : > { %21259 = vmatprep.subr.bf16.mxu0 %v26606_v49 }
 0xe1a   : > { %v26863_v0 = vpack.c.bf16 %v9575_v14, %v9572_v58 }
 0xe1c   : > { %21261 = vmatpush3.bf16.msra.mxu0 %v26606_v49  ;;  %v21354_v49 = vpack.c.bf16 %v28675_v30, %v28674_v52 }
 0xe1d   : > { %21263 = vmatprep.subr.bf16.mxu0 %v26626_v47 }
 0xe20   : > { %21265 = vmatpush3.bf16.msra.mxu0 %v26626_v47  ;;  %v21358_v47 = vpack.c.bf16 %v28677_v7, %v28676_v57 }
 0xe21   : > { %21267 = vmatprep.subr.bf16.mxu0 %v26628_v5 }
 0xe24   : > { %21269 = vmatpush3.bf16.msra.mxu0 %v26628_v5  ;;  %v9560_v5 = vand.u32 4294901760, %v8834_v54 }
 0xe25   : > { %21271 = vmatprep.subr.bf16.mxu0 %v26632_v48 }
 0xe26   : > { %v26899_v30 = vsub.f32 %v8834_v54, %v9560_v5 }
 0xe27   : > { %17710 = vmatmul.mubr.f32.vlgmr.msra.gmra.mrb[6].mxu0 %v26682_v38 }
 0xe28   : > { %21273 = vmatpush3.bf16.msra.mxu0 %v26632_v48  ;;  %17744 = vmatprep.mubr.f32.mxu0 %v26711_v27  ;;  %v9563_v48 = vand.u32 4294901760, %v8835_v24  ;;  %v9679_v26 = vand.u32 4294901760, %v26899_v30 }
 0xe29   : > { %21275 = vmatprep.subr.bf16.mxu0 %v21274_v8 }
 0xe2c   : > { %21277 = vmatpush3.bf16.msra.mxu0 %v21274_v8  ;;  %v26875_v8 = vld [vmem:[#allocation3 + $0x378] sm:$0xff] }
 0xe2d   : > { %21279 = vmatprep.subr.bf16.mxu0 %v21278_v50 }
 0xe30   : > { %21281 = vmatpush3.bf16.msra.mxu0 %v21278_v50  ;;  %v26877_v50 = vsub.f32 %v8832_v28, %v9554_v18 }
 0xe31   : > { %21283 = vmatprep.subr.bf16.mxu0 %v21282_v16 }
 0xe34   : > { %21285 = vmatpush3.bf16.msra.mxu0 %v21282_v16 }
 0xe35   : > { %21287 = vmatprep.subr.bf16.mxu0 %v26636_v42 }
 0xe38   : > { %21289 = vmatpush3.bf16.msra.mxu0 %v26636_v42  ;;  %v8836_v42 = vld [vmem:[#allocation3 + $0x330] sm:$0xff] }
 0xe39   : > { %21291 = vmatprep.subr.bf16.mxu0 %v26640_v12 }
 0xe3c   : > { %21293 = vmatpush3.bf16.msra.mxu0 %v26640_v12  ;;  %v8837_v12 = vld [vmem:[#allocation3 + $0x338] sm:$0xff] }
 0xe3d   : > { %21295 = vmatprep.subr.bf16.mxu0 %v26644_v55 }
 0xe40   : > { %21297 = vmatpush3.bf16.msra.mxu0 %v26644_v55  ;;  %v26847_v55 = vpack.c.bf16 %v9563_v48, %v9560_v5  ;;  %v9680_v5 = vsub.f32 %v26899_v30, %v9679_v26 }
 0xe41   : > { %21299 = vmatprep.subr.bf16.mxu0 %v26648_v9 }
 0xe44   : > { %21301 = vmatpush3.bf16.msra.mxu0 %v26648_v9  ;;  %v9566_v9 = vand.u32 4294901760, %v8836_v42 }
 0xe45   : > { %21303 = vmatprep.subr.bf16.mxu0 %v26418_v25 }
 0xe46   : > { %v26903_v57 = vsub.f32 %v8836_v42, %v9566_v9 }
 0xe47   : > { %17745 = vmatmul.mubr.f32.vlgmr.msra.gmra.mrb[6].mxu0 %v26696_v4  ;;  %v26856_v4 = vld [vmem:[#allocation3 + $0x368] sm:$0xff] }
 0xe48   : > { %21305 = vmatpush3.bf16.msra.mxu0 %v26418_v25  ;;  %17779 = vmatprep.mubr.f32.mxu0 %v26715_v19  ;;  %v9587_v33 = vand.u32 4294901760, %v26856_v4 }
 0xe49   : > { %21307 = vmatprep.subr.bf16.mxu0 %v26426_v36 }
 0xe4c   : > { %21309 = vmatpush3.bf16.msra.mxu0 %v26426_v36 }
 0xe4d   : > { %21311 = vmatprep.subr.bf16.mxu0 %v26441_v21 }
 0xe50   : > { %21313 = vmatpush3.bf16.msra.mxu0 %v26441_v21 }
 0xe51   : > { %21315 = vmatprep.subr.bf16.mxu0 %v26453_v29 }
 0xe54   : > { %21317 = vmatpush3.bf16.msra.mxu0 %v26453_v29 }
 0xe55   : > { %21319 = vmatprep.subr.bf16.mxu0 %v26537_v17 }
 0xe58   : > { %21321 = vmatpush3.bf16.msra.mxu0 %v26537_v17 }
 0xe59   : > { %21323 = vmatprep.subr.bf16.mxu0 %v26541_v44 }
 0xe5c   : > { %21325 = vmatpush3.bf16.msra.mxu0 %v26541_v44 }
 0xe5d   : > { %21327 = vmatprep.subr.bf16.mxu0 %v26545_v13 }
 0xe60   : > { %21329 = vmatpush3.bf16.msra.mxu0 %v26545_v13 }
 0xe61   : > { %21331 = vmatprep.subr.bf16.mxu0 %v26561_v39 }
 0xe64   : > { %21333 = vmatpush3.bf16.msra.mxu0 %v26561_v39 }
 0xe65   : > { %21335 = vmatprep.subr.bf16.mxu0 %v21334_v40 }
 0xe67   : > { %17780 = vmatmul.mubr.f32.vlgmr.msra.gmra.mrb[6].mxu0 %v8956_v43  ;;  %v9578_v43 = vand.u32 4294901760, %v8840_v10 }
 0xe68   : > { %21337 = vmatpush3.bf16.msra.mxu0 %v21334_v40  ;;  %17814 = vmatprep.mubr.f32.mxu0 %v26685_v32  ;;  %v26885_v40 = vpack.c.bf16 %v9587_v33, %v9584_v60 }
 0xe69   : > { %21339 = vmatprep.subr.bf16.mxu0 %v21338_v62 }
 0xe6c   : > { %21341 = vmatpush3.bf16.msra.mxu0 %v21338_v62  ;;  %v9590_v62 = vand.u32 4294901760, %v26873_v22 }
 0xe6d   : > { %21343 = vmatprep.subr.bf16.mxu0 %v21342_v2 }
 0xe70   : > { %21345 = vmatpush3.bf16.msra.mxu0 %v21342_v2  ;;  %v9593_v2 = vand.u32 4294901760, %v26875_v8 }
 0xe71   : > { %21347 = vmatprep.subr.bf16.mxu0 %v21346_v37 }
 0xe74   : > { %21349 = vmatpush3.bf16.msra.mxu0 %v21346_v37 }
 0xe75   : > { %21351 = vmatprep.subr.bf16.mxu0 %v21350_v56 }
 0xe78   : > { %21353 = vmatpush3.bf16.msra.mxu0 %v21350_v56  ;;  %v9665_v56 = vand.u32 4294901760, %v26877_v50 }
 0xe79   : > { %21355 = vmatprep.subr.bf16.mxu0 %v21354_v49 }
 0xe7c   : > { %21357 = vmatpush3.bf16.msra.mxu0 %v21354_v49  ;;  %v26901_v49 = vsub.f32 %v8835_v24, %v9563_v48 }
 0xe7d   : > { %21359 = vmatprep.subr.bf16.mxu0 %v21358_v47 }
 0xe80   : > { %21361 = vmatpush3.bf16.msra.mxu0 %v21358_v47  ;;  %v26912_v47 = vpack.c.bf16 %v9593_v2, %v9590_v62 }
 0xe81   : > { %21363 = vmatprep.subr.bf16.mxu0 %v21362_v51 }
 0xe84   : > { %21365 = vmatpush3.bf16.msra.mxu0 %v21362_v51  ;;  %v9666_v51 = vsub.f32 %v26877_v50, %v9665_v56 }
 0xe85   : > { %21367 = vmatprep.subr.bf16.mxu0 %v26418_v25 }
 0xe86   : > { %v9667_v54 = vand.u32 4294901760, %v9666_v51  ;;  %v26968_v51 = vsub.f32 %v26856_v4, %v9587_v33  ;;  %v26981_v4 = vsub.f32 %v26873_v22, %v9590_v62  ;;  %v26986_v33 = vsub.f32 %v26875_v8, %v9593_v2 }
 0xe87   : > { %17815 = vmatmul.mubr.f32.vlgmr.msra.gmra.mrb[6].mxu0 %v26682_v38 }
 0xe88   : > { %21369 = vmatpush3.bf16.msra.mxu0 %v26418_v25  ;;  %17849 = vmatprep.mubr.f32.mxu0 %v26685_v32  ;;  %v8830_v25 = vld [vmem:[#allocation3 + $0x300] sm:$0xff]  ;;  %v9749_v22 = vand.u32 4294901760, %v26981_v4  ;;  %v28529_v62 = vand.u32 4294901760, %v26986_v33 }
 0xe89   : > { %21371 = vmatprep.subr.bf16.mxu0 %v26426_v36 }
 0xe8c   : > { %21373 = vmatpush3.bf16.msra.mxu0 %v26426_v36  ;;  %v9548_v36 = vand.u32 4294901760, %v8830_v25 }
 0xe8d   : > { %21375 = vmatprep.subr.bf16.mxu0 %v26441_v21 }
 0xe8e   : > { %v26858_v35 = vsub.f32 %v8830_v25, %v9548_v36 }
 0xe90   : > { %21377 = vmatpush3.bf16.msra.mxu0 %v26441_v21  ;;  %v8833_v21 = vld [vmem:[#allocation3 + $0x318] sm:$0xff]  ;;  %v9651_v6 = vand.u32 4294901760, %v26858_v35 }
 0xe91   : > { %21379 = vmatprep.subr.bf16.mxu0 %v26453_v29 }
 0xe92   : > { %v9652_v37 = vsub.f32 %v26858_v35, %v9651_v6 }
 0xe94   : > { %21381 = vmatpush3.bf16.msra.mxu0 %v26453_v29  ;;  %v26837_v29 = vpack.c.bf16 %v9551_v34, %v9548_v36  ;;  %v9653_v20 = vand.u32 4294901760, %v9652_v37  ;;  %v9686_v36 = vand.u32 4294901760, %v26901_v49  ;;  %v9693_v34 = vand.u32 4294901760, %v26903_v57 }
 0xe95   : > { %21383 = vmatprep.subr.bf16.mxu0 %v26537_v17 }
 0xe96   : > { %v9687_v48 = vsub.f32 %v26901_v49, %v9686_v36  ;;  %v9694_v42 = vsub.f32 %v26903_v57, %v9693_v34 }
 0xe98   : > { %21385 = vmatpush3.bf16.msra.mxu0 %v26537_v17  ;;  %v9557_v17 = vand.u32 4294901760, %v8833_v21  ;;  %v9688_v37 = vand.u32 4294901760, %v9687_v48  ;;  %v9695_v23 = vand.u32 4294901760, %v9694_v42 }
 0xe99   : > { %21387 = vmatprep.subr.bf16.mxu0 %v26541_v44 }
 0xe9a   : > { %v26879_v16 = vsub.f32 %v8833_v21, %v9557_v17  ;;  %v21430_v21 = vpack.c.bf16 %v9660_v45, %v9653_v20 }
 0xe9c   : > { %21389 = vmatpush3.bf16.msra.mxu0 %v26541_v44  ;;  %v26841_v44 = vpack.c.bf16 %v9557_v17, %v9554_v18  ;;  %v9672_v52 = vand.u32 4294901760, %v26879_v16  ;;  %v26926_v18 = vsub.f32 %v8838_v61, %v9572_v58  ;;  %v26928_v17 = vsub.f32 %v8839_v59, %v9575_v14 }
 0xe9d   : > { %21391 = vmatprep.subr.bf16.mxu0 %v26545_v13  ;;  %v26946_v61 = vsub.f32 %v8840_v10, %v9578_v43  ;;  %v9681_v14 = vand.u32 4294901760, %v9680_v5 }
 0xe9e   : > { %v9673_v25 = vsub.f32 %v26879_v16, %v9672_v52 }
 0xea0   : > { %21393 = vmatpush3.bf16.msra.mxu0 %v26545_v13  ;;  %v28680_v13 = vmov 0.0   ;;  %v9674_v24 = vand.u32 4294901760, %v9673_v25 }
 0xea1   : > { %21395 = vmatprep.subr.bf16.mxu0 %v26561_v39 }
 0xea2   : > { %v21434_v58 = vpack.c.bf16 %v9674_v24, %v9667_v54 }
 0xea4   : > { %21397 = vmatpush3.bf16.msra.mxu0 %v26561_v39  ;;  %v9569_v39 = vand.u32 4294901760, %v8837_v12 }
 0xea5   : > { %21399 = vmatprep.subr.bf16.mxu0 %v26837_v29 }
 0xea6   : > { %v26851_v53 = vpack.c.bf16 %v9569_v39, %v9566_v9  ;;  %v26905_v7 = vsub.f32 %v8837_v12, %v9569_v39  ;;  %v9707_v9 = vand.u32 4294901760, %v26926_v18  ;;  %v9714_v39 = vand.u32 4294901760, %v26928_v17 }
 0xea7   : > { %17850 = vmatmul.mubr.f32.vlgmr.msra.gmra.mrb[6].mxu0 %v26682_v38  ;;  %v8841_v38 = vld [vmem:[#allocation3 + $0x358] sm:$0xff] }
 0xea8   : > { %21401 = vmatpush3.bf16.msra.mxu0 %v26837_v29  ;;  %17884 = vmatprep.mubr.f32.mxu0 %v28680_v13  ;;  %v9581_v46 = vand.u32 4294901760, %v8841_v38  ;;  %v9700_v28 = vand.u32 4294901760, %v26905_v7  ;;  %v9708_v45 = vsub.f32 %v26926_v18, %v9707_v9  ;;  %v9715_v10 = vsub.f32 %v26928_v17, %v9714_v39 }
 0xea9   : > { %21403 = vmatprep.subr.bf16.mxu0 %v26841_v44 }
 0xeaa   : > { %v26871_v31 = vpack.c.bf16 %v9581_v46, %v9578_v43  ;;  %v9701_v12 = vsub.f32 %v26905_v7, %v9700_v28  ;;  %v26948_v59 = vsub.f32 %v8841_v38, %v9581_v46  ;;  %v9721_v38 = vand.u32 4294901760, %v26946_v61 }
 0xeab   : > { %v21438_v46 = vpack.c.bf16 %v9688_v37, %v9681_v14  ;;  %v9716_v54 = vand.u32 4294901760, %v9715_v10 }
 0xeac   : > { %21405 = vmatpush3.bf16.msra.mxu0 %v26841_v44  ;;  %v9702_v20 = vand.u32 4294901760, %v9701_v12  ;;  %v9728_v43 = vand.u32 4294901760, %v26948_v59  ;;  %v9722_v24 = vsub.f32 %v26946_v61, %v9721_v38 }
 0xead   : > { %21407 = vmatprep.subr.bf16.mxu0 %v26847_v55 }
 0xeae   : > { %v21442_v25 = vpack.c.bf16 %v9702_v20, %v9695_v23  ;;  %v9729_v5 = vsub.f32 %v26948_v59, %v9728_v43  ;;  %v9723_v42 = vand.u32 4294901760, %v9722_v24  ;;  %v9750_v23 = vsub.f32 %v26981_v4, %v9749_v22  ;;  %v27007_v24 = vld [vmem:[#allocation5 + $0x380] sm:$0xff] }
 0xeaf   : > { %v9757_v20 = vsub.f32 %v26986_v33, %v28529_v62 }
 0xeb0   : > { %21409 = vmatpush3.bf16.msra.mxu0 %v26847_v55  ;;  %v9730_v12 = vand.u32 4294901760, %v9729_v5  ;;  %v9751_v10 = vand.u32 4294901760, %v9750_v23  ;;  %v27009_v5 = vld [vmem:[#allocation5 + $0x388] sm:$0xff] }
 0xeb1   : > { %21411 = vmatprep.subr.bf16.mxu0 %v26851_v53 }
 0xeb2   : > { %v21450_v8 = vpack.c.bf16 %v9730_v12, %v9723_v42  ;;  %v28528_v42 = vand.u32 4294901760, %v27007_v24  ;;  %v28525_v12 = vand.u32 4294901760, %v27009_v5 }
 0xeb4   : > { %21413 = vmatpush3.bf16.msra.mxu0 %v26851_v53 }
 0xeb5   : > { %21415 = vmatprep.subr.bf16.mxu0 %v26863_v0 }
 0xeb8   : > { %21417 = vmatpush3.bf16.msra.mxu0 %v26863_v0 }
 0xeb9   : > { %21419 = vmatprep.subr.bf16.mxu0 %v26871_v31 }
 0xebc   : > { %21421 = vmatpush3.bf16.msra.mxu0 %v26871_v31 }
 0xebd   : > { %21423 = vmatprep.subr.bf16.mxu0 %v26885_v40 }
 0xec0   : > { %21425 = vmatpush3.bf16.msra.mxu0 %v26885_v40 }
 0xec1   : > { %21427 = vmatprep.subr.bf16.mxu0 %v26912_v47 }
 0xec4   : > { %21429 = vmatpush3.bf16.msra.mxu0 %v26912_v47 }
 0xec5   : > { %21431 = vmatprep.subr.bf16.mxu0 %v21430_v21 }
 0xec7   : > { %17885 = vmatmul.mubr.f32.vlgmr.msra.gmra.mrb[6].mxu0 %v26730_v63  ;;  %v26963_v63 = vsub.f32 %v26854_v3, %v9584_v60  ;;  %v9742_v60 = vand.u32 4294901760, %v26968_v51 }
 0xec8   : > { %21433 = vmatpush3.bf16.msra.mxu0 %v21430_v21  ;;  %17919 = vmatprep.mubr.f32.mxu0 %v28680_v13  ;;  %v9709_v21 = vand.u32 4294901760, %v9708_v45 }
 0xec9   : > { %21435 = vmatprep.subr.bf16.mxu0 %v21434_v58  ;;  %v9735_v3 = vand.u32 4294901760, %v26963_v63  ;;  %v9743_v14 = vsub.f32 %v26968_v51, %v9742_v60 }
 0xeca   : > { %v21446_v48 = vpack.c.bf16 %v9716_v54, %v9709_v21  ;;  %v21462_v21 = vpack.c.bf16 %v26860_v15, %v26858_v35  ;;  %v21466_v54 = vpack.c.bf16 %v26879_v16, %v26877_v50  ;;  %v21534_v35 = vpack.c.bf16 %v9686_v36, %v9679_v26 }
 0xecb   : > { %v9744_v37 = vand.u32 4294901760, %v9743_v14  ;;  %v21538_v15 = vpack.c.bf16 %v9700_v28, %v9693_v34  ;;  %v28681_v50 = vand.u32 4294901760, %v26986_v33  ;;  %v28682_v26 = vand.u32 4294901760, %v27007_v24 }
 0xecc   : > { %21437 = vmatpush3.bf16.msra.mxu0 %v21434_v58  ;;  %v9736_v58 = vsub.f32 %v26963_v63, %v9735_v3  ;;  %v28683_v34 = vand.u32 4294901760, %v27009_v5 }
 0xecd   : > { %21439 = vmatprep.subr.bf16.mxu0 %v21438_v46  ;;  %v21554_v16 = vpack.c.bf16 %v28681_v50, %v9749_v22  ;;  %v27160_v36 = vsub.f32 %v27007_v24, %v28682_v26 }
 0xece   : > { %v9737_v2 = vand.u32 4294901760, %v9736_v58  ;;  %v27016_v58 = vld [vmem:[#allocation5 + $0x398] sm:$0xff]  ;;  %v27165_v28 = vsub.f32 %v27009_v5, %v28683_v34 }
 0xecf   : > { %v28526_v23 = vand.u32 4294901760, %v27016_v58 }
 0xed0   : > { %21441 = vmatpush3.bf16.msra.mxu0 %v21438_v46  ;;  %v21454_v45 = vpack.c.bf16 %v9744_v37, %v9737_v2  ;;  %v9758_v46 = vand.u32 4294901760, %v9757_v20  ;;  %v27021_v2 = vld [vmem:[#allocation5 + $0x3a8] sm:$0xff]  ;;  %v21470_v37 = vpack.c.bf16 %v26901_v49, %v26899_v30  ;;  %v27030_v20 = vpack.c.bf16 %v28525_v12, %v28528_v42  ;;  %v10272_v49 = vld [vmem:[#allocation5 + $0x3e0] sm:$0xff] }
 0xed1   : > { %21443 = vmatprep.subr.bf16.mxu0 %v21442_v25  ;;  %v21474_v12 = vpack.c.bf16 %v26905_v7, %v26903_v57  ;;  %v21478_v42 = vpack.c.bf16 %v26928_v17, %v26926_v18  ;;  %v10273_v57 = vld [vmem:[#allocation5 + $0x3e8] sm:$0xff]  ;;  %v10274_v18 = vld [vmem:[#allocation5 + $0x3f0] sm:$0xff]  ;;  %v10275_v17 = vld [vmem:[#allocation5 + $0x3f8] sm:$0xff] }
 0xed2   : > { %21591 = vmatprep.subr.bf16.mxu1 %v27030_v20  ;;  %v10316_v7 = vand.u32 4294901760, %v10273_v57 }
 0xed3   : > { %21593 = vmatpush3.bf16.msra.mxu1 %v27030_v20 }
 0xed4   : > { %21445 = vmatpush3.bf16.msra.mxu0 %v21442_v25  ;;  %v21458_v25 = vpack.c.bf16 %v9758_v46, %v9751_v10  ;;  %v28530_v10 = vand.u32 4294901760, %v27021_v2 }
 0xed5   : > { %21447 = vmatprep.subr.bf16.mxu0 %v21446_v48 }
 0xed8   : > { %21449 = vmatpush3.bf16.msra.mxu0 %v21446_v48  ;;  %v27011_v48 = vld [vmem:[#allocation5 + $0x390] sm:$0xff] }
 0xed9   : > { %21451 = vmatprep.subr.bf16.mxu0 %v21450_v8  ;;  %v28527_v14 = vand.u32 4294901760, %v27011_v48 }
 0xedb   : > { %v27038_v46 = vpack.c.bf16 %v28526_v23, %v28527_v14 }
 0xedc   : > { %21453 = vmatpush3.bf16.msra.mxu0 %v21450_v8  ;;  %v27019_v8 = vld [vmem:[#allocation5 + $0x3a0] sm:$0xff] }
 0xedd   : > { %21455 = vmatprep.subr.bf16.mxu0 %v21454_v45  ;;  %21595 = vmatprep.subr.bf16.mxu1 %v27038_v46 }
 0xede   : > { %21597 = vmatpush3.bf16.msra.mxu1 %v27038_v46 }
 0xee0   : > { %21457 = vmatpush3.bf16.msra.mxu0 %v21454_v45  ;;  %v10289_v45 = vand.u32 4294901760, %v27019_v8 }
 0xee1   : > { %21459 = vmatprep.subr.bf16.mxu0 %v21458_v25 }
 0xee2   : > { %v27053_v23 = vpack.c.bf16 %v28530_v10, %v10289_v45  ;;  %v21482_v10 = vpack.c.bf16 %v26948_v59, %v26946_v61  ;;  %v10380_v61 = vand.u32 4294901760, %v27160_v36  ;;  %v10387_v59 = vand.u32 4294901760, %v27165_v28 }
 0xee4   : > { %21461 = vmatpush3.bf16.msra.mxu0 %v21458_v25  ;;  %v27040_v25 = vld [vmem:[#allocation5 + $0x3b0] sm:$0xff]  ;;  %21599 = vmatprep.subr.bf16.mxu1 %v27053_v23 }
 0xee5   : > { %21463 = vmatprep.subr.bf16.mxu0 %v21462_v21  ;;  %v10295_v14 = vand.u32 4294901760, %v27040_v25  ;;  %21601 = vmatpush3.bf16.msra.mxu1 %v27053_v23 }
 0xee7   : > { %17920 = vmatmul.mubr.f32.vlgmr.msra.gmra.mrb[6].mxu0 %v26685_v32 }
 0xee8   : > { %21465 = vmatpush3.bf16.msra.mxu0 %v21462_v21  ;;  %17954 = vmatprep.mubr.f32.mxu0 %v28680_v13  ;;  %v27042_v21 = vld [vmem:[#allocation5 + $0x3b8] sm:$0xff] }
 0xee9   : > { %21467 = vmatprep.subr.bf16.mxu0 %v21466_v54 }
 0xeec   : > { %21469 = vmatpush3.bf16.msra.mxu0 %v21466_v54  ;;  %v10298_v54 = vand.u32 4294901760, %v27042_v21 }
 0xeed   : > { %21471 = vmatprep.subr.bf16.mxu0 %v21470_v37 }
 0xeee   : > { %v27065_v62 = vpack.c.bf16 %v10298_v54, %v10295_v14 }
 0xef0   : > { %21473 = vmatpush3.bf16.msra.mxu0 %v21470_v37  ;;  %21603 = vmatprep.subr.bf16.mxu1 %v27065_v62  ;;  %v21486_v37 = vpack.c.bf16 %v26968_v51, %v26963_v63  ;;  %v10388_v63 = vsub.f32 %v27165_v28, %v10387_v59 }
 0xef1   : > { %21475 = vmatprep.subr.bf16.mxu0 %v21474_v12  ;;  %21605 = vmatpush3.bf16.msra.mxu1 %v27065_v62 }
 0xef4   : > { %21477 = vmatpush3.bf16.msra.mxu0 %v21474_v12  ;;  %v21490_v12 = vpack.c.bf16 %v26986_v33, %v26981_v4 }
 0xef5   : > { %21479 = vmatprep.subr.bf16.mxu0 %v21478_v42 }
 0xef8   : > { %21481 = vmatpush3.bf16.msra.mxu0 %v21478_v42  ;;  %v21530_v42 = vpack.c.bf16 %v9672_v52, %v9665_v56  ;;  %v10271_v52 = vld [vmem:[#allocation5 + $0x3d8] sm:$0xff] }
 0xef9   : > { %21483 = vmatprep.subr.bf16.mxu0 %v21482_v10  ;;  %v10310_v30 = vand.u32 4294901760, %v10271_v52 }
 0xefc   : > { %21485 = vmatpush3.bf16.msra.mxu0 %v21482_v10 }
 0xefd   : > { %21487 = vmatprep.subr.bf16.mxu0 %v21486_v37 }
 0xf00   : > { %21489 = vmatpush3.bf16.msra.mxu0 %v21486_v37 }
 0xf01   : > { %21491 = vmatprep.subr.bf16.mxu0 %v21490_v12 }
 0xf04   : > { %21493 = vmatpush3.bf16.msra.mxu0 %v21490_v12  ;;  %v27198_v12 = vsub.f32 %v10271_v52, %v10310_v30 }
 0xf05   : > { %21495 = vmatprep.subr.bf16.mxu0 %v26837_v29 }
 0xf07   : > { %17955 = vmatmul.mubr.f32.vlgmr.msra.gmra.mrb[6].mxu0 %v26711_v27  ;;  %v21526_v27 = vpack.c.bf16 %v9658_v41, %v9651_v6  ;;  %v21546_v6 = vpack.c.bf16 %v9728_v43, %v9721_v38  ;;  %v21550_v41 = vpack.c.bf16 %v9742_v60, %v9735_v3  ;;  %v10381_v43 = vsub.f32 %v27160_v36, %v10380_v61 }
 0xf08   : > { %21497 = vmatpush3.bf16.msra.mxu0 %v26837_v29  ;;  %17989 = vmatprep.mubr.f32.mxu0 %v28680_v13  ;;  %v10389_v3 = vand.u32 4294901760, %v10388_v63  ;;  %v27242_v63 = vpack.c.bf16 %v27165_v28, %v27160_v36 }
 0xf09   : > { %21499 = vmatprep.subr.bf16.mxu0 %v26841_v44  ;;  %v10382_v51 = vand.u32 4294901760, %v10381_v43 }
 0xf0b   : > { %v27181_v60 = vpack.c.bf16 %v10389_v3, %v10382_v51 }
 0xf0c   : > { %21501 = vmatpush3.bf16.msra.mxu0 %v26841_v44 }
 0xf0d   : > { %21503 = vmatprep.subr.bf16.mxu0 %v26847_v55 }
 0xf10   : > { %21505 = vmatpush3.bf16.msra.mxu0 %v26847_v55 }
 0xf11   : > { %21507 = vmatprep.subr.bf16.mxu0 %v26851_v53 }
 0xf14   : > { %21509 = vmatpush3.bf16.msra.mxu0 %v26851_v53 }
 0xf15   : > { %21511 = vmatprep.subr.bf16.mxu0 %v26863_v0 }
 0xf18   : > { %21513 = vmatpush3.bf16.msra.mxu0 %v26863_v0 }
 0xf19   : > { %21515 = vmatprep.subr.bf16.mxu0 %v26871_v31 }
 0xf1c   : > { %21517 = vmatpush3.bf16.msra.mxu0 %v26871_v31 }
 0xf1d   : > { %21519 = vmatprep.subr.bf16.mxu0 %v26885_v40 }
 0xf20   : > { %21521 = vmatpush3.bf16.msra.mxu0 %v26885_v40 }
 0xf21   : > { %21523 = vmatprep.subr.bf16.mxu0 %v26912_v47 }
 0xf24   : > { %21525 = vmatpush3.bf16.msra.mxu0 %v26912_v47 }
 0xf25   : > { %21527 = vmatprep.subr.bf16.mxu0 %v21526_v27 }
 0xf27   : > { %17990 = vmatmul.mubr.f32.vlgmr.msra.gmra.mrb[6].mxu0 %v26715_v19  ;;  %v21542_v19 = vpack.c.bf16 %v9714_v39, %v9707_v9  ;;  %v10319_v9 = vand.u32 4294901760, %v10274_v18  ;;  %v10322_v39 = vand.u32 4294901760, %v10275_v17 }
 0xf28   : > { %21529 = vmatpush3.bf16.msra.mxu0 %v21526_v27  ;;  %18024 = vmatprep.mubr.f32.mxu0 %v28680_v13 }
 0xf29   : > { %21531 = vmatprep.subr.bf16.mxu0 %v21530_v42  ;;  %v27171_v38 = vpack.c.bf16 %v10322_v39, %v10319_v9 }
 0xf2c   : > { %21533 = vmatpush3.bf16.msra.mxu0 %v21530_v42 }
 0xf2d   : > { %21535 = vmatprep.subr.bf16.mxu0 %v21534_v35 }
 0xf30   : > { %21537 = vmatpush3.bf16.msra.mxu0 %v21534_v35 }
 0xf31   : > { %21539 = vmatprep.subr.bf16.mxu0 %v21538_v15 }
 0xf34   : > { %21541 = vmatpush3.bf16.msra.mxu0 %v21538_v15  ;;  %v28535_v15 = vand.u32 4294901760, %v27198_v12 }
 0xf35   : > { %21543 = vmatprep.subr.bf16.mxu0 %v21542_v19 }
 0xf38   : > { %21545 = vmatpush3.bf16.msra.mxu0 %v21542_v19 }
 0xf39   : > { %21547 = vmatprep.subr.bf16.mxu0 %v21546_v6 }
 0xf3c   : > { %21549 = vmatpush3.bf16.msra.mxu0 %v21546_v6 }
 0xf3d   : > { %21551 = vmatprep.subr.bf16.mxu0 %v21550_v41 }
 0xf40   : > { %21553 = vmatpush3.bf16.msra.mxu0 %v21550_v41  ;;  %v10458_v41 = vsub.f32 %v27198_v12, %v28535_v15 }
 0xf41   : > { %21555 = vmatprep.subr.bf16.mxu0 %v21554_v16 }
 0xf44   : > { %21557 = vmatpush3.bf16.msra.mxu0 %v21554_v16  ;;  %v27212_v16 = vsub.f32 %v10273_v57, %v10316_v7 }
 0xf45   : > { %21559 = vmatprep.subr.bf16.mxu0 %v26837_v29 }
 0xf47   : > { %18025 = vmatmul.mubr.f32.vlgmr.msra.gmra.mrb[6].mxu0 %v26685_v32 }
 0xf48   : > { %21561 = vmatpush3.bf16.msra.mxu0 %v26837_v29  ;;  %18059 = vmatprep.mubr.f32.mxu0 %v28680_v13  ;;  %v10268_v29 = vld [vmem:[#allocation5 + $0x3c0] sm:$0xff] }
 0xf49   : > { %21563 = vmatprep.subr.bf16.mxu0 %v26841_v44 }
 0xf4c   : > { %21565 = vmatpush3.bf16.msra.mxu0 %v26841_v44  ;;  %v10269_v44 = vld [vmem:[#allocation5 + $0x3c8] sm:$0xff] }
 0xf4d   : > { %21567 = vmatprep.subr.bf16.mxu0 %v26847_v55 }
 0xf50   : > { %21569 = vmatpush3.bf16.msra.mxu0 %v26847_v55  ;;  %v10301_v55 = vand.u32 4294901760, %v10268_v29 }
 0xf51   : > { %21571 = vmatprep.subr.bf16.mxu0 %v26851_v53 }
 0xf52   : > { %v27184_v4 = vsub.f32 %v10268_v29, %v10301_v55 }
 0xf54   : > { %21573 = vmatpush3.bf16.msra.mxu0 %v26851_v53  ;;  %v10304_v53 = vand.u32 4294901760, %v10269_v44  ;;  %v28538_v22 = vand.u32 4294901760, %v27184_v4 }
 0xf55   : > { %21575 = vmatprep.subr.bf16.mxu0 %v26863_v0 }
 0xf56   : > { %v27147_v56 = vpack.c.bf16 %v10304_v53, %v10301_v55  ;;  %v27186_v33 = vsub.f32 %v10269_v44, %v10304_v53  ;;  %v10437_v5 = vsub.f32 %v27184_v4, %v28538_v22  ;;  %v10459_v44 = vand.u32 4294901760, %v10458_v41 }
 0xf57   : > { %v28533_v53 = vand.u32 4294901760, %v27212_v16  ;;  %v28685_v41 = vand.u32 4294901760, %v27016_v58 }
 0xf58   : > { %21577 = vmatpush3.bf16.msra.mxu0 %v26863_v0  ;;  %v10270_v0 = vld [vmem:[#allocation5 + $0x3d0] sm:$0xff]  ;;  %21607 = vmatprep.subr.bf16.mxu1 %v27147_v56  ;;  %v28537_v24 = vand.u32 4294901760, %v27186_v33  ;;  %v10438_v27 = vand.u32 4294901760, %v10437_v5  ;;  %v27246_v51 = vpack.c.bf16 %v27186_v33, %v27184_v4 }
 0xf59   : > { %21579 = vmatprep.subr.bf16.mxu0 %v26871_v31  ;;  %21609 = vmatpush3.bf16.msra.mxu1 %v27147_v56 }
 0xf5a   : > { %v10444_v10 = vsub.f32 %v27186_v33, %v28537_v24 }
 0xf5c   : > { %21581 = vmatpush3.bf16.msra.mxu0 %v26871_v31  ;;  %v10307_v31 = vand.u32 4294901760, %v10270_v0  ;;  %v10445_v42 = vand.u32 4294901760, %v10444_v10 }
 0xf5d   : > { %21583 = vmatprep.subr.bf16.mxu0 %v26885_v40 }
 0xf5e   : > { %v27196_v37 = vsub.f32 %v10270_v0, %v10307_v31  ;;  %v27202_v19 = vpack.c.bf16 %v10445_v42, %v10438_v27  ;;  %v13172_v27 = vld [vmem:[%s28404_s2 + $0x3] ss:$0 sm:$0xff]  ;;  %v28684_v42 = vand.u32 4294901760, %v27011_v48 }
 0xf60   : > { %21585 = vmatpush3.bf16.msra.mxu0 %v26885_v40  ;;  %v27151_v40 = vpack.c.bf16 %v10310_v30, %v10307_v31  ;;  %v28536_v35 = vand.u32 4294901760, %v27196_v37  ;;  %v27221_v31 = vsub.f32 %v10274_v18, %v10319_v9  ;;  %v27223_v30 = vsub.f32 %v10275_v17, %v10322_v39 }
 0xf61   : > { %21587 = vmatprep.subr.bf16.mxu0 %v26912_v47  ;;  %v27250_v3 = vpack.c.bf16 %v27198_v12, %v27196_v37 }
 0xf62   : > { %21611 = vmatprep.subr.bf16.mxu1 %v27151_v40  ;;  %v10451_v6 = vsub.f32 %v27196_v37, %v28536_v35  ;;  %v27258_v10 = vpack.c.bf16 %v27223_v30, %v27221_v31 }
 0xf63   : > { %21613 = vmatpush3.bf16.msra.mxu1 %v27151_v40 }
 0xf64   : > { %21589 = vmatpush3.bf16.msra.mxu0 %v26912_v47  ;;  %v10452_v29 = vand.u32 4294901760, %v10451_v6  ;;  %v27266_v6 = vsub.f32 %v27011_v48, %v28684_v42 }
 0xf66   : > { %v27216_v0 = vpack.c.bf16 %v10459_v44, %v10452_v29  ;;  %v27271_v29 = vsub.f32 %v27016_v58, %v28685_v41 }
 0xf67   : > { %18060 = vmatmul.mubr.f32.vlgmr.msra.gmra.mrb[6].mxu0 %v26685_v32  ;;  %v10313_v32 = vand.u32 4294901760, %v10272_v49 }
 0xf69   : > { %v27155_v47 = vpack.c.bf16 %v10316_v7, %v10313_v32  ;;  %v27210_v50 = vsub.f32 %v10272_v49, %v10313_v32  ;;  %v10472_v49 = vsub.f32 %v27212_v16, %v28533_v53  ;;  %v28532_v32 = vand.u32 4294901760, %v27221_v31 }
 0xf6a   : > { %v28531_v7 = vand.u32 4294901760, %v27223_v30 }
 0xf6b   : > { %21615 = vmatprep.subr.bf16.mxu1 %v27155_v47  ;;  %v28534_v55 = vand.u32 4294901760, %v27210_v50  ;;  %v10473_v26 = vand.u32 4294901760, %v10472_v49  ;;  %v10479_v34 = vsub.f32 %v27221_v31, %v28532_v32  ;;  %v27254_v5 = vpack.c.bf16 %v27212_v16, %v27210_v50 }
 0xf6c   : > { %21617 = vmatpush3.bf16.msra.mxu1 %v27155_v47  ;;  %v10486_v18 = vsub.f32 %v27223_v30, %v28531_v7 }
 0xf6d   : > { %21619 = vmatprep.subr.bf16.mxu1 %v27171_v38  ;;  %v10465_v52 = vsub.f32 %v27210_v50, %v28534_v55  ;;  %v10480_v9 = vand.u32 4294901760, %v10479_v34  ;;  %v10401_v34 = vand.u32 4294901760, %v27271_v29 }
 0xf6e   : > { %v10487_v39 = vand.u32 4294901760, %v10486_v18  ;;  %v27278_v18 = vsub.f32 %v27019_v8, %v10289_v45 }
 0xf6f   : > { %v10466_v57 = vand.u32 4294901760, %v10465_v52  ;;  %v10402_v8 = vsub.f32 %v27271_v29, %v10401_v34 }
 0xf70   : > { %21621 = vmatpush3.bf16.msra.mxu1 %v27171_v38  ;;  %v27238_v43 = vpack.c.bf16 %v10487_v39, %v10480_v9  ;;  %v28686_v9 = vand.u32 4294901760, %v27021_v2  ;;  %v10408_v45 = vand.u32 4294901760, %v27278_v18 }
 0xf71   : > { %21623 = vmatprep.subr.bf16.mxu1 %v27181_v60  ;;  %v27236_v17 = vpack.c.bf16 %v10473_v26, %v10466_v57  ;;  %v10394_v26 = vand.u32 4294901760, %v27266_v6  ;;  %v10403_v32 = vand.u32 4294901760, %v10402_v8 }
 0xf72   : > { %v27283_v39 = vsub.f32 %v27021_v2, %v28686_v9 }
 0xf74   : > { %v10415_v2 = vand.u32 4294901760, %v27283_v39 }
 0xf76   : > { %v21726_v36 = vpack.c.bf16 %v10415_v2, %v10408_v45 }
0x103a   : > { %v18061_v44 = vpop.f32.mrb[6].mxu0 }
0x103b   : > { %v10237_v52 = vadd.f32 %v18061_v44, %v13172_v27  ;;  %v10221_v49 = vpop.f32.mrb[7].mxu0 }
0x103c   : > { %v10236_v57 = vadd.f32 %v13172_v27, %v10221_v49  ;;  %v10395_v27 = vsub.f32 %v27266_v6, %v10394_v26  ;;  %v27308_v49 = vsub.f32 %v27042_v21, %v10298_v54  ;;  %v10416_v21 = vsub.f32 %v27283_v39, %v10415_v2  ;;  %v27454_v2 = vld [vmem:[#allocation5 + $0x360] sm:$0xff] }
0x103d   : > { %v10239_v48 = vmax.f32 %v10237_v52, 0.0  ;;  %v27303_v52 = vsub.f32 %v27040_v25, %v10295_v14  ;;  %v10409_v14 = vsub.f32 %v27278_v18, %v10408_v45  ;;  %v10253_v45 = vld [vmem:[#allocation5 + $0x350] sm:$0xff] }
0x103e   : > { %v10238_v58 = vmax.f32 %v10236_v57, 0.0  ;;  %v10396_v7 = vand.u32 4294901760, %v10395_v27  ;;  %v10417_v35 = vand.u32 4294901760, %v10416_v21 }
0x103f   : > { %v27285_v42 = vand.u32 4294901760, %v10239_v48  ;;  %v10422_v54 = vand.u32 4294901760, %v27303_v52  ;;  %v10410_v55 = vand.u32 4294901760, %v10409_v14 }
0x1040   : > { %v27287_v41 = vand.u32 4294901760, %v10238_v58  ;;  %v21626_v53 = vpack.c.bf16 %v10403_v32, %v10396_v7 }
0x1041   : > { %v27297_v44 = vsub.f32 %v10239_v48, %v27285_v42  ;;  %v10423_v24 = vsub.f32 %v27303_v52, %v10422_v54  ;;  %v21630_v32 = vpack.c.bf16 %v10417_v35, %v10410_v55  ;;  %v21718_v35 = vpack.c.bf16 %v10387_v59, %v10380_v61 }
0x1042   : > { %v27311_v57 = vsub.f32 %v10238_v58, %v27287_v41  ;;  %v10429_v58 = vand.u32 4294901760, %v27308_v49  ;;  %v28687_v61 = vand.u32 4294901760, %v27184_v4  ;;  %v28688_v59 = vand.u32 4294901760, %v27186_v33 }
0x1043   : > { %v10369_v9 = vand.u32 4294901760, %v27297_v44  ;;  %v10424_v7 = vand.u32 4294901760, %v10423_v24  ;;  %v21666_v24 = vpack.c.bf16 %v27308_v49, %v27303_v52  ;;  %v28689_v55 = vand.u32 4294901760, %v27196_v37  ;;  %v10244_v37 = vld [vmem:[#allocation5 + $0x308] sm:$0xff] }
0x1044   : > { %v27315_v48 = vand.u32 4294901760, %v27311_v57  ;;  %v10430_v22 = vsub.f32 %v27308_v49, %v10429_v58  ;;  %v21730_v28 = vpack.c.bf16 %v10429_v58, %v10422_v54  ;;  %v28693_v4 = vand.u32 4294901760, %v27221_v31  ;;  %v10247_v31 = vld [vmem:[#allocation5 + $0x320] sm:$0xff]  ;;  %v27456_v52 = vld [vmem:[#allocation5 + $0x368] sm:$0xff] }
0x1045   : > { %v10370_v25 = vsub.f32 %v27297_v44, %v10369_v9  ;;  %v28694_v33 = vand.u32 4294901760, %v27223_v30  ;;  %v10248_v30 = vld [vmem:[#allocation5 + $0x328] sm:$0xff]  ;;  %v10991_v54 = vand.u32 4294901760, %v10253_v45 }
0x1046   : > { %v10360_v27 = vsub.f32 %v27311_v57, %v27315_v48  ;;  %v10431_v14 = vand.u32 4294901760, %v10430_v22  ;;  %v21662_v22 = vpack.c.bf16 %v27283_v39, %v27278_v18 }
0x1047   : > { %v10371_v15 = vand.u32 4294901760, %v10370_v25 }
0x1048   : > { %v27330_v8 = vand.u32 4294901760, %v10360_v27  ;;  %v21634_v25 = vpack.c.bf16 %v10431_v14, %v10424_v7  ;;  %v10997_v27 = vand.u32 4294901760, %v27454_v2 }
0x104a   : > { %18094 = vmatprep.mubr.f32.mxu1 %v27330_v8 }
0x104b   : > { %18095 = vmatmul.mubr.f32.vlgmr.msra.gmra.mrb[6].mxu1 %v10371_v15  ;;  %v21722_v15 = vpack.c.bf16 %v10401_v34, %v10394_v26  ;;  %v10251_v26 = vld [vmem:[#allocation5 + $0x340] sm:$0xff]  ;;  %v10252_v34 = vld [vmem:[#allocation5 + $0x348] sm:$0xff] }
0x104c   : > { %21625 = vmatpush3.bf16.msra.mxu1 %v27181_v60  ;;  %18129 = vmatprep.mubr.f32.mxu1 %v27287_v41  ;;  %v21658_v60 = vpack.c.bf16 %v27271_v29, %v27266_v6  ;;  %v10250_v6 = vld [vmem:[#allocation5 + $0x338] sm:$0xff]  ;;  %v10985_v39 = vand.u32 4294901760, %v10251_v26 }
0x104d   : > { %21627 = vmatprep.subr.bf16.mxu1 %v21626_v53 }
0x1050   : > { %21629 = vmatpush3.bf16.msra.mxu1 %v21626_v53  ;;  %v28690_v53 = vand.u32 4294901760, %v27198_v12  ;;  %v10964_v12 = vand.u32 4294901760, %v10244_v37 }
0x1051   : > { %21631 = vmatprep.subr.bf16.mxu1 %v21630_v32 }
0x1054   : > { %21633 = vmatpush3.bf16.msra.mxu1 %v21630_v32  ;;  %v11000_v32 = vand.u32 4294901760, %v27456_v52 }
0x1055   : > { %21635 = vmatprep.subr.bf16.mxu1 %v21634_v25 }
0x1058   : > { %21637 = vmatpush3.bf16.msra.mxu1 %v21634_v25 }
0x1059   : > { %21639 = vmatprep.subr.bf16.mxu1 %v27202_v19 }
0x105c   : > { %21641 = vmatpush3.bf16.msra.mxu1 %v27202_v19  ;;  %v21734_v19 = vpack.c.bf16 %v28688_v59, %v28687_v61 }
0x105d   : > { %21643 = vmatprep.subr.bf16.mxu1 %v27216_v0 }
0x1060   : > { %21645 = vmatpush3.bf16.msra.mxu1 %v27216_v0  ;;  %v21738_v0 = vpack.c.bf16 %v28690_v53, %v28689_v55 }
0x1061   : > { %21647 = vmatprep.subr.bf16.mxu1 %v27236_v17 }
0x1064   : > { %21649 = vmatpush3.bf16.msra.mxu1 %v27236_v17  ;;  %v28691_v17 = vand.u32 4294901760, %v27210_v50  ;;  %v10245_v50 = vld [vmem:[#allocation5 + $0x310] sm:$0xff] }
0x1065   : > { %21651 = vmatprep.subr.bf16.mxu1 %v27238_v43 }
0x1068   : > { %21653 = vmatpush3.bf16.msra.mxu1 %v27238_v43  ;;  %v28692_v43 = vand.u32 4294901760, %v27212_v16  ;;  %v10967_v16 = vand.u32 4294901760, %v10245_v50 }
0x1069   : > { %21655 = vmatprep.subr.bf16.mxu1 %v27242_v63 }
0x106b   : > { %18130 = vmatmul.mubr.f32.vlgmr.msra.gmra.mrb[6].mxu1 %v27285_v42 }
0x106c   : > { %21657 = vmatpush3.bf16.msra.mxu1 %v27242_v63  ;;  %18164 = vmatprep.mubr.f32.mxu1 %v27311_v57  ;;  %v21742_v63 = vpack.c.bf16 %v28692_v43, %v28691_v17 }
0x106d   : > { %21659 = vmatprep.subr.bf16.mxu1 %v21658_v60 }
0x1070   : > { %21661 = vmatpush3.bf16.msra.mxu1 %v21658_v60  ;;  %v27473_v60 = vld [vmem:[#allocation5 + $0x370] sm:$0xff] }
0x1071   : > { %21663 = vmatprep.subr.bf16.mxu1 %v21662_v22 }
0x1074   : > { %21665 = vmatpush3.bf16.msra.mxu1 %v21662_v22  ;;  %v27475_v22 = vld [vmem:[#allocation5 + $0x378] sm:$0xff] }
0x1075   : > { %21667 = vmatprep.subr.bf16.mxu1 %v21666_v24 }
0x1078   : > { %21669 = vmatpush3.bf16.msra.mxu1 %v21666_v24  ;;  %v27477_v24 = vsub.f32 %v10245_v50, %v10967_v16 }
0x1079   : > { %21671 = vmatprep.subr.bf16.mxu1 %v27246_v51 }
0x107c   : > { %21673 = vmatpush3.bf16.msra.mxu1 %v27246_v51  ;;  %v21746_v51 = vpack.c.bf16 %v28694_v33, %v28693_v4 }
0x107d   : > { %21675 = vmatprep.subr.bf16.mxu1 %v27250_v3 }
0x1080   : > { %21677 = vmatpush3.bf16.msra.mxu1 %v27250_v3  ;;  %v10973_v3 = vand.u32 4294901760, %v10247_v31 }
0x1081   : > { %21679 = vmatprep.subr.bf16.mxu1 %v27254_v5 }
0x1082   : > { %v27499_v53 = vsub.f32 %v10247_v31, %v10973_v3 }
0x1084   : > { %21681 = vmatpush3.bf16.msra.mxu1 %v27254_v5  ;;  %v10976_v5 = vand.u32 4294901760, %v10248_v30 }
0x1085   : > { %21683 = vmatprep.subr.bf16.mxu1 %v27258_v10 }
0x1088   : > { %21685 = vmatpush3.bf16.msra.mxu1 %v27258_v10  ;;  %v10249_v10 = vld [vmem:[#allocation5 + $0x330] sm:$0xff] }
0x1089   : > { %21687 = vmatprep.subr.bf16.mxu1 %v27030_v20  ;;  %v10979_v29 = vand.u32 4294901760, %v10249_v10 }
0x108b   : > { %18165 = vmatmul.mubr.f32.vlgmr.msra.gmra.mrb[6].mxu1 %v27297_v44  ;;  %v10254_v44 = vld [vmem:[#allocation5 + $0x358] sm:$0xff]  ;;  %v27503_v17 = vsub.f32 %v10249_v10, %v10979_v29 }
0x108c   : > { %21689 = vmatpush3.bf16.msra.mxu1 %v27030_v20  ;;  %18199 = vmatprep.mubr.f32.mxu1 %v27315_v48  ;;  %v10994_v58 = vand.u32 4294901760, %v10254_v44 }
0x108d   : > { %21691 = vmatprep.subr.bf16.mxu1 %v27038_v46 }
0x108e   : > { %v27471_v25 = vpack.c.bf16 %v10994_v58, %v10991_v54 }
0x1090   : > { %21693 = vmatpush3.bf16.msra.mxu1 %v27038_v46 }
0x1091   : > { %21695 = vmatprep.subr.bf16.mxu1 %v27053_v23 }
0x1094   : > { %21697 = vmatpush3.bf16.msra.mxu1 %v27053_v23 }
0x1095   : > { %21699 = vmatprep.subr.bf16.mxu1 %v27065_v62 }
0x1098   : > { %21701 = vmatpush3.bf16.msra.mxu1 %v27065_v62 }
0x1099   : > { %21703 = vmatprep.subr.bf16.mxu1 %v27147_v56 }
0x109c   : > { %21705 = vmatpush3.bf16.msra.mxu1 %v27147_v56 }
0x109d   : > { %21707 = vmatprep.subr.bf16.mxu1 %v27151_v40 }
0x10a0   : > { %21709 = vmatpush3.bf16.msra.mxu1 %v27151_v40 }
0x10a1   : > { %21711 = vmatprep.subr.bf16.mxu1 %v27155_v47 }
0x10a4   : > { %21713 = vmatpush3.bf16.msra.mxu1 %v27155_v47 }
0x10a5   : > { %21715 = vmatprep.subr.bf16.mxu1 %v27171_v38 }
0x10a8   : > { %21717 = vmatpush3.bf16.msra.mxu1 %v27171_v38 }
0x10a9   : > { %21719 = vmatprep.subr.bf16.mxu1 %v21718_v35 }
0x10ab   : > { %18200 = vmatmul.mubr.f32.vlgmr.msra.gmra.mrb[6].mxu1 %v10369_v9  ;;  %v27460_v9 = vsub.f32 %v10244_v37, %v10964_v12  ;;  %v11092_v37 = vand.u32 4294901760, %v27499_v53 }
0x10ac   : > { %21721 = vmatpush3.bf16.msra.mxu1 %v21718_v35  ;;  %18234 = vmatprep.mubr.f32.mxu1 %v27287_v41 }
0x10ad   : > { %21723 = vmatprep.subr.bf16.mxu1 %v21722_v15  ;;  %v11071_v14 = vand.u32 4294901760, %v27460_v9 }
0x10af   : > { %v11072_v59 = vsub.f32 %v27460_v9, %v11071_v14 }
0x10b0   : > { %21725 = vmatpush3.bf16.msra.mxu1 %v21722_v15  ;;  %v27485_v15 = vpack.c.bf16 %v11000_v32, %v10997_v27 }
0x10b1   : > { %21727 = vmatprep.subr.bf16.mxu1 %v21726_v36  ;;  %v11073_v33 = vand.u32 4294901760, %v11072_v59 }
0x10b4   : > { %21729 = vmatpush3.bf16.msra.mxu1 %v21726_v36  ;;  %v11003_v36 = vand.u32 4294901760, %v27473_v60 }
0x10b5   : > { %21731 = vmatprep.subr.bf16.mxu1 %v21730_v28 }
0x10b8   : > { %21733 = vmatpush3.bf16.msra.mxu1 %v21730_v28  ;;  %v11006_v28 = vand.u32 4294901760, %v27475_v22 }
0x10b9   : > { %21735 = vmatprep.subr.bf16.mxu1 %v21734_v19 }
0x10bc   : > { %21737 = vmatpush3.bf16.msra.mxu1 %v21734_v19  ;;  %v11078_v19 = vand.u32 4294901760, %v27477_v24 }
0x10bd   : > { %21739 = vmatprep.subr.bf16.mxu1 %v21738_v0 }
0x10c0   : > { %21741 = vmatpush3.bf16.msra.mxu1 %v21738_v0  ;;  %v27501_v0 = vsub.f32 %v10248_v30, %v10976_v5 }
0x10c1   : > { %21743 = vmatprep.subr.bf16.mxu1 %v21742_v63 }
0x10c4   : > { %21745 = vmatpush3.bf16.msra.mxu1 %v21742_v63  ;;  %v27512_v63 = vpack.c.bf16 %v11006_v28, %v11003_v36 }
0x10c5   : > { %21747 = vmatprep.subr.bf16.mxu1 %v21746_v51 }
0x10c8   : > { %21749 = vmatpush3.bf16.msra.mxu1 %v21746_v51  ;;  %v11079_v51 = vsub.f32 %v27477_v24, %v11078_v19 }
0x10c9   : > { %21751 = vmatprep.subr.bf16.mxu1 %v27030_v20 }
0x10ca   : > { %v11080_v31 = vand.u32 4294901760, %v11079_v51  ;;  %v27568_v51 = vsub.f32 %v27456_v52, %v11000_v32  ;;  %v27581_v52 = vsub.f32 %v27473_v60, %v11003_v36  ;;  %v27586_v32 = vsub.f32 %v27475_v22, %v11006_v28 }
0x10cb   : > { %18235 = vmatmul.mubr.f32.vlgmr.msra.gmra.mrb[6].mxu1 %v27285_v42 }
0x10cc   : > { %21753 = vmatpush3.bf16.msra.mxu1 %v27030_v20  ;;  %18269 = vmatprep.mubr.f32.mxu1 %v27287_v41  ;;  %v10243_v20 = vld [vmem:[#allocation5 + $0x300] sm:$0xff]  ;;  %v11162_v60 = vand.u32 4294901760, %v27581_v52  ;;  %v28543_v36 = vand.u32 4294901760, %v27586_v32 }
0x10cd   : > { %21755 = vmatprep.subr.bf16.mxu1 %v27038_v46 }
0x10d0   : > { %21757 = vmatpush3.bf16.msra.mxu1 %v27038_v46  ;;  %v10961_v46 = vand.u32 4294901760, %v10243_v20 }
0x10d1   : > { %21759 = vmatprep.subr.bf16.mxu1 %v27053_v23 }
0x10d2   : > { %v27458_v49 = vsub.f32 %v10243_v20, %v10961_v46 }
0x10d4   : > { %21761 = vmatpush3.bf16.msra.mxu1 %v27053_v23  ;;  %v10246_v23 = vld [vmem:[#allocation5 + $0x318] sm:$0xff]  ;;  %v11064_v7 = vand.u32 4294901760, %v27458_v49 }
0x10d5   : > { %21763 = vmatprep.subr.bf16.mxu1 %v27065_v62 }
0x10d6   : > { %v11065_v61 = vsub.f32 %v27458_v49, %v11064_v7 }
0x10d8   : > { %21765 = vmatpush3.bf16.msra.mxu1 %v27065_v62  ;;  %v27437_v62 = vpack.c.bf16 %v10964_v12, %v10961_v46  ;;  %v11066_v4 = vand.u32 4294901760, %v11065_v61  ;;  %v11099_v46 = vand.u32 4294901760, %v27501_v0  ;;  %v11106_v12 = vand.u32 4294901760, %v27503_v17 }
0x10d9   : > { %21767 = vmatprep.subr.bf16.mxu1 %v27147_v56 }
0x10da   : > { %v11107_v10 = vsub.f32 %v27503_v17, %v11106_v12 }
0x10dc   : > { %21769 = vmatpush3.bf16.msra.mxu1 %v27147_v56  ;;  %v10970_v56 = vand.u32 4294901760, %v10246_v23  ;;  %v11108_v59 = vand.u32 4294901760, %v11107_v10 }
0x10dd   : > { %21771 = vmatprep.subr.bf16.mxu1 %v27151_v40 }
0x10de   : > { %v27479_v35 = vsub.f32 %v10246_v23, %v10970_v56  ;;  %v21814_v23 = vpack.c.bf16 %v11073_v33, %v11066_v4 }
0x10e0   : > { %21773 = vmatpush3.bf16.msra.mxu1 %v27151_v40  ;;  %v27441_v40 = vpack.c.bf16 %v10970_v56, %v10967_v16  ;;  %v11085_v55 = vand.u32 4294901760, %v27479_v35  ;;  %v27526_v16 = vsub.f32 %v10251_v26, %v10985_v39  ;;  %v27546_v26 = vsub.f32 %v10253_v45, %v10991_v54 }
0x10e1   : > { %21775 = vmatprep.subr.bf16.mxu1 %v27155_v47 }
0x10e2   : > { %v11086_v20 = vsub.f32 %v27479_v35, %v11085_v55 }
0x10e4   : > { %21777 = vmatpush3.bf16.msra.mxu1 %v27155_v47  ;;  %v27447_v47 = vpack.c.bf16 %v10976_v5, %v10973_v3  ;;  %v11087_v30 = vand.u32 4294901760, %v11086_v20  ;;  %v11093_v3 = vsub.f32 %v27499_v53, %v11092_v37  ;;  %v11100_v5 = vsub.f32 %v27501_v0, %v11099_v46 }
0x10e5   : > { %21779 = vmatprep.subr.bf16.mxu1 %v27171_v38 }
0x10e6   : > { %v11101_v61 = vand.u32 4294901760, %v11100_v5 }
0x10e8   : > { %21781 = vmatpush3.bf16.msra.mxu1 %v27171_v38  ;;  %v10982_v38 = vand.u32 4294901760, %v10250_v6 }
0x10e9   : > { %21783 = vmatprep.subr.bf16.mxu1 %v27437_v62 }
0x10ea   : > { %v27451_v18 = vpack.c.bf16 %v10982_v38, %v10979_v29  ;;  %v27505_v43 = vsub.f32 %v10250_v6, %v10982_v38  ;;  %v11120_v29 = vand.u32 4294901760, %v27526_v16 }
0x10eb   : > { %18270 = vmatmul.mubr.f32.vlgmr.msra.gmra.mrb[6].mxu1 %v27285_v42  ;;  %v10988_v42 = vand.u32 4294901760, %v10252_v34 }
0x10ec   : > { %21785 = vmatpush3.bf16.msra.mxu1 %v27437_v62  ;;  %18304 = vmatprep.mubr.f32.mxu1 %v28680_v13  ;;  %v11113_v50 = vand.u32 4294901760, %v27505_v43  ;;  %v11121_v33 = vsub.f32 %v27526_v16, %v11120_v29 }
0x10ed   : > { %21787 = vmatprep.subr.bf16.mxu1 %v27441_v40  ;;  %v27463_v21 = vpack.c.bf16 %v10988_v42, %v10985_v39  ;;  %v27528_v56 = vsub.f32 %v10252_v34, %v10988_v42  ;;  %v27548_v34 = vsub.f32 %v10254_v44, %v10994_v58  ;;  %v21818_v39 = vpack.c.bf16 %v11087_v30, %v11080_v31 }
0x10ee   : > { %v11114_v6 = vsub.f32 %v27505_v43, %v11113_v50  ;;  %v11094_v42 = vand.u32 4294901760, %v11093_v3  ;;  %v11134_v44 = vand.u32 4294901760, %v27546_v26 }
0x10ef   : > { %v11127_v38 = vand.u32 4294901760, %v27528_v56  ;;  %v11141_v54 = vand.u32 4294901760, %v27548_v34 }
0x10f0   : > { %21789 = vmatpush3.bf16.msra.mxu1 %v27441_v40  ;;  %v11115_v4 = vand.u32 4294901760, %v11114_v6  ;;  %v21822_v58 = vpack.c.bf16 %v11101_v61, %v11094_v42  ;;  %v11135_v30 = vsub.f32 %v27546_v26, %v11134_v44 }
0x10f1   : > { %21791 = vmatprep.subr.bf16.mxu1 %v27447_v47  ;;  %v11128_v45 = vsub.f32 %v27528_v56, %v11127_v38  ;;  %v11142_v3 = vsub.f32 %v27548_v34, %v11141_v54 }
0x10f2   : > { %v21826_v20 = vpack.c.bf16 %v11115_v4, %v11108_v59  ;;  %v11136_v10 = vand.u32 4294901760, %v11135_v30  ;;  %v11163_v59 = vsub.f32 %v27581_v52, %v11162_v60  ;;  %v11170_v4 = vsub.f32 %v27586_v32, %v28543_v36  ;;  %v27607_v30 = vld [vmem:[#allocation3 + $0x480] sm:$0xff] }
0x10f3   : > { %v11129_v31 = vand.u32 4294901760, %v11128_v45  ;;  %v11143_v6 = vand.u32 4294901760, %v11142_v3  ;;  %v27609_v3 = vld [vmem:[#allocation3 + $0x488] sm:$0xff] }
0x10f4   : > { %21793 = vmatpush3.bf16.msra.mxu1 %v27447_v47  ;;  %v11164_v45 = vand.u32 4294901760, %v11163_v59 }
0x10f5   : > { %21795 = vmatprep.subr.bf16.mxu1 %v27451_v18  ;;  %v21834_v22 = vpack.c.bf16 %v11143_v6, %v11136_v10  ;;  %v28542_v10 = vand.u32 4294901760, %v27607_v30  ;;  %v28539_v6 = vand.u32 4294901760, %v27609_v3 }
0x10f8   : > { %21797 = vmatpush3.bf16.msra.mxu1 %v27451_v18 }
0x10f9   : > { %21799 = vmatprep.subr.bf16.mxu1 %v27463_v21 }
0x10fc   : > { %21801 = vmatpush3.bf16.msra.mxu1 %v27463_v21 }
0x10fd   : > { %21803 = vmatprep.subr.bf16.mxu1 %v27471_v25 }
0x1100   : > { %21805 = vmatpush3.bf16.msra.mxu1 %v27471_v25 }
0x1101   : > { %21807 = vmatprep.subr.bf16.mxu1 %v27485_v15 }
0x1104   : > { %21809 = vmatpush3.bf16.msra.mxu1 %v27485_v15 }
0x1105   : > { %21811 = vmatprep.subr.bf16.mxu1 %v27512_v63 }
0x1108   : > { %21813 = vmatpush3.bf16.msra.mxu1 %v27512_v63 }
0x1109   : > { %21815 = vmatprep.subr.bf16.mxu1 %v21814_v23 }
0x110b   : > { %18305 = vmatmul.mubr.f32.vlgmr.msra.gmra.mrb[6].mxu1 %v27330_v8  ;;  %v27563_v8 = vsub.f32 %v27454_v2, %v10997_v27  ;;  %v11155_v27 = vand.u32 4294901760, %v27568_v51 }
0x110c   : > { %21817 = vmatpush3.bf16.msra.mxu1 %v21814_v23  ;;  %18339 = vmatprep.mubr.f32.mxu1 %v28680_v13  ;;  %v11122_v23 = vand.u32 4294901760, %v11121_v33 }
0x110d   : > { %21819 = vmatprep.subr.bf16.mxu1 %v21818_v39  ;;  %v11148_v2 = vand.u32 4294901760, %v27563_v8  ;;  %v11156_v42 = vsub.f32 %v27568_v51, %v11155_v27 }
0x110e   : > { %v21830_v5 = vpack.c.bf16 %v11129_v31, %v11122_v23  ;;  %v21846_v23 = vpack.c.bf16 %v27460_v9, %v27458_v49  ;;  %v21850_v31 = vpack.c.bf16 %v27479_v35, %v27477_v24  ;;  %v21918_v49 = vpack.c.bf16 %v11099_v46, %v11092_v37 }
0x110f   : > { %v11157_v61 = vand.u32 4294901760, %v11156_v42  ;;  %v21922_v9 = vpack.c.bf16 %v11113_v50, %v11106_v12  ;;  %v28695_v24 = vand.u32 4294901760, %v27586_v32  ;;  %v28697_v46 = vand.u32 4294901760, %v27609_v3  ;;  %v11670_v50 = vld [vmem:[#allocation3 + $0x4f0] sm:$0xff] }
0x1110   : > { %21821 = vmatpush3.bf16.msra.mxu1 %v21818_v39  ;;  %v11149_v39 = vsub.f32 %v27563_v8, %v11148_v2 }
0x1111   : > { %21823 = vmatprep.subr.bf16.mxu1 %v21822_v58  ;;  %v21938_v35 = vpack.c.bf16 %v28695_v24, %v11162_v60  ;;  %v27765_v12 = vsub.f32 %v27609_v3, %v28697_v46 }
0x1112   : > { %v11150_v28 = vand.u32 4294901760, %v11149_v39  ;;  %v27616_v39 = vld [vmem:[#allocation3 + $0x498] sm:$0xff] }
0x1113   : > { %v28540_v59 = vand.u32 4294901760, %v27616_v39 }
0x1114   : > { %21825 = vmatpush3.bf16.msra.mxu1 %v21822_v58  ;;  %v21838_v33 = vpack.c.bf16 %v11157_v61, %v11150_v28  ;;  %v11171_v58 = vand.u32 4294901760, %v11170_v4  ;;  %v27621_v28 = vld [vmem:[#allocation3 + $0x4a8] sm:$0xff]  ;;  %v21854_v61 = vpack.c.bf16 %v27501_v0, %v27499_v53  ;;  %v27630_v4 = vpack.c.bf16 %v28539_v6, %v28542_v10  ;;  %v11668_v53 = vld [vmem:[#allocation3 + $0x4e0] sm:$0xff] }
0x1115   : > { %21827 = vmatprep.subr.bf16.mxu1 %v21826_v20  ;;  %v21858_v6 = vpack.c.bf16 %v27505_v43, %v27503_v17  ;;  %v21862_v10 = vpack.c.bf16 %v27528_v56, %v27526_v16  ;;  %v11669_v0 = vld [vmem:[#allocation3 + $0x4e8] sm:$0xff]  ;;  %v11671_v16 = vld [vmem:[#allocation3 + $0x4f8] sm:$0xff]  ;;  %v11720_v56 = vand.u32 4294901760, %v11670_v50 }
0x1116   : > { %21975 = vmatprep.subr.bf16.mxu0 %v27630_v4  ;;  %v11717_v17 = vand.u32 4294901760, %v11669_v0 }
0x1117   : > { %21977 = vmatpush3.bf16.msra.mxu0 %v27630_v4 }
0x1118   : > { %21829 = vmatpush3.bf16.msra.mxu1 %v21826_v20  ;;  %v21842_v20 = vpack.c.bf16 %v11171_v58, %v11164_v45  ;;  %v28544_v45 = vand.u32 4294901760, %v27621_v28  ;;  %v27812_v24 = vsub.f32 %v11669_v0, %v11717_v17 }
0x1119   : > { %21831 = vmatprep.subr.bf16.mxu1 %v21830_v5 }
0x111c   : > { %21833 = vmatpush3.bf16.msra.mxu1 %v21830_v5  ;;  %v27611_v5 = vld [vmem:[#allocation3 + $0x490] sm:$0xff] }
0x111d   : > { %21835 = vmatprep.subr.bf16.mxu1 %v21834_v22  ;;  %v28541_v42 = vand.u32 4294901760, %v27611_v5 }
0x111f   : > { %v27638_v58 = vpack.c.bf16 %v28540_v59, %v28541_v42 }
0x1120   : > { %21837 = vmatpush3.bf16.msra.mxu1 %v21834_v22  ;;  %v27619_v22 = vld [vmem:[#allocation3 + $0x4a0] sm:$0xff] }
0x1121   : > { %21839 = vmatprep.subr.bf16.mxu1 %v21838_v33  ;;  %21979 = vmatprep.subr.bf16.mxu0 %v27638_v58 }
0x1122   : > { %21981 = vmatpush3.bf16.msra.mxu0 %v27638_v58 }
0x1124   : > { %21841 = vmatpush3.bf16.msra.mxu1 %v21838_v33  ;;  %v11690_v33 = vand.u32 4294901760, %v27619_v22 }
0x1125   : > { %21843 = vmatprep.subr.bf16.mxu1 %v21842_v20 }
0x1126   : > { %v27653_v59 = vpack.c.bf16 %v28544_v45, %v11690_v33  ;;  %v21866_v45 = vpack.c.bf16 %v27548_v34, %v27546_v26  ;;  %v11788_v26 = vand.u32 4294901760, %v27765_v12 }
0x1128   : > { %21845 = vmatpush3.bf16.msra.mxu1 %v21842_v20  ;;  %v27640_v20 = vld [vmem:[#allocation3 + $0x4b0] sm:$0xff]  ;;  %21983 = vmatprep.subr.bf16.mxu0 %v27653_v59 }
0x1129   : > { %21847 = vmatprep.subr.bf16.mxu1 %v21846_v23  ;;  %v11696_v42 = vand.u32 4294901760, %v27640_v20  ;;  %21985 = vmatpush3.bf16.msra.mxu0 %v27653_v59 }
0x112b   : > { %18340 = vmatmul.mubr.f32.vlgmr.msra.gmra.mrb[6].mxu1 %v27287_v41 }
0x112c   : > { %21849 = vmatpush3.bf16.msra.mxu1 %v21846_v23  ;;  %18374 = vmatprep.mubr.f32.mxu1 %v28680_v13  ;;  %v27642_v23 = vld [vmem:[#allocation3 + $0x4b8] sm:$0xff] }
0x112d   : > { %21851 = vmatprep.subr.bf16.mxu1 %v21850_v31 }
0x1130   : > { %21853 = vmatpush3.bf16.msra.mxu1 %v21850_v31  ;;  %v11699_v31 = vand.u32 4294901760, %v27642_v23 }
0x1131   : > { %21855 = vmatprep.subr.bf16.mxu1 %v21854_v61 }
0x1132   : > { %v27665_v36 = vpack.c.bf16 %v11699_v31, %v11696_v42 }
0x1134   : > { %21857 = vmatpush3.bf16.msra.mxu1 %v21854_v61  ;;  %21987 = vmatprep.subr.bf16.mxu0 %v27665_v36  ;;  %v21870_v61 = vpack.c.bf16 %v27568_v51, %v27563_v8 }
0x1135   : > { %21859 = vmatprep.subr.bf16.mxu1 %v21858_v6  ;;  %21989 = vmatpush3.bf16.msra.mxu0 %v27665_v36 }
0x1138   : > { %21861 = vmatpush3.bf16.msra.mxu1 %v21858_v6  ;;  %v21874_v6 = vpack.c.bf16 %v27586_v32, %v27581_v52 }
0x1139   : > { %21863 = vmatprep.subr.bf16.mxu1 %v21862_v10 }
0x113c   : > { %21865 = vmatpush3.bf16.msra.mxu1 %v21862_v10  ;;  %v21914_v10 = vpack.c.bf16 %v11085_v55, %v11078_v19  ;;  %v11667_v19 = vld [vmem:[#allocation3 + $0x4d8] sm:$0xff] }
0x113d   : > { %21867 = vmatprep.subr.bf16.mxu1 %v21866_v45  ;;  %v11711_v55 = vand.u32 4294901760, %v11667_v19 }
0x1140   : > { %21869 = vmatpush3.bf16.msra.mxu1 %v21866_v45 }
0x1141   : > { %21871 = vmatprep.subr.bf16.mxu1 %v21870_v61 }
0x1144   : > { %21873 = vmatpush3.bf16.msra.mxu1 %v21870_v61  ;;  %v27798_v61 = vsub.f32 %v11667_v19, %v11711_v55  ;;  %v27821_v19 = vsub.f32 %v11670_v50, %v11720_v56 }
0x1145   : > { %21875 = vmatprep.subr.bf16.mxu1 %v21874_v6 }
0x1146   : > { %v28546_v0 = vand.u32 4294901760, %v27821_v19 }
0x1148   : > { %21877 = vmatpush3.bf16.msra.mxu1 %v21874_v6 }
0x1149   : > { %21879 = vmatprep.subr.bf16.mxu1 %v27437_v62 }
0x114b   : > { %18375 = vmatmul.mubr.f32.vlgmr.msra.gmra.mrb[6].mxu1 %v27311_v57  ;;  %v21910_v57 = vpack.c.bf16 %v11071_v14, %v11064_v7  ;;  %v21930_v7 = vpack.c.bf16 %v11141_v54, %v11134_v44  ;;  %v21934_v14 = vpack.c.bf16 %v11155_v27, %v11148_v2  ;;  %v11789_v54 = vsub.f32 %v27765_v12, %v11788_v26 }
0x114c   : > { %21881 = vmatpush3.bf16.msra.mxu1 %v27437_v62  ;;  %18409 = vmatprep.mubr.f32.mxu1 %v28680_v13 }
0x114d   : > { %21883 = vmatprep.subr.bf16.mxu1 %v27441_v40  ;;  %v11790_v51 = vand.u32 4294901760, %v11789_v54 }
0x1150   : > { %21885 = vmatpush3.bf16.msra.mxu1 %v27441_v40 }
0x1151   : > { %21887 = vmatprep.subr.bf16.mxu1 %v27447_v47 }
0x1154   : > { %21889 = vmatpush3.bf16.msra.mxu1 %v27447_v47 }
0x1155   : > { %21891 = vmatprep.subr.bf16.mxu1 %v27451_v18 }
0x1158   : > { %21893 = vmatpush3.bf16.msra.mxu1 %v27451_v18 }
0x1159   : > { %21895 = vmatprep.subr.bf16.mxu1 %v27463_v21 }
0x115c   : > { %21897 = vmatpush3.bf16.msra.mxu1 %v27463_v21 }
0x115d   : > { %21899 = vmatprep.subr.bf16.mxu1 %v27471_v25 }
0x1160   : > { %21901 = vmatpush3.bf16.msra.mxu1 %v27471_v25 }
0x1161   : > { %21903 = vmatprep.subr.bf16.mxu1 %v27485_v15 }
0x1164   : > { %21905 = vmatpush3.bf16.msra.mxu1 %v27485_v15 }
0x1165   : > { %21907 = vmatprep.subr.bf16.mxu1 %v27512_v63 }
0x1168   : > { %21909 = vmatpush3.bf16.msra.mxu1 %v27512_v63 }
0x1169   : > { %21911 = vmatprep.subr.bf16.mxu1 %v21910_v57 }
0x116b   : > { %18410 = vmatmul.mubr.f32.vlgmr.msra.gmra.mrb[6].mxu1 %v27315_v48  ;;  %v21926_v48 = vpack.c.bf16 %v11127_v38, %v11120_v29  ;;  %v11723_v29 = vand.u32 4294901760, %v11671_v16 }
0x116c   : > { %21913 = vmatpush3.bf16.msra.mxu1 %v21910_v57  ;;  %18444 = vmatprep.mubr.f32.mxu1 %v28680_v13 }
0x116d   : > { %21915 = vmatprep.subr.bf16.mxu1 %v21914_v10  ;;  %v27771_v34 = vpack.c.bf16 %v11723_v29, %v11720_v56 }
0x1170   : > { %21917 = vmatpush3.bf16.msra.mxu1 %v21914_v10 }
0x1171   : > { %21919 = vmatprep.subr.bf16.mxu1 %v21918_v49 }
0x1174   : > { %21921 = vmatpush3.bf16.msra.mxu1 %v21918_v49  ;;  %v28549_v49 = vand.u32 4294901760, %v27798_v61 }
0x1175   : > { %21923 = vmatprep.subr.bf16.mxu1 %v21922_v9 }
0x1178   : > { %21925 = vmatpush3.bf16.msra.mxu1 %v21922_v9 }
0x1179   : > { %21927 = vmatprep.subr.bf16.mxu1 %v21926_v48 }
0x117c   : > { %21929 = vmatpush3.bf16.msra.mxu1 %v21926_v48 }
0x117d   : > { %21931 = vmatprep.subr.bf16.mxu1 %v21930_v7 }
0x1180   : > { %21933 = vmatpush3.bf16.msra.mxu1 %v21930_v7  ;;  %v11859_v7 = vsub.f32 %v27798_v61, %v28549_v49 }
0x1181   : > { %21935 = vmatprep.subr.bf16.mxu1 %v21934_v14 }
0x1184   : > { %21937 = vmatpush3.bf16.msra.mxu1 %v21934_v14 }
0x1185   : > { %21939 = vmatprep.subr.bf16.mxu1 %v21938_v35 }
0x1188   : > { %21941 = vmatpush3.bf16.msra.mxu1 %v21938_v35 }
0x1189   : > { %21943 = vmatprep.subr.bf16.mxu1 %v27437_v62 }
0x118b   : > { %18445 = vmatmul.mubr.f32.vlgmr.msra.gmra.mrb[6].mxu1 %v27287_v41 }
0x118c   : > { %21945 = vmatpush3.bf16.msra.mxu1 %v27437_v62  ;;  %18479 = vmatprep.mubr.f32.mxu1 %v28680_v13  ;;  %v11664_v13 = vld [vmem:[#allocation3 + $0x4c0] sm:$0xff]  ;;  %v11665_v62 = vld [vmem:[#allocation3 + $0x4c8] sm:$0xff] }
0x118d   : > { %21947 = vmatprep.subr.bf16.mxu1 %v27441_v40 }
0x1190   : > { %21949 = vmatpush3.bf16.msra.mxu1 %v27441_v40  ;;  %v11702_v40 = vand.u32 4294901760, %v11664_v13 }
0x1191   : > { %21951 = vmatprep.subr.bf16.mxu1 %v27447_v47 }
0x1192   : > { %v27784_v27 = vsub.f32 %v11664_v13, %v11702_v40  ;;  %v11860_v13 = vand.u32 4294901760, %v11859_v7  ;;  %v28699_v7 = vand.u32 4294901760, %v27616_v39 }
0x1194   : > { %21953 = vmatpush3.bf16.msra.mxu1 %v27447_v47  ;;  %v11705_v47 = vand.u32 4294901760, %v11665_v62  ;;  %v11837_v32 = vand.u32 4294901760, %v27784_v27 }
0x1195   : > { %21955 = vmatprep.subr.bf16.mxu1 %v27451_v18 }
0x1196   : > { %v27786_v52 = vsub.f32 %v11665_v62, %v11705_v47 }
0x1198   : > { %21957 = vmatpush3.bf16.msra.mxu1 %v27451_v18  ;;  %v27747_v18 = vpack.c.bf16 %v11705_v47, %v11702_v40  ;;  %v28551_v60 = vand.u32 4294901760, %v27786_v52  ;;  %v28547_v40 = vand.u32 4294901760, %v27812_v24  ;;  %v27846_v54 = vpack.c.bf16 %v27786_v52, %v27784_v27 }
0x1199   : > { %21959 = vmatprep.subr.bf16.mxu1 %v27463_v21 }
0x119a   : > { %21991 = vmatprep.subr.bf16.mxu0 %v27747_v18  ;;  %v11845_v3 = vsub.f32 %v27786_v52, %v28551_v60 }
0x119b   : > { %21993 = vmatpush3.bf16.msra.mxu0 %v27747_v18 }
0x119c   : > { %21961 = vmatpush3.bf16.msra.mxu1 %v27463_v21  ;;  %v11666_v21 = vld [vmem:[#allocation3 + $0x4d0] sm:$0xff]  ;;  %v11846_v57 = vand.u32 4294901760, %v11845_v3 }
0x119d   : > { %21963 = vmatprep.subr.bf16.mxu1 %v27471_v25  ;;  %v13173_v3 = vld [vmem:[%s28406_s4 + $0x3] ss:$0 sm:$0xff] }
0x11a0   : > { %21965 = vmatpush3.bf16.msra.mxu1 %v27471_v25  ;;  %v11708_v25 = vand.u32 4294901760, %v11666_v21 }
0x11a1   : > { %21967 = vmatprep.subr.bf16.mxu1 %v27485_v15 }
0x11a2   : > { %v27796_v45 = vsub.f32 %v11666_v21, %v11708_v25 }
0x11a4   : > { %21969 = vmatpush3.bf16.msra.mxu1 %v27485_v15  ;;  %v27751_v15 = vpack.c.bf16 %v11711_v55, %v11708_v25  ;;  %v28550_v10 = vand.u32 4294901760, %v27796_v45  ;;  %v27823_v25 = vsub.f32 %v11671_v16, %v11723_v29  ;;  %v11873_v55 = vsub.f32 %v27812_v24, %v28547_v40 }
0x11a5   : > { %21971 = vmatprep.subr.bf16.mxu1 %v27512_v63 }
0x11a6   : > { %21995 = vmatprep.subr.bf16.mxu0 %v27751_v15  ;;  %v11852_v48 = vsub.f32 %v27796_v45, %v28550_v10 }
0x11a7   : > { %21997 = vmatpush3.bf16.msra.mxu0 %v27751_v15 }
0x11a8   : > { %21973 = vmatpush3.bf16.msra.mxu1 %v27512_v63  ;;  %v28696_v63 = vand.u32 4294901760, %v27607_v30  ;;  %v11853_v35 = vand.u32 4294901760, %v11852_v48 }
0x11aa   : > { %v27760_v37 = vsub.f32 %v27607_v30, %v28696_v63  ;;  %v11838_v30 = vsub.f32 %v27784_v27, %v11837_v32  ;;  %v27816_v47 = vpack.c.bf16 %v11860_v13, %v11853_v35  ;;  %v11880_v63 = vsub.f32 %v27821_v19, %v28546_v0 }
0x11ab   : > { %18480 = vmatmul.mubr.f32.vlgmr.msra.gmra.mrb[6].mxu1 %v27287_v41  ;;  %v11714_v41 = vand.u32 4294901760, %v11668_v53  ;;  %v27871_v35 = vsub.f32 %v27616_v39, %v28699_v7  ;;  %v28700_v39 = vand.u32 4294901760, %v27621_v28  ;;  %v27912_v7 = vsub.f32 %v27640_v20, %v11696_v42 }
0x11ac   : > { %v11781_v38 = vand.u32 4294901760, %v27760_v37  ;;  %v11839_v6 = vand.u32 4294901760, %v11838_v30  ;;  %v11881_v16 = vand.u32 4294901760, %v11880_v63  ;;  %v27858_v30 = vpack.c.bf16 %v27823_v25, %v27821_v19 }
0x11ad   : > { %v27755_v43 = vpack.c.bf16 %v11717_v17, %v11714_v41  ;;  %v27810_v14 = vsub.f32 %v11668_v53, %v11714_v41  ;;  %v28545_v41 = vand.u32 4294901760, %v27823_v25  ;;  %v11874_v17 = vand.u32 4294901760, %v11873_v55 }
0x11ae   : > { %v11782_v44 = vsub.f32 %v27760_v37, %v11781_v38  ;;  %v27802_v9 = vpack.c.bf16 %v11846_v57, %v11839_v6  ;;  %v28698_v57 = vand.u32 4294901760, %v27611_v5  ;;  %v28706_v27 = vand.u32 4294901760, %v27821_v19 }
0x11af   : > { %21999 = vmatprep.subr.bf16.mxu0 %v27755_v43  ;;  %v28548_v62 = vand.u32 4294901760, %v27810_v14  ;;  %v11887_v46 = vsub.f32 %v27823_v25, %v28545_v41 }
0x11b0   : > { %22001 = vmatpush3.bf16.msra.mxu0 %v27755_v43  ;;  %v11783_v8 = vand.u32 4294901760, %v11782_v44  ;;  %v27842_v44 = vpack.c.bf16 %v27765_v12, %v27760_v37  ;;  %v27866_v48 = vsub.f32 %v27611_v5, %v28698_v57 }
0x11b1   : > { %22003 = vmatprep.subr.bf16.mxu0 %v27771_v34  ;;  %v11866_v21 = vsub.f32 %v27810_v14, %v28548_v62  ;;  %v11888_v56 = vand.u32 4294901760, %v11887_v46  ;;  %v11802_v46 = vand.u32 4294901760, %v27871_v35 }
0x11b2   : > { %v27781_v2 = vpack.c.bf16 %v11790_v51, %v11783_v8  ;;  %v27850_v8 = vpack.c.bf16 %v27798_v61, %v27796_v45  ;;  %v27854_v51 = vpack.c.bf16 %v27812_v24, %v27810_v14  ;;  %v11795_v63 = vand.u32 4294901760, %v27866_v48 }
0x11b3   : > { %v11867_v53 = vand.u32 4294901760, %v11866_v21  ;;  %v27838_v29 = vpack.c.bf16 %v11888_v56, %v11881_v16  ;;  %v27878_v16 = vsub.f32 %v27619_v22, %v11690_v33  ;;  %v27886_v56 = vsub.f32 %v27621_v28, %v28700_v39 }
0x11b4   : > { %22005 = vmatpush3.bf16.msra.mxu0 %v27771_v34  ;;  %v11796_v22 = vsub.f32 %v27866_v48, %v11795_v63 }
0x11b5   : > { %22007 = vmatprep.subr.bf16.mxu0 %v27781_v2  ;;  %v27836_v50 = vpack.c.bf16 %v11874_v17, %v11867_v53  ;;  %v11809_v28 = vand.u32 4294901760, %v27878_v16  ;;  %v11816_v33 = vand.u32 4294901760, %v27886_v56 }
0x11b7   : > { %v11810_v42 = vsub.f32 %v27878_v16, %v11809_v28  ;;  %v22110_v37 = vpack.c.bf16 %v11816_v33, %v11809_v28  ;;  %v12379_v28 = vld [vmem:[#allocation5 + $0x4f8] sm:$0xff] }
0x11b9   : > { %v11811_v40 = vand.u32 4294901760, %v11810_v42 }
0x127e   : > { %v18481_v6 = vpop.f32.mrb[6].mxu1 }
0x127f   : > { %v11650_v13 = vadd.f32 %v18481_v6, %v13173_v3  ;;  %v11634_v21 = vpop.f32.mrb[7].mxu1 }
0x1280   : > { %v11649_v55 = vadd.f32 %v13173_v3, %v11634_v21 }
0x1281   : > { %v11652_v53 = vmax.f32 %v11650_v13, 0.0  ;;  %v27917_v13 = vsub.f32 %v27642_v23, %v11699_v31  ;;  %v11817_v23 = vsub.f32 %v27886_v56, %v11816_v33  ;;  %v11823_v31 = vand.u32 4294901760, %v27912_v7 }
0x1282   : > { %v11651_v17 = vmax.f32 %v11649_v55, 0.0  ;;  %v12431_v33 = vand.u32 4294901760, %v12379_v28 }
0x1283   : > { %v27881_v5 = vadd.f32 %v11652_v53, %v26671_v11  ;;  %v11803_v11 = vsub.f32 %v27871_v35, %v11802_v46  ;;  %v11830_v41 = vand.u32 4294901760, %v27917_v13  ;;  %v11818_v49 = vand.u32 4294901760, %v11817_v23 }
0x1284   : > { %v27889_v3 = vadd.f32 %v11651_v17, %v26679_v1  ;;  %v11797_v17 = vand.u32 4294901760, %v11796_v22  ;;  %v11824_v10 = vsub.f32 %v27912_v7, %v11823_v31 }
0x1285   : > { %v27892_v6 = vand.u32 4294901760, %v27881_v5  ;;  %v11804_v39 = vand.u32 4294901760, %v11803_v11  ;;  %v11831_v60 = vsub.f32 %v27917_v13, %v11830_v41  ;;  %v22114_v12 = vpack.c.bf16 %v11830_v41, %v11823_v31 }
0x1286   : > { %v27895_v57 = vand.u32 4294901760, %v27889_v3  ;;  %v28705_v41 = vand.u32 4294901760, %v27812_v24  ;;  %v12376_v24 = vld [vmem:[#allocation5 + $0x4e0] sm:$0xff] }
0x1287   : > { %v27906_v1 = vsub.f32 %v27881_v5, %v27892_v6  ;;  %v22010_v0 = vpack.c.bf16 %v11804_v39, %v11797_v17  ;;  %v11825_v17 = vand.u32 4294901760, %v11824_v10  ;;  %v11832_v39 = vand.u32 4294901760, %v11831_v60  ;;  %v27959_v60 = vld [vmem:[#allocation5 + $0x480] sm:$0xff]  ;;  %v27961_v10 = vld [vmem:[#allocation5 + $0x488] sm:$0xff] }
0x1288   : > { %v27921_v21 = vsub.f32 %v27889_v3, %v27895_v57  ;;  %v12422_v19 = vand.u32 4294901760, %v12376_v24 }
0x1289   : > { %v11770_v55 = vand.u32 4294901760, %v27906_v1  ;;  %v22018_v42 = vpack.c.bf16 %v11832_v39, %v11825_v17  ;;  %v27993_v17 = vld [vmem:[#allocation5 + $0x4b0] sm:$0xff]  ;;  %v27995_v39 = vld [vmem:[#allocation5 + $0x4b8] sm:$0xff] }
0x128a   : > { %v11760_v53 = vand.u32 4294901760, %v27921_v21 }
0x128b   : > { %v11771_v20 = vsub.f32 %v27906_v1, %v11770_v55 }
0x128c   : > { %v11761_v22 = vsub.f32 %v27921_v21, %v11760_v53 }
0x128d   : > { %v11772_v62 = vand.u32 4294901760, %v11771_v20 }
0x128e   : > { %v11762_v11 = vand.u32 4294901760, %v11761_v22  ;;  %v22014_v22 = vpack.c.bf16 %v11818_v49, %v11811_v40  ;;  %v27963_v49 = vld [vmem:[#allocation5 + $0x490] sm:$0xff]  ;;  %v27969_v40 = vld [vmem:[#allocation5 + $0x498] sm:$0xff] }
0x1290   : > { %18514 = vmatprep.mubr.f32.mxu0 %v11762_v11 }
0x1291   : > { %18515 = vmatmul.mubr.f32.vlgmr.msra.gmra.mrb[8].mxu0 %v11772_v62  ;;  %v28554_v62 = vand.u32 4294901760, %v27961_v10 }
0x1292   : > { %22009 = vmatpush3.bf16.msra.mxu0 %v27781_v2  ;;  %18549 = vmatprep.mubr.f32.mxu0 %v27895_v57  ;;  %v22042_v2 = vpack.c.bf16 %v27871_v35, %v27866_v48  ;;  %v28704_v35 = vand.u32 4294901760, %v27810_v14 }
0x1293   : > { %22011 = vmatprep.subr.bf16.mxu0 %v22010_v0 }
0x1296   : > { %22013 = vmatpush3.bf16.msra.mxu0 %v22010_v0  ;;  %v27972_v0 = vld [vmem:[#allocation5 + $0x4a0] sm:$0xff] }
0x1297   : > { %22015 = vmatprep.subr.bf16.mxu0 %v22014_v22  ;;  %v12398_v23 = vand.u32 4294901760, %v27972_v0 }
0x129a   : > { %22017 = vmatpush3.bf16.msra.mxu0 %v22014_v22 }
0x129b   : > { %22019 = vmatprep.subr.bf16.mxu0 %v22018_v42 }
0x129e   : > { %22021 = vmatpush3.bf16.msra.mxu0 %v22018_v42  ;;  %v22050_v42 = vpack.c.bf16 %v27917_v13, %v27912_v7 }
0x129f   : > { %22023 = vmatprep.subr.bf16.mxu0 %v27802_v9 }
0x12a2   : > { %22025 = vmatpush3.bf16.msra.mxu0 %v27802_v9  ;;  %v12386_v9 = vand.u32 4294901760, %v27959_v60 }
0x12a3   : > { %22027 = vmatprep.subr.bf16.mxu0 %v27816_v47 }
0x12a4   : > { %v27983_v20 = vpack.c.bf16 %v28554_v62, %v12386_v9 }
0x12a6   : > { %22029 = vmatpush3.bf16.msra.mxu0 %v27816_v47  ;;  %v28553_v47 = vand.u32 4294901760, %v27963_v49  ;;  %22167 = vmatprep.subr.bf16.mxu1 %v27983_v20 }
0x12a7   : > { %22031 = vmatprep.subr.bf16.mxu0 %v27836_v50  ;;  %22169 = vmatpush3.bf16.msra.mxu1 %v27983_v20 }
0x12aa   : > { %22033 = vmatpush3.bf16.msra.mxu0 %v27836_v50  ;;  %v27974_v50 = vld [vmem:[#allocation5 + $0x4a8] sm:$0xff] }
0x12ab   : > { %22035 = vmatprep.subr.bf16.mxu0 %v27838_v29  ;;  %v12401_v11 = vand.u32 4294901760, %v27974_v50 }
0x12ae   : > { %22037 = vmatpush3.bf16.msra.mxu0 %v27838_v29  ;;  %v22046_v29 = vpack.c.bf16 %v27886_v56, %v27878_v16  ;;  %v28115_v16 = vsub.f32 %v27959_v60, %v12386_v9  ;;  %v28708_v56 = vand.u32 4294901760, %v27961_v10 }
0x12af   : > { %22039 = vmatprep.subr.bf16.mxu0 %v27842_v44 }
0x12b0   : > { %v12489_v7 = vand.u32 4294901760, %v28115_v16 }
0x12b1   : > { %18550 = vmatmul.mubr.f32.vlgmr.msra.gmra.mrb[8].mxu0 %v27892_v6 }
0x12b2   : > { %22041 = vmatpush3.bf16.msra.mxu0 %v27842_v44  ;;  %18584 = vmatprep.mubr.f32.mxu0 %v27921_v21  ;;  %v28552_v44 = vand.u32 4294901760, %v27969_v40 }
0x12b3   : > { %22043 = vmatprep.subr.bf16.mxu0 %v22042_v2 }
0x12b4   : > { %v27991_v22 = vpack.c.bf16 %v28552_v44, %v28553_v47  ;;  %v28006_v44 = vpack.c.bf16 %v12401_v11, %v12398_v23  ;;  %v12404_v47 = vand.u32 4294901760, %v27993_v17 }
0x12b6   : > { %22045 = vmatpush3.bf16.msra.mxu0 %v22042_v2  ;;  %22171 = vmatprep.subr.bf16.mxu1 %v27991_v22  ;;  %v12407_v2 = vand.u32 4294901760, %v27995_v39 }
0x12b7   : > { %22047 = vmatprep.subr.bf16.mxu0 %v22046_v29  ;;  %22173 = vmatpush3.bf16.msra.mxu1 %v27991_v22 }
0x12b8   : > { %22175 = vmatprep.subr.bf16.mxu1 %v28006_v44  ;;  %v28016_v62 = vpack.c.bf16 %v12407_v2, %v12404_v47 }
0x12ba   : > { %22049 = vmatpush3.bf16.msra.mxu0 %v22046_v29 }
0x12bb   : > { %22051 = vmatprep.subr.bf16.mxu0 %v22050_v42  ;;  %22177 = vmatpush3.bf16.msra.mxu1 %v28006_v44 }
0x12bc   : > { %22179 = vmatprep.subr.bf16.mxu1 %v28016_v62 }
0x12be   : > { %22053 = vmatpush3.bf16.msra.mxu0 %v22050_v42 }
0x12bf   : > { %22055 = vmatprep.subr.bf16.mxu0 %v27846_v54  ;;  %22181 = vmatpush3.bf16.msra.mxu1 %v28016_v62 }
0x12c2   : > { %22057 = vmatpush3.bf16.msra.mxu0 %v27846_v54  ;;  %v22102_v54 = vpack.c.bf16 %v11788_v26, %v11781_v38  ;;  %v28701_v38 = vand.u32 4294901760, %v27786_v52  ;;  %v28707_v52 = vand.u32 4294901760, %v27823_v25 }
0x12c3   : > { %22059 = vmatprep.subr.bf16.mxu0 %v27850_v8 }
0x12c4   : > { %v22118_v26 = vpack.c.bf16 %v28701_v38, %v11837_v32  ;;  %v22130_v32 = vpack.c.bf16 %v28707_v52, %v28706_v27  ;;  %v28165_v27 = vsub.f32 %v12376_v24, %v12422_v19 }
0x12c6   : > { %22061 = vmatpush3.bf16.msra.mxu0 %v27850_v8  ;;  %v22106_v8 = vpack.c.bf16 %v11802_v46, %v11795_v63  ;;  %v22126_v63 = vpack.c.bf16 %v28705_v41, %v28704_v35 }
0x12c7   : > { %22063 = vmatprep.subr.bf16.mxu0 %v27854_v51 }
0x12ca   : > { %22065 = vmatpush3.bf16.msra.mxu0 %v27854_v51  ;;  %v28702_v51 = vand.u32 4294901760, %v27796_v45 }
0x12cb   : > { %22067 = vmatprep.subr.bf16.mxu0 %v27858_v30 }
0x12ce   : > { %22069 = vmatpush3.bf16.msra.mxu0 %v27858_v30  ;;  %v28703_v30 = vand.u32 4294901760, %v27798_v61  ;;  %v12375_v61 = vld [vmem:[#allocation5 + $0x4d8] sm:$0xff] }
0x12cf   : > { %22071 = vmatprep.subr.bf16.mxu0 %v27630_v4  ;;  %v12419_v14 = vand.u32 4294901760, %v12375_v61 }
0x12d0   : > { %v22122_v48 = vpack.c.bf16 %v28703_v30, %v28702_v51 }
0x12d1   : > { %18585 = vmatmul.mubr.f32.vlgmr.msra.gmra.mrb[8].mxu0 %v27906_v1  ;;  %v28153_v38 = vsub.f32 %v12375_v61, %v12419_v14 }
0x12d2   : > { %22073 = vmatpush3.bf16.msra.mxu0 %v27630_v4  ;;  %18619 = vmatprep.mubr.f32.mxu0 %v11760_v53 }
0x12d3   : > { %22075 = vmatprep.subr.bf16.mxu0 %v27638_v58 }
0x12d6   : > { %22077 = vmatpush3.bf16.msra.mxu0 %v27638_v58 }
0x12d7   : > { %22079 = vmatprep.subr.bf16.mxu0 %v27653_v59 }
0x12da   : > { %22081 = vmatpush3.bf16.msra.mxu0 %v27653_v59 }
0x12db   : > { %22083 = vmatprep.subr.bf16.mxu0 %v27665_v36 }
0x12de   : > { %22085 = vmatpush3.bf16.msra.mxu0 %v27665_v36 }
0x12df   : > { %22087 = vmatprep.subr.bf16.mxu0 %v27747_v18 }
0x12e2   : > { %22089 = vmatpush3.bf16.msra.mxu0 %v27747_v18 }
0x12e3   : > { %22091 = vmatprep.subr.bf16.mxu0 %v27751_v15 }
0x12e6   : > { %22093 = vmatpush3.bf16.msra.mxu0 %v27751_v15 }
0x12e7   : > { %22095 = vmatprep.subr.bf16.mxu0 %v27755_v43 }
0x12ea   : > { %22097 = vmatpush3.bf16.msra.mxu0 %v27755_v43 }
0x12eb   : > { %22099 = vmatprep.subr.bf16.mxu0 %v27771_v34 }
0x12ee   : > { %22101 = vmatpush3.bf16.msra.mxu0 %v27771_v34 }
0x12ef   : > { %22103 = vmatprep.subr.bf16.mxu0 %v22102_v54 }
0x12f1   : > { %18620 = vmatmul.mubr.f32.vlgmr.msra.gmra.mrb[8].mxu0 %v11770_v55  ;;  %v12490_v55 = vsub.f32 %v28115_v16, %v12489_v7 }
0x12f2   : > { %22105 = vmatpush3.bf16.msra.mxu0 %v22102_v54  ;;  %18654 = vmatprep.mubr.f32.mxu0 %v27895_v57 }
0x12f3   : > { %22107 = vmatprep.subr.bf16.mxu0 %v22106_v8  ;;  %v12491_v31 = vand.u32 4294901760, %v12490_v55 }
0x12f6   : > { %22109 = vmatpush3.bf16.msra.mxu0 %v22106_v8 }
0x12f7   : > { %22111 = vmatprep.subr.bf16.mxu0 %v22110_v37 }
0x12fa   : > { %22113 = vmatpush3.bf16.msra.mxu0 %v22110_v37 }
0x12fb   : > { %22115 = vmatprep.subr.bf16.mxu0 %v22114_v12 }
0x12fe   : > { %22117 = vmatpush3.bf16.msra.mxu0 %v22114_v12 }
0x12ff   : > { %22119 = vmatprep.subr.bf16.mxu0 %v22118_v26 }
0x1302   : > { %22121 = vmatpush3.bf16.msra.mxu0 %v22118_v26 }
0x1303   : > { %22123 = vmatprep.subr.bf16.mxu0 %v22122_v48 }
0x1306   : > { %22125 = vmatpush3.bf16.msra.mxu0 %v22122_v48  ;;  %v28559_v48 = vand.u32 4294901760, %v28153_v38 }
0x1307   : > { %22127 = vmatprep.subr.bf16.mxu0 %v22126_v63 }
0x130a   : > { %22129 = vmatpush3.bf16.msra.mxu0 %v22126_v63  ;;  %v12567_v63 = vsub.f32 %v28153_v38, %v28559_v48 }
0x130b   : > { %22131 = vmatprep.subr.bf16.mxu0 %v22130_v32 }
0x130e   : > { %22133 = vmatpush3.bf16.msra.mxu0 %v22130_v32 }
0x130f   : > { %22135 = vmatprep.subr.bf16.mxu0 %v27630_v4 }
0x1311   : > { %18655 = vmatmul.mubr.f32.vlgmr.msra.gmra.mrb[8].mxu0 %v27892_v6 }
0x1312   : > { %22137 = vmatpush3.bf16.msra.mxu0 %v27630_v4  ;;  %18689 = vmatprep.mubr.f32.mxu0 %v27895_v57  ;;  %v12378_v57 = vld [vmem:[#allocation5 + $0x4f0] sm:$0xff] }
0x1313   : > { %22139 = vmatprep.subr.bf16.mxu0 %v27638_v58  ;;  %v12428_v1 = vand.u32 4294901760, %v12378_v57 }
0x1315   : > { %v28126_v21 = vpack.c.bf16 %v12431_v33, %v12428_v1  ;;  %v28176_v61 = vsub.f32 %v12378_v57, %v12428_v1 }
0x1316   : > { %22141 = vmatpush3.bf16.msra.mxu0 %v27638_v58 }
0x1317   : > { %22143 = vmatprep.subr.bf16.mxu0 %v27653_v59 }
0x131a   : > { %22145 = vmatpush3.bf16.msra.mxu0 %v27653_v59  ;;  %v12372_v59 = vld [vmem:[#allocation5 + $0x4c0] sm:$0xff] }
0x131b   : > { %22147 = vmatprep.subr.bf16.mxu0 %v27665_v36  ;;  %v12410_v4 = vand.u32 4294901760, %v12372_v59 }
0x131d   : > { %v28139_v9 = vsub.f32 %v12372_v59, %v12410_v4  ;;  %v12568_v59 = vand.u32 4294901760, %v12567_v63  ;;  %v28710_v63 = vand.u32 4294901760, %v27969_v40 }
0x131e   : > { %22149 = vmatpush3.bf16.msra.mxu0 %v27665_v36  ;;  %v12373_v36 = vld [vmem:[#allocation5 + $0x4c8] sm:$0xff] }
0x131f   : > { %22151 = vmatprep.subr.bf16.mxu0 %v27747_v18  ;;  %v12413_v58 = vand.u32 4294901760, %v12373_v36  ;;  %v12545_v42 = vand.u32 4294901760, %v28139_v9 }
0x1321   : > { %v28102_v45 = vpack.c.bf16 %v12413_v58, %v12410_v4  ;;  %v28141_v29 = vsub.f32 %v12373_v36, %v12413_v58  ;;  %v12546_v8 = vsub.f32 %v28139_v9, %v12545_v42  ;;  %v28558_v36 = vand.u32 4294901760, %v28165_v27 }
0x1322   : > { %22153 = vmatpush3.bf16.msra.mxu0 %v27747_v18  ;;  %v12374_v18 = vld [vmem:[#allocation5 + $0x4d0] sm:$0xff] }
0x1323   : > { %22155 = vmatprep.subr.bf16.mxu0 %v27751_v15  ;;  %22183 = vmatprep.subr.bf16.mxu1 %v28102_v45  ;;  %v28561_v54 = vand.u32 4294901760, %v28141_v29  ;;  %v12547_v26 = vand.u32 4294901760, %v12546_v8 }
0x1324   : > { %22185 = vmatpush3.bf16.msra.mxu1 %v28102_v45 }
0x1325   : > { %v12553_v37 = vsub.f32 %v28141_v29, %v28561_v54 }
0x1326   : > { %22157 = vmatpush3.bf16.msra.mxu0 %v27751_v15  ;;  %v12416_v15 = vand.u32 4294901760, %v12374_v18 }
0x1327   : > { %22159 = vmatprep.subr.bf16.mxu0 %v27755_v43  ;;  %v12554_v51 = vand.u32 4294901760, %v12553_v37 }
0x1328   : > { %v28151_v12 = vsub.f32 %v12374_v18, %v12416_v15  ;;  %v12574_v18 = vsub.f32 %v28165_v27, %v28558_v36 }
0x1329   : > { %v28157_v35 = vpack.c.bf16 %v12554_v51, %v12547_v26  ;;  %v13174_v26 = vld [vmem:[%s28404_s2 + $0x4] ss:$0 sm:$0xff]  ;;  %v28709_v51 = vand.u32 4294901760, %v27963_v49 }
0x132a   : > { %22161 = vmatpush3.bf16.msra.mxu0 %v27755_v43  ;;  %v28106_v43 = vpack.c.bf16 %v12419_v14, %v12416_v15  ;;  %v28560_v30 = vand.u32 4294901760, %v28151_v12  ;;  %v28178_v15 = vsub.f32 %v12379_v28, %v12431_v33  ;;  %v12575_v24 = vand.u32 4294901760, %v12574_v18 }
0x132b   : > { %22163 = vmatprep.subr.bf16.mxu0 %v27771_v34 }
0x132c   : > { %22187 = vmatprep.subr.bf16.mxu1 %v28106_v43  ;;  %v12560_v41 = vsub.f32 %v28151_v12, %v28560_v30  ;;  %v28213_v37 = vpack.c.bf16 %v28178_v15, %v28176_v61 }
0x132d   : > { %22189 = vmatpush3.bf16.msra.mxu1 %v28106_v43 }
0x132e   : > { %22165 = vmatpush3.bf16.msra.mxu0 %v27771_v34  ;;  %v12377_v34 = vld [vmem:[#allocation5 + $0x4e8] sm:$0xff]  ;;  %v12561_v32 = vand.u32 4294901760, %v12560_v41  ;;  %v28221_v41 = vsub.f32 %v27963_v49, %v28709_v51 }
0x132f   : > { %v12425_v25 = vand.u32 4294901760, %v12377_v34 }
0x1330   : > { %v28171_v58 = vpack.c.bf16 %v12568_v59, %v12561_v32  ;;  %v28226_v32 = vsub.f32 %v27969_v40, %v28710_v63 }
0x1331   : > { %18690 = vmatmul.mubr.f32.vlgmr.msra.gmra.mrb[8].mxu0 %v27892_v6  ;;  %v28110_v46 = vpack.c.bf16 %v12425_v25, %v12422_v19  ;;  %v28120_v6 = vsub.f32 %v27961_v10, %v28708_v56  ;;  %v28167_v52 = vsub.f32 %v12377_v34, %v12425_v25  ;;  %v28556_v34 = vand.u32 4294901760, %v28176_v61 }
0x1332   : > { %v28555_v19 = vand.u32 4294901760, %v28178_v15 }
0x1333   : > { %22191 = vmatprep.subr.bf16.mxu1 %v28110_v46  ;;  %v12496_v13 = vand.u32 4294901760, %v28120_v6  ;;  %v28557_v4 = vand.u32 4294901760, %v28167_v52  ;;  %v12588_v56 = vsub.f32 %v28176_v61, %v28556_v34  ;;  %v28209_v8 = vpack.c.bf16 %v28167_v52, %v28165_v27 }
0x1334   : > { %22193 = vmatpush3.bf16.msra.mxu1 %v28110_v46  ;;  %v12595_v57 = vsub.f32 %v28178_v15, %v28555_v19 }
0x1335   : > { %v12497_v53 = vsub.f32 %v28120_v6, %v12496_v13  ;;  %22195 = vmatprep.subr.bf16.mxu1 %v28126_v21  ;;  %v12581_v14 = vsub.f32 %v28167_v52, %v28557_v4  ;;  %v12589_v1 = vand.u32 4294901760, %v12588_v56  ;;  %v12510_v56 = vand.u32 4294901760, %v28226_v32 }
0x1336   : > { %v12596_v33 = vand.u32 4294901760, %v12595_v57  ;;  %v28233_v57 = vsub.f32 %v27972_v0, %v12398_v23 }
0x1337   : > { %v12498_v60 = vand.u32 4294901760, %v12497_v53  ;;  %v12582_v25 = vand.u32 4294901760, %v12581_v14  ;;  %v28197_v53 = vpack.c.bf16 %v28120_v6, %v28115_v16  ;;  %v12511_v0 = vsub.f32 %v28226_v32, %v12510_v56 }
0x1338   : > { %22197 = vmatpush3.bf16.msra.mxu1 %v28126_v21  ;;  %v28193_v55 = vpack.c.bf16 %v12596_v33, %v12589_v1  ;;  %v28238_v1 = vsub.f32 %v27974_v50, %v12401_v11  ;;  %v12517_v23 = vand.u32 4294901760, %v28233_v57  ;;  %v28258_v11 = vsub.f32 %v27993_v17, %v12404_v47 }
0x1339   : > { %v28136_v10 = vpack.c.bf16 %v12498_v60, %v12491_v31  ;;  %v28191_v28 = vpack.c.bf16 %v12582_v25, %v12575_v24  ;;  %v28201_v31 = vpack.c.bf16 %v28141_v29, %v28139_v9  ;;  %v28205_v60 = vpack.c.bf16 %v28153_v38, %v28151_v12 }
0x133a   : > { %v12503_v25 = vand.u32 4294901760, %v28221_v41  ;;  %v12524_v50 = vand.u32 4294901760, %v28238_v1  ;;  %v12512_v19 = vand.u32 4294901760, %v12511_v0  ;;  %v12518_v34 = vsub.f32 %v28233_v57, %v12517_v23 }
0x133b   : > { %22199 = vmatprep.subr.bf16.mxu1 %v28136_v10  ;;  %v28716_v9 = vand.u32 4294901760, %v28176_v61 }
0x133c   : > { %v12525_v17 = vsub.f32 %v28238_v1, %v12524_v50  ;;  %v12519_v4 = vand.u32 4294901760, %v12518_v34  ;;  %v22302_v16 = vpack.c.bf16 %v12524_v50, %v12517_v23 }
0x133e   : > { %v12526_v48 = vand.u32 4294901760, %v12525_v17 }
0x1404   : > { %v18691_v59 = vpop.f32.mrb[8].mxu0 }
0x1405   : > { %v22358_v18 = vadd.f32 %v18691_v59, %v13174_v26  ;;  %v12351_v14 = vpop.f32.mrb[9].mxu0  ;;  %v28263_v59 = vsub.f32 %v27995_v39, %v12407_v2  ;;  %v12531_v39 = vand.u32 4294901760, %v28258_v11 }
0x1406   : > { %v22359_v24 = vadd.f32 %v13174_v26, %v12351_v14  ;;  %v12504_v26 = vsub.f32 %v28221_v41, %v12503_v25 }
0x1407   : > { %v12362_v49 = vmax.f32 %v22358_v18, 0.0  ;;  %v12538_v2 = vand.u32 4294901760, %v28263_v59  ;;  %v12532_v30 = vsub.f32 %v28258_v11, %v12531_v39 }
0x1408   : > { %v12361_v40 = vmax.f32 %v22359_v24, 0.0 }
0x1409   : > { %v28240_v33 = vand.u32 4294901760, %v12362_v49  ;;  %v12539_v54 = vsub.f32 %v28263_v59, %v12538_v2  ;;  %v22306_v6 = vpack.c.bf16 %v12538_v2, %v12531_v39 }
0x140a   : > { %v28242_v51 = vand.u32 4294901760, %v12361_v40 }
0x140b   : > { %v28252_v63 = vsub.f32 %v12362_v49, %v28240_v33  ;;  %v12505_v49 = vand.u32 4294901760, %v12504_v26  ;;  %v12540_v34 = vand.u32 4294901760, %v12539_v54  ;;  %v22238_v54 = vpack.c.bf16 %v28238_v1, %v28233_v57 }
0x140c   : > { %v28266_v18 = vsub.f32 %v12361_v40, %v28242_v51 }
0x140d   : > { %v12478_v14 = vand.u32 4294901760, %v28252_v63  ;;  %v22202_v0 = vpack.c.bf16 %v12512_v19, %v12505_v49  ;;  %v12533_v19 = vand.u32 4294901760, %v12532_v30  ;;  %v22242_v30 = vpack.c.bf16 %v28263_v59, %v28258_v11 }
0x140e   : > { %v12468_v24 = vand.u32 4294901760, %v28266_v18 }
0x140f   : > { %v12479_v47 = vsub.f32 %v28252_v63, %v12478_v14  ;;  %v22210_v49 = vpack.c.bf16 %v12540_v34, %v12533_v19 }
0x1410   : > { %v12469_v40 = vsub.f32 %v28266_v18, %v12468_v24 }
0x1411   : > { %v12480_v36 = vand.u32 4294901760, %v12479_v47 }
0x1412   : > { %v12470_v26 = vand.u32 4294901760, %v12469_v40  ;;  %v22206_v40 = vpack.c.bf16 %v12526_v48, %v12519_v4  ;;  %v22294_v48 = vpack.c.bf16 %v12496_v13, %v12489_v7  ;;  %v28711_v7 = vand.u32 4294901760, %v28141_v29 }
0x1413   : > { %v28713_v4 = vand.u32 4294901760, %v28153_v38  ;;  %v28717_v29 = vand.u32 4294901760, %v28178_v15 }
0x1414   : > { %18724 = vmatprep.mubr.f32.mxu1 %v12470_v26  ;;  %v22310_v13 = vpack.c.bf16 %v28711_v7, %v12545_v42 }
0x1415   : > { %18725 = vmatmul.mubr.f32.vlgmr.msra.gmra.mrb[8].mxu1 %v12480_v36  ;;  %v28712_v36 = vand.u32 4294901760, %v28151_v12  ;;  %v22322_v42 = vpack.c.bf16 %v28717_v29, %v28716_v9 }
0x1416   : > { %22201 = vmatpush3.bf16.msra.mxu1 %v28136_v10  ;;  %18759 = vmatprep.mubr.f32.mxu1 %v28242_v51  ;;  %v22234_v10 = vpack.c.bf16 %v28226_v32, %v28221_v41 }
0x1417   : > { %22203 = vmatprep.subr.bf16.mxu1 %v22202_v0 }
0x141a   : > { %22205 = vmatpush3.bf16.msra.mxu1 %v22202_v0 }
0x141b   : > { %22207 = vmatprep.subr.bf16.mxu1 %v22206_v40 }
0x141e   : > { %22209 = vmatpush3.bf16.msra.mxu1 %v22206_v40 }
0x141f   : > { %22211 = vmatprep.subr.bf16.mxu1 %v22210_v49 }
0x1422   : > { %22213 = vmatpush3.bf16.msra.mxu1 %v22210_v49 }
0x1423   : > { %22215 = vmatprep.subr.bf16.mxu1 %v28157_v35 }
0x1426   : > { %22217 = vmatpush3.bf16.msra.mxu1 %v28157_v35  ;;  %v22298_v35 = vpack.c.bf16 %v12510_v56, %v12503_v25 }
0x1427   : > { %22219 = vmatprep.subr.bf16.mxu1 %v28171_v58 }
0x142a   : > { %22221 = vmatpush3.bf16.msra.mxu1 %v28171_v58  ;;  %v22314_v58 = vpack.c.bf16 %v28713_v4, %v28712_v36 }
0x142b   : > { %22223 = vmatprep.subr.bf16.mxu1 %v28191_v28 }
0x142e   : > { %22225 = vmatpush3.bf16.msra.mxu1 %v28191_v28  ;;  %v28714_v28 = vand.u32 4294901760, %v28165_v27 }
0x142f   : > { %22227 = vmatprep.subr.bf16.mxu1 %v28193_v55 }
0x1432   : > { %22229 = vmatpush3.bf16.msra.mxu1 %v28193_v55  ;;  %v28715_v55 = vand.u32 4294901760, %v28167_v52 }
0x1433   : > { %22231 = vmatprep.subr.bf16.mxu1 %v28197_v53 }
0x1435   : > { %18760 = vmatmul.mubr.f32.vlgmr.msra.gmra.mrb[8].mxu1 %v28240_v33 }
0x1436   : > { %22233 = vmatpush3.bf16.msra.mxu1 %v28197_v53  ;;  %18794 = vmatprep.mubr.f32.mxu1 %v28266_v18  ;;  %v22318_v53 = vpack.c.bf16 %v28715_v55, %v28714_v28 }
0x1437   : > { %22235 = vmatprep.subr.bf16.mxu1 %v22234_v10 }
0x143a   : > { %22237 = vmatpush3.bf16.msra.mxu1 %v22234_v10 }
0x143b   : > { %22239 = vmatprep.subr.bf16.mxu1 %v22238_v54 }
0x143e   : > { %22241 = vmatpush3.bf16.msra.mxu1 %v22238_v54 }
0x143f   : > { %22243 = vmatprep.subr.bf16.mxu1 %v22242_v30 }
0x1442   : > { %22245 = vmatpush3.bf16.msra.mxu1 %v22242_v30 }
0x1443   : > { %22247 = vmatprep.subr.bf16.mxu1 %v28201_v31 }
0x1446   : > { %22249 = vmatpush3.bf16.msra.mxu1 %v28201_v31 }
0x1447   : > { %22251 = vmatprep.subr.bf16.mxu1 %v28205_v60 }
0x144a   : > { %22253 = vmatpush3.bf16.msra.mxu1 %v28205_v60 }
0x144b   : > { %22255 = vmatprep.subr.bf16.mxu1 %v28209_v8 }
0x144e   : > { %22257 = vmatpush3.bf16.msra.mxu1 %v28209_v8 }
0x144f   : > { %22259 = vmatprep.subr.bf16.mxu1 %v28213_v37 }
0x1452   : > { %22261 = vmatpush3.bf16.msra.mxu1 %v28213_v37 }
0x1453   : > { %22263 = vmatprep.subr.bf16.mxu1 %v27983_v20 }
0x1455   : > { %18795 = vmatmul.mubr.f32.vlgmr.msra.gmra.mrb[8].mxu1 %v28252_v63 }
0x1456   : > { %22265 = vmatpush3.bf16.msra.mxu1 %v27983_v20  ;;  %18829 = vmatprep.mubr.f32.mxu1 %v12468_v24 }
0x1457   : > { %22267 = vmatprep.subr.bf16.mxu1 %v27991_v22 }
0x145a   : > { %22269 = vmatpush3.bf16.msra.mxu1 %v27991_v22 }
0x145b   : > { %22271 = vmatprep.subr.bf16.mxu1 %v28006_v44 }
0x145e   : > { %22273 = vmatpush3.bf16.msra.mxu1 %v28006_v44 }
0x145f   : > { %22275 = vmatprep.subr.bf16.mxu1 %v28016_v62 }
0x1462   : > { %22277 = vmatpush3.bf16.msra.mxu1 %v28016_v62 }
0x1463   : > { %22279 = vmatprep.subr.bf16.mxu1 %v28102_v45 }
0x1466   : > { %22281 = vmatpush3.bf16.msra.mxu1 %v28102_v45 }
0x1467   : > { %22283 = vmatprep.subr.bf16.mxu1 %v28106_v43 }
0x146a   : > { %22285 = vmatpush3.bf16.msra.mxu1 %v28106_v43 }
0x146b   : > { %22287 = vmatprep.subr.bf16.mxu1 %v28110_v46 }
0x146e   : > { %22289 = vmatpush3.bf16.msra.mxu1 %v28110_v46 }
0x146f   : > { %22291 = vmatprep.subr.bf16.mxu1 %v28126_v21 }
0x1472   : > { %22293 = vmatpush3.bf16.msra.mxu1 %v28126_v21 }
0x1473   : > { %22295 = vmatprep.subr.bf16.mxu1 %v22294_v48 }
0x1475   : > { %18830 = vmatmul.mubr.f32.vlgmr.msra.gmra.mrb[8].mxu1 %v12478_v14 }
0x1476   : > { %22297 = vmatpush3.bf16.msra.mxu1 %v22294_v48  ;;  %18864 = vmatprep.mubr.f32.mxu1 %v28242_v51 }
0x1477   : > { %22299 = vmatprep.subr.bf16.mxu1 %v22298_v35 }
0x147a   : > { %22301 = vmatpush3.bf16.msra.mxu1 %v22298_v35 }
0x147b   : > { %22303 = vmatprep.subr.bf16.mxu1 %v22302_v16 }
0x147e   : > { %22305 = vmatpush3.bf16.msra.mxu1 %v22302_v16 }
0x147f   : > { %22307 = vmatprep.subr.bf16.mxu1 %v22306_v6 }
0x1482   : > { %22309 = vmatpush3.bf16.msra.mxu1 %v22306_v6 }
0x1483   : > { %22311 = vmatprep.subr.bf16.mxu1 %v22310_v13 }
0x1486   : > { %22313 = vmatpush3.bf16.msra.mxu1 %v22310_v13 }
0x1487   : > { %22315 = vmatprep.subr.bf16.mxu1 %v22314_v58 }
0x148a   : > { %22317 = vmatpush3.bf16.msra.mxu1 %v22314_v58 }
0x148b   : > { %22319 = vmatprep.subr.bf16.mxu1 %v22318_v53 }
0x148e   : > { %22321 = vmatpush3.bf16.msra.mxu1 %v22318_v53 }
0x148f   : > { %22323 = vmatprep.subr.bf16.mxu1 %v22322_v42 }
0x1492   : > { %22325 = vmatpush3.bf16.msra.mxu1 %v22322_v42 }
0x1493   : > { %22327 = vmatprep.subr.bf16.mxu1 %v27983_v20 }
0x1495   : > { %18865 = vmatmul.mubr.f32.vlgmr.msra.gmra.mrb[8].mxu1 %v28240_v33 }
0x1496   : > { %22329 = vmatpush3.bf16.msra.mxu1 %v27983_v20  ;;  %18899 = vmatprep.mubr.f32.mxu1 %v28242_v51 }
0x1497   : > { %22331 = vmatprep.subr.bf16.mxu1 %v27991_v22 }
0x149a   : > { %22333 = vmatpush3.bf16.msra.mxu1 %v27991_v22 }
0x149b   : > { %22335 = vmatprep.subr.bf16.mxu1 %v28006_v44 }
0x149e   : > { %22337 = vmatpush3.bf16.msra.mxu1 %v28006_v44 }
0x149f   : > { %22339 = vmatprep.subr.bf16.mxu1 %v28016_v62 }
0x14a2   : > { %22341 = vmatpush3.bf16.msra.mxu1 %v28016_v62  ;;  %v13175_v62 = vld [vmem:[%s28406_s4 + $0x4] ss:$0 sm:$0xff] }
0x14a3   : > { %22343 = vmatprep.subr.bf16.mxu1 %v28102_v45 }
0x14a6   : > { %22345 = vmatpush3.bf16.msra.mxu1 %v28102_v45 }
0x14a7   : > { %22347 = vmatprep.subr.bf16.mxu1 %v28106_v43 }
0x14aa   : > { %22349 = vmatpush3.bf16.msra.mxu1 %v28106_v43 }
0x14ab   : > { %22351 = vmatprep.subr.bf16.mxu1 %v28110_v46 }
0x14ae   : > { %22353 = vmatpush3.bf16.msra.mxu1 %v28110_v46 }
0x14af   : > { %22355 = vmatprep.subr.bf16.mxu1 %v28126_v21 }
0x14b2   : > { %22357 = vmatpush3.bf16.msra.mxu1 %v28126_v21 }
0x14b5   : > { %18900 = vmatmul.mubr.f32.vlgmr.msra.gmra.mrb[8].mxu1 %v28240_v33 }
0x1588   : > { %v18901_v44 = vpop.f32.mrb[8].mxu1 }
0x1589   : > { %v22360_v20 = vadd.f32 %v18901_v44, %v13175_v62  ;;  %v13059_v22 = vpop.f32.mrb[9].mxu1 }
0x158a   : > { %v22361_v45 = vadd.f32 %v13175_v62, %v13059_v22 }
0x158b   : > { %v13070_v12 = vmax.f32 %v22360_v20, 0.0 }
0x158c   : > { %v13069_v43 = vmax.f32 %v22361_v45, 0.0 }
0x158d   : > { %v13072_v21 = vadd.f32 %v13070_v12, %v27881_v5 }
0x158e   : > { %v13071_v46 = vadd.f32 %v13069_v43, %v27889_v3 }
0x158f   : > { %13074 = vst.msk [vmem:[%s256_s30 + $0x8] sm:$0xff] %vm262_vm0, %v13072_v21 }
0x1590   : > { %13073 = vst.msk [vmem:[%s256_s30] sm:$0xff] %vm262_vm0, %v13071_v46 }
0x1591 PF: > { %s17_s18 = sadd.s32 1, %s22662_s18  }
0x1592   : > { %p14_p5 = scmp.ge.s32.totalorder %s17_s18, 4  }
0x1594   :  { %16 = sbr.rel (!%p14_p5) target bundleno = 2 (0x2), region = 95 }
0x159b   :  { %13097 = vsyncpa [#allocation4], 1 }
0x159c   :  { %13099 = vsyncpa [#allocation4 + $0x1], 1 }
0x159d   :  { %13100 = vsyncpa [#allocation6], 1 }

</bundles_post_ra>
